<compile_context>
chip_gen: v7x
topology: tpu7x:2x2x1
jax: 0.10.0
libtpu: 0.0.40
codegen_flags: <defaults>
</compile_context>

<pallas_src>
import functools

import jax
import jax.numpy as jnp
from jax.experimental import pallas as pl
from jax.experimental.pallas import tpu as pltpu


_HALO = 128  # lane-aligned zero halo used for the on-chip shifted copies


# ---------------------------------------------------------------------------
# On-chip 3x3 "same" convolution on a flattened (Cin, H*W) activation value.
# ---------------------------------------------------------------------------
def _conv3x3_onchip(x, wmat, bias, *, W, lrelu):
    """x: (Cin, H*W) f32 value, wmat: (Cout, 9*Cin), bias: (Cout, 1).

    Computes a 3x3 / stride-1 / pad-1 convolution as an MXU matmul over an
    im2col patch built on-chip: for tap (dh, dw) the flat-shifted image
    x[p + dh*W + dw] is read from a zero lane-halo (handles the top/bottom
    halo) and column-masked (handles the left/right halo).
    """
    Cin, HW = x.shape
    Cout = wmat.shape[0]

    zeros = jnp.zeros((Cin, _HALO), x.dtype)
    xp = jnp.concatenate([zeros, x, zeros], axis=1)          # (Cin, HW + 2*_HALO)
    lane = jax.lax.broadcasted_iota(jnp.int32, (1, HW), 1)
    col = lane % W                                           # j of flat position p

    pieces = []
    for dh in (-1, 0, 1):
        for dw in (-1, 0, 1):
            off = dh * W + dw
            s = xp[:, _HALO + off:_HALO + off + HW]          # x[p+off] (0 in halo)
            if dw != 0:
                ok = jnp.logical_and(col + dw >= 0, col + dw < W)
                s = jnp.where(ok, s, 0.0)
            pieces.append(s)

    if Cin % 8 == 0:
        # Single merged K = 9*Cin contraction (sublane-aligned concat).
        patch = jnp.concatenate(pieces, axis=0)              # (9*Cin, H*W)
        acc = jnp.dot(wmat, patch, preferred_element_type=jnp.float32)
    else:
        # Cin not sublane-aligned (only conv_first, Cin=3): accumulate 9 dots.
        acc = jnp.zeros((Cout, HW), jnp.float32)
        for t, s in enumerate(pieces):
            acc = acc + jnp.dot(wmat[:, t * Cin:(t + 1) * Cin], s,
                                preferred_element_type=jnp.float32)

    acc = acc + bias                                         # (Cout, 1) bcast
    if lrelu:
        acc = jnp.where(acc >= 0.0, acc, 0.2 * acc)
    return acc


# ---------------------------------------------------------------------------
# Pallas kernels
# ---------------------------------------------------------------------------
def _conv_kernel(x_ref, w_ref, b_ref, o_ref, *, W, lrelu):
    o_ref[...] = _conv3x3_onchip(
        x_ref[...], w_ref[...], b_ref[...], W=W, lrelu=lrelu
    ).astype(o_ref.dtype)


def _conv_res_kernel(x_ref, res_ref, w_ref, b_ref, o_ref, *, W, lrelu, res_scale):
    y = _conv3x3_onchip(x_ref[...], w_ref[...], b_ref[...], W=W, lrelu=lrelu)
    y = y + res_scale * res_ref[...]                         # fused residual add
    o_ref[...] = y.astype(o_ref.dtype)


def _rdb_kernel(*refs, W, has_res2):
    """Whole ResidualDenseBlock (+ optional fused RRDB residual) in one call."""
    i = 0
    x_ref = refs[i]; i += 1
    res2_ref = None
    if has_res2:
        res2_ref = refs[i]; i += 1
    (w1, b1, w2, b2, w3, b3, w4, b4, w5, b5) = refs[i:i + 10]
    o_ref = refs[i + 10]

    x = x_ref[...]                                           # (nf, H*W) f32
    x1 = _conv3x3_onchip(x, w1[...], b1[...], W=W, lrelu=True)
    cat = jnp.concatenate([x, x1], axis=0)
    x2 = _conv3x3_onchip(cat, w2[...], b2[...], W=W, lrelu=True)
    cat = jnp.concatenate([cat, x2], axis=0)
    x3 = _conv3x3_onchip(cat, w3[...], b3[...], W=W, lrelu=True)
    cat = jnp.concatenate([cat, x3], axis=0)
    x4 = _conv3x3_onchip(cat, w4[...], b4[...], W=W, lrelu=True)
    cat = jnp.concatenate([cat, x4], axis=0)
    x5 = _conv3x3_onchip(cat, w5[...], b5[...], W=W, lrelu=False)

    y = x5 * 0.2 + x                                         # RDB residual
    if has_res2:
        y = y * 0.2 + res2_ref[...]                          # fused RRDB residual
    o_ref[...] = y.astype(o_ref.dtype)


# ---------------------------------------------------------------------------
# Wrappers (activations kept flat as (B, C, H*W) between calls)
# ---------------------------------------------------------------------------
def _prep_w(w_hwio):
    """(3, 3, Cin, Cout) HWIO -> (Cout, 9*Cin), tap-major / channel-minor."""
    kh, kw, cin, cout = w_hwio.shape
    return jnp.transpose(w_hwio, (3, 0, 1, 2)).reshape(cout, kh * kw * cin)


def _act_spec(C, HW):
    return pl.BlockSpec((None, C, HW), lambda b: (b, 0, 0))


def _w_spec(cout, cin):
    return pl.BlockSpec((cout, 9 * cin), lambda b: (0, 0))


def _b_spec(cout):
    return pl.BlockSpec((cout, 1), lambda b: (0, 0))


def conv3x3(x, w, b, *, W, lrelu=False, res=None, res_scale=1.0):
    """x: (B, Cin, H*W); w: (3,3,Cin,Cout) HWIO; b: (Cout,); res: (B, Cout, H*W)."""
    B, Cin, HW = x.shape
    Cout = w.shape[-1]

    inputs = [x]
    in_specs = [_act_spec(Cin, HW)]
    if res is not None:
        inputs.append(res)
        in_specs.append(_act_spec(Cout, HW))
    inputs += [_prep_w(w), b.reshape(Cout, 1)]
    in_specs += [_w_spec(Cout, Cin), _b_spec(Cout)]

    if res is None:
        kernel = functools.partial(_conv_kernel, W=W, lrelu=lrelu)
    else:
        kernel = functools.partial(_conv_res_kernel, W=W, lrelu=lrelu,
                                   res_scale=res_scale)

    return pl.pallas_call(
        kernel,
        out_shape=jax.ShapeDtypeStruct((B, Cout, HW), x.dtype),
        grid_spec=pltpu.PrefetchScalarGridSpec(
            num_scalar_prefetch=0,
            grid=(B,),
            in_specs=in_specs,
            out_specs=_act_spec(Cout, HW),
        ),
        compiler_params=pltpu.CompilerParams(
            dimension_semantics=("parallel",)),
    )(*inputs)


def rdb_block(x, p, *, W, res2=None):
    """Whole ResidualDenseBlock as one pallas_call (weights resident in VMEM)."""
    B, nf, HW = x.shape

    inputs = [x]
    in_specs = [_act_spec(nf, HW)]
    if res2 is not None:
        inputs.append(res2)
        in_specs.append(_act_spec(nf, HW))
    for name in ("c1", "c2", "c3", "c4", "c5"):
        w, b = p[name]["w"], p[name]["b"]
        cin, cout = w.shape[2], w.shape[3]
        inputs += [_prep_w(w), b.reshape(cout, 1)]
        in_specs += [_w_spec(cout, cin), _b_spec(cout)]

    kernel = functools.partial(_rdb_kernel, W=W, has_res2=(res2 is not None))

    return pl.pallas_call(
        kernel,
        out_shape=jax.ShapeDtypeStruct((B, nf, HW), x.dtype),
        grid_spec=pltpu.PrefetchScalarGridSpec(
            num_scalar_prefetch=0,
            grid=(B,),
            in_specs=in_specs,
            out_specs=_act_spec(nf, HW),
        ),
        compiler_params=pltpu.CompilerParams(
            dimension_semantics=("parallel",)),
    )(*inputs)


# ---------------------------------------------------------------------------
# Post_Processing forward (Pallas)
# ---------------------------------------------------------------------------
def post_processing_forward(x_nchw, params):
    B, Cin, H, W = x_nchw.shape
    x = x_nchw.reshape(B, Cin, H * W)                        # channels-major, flat

    fea = conv3x3(x, params["conv_first"]["w"], params["conv_first"]["b"], W=W)

    trunk = fea
    for rrdb_p in params["trunk"]:
        t = rdb_block(trunk, rrdb_p["rdb1"], W=W)
        trunk = rdb_block(t, rrdb_p["rdb2"], W=W, res2=trunk)   # fused *0.2 + skip

    # trunk_conv with the "fea + trunk" residual fused into its store.
    fea = conv3x3(trunk, params["trunk_conv"]["w"], params["trunk_conv"]["b"],
                  W=W, res=fea, res_scale=1.0)

    out = fea
    n_tail = len(params["tail"])
    for i, cp in enumerate(params["tail"]):
        out = conv3x3(out, cp["w"], cp["b"], W=W, lrelu=(i < n_tail - 1))

    return out.reshape(B, out.shape[1], H, W)                # back to NCHW


# ---------------------------------------------------------------------------
# Pure-XLA reference for correctness checking
# ---------------------------------------------------------------------------
def _conv3x3_ref(x, w, b, *, lrelu=False):
    y = jax.lax.conv_general_dilated(
        x, w, window_strides=(1, 1), padding=((1, 1), (1, 1)),
        dimension_numbers=("NCHW", "HWIO", "NCHW"))
    y = y + b.reshape(1, -1, 1, 1)
    if lrelu:
        y = jnp.where(y >= 0.0, y, 0.2 * y)
    return y


def post_processing_ref(x, params):
    def rdb(x, p):
        x1 = _conv3x3_ref(x, p["c1"]["w"], p["c1"]["b"], lrelu=True)
        x2 = _conv3x3_ref(jnp.concatenate([x, x1], 1),
                          p["c2"]["w"], p["c2"]["b"], lrelu=True)
        x3 = _conv3x3_ref(jnp.concatenate([x, x1, x2], 1),
                          p["c3"]["w"], p["c3"]["b"], lrelu=True)
        x4 = _conv3x3_ref(jnp.concatenate([x, x1, x2, x3], 1),
                          p["c4"]["w"], p["c4"]["b"], lrelu=True)
        x5 = _conv3x3_ref(jnp.concatenate([x, x1, x2, x3, x4], 1),
                          p["c5"]["w"], p["c5"]["b"])
        return x5 * 0.2 + x

    fea = _conv3x3_ref(x, params["conv_first"]["w"], params["conv_first"]["b"])
    trunk = fea
    for rp in params["trunk"]:
        t = rdb(trunk, rp["rdb1"])
        t = rdb(t, rp["rdb2"])
        trunk = t * 0.2 + trunk
    trunk = _conv3x3_ref(trunk, params["trunk_conv"]["w"], params["trunk_conv"]["b"])
    fea = fea + trunk
    out = fea
    n_tail = len(params["tail"])
    for i, cp in enumerate(params["tail"]):
        out = _conv3x3_ref(out, cp["w"], cp["b"], lrelu=(i < n_tail - 1))
    return out


# ---------------------------------------------------------------------------
# Deterministic parameter init (PyTorch-Conv2d-style uniform bounds, HWIO)
# ---------------------------------------------------------------------------
def _init_conv(key, cin, cout):
    kw, kb = jax.random.split(key)
    bound = 1.0 / (cin * 9) ** 0.5
    w = jax.random.uniform(kw, (3, 3, cin, cout), jnp.float32, -bound, bound)
    b = jax.random.uniform(kb, (cout,), jnp.float32, -bound, bound)
    return {"w": w, "b": b}


def _init_rdb(key, nf, gc):
    ks = jax.random.split(key, 5)
    return {
        "c1": _init_conv(ks[0], nf, gc),
        "c2": _init_conv(ks[1], nf + gc, gc),
        "c3": _init_conv(ks[2], nf + 2 * gc, gc),
        "c4": _init_conv(ks[3], nf + 3 * gc, gc),
        "c5": _init_conv(ks[4], nf + 4 * gc, nf),
    }


def _init_params(key, in_nc, out_nc, nf, nb, gc):
    keys = jax.random.split(key, nb + 6)
    params = {
        "conv_first": _init_conv(keys[0], in_nc, nf),
        "trunk": [],
        "trunk_conv": _init_conv(keys[1], nf, nf),
        "tail": [
            _init_conv(keys[2], nf, nf),
            _init_conv(keys[3], nf, nf),
            _init_conv(keys[4], nf, nf),
            _init_conv(keys[5], nf, out_nc),
        ],
    }
    for i in range(nb):
        k1, k2 = jax.random.split(keys[6 + i])
        params["trunk"].append(
            {"rdb1": _init_rdb(k1, nf, gc), "rdb2": _init_rdb(k2, nf, gc)})
    return params


if __name__ == "__main__":
    # small config: Post_Processing(in_nc=3, out_nc=3, nf=16, nb=1, gc=8)
    B, in_nc, out_nc, nf, nb, gc = 2, 3, 3, 16, 1, 8
    H = W = 16

    key = jax.random.PRNGKey(0)
    kx, kp = jax.random.split(key)
    x = jax.random.normal(kx, (B, in_nc, H, W), dtype=jnp.float32)
    params = _init_params(kp, in_nc, out_nc, nf, nb, gc)

    fwd = jax.jit(post_processing_forward)
    out = jax.block_until_ready(fwd(x, params))

    ref = jax.block_until_ready(jax.jit(post_processing_ref)(x, params))

    assert out.shape == (B, out_nc, H, W)
    # Kernel uses default (single-pass) MXU precision with f32 accumulation,
    # the XLA reference may use a different pass count -> loosened tolerance.
    assert jnp.allclose(out, ref, atol=5e-2, rtol=5e-2), \
        f"mismatch: {float(jnp.max(jnp.abs(out - ref)))}"

    print("KERNEL_OK")
</pallas_src>

<mosaic_0001>
module attributes {stable_mosaic.version = 11 : i64} {
  func.func @_conv_kernel(%arg0: i32, %arg1: memref<1x3x256xf32, #tpu.memory_space<vmem>>, %arg2: memref<16x27xf32, #tpu.memory_space<vmem>>, %arg3: memref<16x1xf32, #tpu.memory_space<vmem>>, %arg4: memref<1x16x256xf32, #tpu.memory_space<vmem>>) attributes {dimension_semantics = [#tpu.dimension_semantics<parallel>], iteration_bounds = array<i64: 2>, scalar_prefetch = 0 : i64, scratch_operands = 0 : i64, tpu.core_type = #tpu.core_type<tc>, window_params = [{transform_indices = @transform_0, window_bounds = array<i64: 1, 3, 256>}, {pipeline_mode = #tpu.pipeline_mode<synchronous>, transform_indices = @transform_1, window_bounds = array<i64: 16, 27>}, {pipeline_mode = #tpu.pipeline_mode<synchronous>, transform_indices = @transform_2, window_bounds = array<i64: 16, 1>}, {transform_indices = @transform_3, window_bounds = array<i64: 1, 16, 256>}]} {
    %c0 = arith.constant 0 : index
    %c0_0 = arith.constant 0 : index
    %c0_1 = arith.constant 0 : index
    %0 = vector.load %arg1[%c0, %c0_0, %c0_1] : memref<1x3x256xf32, #tpu.memory_space<vmem>>, vector<1x3x256xf32>
    %1 = vector.shape_cast %0 : vector<1x3x256xf32> to vector<3x256xf32>
    %c0_2 = arith.constant 0 : index
    %c0_3 = arith.constant 0 : index
    %2 = vector.load %arg2[%c0_2, %c0_3] : memref<16x27xf32, #tpu.memory_space<vmem>>, vector<16x27xf32>
    %c0_4 = arith.constant 0 : index
    %c0_5 = arith.constant 0 : index
    %3 = vector.load %arg3[%c0_4, %c0_5] : memref<16x1xf32, #tpu.memory_space<vmem>>, vector<16x1xf32>
    %cst = arith.constant 0.000000e+00 : f32
    %4 = vector.broadcast %cst : f32 to vector<3x128xf32>
    %5 = tpu.concatenate %4, %1, %4 in 1 : vector<3x128xf32>, vector<3x256xf32>, vector<3x128xf32> -> vector<3x512xf32>
    %6 = tpu.iota {dimensions = array<i32: 1>} : vector<1x256xi32>
    %c16_i32 = arith.constant 16 : i32
    %c0_i32 = arith.constant 0 : i32
    %7 = arith.cmpi eq, %c16_i32, %c0_i32 : i32
    %c1_i32 = arith.constant 1 : i32
    %8 = arith.select %7, %c1_i32, %c16_i32 : i32
    %9 = vector.broadcast %8 : i32 to vector<1x256xi32>
    %10 = arith.remsi %6, %9 : vector<1x256xi32>
    %c0_i32_6 = arith.constant 0 : i32
    %11 = vector.broadcast %c0_i32_6 : i32 to vector<1x256xi32>
    %12 = arith.cmpi ne, %10, %11 : vector<1x256xi32>
    %c0_i32_7 = arith.constant 0 : i32
    %13 = vector.broadcast %c0_i32_7 : i32 to vector<1x256xi32>
    %14 = arith.cmpi slt, %10, %13 : vector<1x256xi32>
    %c0_i32_8 = arith.constant 0 : i32
    %15 = arith.cmpi slt, %8, %c0_i32_8 : i32
    %16 = vector.broadcast %15 : i1 to vector<1x256xi1>
    %17 = vector.broadcast %16 : vector<1x256xi1> to vector<1x256xi1>
    %18 = arith.xori %14, %17 : vector<1x256xi1>
    %19 = arith.andi %18, %12 : vector<1x256xi1>
    %20 = vector.broadcast %8 : i32 to vector<1x256xi32>
    %21 = arith.addi %10, %20 : vector<1x256xi32>
    %22 = arith.select %19, %21, %10 : vector<1x256xi1>, vector<1x256xi32>
    %23 = vector.extract_strided_slice %5 {offsets = [0, 111], sizes = [3, 256], strides = [1, 1]} : vector<3x512xf32> to vector<3x256xf32>
    %c-1_i32 = arith.constant -1 : i32
    %24 = vector.broadcast %c-1_i32 : i32 to vector<1x256xi32>
    %25 = arith.addi %22, %24 : vector<1x256xi32>
    %c0_i32_9 = arith.constant 0 : i32
    %26 = vector.broadcast %c0_i32_9 : i32 to vector<1x256xi32>
    %27 = arith.cmpi sge, %25, %26 : vector<1x256xi32>
    %c-1_i32_10 = arith.constant -1 : i32
    %28 = vector.broadcast %c-1_i32_10 : i32 to vector<1x256xi32>
    %29 = arith.addi %22, %28 : vector<1x256xi32>
    %c16_i32_11 = arith.constant 16 : i32
    %30 = vector.broadcast %c16_i32_11 : i32 to vector<1x256xi32>
    %31 = arith.cmpi slt, %29, %30 : vector<1x256xi32>
    %32 = arith.andi %27, %31 : vector<1x256xi1>
    %cst_12 = arith.constant 0.000000e+00 : f32
    %33 = vector.shape_cast %32 : vector<1x256xi1> to vector<1x256xi1>
    %34 = vector.broadcast %33 : vector<1x256xi1> to vector<3x256xi1>
    %35 = vector.broadcast %cst_12 : f32 to vector<3x256xf32>
    %36 = arith.select %34, %23, %35 : vector<3x256xi1>, vector<3x256xf32>
    %37 = vector.extract_strided_slice %5 {offsets = [0, 112], sizes = [3, 256], strides = [1, 1]} : vector<3x512xf32> to vector<3x256xf32>
    %38 = vector.extract_strided_slice %5 {offsets = [0, 113], sizes = [3, 256], strides = [1, 1]} : vector<3x512xf32> to vector<3x256xf32>
    %c1_i32_13 = arith.constant 1 : i32
    %39 = vector.broadcast %c1_i32_13 : i32 to vector<1x256xi32>
    %40 = arith.addi %22, %39 : vector<1x256xi32>
    %c0_i32_14 = arith.constant 0 : i32
    %41 = vector.broadcast %c0_i32_14 : i32 to vector<1x256xi32>
    %42 = arith.cmpi sge, %40, %41 : vector<1x256xi32>
    %c1_i32_15 = arith.constant 1 : i32
    %43 = vector.broadcast %c1_i32_15 : i32 to vector<1x256xi32>
    %44 = arith.addi %22, %43 : vector<1x256xi32>
    %c16_i32_16 = arith.constant 16 : i32
    %45 = vector.broadcast %c16_i32_16 : i32 to vector<1x256xi32>
    %46 = arith.cmpi slt, %44, %45 : vector<1x256xi32>
    %47 = arith.andi %42, %46 : vector<1x256xi1>
    %cst_17 = arith.constant 0.000000e+00 : f32
    %48 = vector.shape_cast %47 : vector<1x256xi1> to vector<1x256xi1>
    %49 = vector.broadcast %48 : vector<1x256xi1> to vector<3x256xi1>
    %50 = vector.broadcast %cst_17 : f32 to vector<3x256xf32>
    %51 = arith.select %49, %38, %50 : vector<3x256xi1>, vector<3x256xf32>
    %52 = vector.extract_strided_slice %5 {offsets = [0, 127], sizes = [3, 256], strides = [1, 1]} : vector<3x512xf32> to vector<3x256xf32>
    %c-1_i32_18 = arith.constant -1 : i32
    %53 = vector.broadcast %c-1_i32_18 : i32 to vector<1x256xi32>
    %54 = arith.addi %22, %53 : vector<1x256xi32>
    %c0_i32_19 = arith.constant 0 : i32
    %55 = vector.broadcast %c0_i32_19 : i32 to vector<1x256xi32>
    %56 = arith.cmpi sge, %54, %55 : vector<1x256xi32>
    %c-1_i32_20 = arith.constant -1 : i32
    %57 = vector.broadcast %c-1_i32_20 : i32 to vector<1x256xi32>
    %58 = arith.addi %22, %57 : vector<1x256xi32>
    %c16_i32_21 = arith.constant 16 : i32
    %59 = vector.broadcast %c16_i32_21 : i32 to vector<1x256xi32>
    %60 = arith.cmpi slt, %58, %59 : vector<1x256xi32>
    %61 = arith.andi %56, %60 : vector<1x256xi1>
    %cst_22 = arith.constant 0.000000e+00 : f32
    %62 = vector.shape_cast %61 : vector<1x256xi1> to vector<1x256xi1>
    %63 = vector.broadcast %62 : vector<1x256xi1> to vector<3x256xi1>
    %64 = vector.broadcast %cst_22 : f32 to vector<3x256xf32>
    %65 = arith.select %63, %52, %64 : vector<3x256xi1>, vector<3x256xf32>
    %66 = vector.extract_strided_slice %5 {offsets = [0, 128], sizes = [3, 256], strides = [1, 1]} : vector<3x512xf32> to vector<3x256xf32>
    %67 = vector.extract_strided_slice %5 {offsets = [0, 129], sizes = [3, 256], strides = [1, 1]} : vector<3x512xf32> to vector<3x256xf32>
    %c1_i32_23 = arith.constant 1 : i32
    %68 = vector.broadcast %c1_i32_23 : i32 to vector<1x256xi32>
    %69 = arith.addi %22, %68 : vector<1x256xi32>
    %c0_i32_24 = arith.constant 0 : i32
    %70 = vector.broadcast %c0_i32_24 : i32 to vector<1x256xi32>
    %71 = arith.cmpi sge, %69, %70 : vector<1x256xi32>
    %c1_i32_25 = arith.constant 1 : i32
    %72 = vector.broadcast %c1_i32_25 : i32 to vector<1x256xi32>
    %73 = arith.addi %22, %72 : vector<1x256xi32>
    %c16_i32_26 = arith.constant 16 : i32
    %74 = vector.broadcast %c16_i32_26 : i32 to vector<1x256xi32>
    %75 = arith.cmpi slt, %73, %74 : vector<1x256xi32>
    %76 = arith.andi %71, %75 : vector<1x256xi1>
    %cst_27 = arith.constant 0.000000e+00 : f32
    %77 = vector.shape_cast %76 : vector<1x256xi1> to vector<1x256xi1>
    %78 = vector.broadcast %77 : vector<1x256xi1> to vector<3x256xi1>
    %79 = vector.broadcast %cst_27 : f32 to vector<3x256xf32>
    %80 = arith.select %78, %67, %79 : vector<3x256xi1>, vector<3x256xf32>
    %81 = vector.extract_strided_slice %5 {offsets = [0, 143], sizes = [3, 256], strides = [1, 1]} : vector<3x512xf32> to vector<3x256xf32>
    %c-1_i32_28 = arith.constant -1 : i32
    %82 = vector.broadcast %c-1_i32_28 : i32 to vector<1x256xi32>
    %83 = arith.addi %22, %82 : vector<1x256xi32>
    %c0_i32_29 = arith.constant 0 : i32
    %84 = vector.broadcast %c0_i32_29 : i32 to vector<1x256xi32>
    %85 = arith.cmpi sge, %83, %84 : vector<1x256xi32>
    %c-1_i32_30 = arith.constant -1 : i32
    %86 = vector.broadcast %c-1_i32_30 : i32 to vector<1x256xi32>
    %87 = arith.addi %22, %86 : vector<1x256xi32>
    %c16_i32_31 = arith.constant 16 : i32
    %88 = vector.broadcast %c16_i32_31 : i32 to vector<1x256xi32>
    %89 = arith.cmpi slt, %87, %88 : vector<1x256xi32>
    %90 = arith.andi %85, %89 : vector<1x256xi1>
    %cst_32 = arith.constant 0.000000e+00 : f32
    %91 = vector.shape_cast %90 : vector<1x256xi1> to vector<1x256xi1>
    %92 = vector.broadcast %91 : vector<1x256xi1> to vector<3x256xi1>
    %93 = vector.broadcast %cst_32 : f32 to vector<3x256xf32>
    %94 = arith.select %92, %81, %93 : vector<3x256xi1>, vector<3x256xf32>
    %95 = vector.extract_strided_slice %5 {offsets = [0, 144], sizes = [3, 256], strides = [1, 1]} : vector<3x512xf32> to vector<3x256xf32>
    %96 = vector.extract_strided_slice %5 {offsets = [0, 145], sizes = [3, 256], strides = [1, 1]} : vector<3x512xf32> to vector<3x256xf32>
    %c1_i32_33 = arith.constant 1 : i32
    %97 = vector.broadcast %c1_i32_33 : i32 to vector<1x256xi32>
    %98 = arith.addi %22, %97 : vector<1x256xi32>
    %c0_i32_34 = arith.constant 0 : i32
    %99 = vector.broadcast %c0_i32_34 : i32 to vector<1x256xi32>
    %100 = arith.cmpi sge, %98, %99 : vector<1x256xi32>
    %c1_i32_35 = arith.constant 1 : i32
    %101 = vector.broadcast %c1_i32_35 : i32 to vector<1x256xi32>
    %102 = arith.addi %22, %101 : vector<1x256xi32>
    %c16_i32_36 = arith.constant 16 : i32
    %103 = vector.broadcast %c16_i32_36 : i32 to vector<1x256xi32>
    %104 = arith.cmpi slt, %102, %103 : vector<1x256xi32>
    %105 = arith.andi %100, %104 : vector<1x256xi1>
    %cst_37 = arith.constant 0.000000e+00 : f32
    %106 = vector.shape_cast %105 : vector<1x256xi1> to vector<1x256xi1>
    %107 = vector.broadcast %106 : vector<1x256xi1> to vector<3x256xi1>
    %108 = vector.broadcast %cst_37 : f32 to vector<3x256xf32>
    %109 = arith.select %107, %96, %108 : vector<3x256xi1>, vector<3x256xf32>
    %cst_38 = arith.constant 0.000000e+00 : f32
    %110 = vector.broadcast %cst_38 : f32 to vector<16x256xf32>
    %111 = vector.extract_strided_slice %2 {offsets = [0, 0], sizes = [16, 3], strides = [1, 1]} : vector<16x27xf32> to vector<16x3xf32>
    %cst_39 = arith.constant dense<0.000000e+00> : vector<16x256xf32>
    %112 = tpu.matmul %111, %36, %cst_39 {dimension_numbers = #tpu.dot_dimension_numbers<[1], [0], [0], [1], [0, 0, 1, 1], [], []>} : vector<16x3xf32>, vector<3x256xf32>, vector<16x256xf32> -> vector<16x256xf32>
    %113 = arith.addf %110, %112 : vector<16x256xf32>
    %114 = vector.extract_strided_slice %2 {offsets = [0, 3], sizes = [16, 3], strides = [1, 1]} : vector<16x27xf32> to vector<16x3xf32>
    %cst_40 = arith.constant dense<0.000000e+00> : vector<16x256xf32>
    %115 = tpu.matmul %114, %37, %cst_40 {dimension_numbers = #tpu.dot_dimension_numbers<[1], [0], [0], [1], [0, 0, 1, 1], [], []>} : vector<16x3xf32>, vector<3x256xf32>, vector<16x256xf32> -> vector<16x256xf32>
    %116 = arith.addf %113, %115 : vector<16x256xf32>
    %117 = vector.extract_strided_slice %2 {offsets = [0, 6], sizes = [16, 3], strides = [1, 1]} : vector<16x27xf32> to vector<16x3xf32>
    %cst_41 = arith.constant dense<0.000000e+00> : vector<16x256xf32>
    %118 = tpu.matmul %117, %51, %cst_41 {dimension_numbers = #tpu.dot_dimension_numbers<[1], [0], [0], [1], [0, 0, 1, 1], [], []>} : vector<16x3xf32>, vector<3x256xf32>, vector<16x256xf32> -> vector<16x256xf32>
    %119 = arith.addf %116, %118 : vector<16x256xf32>
    %120 = vector.extract_strided_slice %2 {offsets = [0, 9], sizes = [16, 3], strides = [1, 1]} : vector<16x27xf32> to vector<16x3xf32>
    %cst_42 = arith.constant dense<0.000000e+00> : vector<16x256xf32>
    %121 = tpu.matmul %120, %65, %cst_42 {dimension_numbers = #tpu.dot_dimension_numbers<[1], [0], [0], [1], [0, 0, 1, 1], [], []>} : vector<16x3xf32>, vector<3x256xf32>, vector<16x256xf32> -> vector<16x256xf32>
    %122 = arith.addf %119, %121 : vector<16x256xf32>
    %123 = vector.extract_strided_slice %2 {offsets = [0, 12], sizes = [16, 3], strides = [1, 1]} : vector<16x27xf32> to vector<16x3xf32>
    %cst_43 = arith.constant dense<0.000000e+00> : vector<16x256xf32>
    %124 = tpu.matmul %123, %66, %cst_43 {dimension_numbers = #tpu.dot_dimension_numbers<[1], [0], [0], [1], [0, 0, 1, 1], [], []>} : vector<16x3xf32>, vector<3x256xf32>, vector<16x256xf32> -> vector<16x256xf32>
    %125 = arith.addf %122, %124 : vector<16x256xf32>
    %126 = vector.extract_strided_slice %2 {offsets = [0, 15], sizes = [16, 3], strides = [1, 1]} : vector<16x27xf32> to vector<16x3xf32>
    %cst_44 = arith.constant dense<0.000000e+00> : vector<16x256xf32>
    %127 = tpu.matmul %126, %80, %cst_44 {dimension_numbers = #tpu.dot_dimension_numbers<[1], [0], [0], [1], [0, 0, 1, 1], [], []>} : vector<16x3xf32>, vector<3x256xf32>, vector<16x256xf32> -> vector<16x256xf32>
    %128 = arith.addf %125, %127 : vector<16x256xf32>
    %129 = vector.extract_strided_slice %2 {offsets = [0, 18], sizes = [16, 3], strides = [1, 1]} : vector<16x27xf32> to vector<16x3xf32>
    %cst_45 = arith.constant dense<0.000000e+00> : vector<16x256xf32>
    %130 = tpu.matmul %129, %94, %cst_45 {dimension_numbers = #tpu.dot_dimension_numbers<[1], [0], [0], [1], [0, 0, 1, 1], [], []>} : vector<16x3xf32>, vector<3x256xf32>, vector<16x256xf32> -> vector<16x256xf32>
    %131 = arith.addf %128, %130 : vector<16x256xf32>
    %132 = vector.extract_strided_slice %2 {offsets = [0, 21], sizes = [16, 3], strides = [1, 1]} : vector<16x27xf32> to vector<16x3xf32>
    %cst_46 = arith.constant dense<0.000000e+00> : vector<16x256xf32>
    %133 = tpu.matmul %132, %95, %cst_46 {dimension_numbers = #tpu.dot_dimension_numbers<[1], [0], [0], [1], [0, 0, 1, 1], [], []>} : vector<16x3xf32>, vector<3x256xf32>, vector<16x256xf32> -> vector<16x256xf32>
    %134 = arith.addf %131, %133 : vector<16x256xf32>
    %135 = vector.extract_strided_slice %2 {offsets = [0, 24], sizes = [16, 3], strides = [1, 1]} : vector<16x27xf32> to vector<16x3xf32>
    %cst_47 = arith.constant dense<0.000000e+00> : vector<16x256xf32>
    %136 = tpu.matmul %135, %109, %cst_47 {dimension_numbers = #tpu.dot_dimension_numbers<[1], [0], [0], [1], [0, 0, 1, 1], [], []>} : vector<16x3xf32>, vector<3x256xf32>, vector<16x256xf32> -> vector<16x256xf32>
    %137 = arith.addf %134, %136 : vector<16x256xf32>
    %138 = vector.broadcast %3 : vector<16x1xf32> to vector<16x256xf32>
    %139 = arith.addf %137, %138 : vector<16x256xf32>
    %c0_48 = arith.constant 0 : index
    %c0_49 = arith.constant 0 : index
    %c0_50 = arith.constant 0 : index
    %140 = vector.load %arg4[%c0_48, %c0_49, %c0_50] : memref<1x16x256xf32, #tpu.memory_space<vmem>>, vector<1x16x256xf32>
    %141 = vector.shape_cast %140 : vector<1x16x256xf32> to vector<16x256xf32>
    %142 = vector.shape_cast %139 : vector<16x256xf32> to vector<1x16x256xf32>
    tpu.vector_store %arg4[%c0_48, %c0_49, %c0_50], %142 {strides = array<i32>} : memref<1x16x256xf32, #tpu.memory_space<vmem>>, vector<1x16x256xf32>,
    return
  }
  func.func @transform_0(%arg0: i32) -> (i32, i32, i32) {
    %c0_i32 = arith.constant 0 : i32
    %c0_i32_0 = arith.constant 0 : i32
    %c0_i32_1 = arith.constant 0 : i32
    return %arg0, %c0_i32, %c0_i32_0 : i32, i32, i32
  }
  func.func @transform_1(%arg0: i32) -> (i32, i32) {
    %c0_i32 = arith.constant 0 : i32
    %c0_i32_0 = arith.constant 0 : i32
    %c0_i32_1 = arith.constant 0 : i32
    return %c0_i32, %c0_i32_0 : i32, i32
  }
  func.func @transform_2(%arg0: i32) -> (i32, i32) {
    %c0_i32 = arith.constant 0 : i32
    %c0_i32_0 = arith.constant 0 : i32
    %c0_i32_1 = arith.constant 0 : i32
    return %c0_i32, %c0_i32_0 : i32, i32
  }
  func.func @transform_3(%arg0: i32) -> (i32, i32, i32) {
    %c0_i32 = arith.constant 0 : i32
    %c0_i32_0 = arith.constant 0 : i32
    %c0_i32_1 = arith.constant 0 : i32
    return %arg0, %c0_i32, %c0_i32_0 : i32, i32, i32
  }
}

module attributes {stable_mosaic.version = 11 : i64} {
  func.func @_conv_res_kernel(%arg0: i32, %arg1: memref<1x16x256xf32, #tpu.memory_space<vmem>>, %arg2: memref<1x16x256xf32, #tpu.memory_space<vmem>>, %arg3: memref<16x144xf32, #tpu.memory_space<vmem>>, %arg4: memref<16x1xf32, #tpu.memory_space<vmem>>, %arg5: memref<1x16x256xf32, #tpu.memory_space<vmem>>) attributes {dimension_semantics = [#tpu.dimension_semantics<parallel>], iteration_bounds = array<i64: 2>, scalar_prefetch = 0 : i64, scratch_operands = 0 : i64, tpu.core_type = #tpu.core_type<tc>, window_params = [{transform_indices = @transform_0, window_bounds = array<i64: 1, 16, 256>}, {transform_indices = @transform_1, window_bounds = array<i64: 1, 16, 256>}, {pipeline_mode = #tpu.pipeline_mode<synchronous>, transform_indices = @transform_2, window_bounds = array<i64: 16, 144>}, {pipeline_mode = #tpu.pipeline_mode<synchronous>, transform_indices = @transform_3, window_bounds = array<i64: 16, 1>}, {transform_indices = @transform_4, window_bounds = array<i64: 1, 16, 256>}]} {
    %c0 = arith.constant 0 : index
    %c0_0 = arith.constant 0 : index
    %c0_1 = arith.constant 0 : index
    %0 = vector.load %arg1[%c0, %c0_0, %c0_1] : memref<1x16x256xf32, #tpu.memory_space<vmem>>, vector<1x16x256xf32>
    %1 = vector.shape_cast %0 : vector<1x16x256xf32> to vector<16x256xf32>
    %c0_2 = arith.constant 0 : index
    %c0_3 = arith.constant 0 : index
    %2 = vector.load %arg3[%c0_2, %c0_3] : memref<16x144xf32, #tpu.memory_space<vmem>>, vector<16x144xf32>
    %c0_4 = arith.constant 0 : index
    %c0_5 = arith.constant 0 : index
    %3 = vector.load %arg4[%c0_4, %c0_5] : memref<16x1xf32, #tpu.memory_space<vmem>>, vector<16x1xf32>
    %cst = arith.constant 0.000000e+00 : f32
    %4 = vector.broadcast %cst : f32 to vector<16x128xf32>
    %5 = tpu.concatenate %4, %1, %4 in 1 : vector<16x128xf32>, vector<16x256xf32>, vector<16x128xf32> -> vector<16x512xf32>
    %6 = tpu.iota {dimensions = array<i32: 1>} : vector<1x256xi32>
    %c16_i32 = arith.constant 16 : i32
    %c0_i32 = arith.constant 0 : i32
    %7 = arith.cmpi eq, %c16_i32, %c0_i32 : i32
    %c1_i32 = arith.constant 1 : i32
    %8 = arith.select %7, %c1_i32, %c16_i32 : i32
    %9 = vector.broadcast %8 : i32 to vector<1x256xi32>
    %10 = arith.remsi %6, %9 : vector<1x256xi32>
    %c0_i32_6 = arith.constant 0 : i32
    %11 = vector.broadcast %c0_i32_6 : i32 to vector<1x256xi32>
    %12 = arith.cmpi ne, %10, %11 : vector<1x256xi32>
    %c0_i32_7 = arith.constant 0 : i32
    %13 = vector.broadcast %c0_i32_7 : i32 to vector<1x256xi32>
    %14 = arith.cmpi slt, %10, %13 : vector<1x256xi32>
    %c0_i32_8 = arith.constant 0 : i32
    %15 = arith.cmpi slt, %8, %c0_i32_8 : i32
    %16 = vector.broadcast %15 : i1 to vector<1x256xi1>
    %17 = vector.broadcast %16 : vector<1x256xi1> to vector<1x256xi1>
    %18 = arith.xori %14, %17 : vector<1x256xi1>
    %19 = arith.andi %18, %12 : vector<1x256xi1>
    %20 = vector.broadcast %8 : i32 to vector<1x256xi32>
    %21 = arith.addi %10, %20 : vector<1x256xi32>
    %22 = arith.select %19, %21, %10 : vector<1x256xi1>, vector<1x256xi32>
    %23 = vector.extract_strided_slice %5 {offsets = [0, 111], sizes = [16, 256], strides = [1, 1]} : vector<16x512xf32> to vector<16x256xf32>
    %c-1_i32 = arith.constant -1 : i32
    %24 = vector.broadcast %c-1_i32 : i32 to vector<1x256xi32>
    %25 = arith.addi %22, %24 : vector<1x256xi32>
    %c0_i32_9 = arith.constant 0 : i32
    %26 = vector.broadcast %c0_i32_9 : i32 to vector<1x256xi32>
    %27 = arith.cmpi sge, %25, %26 : vector<1x256xi32>
    %c-1_i32_10 = arith.constant -1 : i32
    %28 = vector.broadcast %c-1_i32_10 : i32 to vector<1x256xi32>
    %29 = arith.addi %22, %28 : vector<1x256xi32>
    %c16_i32_11 = arith.constant 16 : i32
    %30 = vector.broadcast %c16_i32_11 : i32 to vector<1x256xi32>
    %31 = arith.cmpi slt, %29, %30 : vector<1x256xi32>
    %32 = arith.andi %27, %31 : vector<1x256xi1>
    %cst_12 = arith.constant 0.000000e+00 : f32
    %33 = vector.shape_cast %32 : vector<1x256xi1> to vector<1x256xi1>
    %34 = vector.broadcast %33 : vector<1x256xi1> to vector<16x256xi1>
    %35 = vector.broadcast %cst_12 : f32 to vector<16x256xf32>
    %36 = arith.select %34, %23, %35 : vector<16x256xi1>, vector<16x256xf32>
    %37 = vector.extract_strided_slice %5 {offsets = [0, 112], sizes = [16, 256], strides = [1, 1]} : vector<16x512xf32> to vector<16x256xf32>
    %38 = vector.extract_strided_slice %5 {offsets = [0, 113], sizes = [16, 256], strides = [1, 1]} : vector<16x512xf32> to vector<16x256xf32>
    %c1_i32_13 = arith.constant 1 : i32
    %39 = vector.broadcast %c1_i32_13 : i32 to vector<1x256xi32>
    %40 = arith.addi %22, %39 : vector<1x256xi32>
    %c0_i32_14 = arith.constant 0 : i32
    %41 = vector.broadcast %c0_i32_14 : i32 to vector<1x256xi32>
    %42 = arith.cmpi sge, %40, %41 : vector<1x256xi32>
    %c1_i32_15 = arith.constant 1 : i32
    %43 = vector.broadcast %c1_i32_15 : i32 to vector<1x256xi32>
    %44 = arith.addi %22, %43 : vector<1x256xi32>
    %c16_i32_16 = arith.constant 16 : i32
    %45 = vector.broadcast %c16_i32_16 : i32 to vector<1x256xi32>
    %46 = arith.cmpi slt, %44, %45 : vector<1x256xi32>
    %47 = arith.andi %42, %46 : vector<1x256xi1>
    %cst_17 = arith.constant 0.000000e+00 : f32
    %48 = vector.shape_cast %47 : vector<1x256xi1> to vector<1x256xi1>
    %49 = vector.broadcast %48 : vector<1x256xi1> to vector<16x256xi1>
    %50 = vector.broadcast %cst_17 : f32 to vector<16x256xf32>
    %51 = arith.select %49, %38, %50 : vector<16x256xi1>, vector<16x256xf32>
    %52 = vector.extract_strided_slice %5 {offsets = [0, 127], sizes = [16, 256], strides = [1, 1]} : vector<16x512xf32> to vector<16x256xf32>
    %c-1_i32_18 = arith.constant -1 : i32
    %53 = vector.broadcast %c-1_i32_18 : i32 to vector<1x256xi32>
    %54 = arith.addi %22, %53 : vector<1x256xi32>
    %c0_i32_19 = arith.constant 0 : i32
    %55 = vector.broadcast %c0_i32_19 : i32 to vector<1x256xi32>
    %56 = arith.cmpi sge, %54, %55 : vector<1x256xi32>
    %c-1_i32_20 = arith.constant -1 : i32
    %57 = vector.broadcast %c-1_i32_20 : i32 to vector<1x256xi32>
    %58 = arith.addi %22, %57 : vector<1x256xi32>
    %c16_i32_21 = arith.constant 16 : i32
    %59 = vector.broadcast %c16_i32_21 : i32 to vector<1x256xi32>
    %60 = arith.cmpi slt, %58, %59 : vector<1x256xi32>
    %61 = arith.andi %56, %60 : vector<1x256xi1>
    %cst_22 = arith.constant 0.000000e+00 : f32
    %62 = vector.shape_cast %61 : vector<1x256xi1> to vector<1x256xi1>
    %63 = vector.broadcast %62 : vector<1x256xi1> to vector<16x256xi1>
    %64 = vector.broadcast %cst_22 : f32 to vector<16x256xf32>
    %65 = arith.select %63, %52, %64 : vector<16x256xi1>, vector<16x256xf32>
    %66 = vector.extract_strided_slice %5 {offsets = [0, 128], sizes = [16, 256], strides = [1, 1]} : vector<16x512xf32> to vector<16x256xf32>
    %67 = vector.extract_strided_slice %5 {offsets = [0, 129], sizes = [16, 256], strides = [1, 1]} : vector<16x512xf32> to vector<16x256xf32>
    %c1_i32_23 = arith.constant 1 : i32
    %68 = vector.broadcast %c1_i32_23 : i32 to vector<1x256xi32>
    %69 = arith.addi %22, %68 : vector<1x256xi32>
    %c0_i32_24 = arith.constant 0 : i32
    %70 = vector.broadcast %c0_i32_24 : i32 to vector<1x256xi32>
    %71 = arith.cmpi sge, %69, %70 : vector<1x256xi32>
    %c1_i32_25 = arith.constant 1 : i32
    %72 = vector.broadcast %c1_i32_25 : i32 to vector<1x256xi32>
    %73 = arith.addi %22, %72 : vector<1x256xi32>
    %c16_i32_26 = arith.constant 16 : i32
    %74 = vector.broadcast %c16_i32_26 : i32 to vector<1x256xi32>
    %75 = arith.cmpi slt, %73, %74 : vector<1x256xi32>
    %76 = arith.andi %71, %75 : vector<1x256xi1>
    %cst_27 = arith.constant 0.000000e+00 : f32
    %77 = vector.shape_cast %76 : vector<1x256xi1> to vector<1x256xi1>
    %78 = vector.broadcast %77 : vector<1x256xi1> to vector<16x256xi1>
    %79 = vector.broadcast %cst_27 : f32 to vector<16x256xf32>
    %80 = arith.select %78, %67, %79 : vector<16x256xi1>, vector<16x256xf32>
    %81 = vector.extract_strided_slice %5 {offsets = [0, 143], sizes = [16, 256], strides = [1, 1]} : vector<16x512xf32> to vector<16x256xf32>
    %c-1_i32_28 = arith.constant -1 : i32
    %82 = vector.broadcast %c-1_i32_28 : i32 to vector<1x256xi32>
    %83 = arith.addi %22, %82 : vector<1x256xi32>
    %c0_i32_29 = arith.constant 0 : i32
    %84 = vector.broadcast %c0_i32_29 : i32 to vector<1x256xi32>
    %85 = arith.cmpi sge, %83, %84 : vector<1x256xi32>
    %c-1_i32_30 = arith.constant -1 : i32
    %86 = vector.broadcast %c-1_i32_30 : i32 to vector<1x256xi32>
    %87 = arith.addi %22, %86 : vector<1x256xi32>
    %c16_i32_31 = arith.constant 16 : i32
    %88 = vector.broadcast %c16_i32_31 : i32 to vector<1x256xi32>
    %89 = arith.cmpi slt, %87, %88 : vector<1x256xi32>
    %90 = arith.andi %85, %89 : vector<1x256xi1>
    %cst_32 = arith.constant 0.000000e+00 : f32
    %91 = vector.shape_cast %90 : vector<1x256xi1> to vector<1x256xi1>
    %92 = vector.broadcast %91 : vector<1x256xi1> to vector<16x256xi1>
    %93 = vector.broadcast %cst_32 : f32 to vector<16x256xf32>
    %94 = arith.select %92, %81, %93 : vector<16x256xi1>, vector<16x256xf32>
    %95 = vector.extract_strided_slice %5 {offsets = [0, 144], sizes = [16, 256], strides = [1, 1]} : vector<16x512xf32> to vector<16x256xf32>
    %96 = vector.extract_strided_slice %5 {offsets = [0, 145], sizes = [16, 256], strides = [1, 1]} : vector<16x512xf32> to vector<16x256xf32>
    %c1_i32_33 = arith.constant 1 : i32
    %97 = vector.broadcast %c1_i32_33 : i32 to vector<1x256xi32>
    %98 = arith.addi %22, %97 : vector<1x256xi32>
    %c0_i32_34 = arith.constant 0 : i32
    %99 = vector.broadcast %c0_i32_34 : i32 to vector<1x256xi32>
    %100 = arith.cmpi sge, %98, %99 : vector<1x256xi32>
    %c1_i32_35 = arith.constant 1 : i32
    %101 = vector.broadcast %c1_i32_35 : i32 to vector<1x256xi32>
    %102 = arith.addi %22, %101 : vector<1x256xi32>
    %c16_i32_36 = arith.constant 16 : i32
    %103 = vector.broadcast %c16_i32_36 : i32 to vector<1x256xi32>
    %104 = arith.cmpi slt, %102, %103 : vector<1x256xi32>
    %105 = arith.andi %100, %104 : vector<1x256xi1>
    %cst_37 = arith.constant 0.000000e+00 : f32
    %106 = vector.shape_cast %105 : vector<1x256xi1> to vector<1x256xi1>
    %107 = vector.broadcast %106 : vector<1x256xi1> to vector<16x256xi1>
    %108 = vector.broadcast %cst_37 : f32 to vector<16x256xf32>
    %109 = arith.select %107, %96, %108 : vector<16x256xi1>, vector<16x256xf32>
    %110 = tpu.concatenate %36, %37, %51, %65, %66, %80, %94, %95, %109 in 0 : vector<16x256xf32>, vector<16x256xf32>, vector<16x256xf32>, vector<16x256xf32>, vector<16x256xf32>, vector<16x256xf32>, vector<16x256xf32>, vector<16x256xf32>, vector<16x256xf32> -> vector<144x256xf32>
    %cst_38 = arith.constant dense<0.000000e+00> : vector<16x256xf32>
    %111 = tpu.matmul %2, %110, %cst_38 {dimension_numbers = #tpu.dot_dimension_numbers<[1], [0], [0], [1], [0, 0, 1, 1], [], []>} : vector<16x144xf32>, vector<144x256xf32>, vector<16x256xf32> -> vector<16x256xf32>
    %112 = vector.broadcast %3 : vector<16x1xf32> to vector<16x256xf32>
    %113 = arith.addf %111, %112 : vector<16x256xf32>
    %c0_39 = arith.constant 0 : index
    %c0_40 = arith.constant 0 : index
    %c0_41 = arith.constant 0 : index
    %114 = vector.load %arg2[%c0_39, %c0_40, %c0_41] : memref<1x16x256xf32, #tpu.memory_space<vmem>>, vector<1x16x256xf32>
    %115 = vector.shape_cast %114 : vector<1x16x256xf32> to vector<16x256xf32>
    %cst_42 = arith.constant 1.000000e+00 : f32
    %116 = vector.broadcast %cst_42 : f32 to vector<16x256xf32>
    %117 = arith.mulf %116, %115 : vector<16x256xf32>
    %118 = arith.addf %113, %117 : vector<16x256xf32>
    %c0_43 = arith.constant 0 : index
    %c0_44 = arith.constant 0 : index
    %c0_45 = arith.constant 0 : index
    %119 = vector.load %arg5[%c0_43, %c0_44, %c0_45] : memref<1x16x256xf32, #tpu.memory_space<vmem>>, vector<1x16x256xf32>
    %120 = vector.shape_cast %119 : vector<1x16x256xf32> to vector<16x256xf32>
    %121 = vector.shape_cast %118 : vector<16x256xf32> to vector<1x16x256xf32>
    tpu.vector_store %arg5[%c0_43, %c0_44, %c0_45], %121 {strides = array<i32>} : memref<1x16x256xf32, #tpu.memory_space<vmem>>, vector<1x16x256xf32>,
    return
  }
  func.func @transform_0(%arg0: i32) -> (i32, i32, i32) {
    %c0_i32 = arith.constant 0 : i32
    %c0_i32_0 = arith.constant 0 : i32
    %c0_i32_1 = arith.constant 0 : i32
    return %arg0, %c0_i32, %c0_i32_0 : i32, i32, i32
  }
  func.func @transform_1(%arg0: i32) -> (i32, i32, i32) {
    %c0_i32 = arith.constant 0 : i32
    %c0_i32_0 = arith.constant 0 : i32
    %c0_i32_1 = arith.constant 0 : i32
    return %arg0, %c0_i32, %c0_i32_0 : i32, i32, i32
  }
  func.func @transform_2(%arg0: i32) -> (i32, i32) {
    %c0_i32 = arith.constant 0 : i32
    %c0_i32_0 = arith.constant 0 : i32
    %c0_i32_1 = arith.constant 0 : i32
    return %c0_i32, %c0_i32_0 : i32, i32
  }
  func.func @transform_3(%arg0: i32) -> (i32, i32) {
    %c0_i32 = arith.constant 0 : i32
    %c0_i32_0 = arith.constant 0 : i32
    %c0_i32_1 = arith.constant 0 : i32
    return %c0_i32, %c0_i32_0 : i32, i32
  }
  func.func @transform_4(%arg0: i32) -> (i32, i32, i32) {
    %c0_i32 = arith.constant 0 : i32
    %c0_i32_0 = arith.constant 0 : i32
    %c0_i32_1 = arith.constant 0 : i32
    return %arg0, %c0_i32, %c0_i32_0 : i32, i32, i32
  }
}

module attributes {stable_mosaic.version = 11 : i64} {
  func.func @_rdb_kernel(%arg0: i32, %arg1: memref<1x16x256xf32, #tpu.memory_space<vmem>>, %arg2: memref<8x144xf32, #tpu.memory_space<vmem>>, %arg3: memref<8x1xf32, #tpu.memory_space<vmem>>, %arg4: memref<8x216xf32, #tpu.memory_space<vmem>>, %arg5: memref<8x1xf32, #tpu.memory_space<vmem>>, %arg6: memref<8x288xf32, #tpu.memory_space<vmem>>, %arg7: memref<8x1xf32, #tpu.memory_space<vmem>>, %arg8: memref<8x360xf32, #tpu.memory_space<vmem>>, %arg9: memref<8x1xf32, #tpu.memory_space<vmem>>, %arg10: memref<16x432xf32, #tpu.memory_space<vmem>>, %arg11: memref<16x1xf32, #tpu.memory_space<vmem>>, %arg12: memref<1x16x256xf32, #tpu.memory_space<vmem>>) attributes {dimension_semantics = [#tpu.dimension_semantics<parallel>], iteration_bounds = array<i64: 2>, scalar_prefetch = 0 : i64, scratch_operands = 0 : i64, tpu.core_type = #tpu.core_type<tc>, window_params = [{transform_indices = @transform_0, window_bounds = array<i64: 1, 16, 256>}, {pipeline_mode = #tpu.pipeline_mode<synchronous>, transform_indices = @transform_1, window_bounds = array<i64: 8, 144>}, {pipeline_mode = #tpu.pipeline_mode<synchronous>, transform_indices = @transform_2, window_bounds = array<i64: 8, 1>}, {pipeline_mode = #tpu.pipeline_mode<synchronous>, transform_indices = @transform_3, window_bounds = array<i64: 8, 216>}, {pipeline_mode = #tpu.pipeline_mode<synchronous>, transform_indices = @transform_4, window_bounds = array<i64: 8, 1>}, {pipeline_mode = #tpu.pipeline_mode<synchronous>, transform_indices = @transform_5, window_bounds = array<i64: 8, 288>}, {pipeline_mode = #tpu.pipeline_mode<synchronous>, transform_indices = @transform_6, window_bounds = array<i64: 8, 1>}, {pipeline_mode = #tpu.pipeline_mode<synchronous>, transform_indices = @transform_7, window_bounds = array<i64: 8, 360>}, {pipeline_mode = #tpu.pipeline_mode<synchronous>, transform_indices = @transform_8, window_bounds = array<i64: 8, 1>}, {pipeline_mode = #tpu.pipeline_mode<synchronous>, transform_indices = @transform_9, window_bounds = array<i64: 16, 432>}, {pipeline_mode = #tpu.pipeline_mode<synchronous>, transform_indices = @transform_10, window_bounds = array<i64: 16, 1>}, {transform_indices = @transform_11, window_bounds = array<i64: 1, 16, 256>}]} {
    %c0 = arith.constant 0 : index
    %c0_0 = arith.constant 0 : index
    %c0_1 = arith.constant 0 : index
    %0 = vector.load %arg1[%c0, %c0_0, %c0_1] : memref<1x16x256xf32, #tpu.memory_space<vmem>>, vector<1x16x256xf32>
    %1 = vector.shape_cast %0 : vector<1x16x256xf32> to vector<16x256xf32>
    %c0_2 = arith.constant 0 : index
    %c0_3 = arith.constant 0 : index
    %2 = vector.load %arg2[%c0_2, %c0_3] : memref<8x144xf32, #tpu.memory_space<vmem>>, vector<8x144xf32>
    %c0_4 = arith.constant 0 : index
    %c0_5 = arith.constant 0 : index
    %3 = vector.load %arg3[%c0_4, %c0_5] : memref<8x1xf32, #tpu.memory_space<vmem>>, vector<8x1xf32>
    %cst = arith.constant 0.000000e+00 : f32
    %4 = vector.broadcast %cst : f32 to vector<16x128xf32>
    %5 = tpu.concatenate %4, %1, %4 in 1 : vector<16x128xf32>, vector<16x256xf32>, vector<16x128xf32> -> vector<16x512xf32>
    %6 = tpu.iota {dimensions = array<i32: 1>} : vector<1x256xi32>
    %c16_i32 = arith.constant 16 : i32
    %c0_i32 = arith.constant 0 : i32
    %7 = arith.cmpi eq, %c16_i32, %c0_i32 : i32
    %c1_i32 = arith.constant 1 : i32
    %8 = arith.select %7, %c1_i32, %c16_i32 : i32
    %9 = vector.broadcast %8 : i32 to vector<1x256xi32>
    %10 = arith.remsi %6, %9 : vector<1x256xi32>
    %c0_i32_6 = arith.constant 0 : i32
    %11 = vector.broadcast %c0_i32_6 : i32 to vector<1x256xi32>
    %12 = arith.cmpi ne, %10, %11 : vector<1x256xi32>
    %c0_i32_7 = arith.constant 0 : i32
    %13 = vector.broadcast %c0_i32_7 : i32 to vector<1x256xi32>
    %14 = arith.cmpi slt, %10, %13 : vector<1x256xi32>
    %c0_i32_8 = arith.constant 0 : i32
    %15 = arith.cmpi slt, %8, %c0_i32_8 : i32
    %16 = vector.broadcast %15 : i1 to vector<1x256xi1>
    %17 = vector.broadcast %16 : vector<1x256xi1> to vector<1x256xi1>
    %18 = arith.xori %14, %17 : vector<1x256xi1>
    %19 = arith.andi %18, %12 : vector<1x256xi1>
    %20 = vector.broadcast %8 : i32 to vector<1x256xi32>
    %21 = arith.addi %10, %20 : vector<1x256xi32>
    %22 = arith.select %19, %21, %10 : vector<1x256xi1>, vector<1x256xi32>
    %23 = vector.extract_strided_slice %5 {offsets = [0, 111], sizes = [16, 256], strides = [1, 1]} : vector<16x512xf32> to vector<16x256xf32>
    %c-1_i32 = arith.constant -1 : i32
    %24 = vector.broadcast %c-1_i32 : i32 to vector<1x256xi32>
    %25 = arith.addi %22, %24 : vector<1x256xi32>
    %c0_i32_9 = arith.constant 0 : i32
    %26 = vector.broadcast %c0_i32_9 : i32 to vector<1x256xi32>
    %27 = arith.cmpi sge, %25, %26 : vector<1x256xi32>
    %c-1_i32_10 = arith.constant -1 : i32
    %28 = vector.broadcast %c-1_i32_10 : i32 to vector<1x256xi32>
    %29 = arith.addi %22, %28 : vector<1x256xi32>
    %c16_i32_11 = arith.constant 16 : i32
    %30 = vector.broadcast %c16_i32_11 : i32 to vector<1x256xi32>
    %31 = arith.cmpi slt, %29, %30 : vector<1x256xi32>
    %32 = arith.andi %27, %31 : vector<1x256xi1>
    %cst_12 = arith.constant 0.000000e+00 : f32
    %33 = vector.shape_cast %32 : vector<1x256xi1> to vector<1x256xi1>
    %34 = vector.broadcast %33 : vector<1x256xi1> to vector<16x256xi1>
    %35 = vector.broadcast %cst_12 : f32 to vector<16x256xf32>
    %36 = arith.select %34, %23, %35 : vector<16x256xi1>, vector<16x256xf32>
    %37 = vector.extract_strided_slice %5 {offsets = [0, 112], sizes = [16, 256], strides = [1, 1]} : vector<16x512xf32> to vector<16x256xf32>
    %38 = vector.extract_strided_slice %5 {offsets = [0, 113], sizes = [16, 256], strides = [1, 1]} : vector<16x512xf32> to vector<16x256xf32>
    %c1_i32_13 = arith.constant 1 : i32
    %39 = vector.broadcast %c1_i32_13 : i32 to vector<1x256xi32>
    %40 = arith.addi %22, %39 : vector<1x256xi32>
    %c0_i32_14 = arith.constant 0 : i32
    %41 = vector.broadcast %c0_i32_14 : i32 to vector<1x256xi32>
    %42 = arith.cmpi sge, %40, %41 : vector<1x256xi32>
    %c1_i32_15 = arith.constant 1 : i32
    %43 = vector.broadcast %c1_i32_15 : i32 to vector<1x256xi32>
    %44 = arith.addi %22, %43 : vector<1x256xi32>
    %c16_i32_16 = arith.constant 16 : i32
    %45 = vector.broadcast %c16_i32_16 : i32 to vector<1x256xi32>
    %46 = arith.cmpi slt, %44, %45 : vector<1x256xi32>
    %47 = arith.andi %42, %46 : vector<1x256xi1>
    %cst_17 = arith.constant 0.000000e+00 : f32
    %48 = vector.shape_cast %47 : vector<1x256xi1> to vector<1x256xi1>
    %49 = vector.broadcast %48 : vector<1x256xi1> to vector<16x256xi1>
    %50 = vector.broadcast %cst_17 : f32 to vector<16x256xf32>
    %51 = arith.select %49, %38, %50 : vector<16x256xi1>, vector<16x256xf32>
    %52 = vector.extract_strided_slice %5 {offsets = [0, 127], sizes = [16, 256], strides = [1, 1]} : vector<16x512xf32> to vector<16x256xf32>
    %c-1_i32_18 = arith.constant -1 : i32
    %53 = vector.broadcast %c-1_i32_18 : i32 to vector<1x256xi32>
    %54 = arith.addi %22, %53 : vector<1x256xi32>
    %c0_i32_19 = arith.constant 0 : i32
    %55 = vector.broadcast %c0_i32_19 : i32 to vector<1x256xi32>
    %56 = arith.cmpi sge, %54, %55 : vector<1x256xi32>
    %c-1_i32_20 = arith.constant -1 : i32
    %57 = vector.broadcast %c-1_i32_20 : i32 to vector<1x256xi32>
    %58 = arith.addi %22, %57 : vector<1x256xi32>
    %c16_i32_21 = arith.constant 16 : i32
    %59 = vector.broadcast %c16_i32_21 : i32 to vector<1x256xi32>
    %60 = arith.cmpi slt, %58, %59 : vector<1x256xi32>
    %61 = arith.andi %56, %60 : vector<1x256xi1>
    %cst_22 = arith.constant 0.000000e+00 : f32
    %62 = vector.shape_cast %61 : vector<1x256xi1> to vector<1x256xi1>
    %63 = vector.broadcast %62 : vector<1x256xi1> to vector<16x256xi1>
    %64 = vector.broadcast %cst_22 : f32 to vector<16x256xf32>
    %65 = arith.select %63, %52, %64 : vector<16x256xi1>, vector<16x256xf32>
    %66 = vector.extract_strided_slice %5 {offsets = [0, 128], sizes = [16, 256], strides = [1, 1]} : vector<16x512xf32> to vector<16x256xf32>
    %67 = vector.extract_strided_slice %5 {offsets = [0, 129], sizes = [16, 256], strides = [1, 1]} : vector<16x512xf32> to vector<16x256xf32>
    %c1_i32_23 = arith.constant 1 : i32
    %68 = vector.broadcast %c1_i32_23 : i32 to vector<1x256xi32>
    %69 = arith.addi %22, %68 : vector<1x256xi32>
    %c0_i32_24 = arith.constant 0 : i32
    %70 = vector.broadcast %c0_i32_24 : i32 to vector<1x256xi32>
    %71 = arith.cmpi sge, %69, %70 : vector<1x256xi32>
    %c1_i32_25 = arith.constant 1 : i32
    %72 = vector.broadcast %c1_i32_25 : i32 to vector<1x256xi32>
    %73 = arith.addi %22, %72 : vector<1x256xi32>
    %c16_i32_26 = arith.constant 16 : i32
    %74 = vector.broadcast %c16_i32_26 : i32 to vector<1x256xi32>
    %75 = arith.cmpi slt, %73, %74 : vector<1x256xi32>
    %76 = arith.andi %71, %75 : vector<1x256xi1>
    %cst_27 = arith.constant 0.000000e+00 : f32
    %77 = vector.shape_cast %76 : vector<1x256xi1> to vector<1x256xi1>
    %78 = vector.broadcast %77 : vector<1x256xi1> to vector<16x256xi1>
    %79 = vector.broadcast %cst_27 : f32 to vector<16x256xf32>
    %80 = arith.select %78, %67, %79 : vector<16x256xi1>, vector<16x256xf32>
    %81 = vector.extract_strided_slice %5 {offsets = [0, 143], sizes = [16, 256], strides = [1, 1]} : vector<16x512xf32> to vector<16x256xf32>
    %c-1_i32_28 = arith.constant -1 : i32
    %82 = vector.broadcast %c-1_i32_28 : i32 to vector<1x256xi32>
    %83 = arith.addi %22, %82 : vector<1x256xi32>
    %c0_i32_29 = arith.constant 0 : i32
    %84 = vector.broadcast %c0_i32_29 : i32 to vector<1x256xi32>
    %85 = arith.cmpi sge, %83, %84 : vector<1x256xi32>
    %c-1_i32_30 = arith.constant -1 : i32
    %86 = vector.broadcast %c-1_i32_30 : i32 to vector<1x256xi32>
    %87 = arith.addi %22, %86 : vector<1x256xi32>
    %c16_i32_31 = arith.constant 16 : i32
    %88 = vector.broadcast %c16_i32_31 : i32 to vector<1x256xi32>
    %89 = arith.cmpi slt, %87, %88 : vector<1x256xi32>
    %90 = arith.andi %85, %89 : vector<1x256xi1>
    %cst_32 = arith.constant 0.000000e+00 : f32
    %91 = vector.shape_cast %90 : vector<1x256xi1> to vector<1x256xi1>
    %92 = vector.broadcast %91 : vector<1x256xi1> to vector<16x256xi1>
    %93 = vector.broadcast %cst_32 : f32 to vector<16x256xf32>
    %94 = arith.select %92, %81, %93 : vector<16x256xi1>, vector<16x256xf32>
    %95 = vector.extract_strided_slice %5 {offsets = [0, 144], sizes = [16, 256], strides = [1, 1]} : vector<16x512xf32> to vector<16x256xf32>
    %96 = vector.extract_strided_slice %5 {offsets = [0, 145], sizes = [16, 256], strides = [1, 1]} : vector<16x512xf32> to vector<16x256xf32>
    %c1_i32_33 = arith.constant 1 : i32
    %97 = vector.broadcast %c1_i32_33 : i32 to vector<1x256xi32>
    %98 = arith.addi %22, %97 : vector<1x256xi32>
    %c0_i32_34 = arith.constant 0 : i32
    %99 = vector.broadcast %c0_i32_34 : i32 to vector<1x256xi32>
    %100 = arith.cmpi sge, %98, %99 : vector<1x256xi32>
    %c1_i32_35 = arith.constant 1 : i32
    %101 = vector.broadcast %c1_i32_35 : i32 to vector<1x256xi32>
    %102 = arith.addi %22, %101 : vector<1x256xi32>
    %c16_i32_36 = arith.constant 16 : i32
    %103 = vector.broadcast %c16_i32_36 : i32 to vector<1x256xi32>
    %104 = arith.cmpi slt, %102, %103 : vector<1x256xi32>
    %105 = arith.andi %100, %104 : vector<1x256xi1>
    %cst_37 = arith.constant 0.000000e+00 : f32
    %106 = vector.shape_cast %105 : vector<1x256xi1> to vector<1x256xi1>
    %107 = vector.broadcast %106 : vector<1x256xi1> to vector<16x256xi1>
    %108 = vector.broadcast %cst_37 : f32 to vector<16x256xf32>
    %109 = arith.select %107, %96, %108 : vector<16x256xi1>, vector<16x256xf32>
    %110 = tpu.concatenate %36, %37, %51, %65, %66, %80, %94, %95, %109 in 0 : vector<16x256xf32>, vector<16x256xf32>, vector<16x256xf32>, vector<16x256xf32>, vector<16x256xf32>, vector<16x256xf32>, vector<16x256xf32>, vector<16x256xf32>, vector<16x256xf32> -> vector<144x256xf32>
    %cst_38 = arith.constant dense<0.000000e+00> : vector<8x256xf32>
    %111 = tpu.matmul %2, %110, %cst_38 {dimension_numbers = #tpu.dot_dimension_numbers<[1], [0], [0], [1], [0, 0, 1, 1], [], []>} : vector<8x144xf32>, vector<144x256xf32>, vector<8x256xf32> -> vector<8x256xf32>
    %112 = vector.broadcast %3 : vector<8x1xf32> to vector<8x256xf32>
    %113 = arith.addf %111, %112 : vector<8x256xf32>
    %cst_39 = arith.constant 0.000000e+00 : f32
    %114 = vector.broadcast %cst_39 : f32 to vector<8x256xf32>
    %115 = arith.cmpf oge, %113, %114 : vector<8x256xf32>
    %cst_40 = arith.constant 2.000000e-01 : f32
    %116 = vector.broadcast %cst_40 : f32 to vector<8x256xf32>
    %117 = arith.mulf %116, %113 : vector<8x256xf32>
    %118 = arith.select %115, %113, %117 : vector<8x256xi1>, vector<8x256xf32>
    %119 = tpu.concatenate %1, %118 in 0 : vector<16x256xf32>, vector<8x256xf32> -> vector<24x256xf32>
    %c0_41 = arith.constant 0 : index
    %c0_42 = arith.constant 0 : index
    %120 = vector.load %arg4[%c0_41, %c0_42] : memref<8x216xf32, #tpu.memory_space<vmem>>, vector<8x216xf32>
    %c0_43 = arith.constant 0 : index
    %c0_44 = arith.constant 0 : index
    %121 = vector.load %arg5[%c0_43, %c0_44] : memref<8x1xf32, #tpu.memory_space<vmem>>, vector<8x1xf32>
    %cst_45 = arith.constant 0.000000e+00 : f32
    %122 = vector.broadcast %cst_45 : f32 to vector<24x128xf32>
    %123 = tpu.concatenate %122, %119, %122 in 1 : vector<24x128xf32>, vector<24x256xf32>, vector<24x128xf32> -> vector<24x512xf32>
    %124 = tpu.iota {dimensions = array<i32: 1>} : vector<1x256xi32>
    %c16_i32_46 = arith.constant 16 : i32
    %c0_i32_47 = arith.constant 0 : i32
    %125 = arith.cmpi eq, %c16_i32_46, %c0_i32_47 : i32
    %c1_i32_48 = arith.constant 1 : i32
    %126 = arith.select %125, %c1_i32_48, %c16_i32_46 : i32
    %127 = vector.broadcast %126 : i32 to vector<1x256xi32>
    %128 = arith.remsi %124, %127 : vector<1x256xi32>
    %c0_i32_49 = arith.constant 0 : i32
    %129 = vector.broadcast %c0_i32_49 : i32 to vector<1x256xi32>
    %130 = arith.cmpi ne, %128, %129 : vector<1x256xi32>
    %c0_i32_50 = arith.constant 0 : i32
    %131 = vector.broadcast %c0_i32_50 : i32 to vector<1x256xi32>
    %132 = arith.cmpi slt, %128, %131 : vector<1x256xi32>
    %c0_i32_51 = arith.constant 0 : i32
    %133 = arith.cmpi slt, %126, %c0_i32_51 : i32
    %134 = vector.broadcast %133 : i1 to vector<1x256xi1>
    %135 = vector.broadcast %134 : vector<1x256xi1> to vector<1x256xi1>
    %136 = arith.xori %132, %135 : vector<1x256xi1>
    %137 = arith.andi %136, %130 : vector<1x256xi1>
    %138 = vector.broadcast %126 : i32 to vector<1x256xi32>
    %139 = arith.addi %128, %138 : vector<1x256xi32>
    %140 = arith.select %137, %139, %128 : vector<1x256xi1>, vector<1x256xi32>
    %141 = vector.extract_strided_slice %123 {offsets = [0, 111], sizes = [24, 256], strides = [1, 1]} : vector<24x512xf32> to vector<24x256xf32>
    %c-1_i32_52 = arith.constant -1 : i32
    %142 = vector.broadcast %c-1_i32_52 : i32 to vector<1x256xi32>
    %143 = arith.addi %140, %142 : vector<1x256xi32>
    %c0_i32_53 = arith.constant 0 : i32
    %144 = vector.broadcast %c0_i32_53 : i32 to vector<1x256xi32>
    %145 = arith.cmpi sge, %143, %144 : vector<1x256xi32>
    %c-1_i32_54 = arith.constant -1 : i32
    %146 = vector.broadcast %c-1_i32_54 : i32 to vector<1x256xi32>
    %147 = arith.addi %140, %146 : vector<1x256xi32>
    %c16_i32_55 = arith.constant 16 : i32
    %148 = vector.broadcast %c16_i32_55 : i32 to vector<1x256xi32>
    %149 = arith.cmpi slt, %147, %148 : vector<1x256xi32>
    %150 = arith.andi %145, %149 : vector<1x256xi1>
    %cst_56 = arith.constant 0.000000e+00 : f32
    %151 = vector.shape_cast %150 : vector<1x256xi1> to vector<1x256xi1>
    %152 = vector.broadcast %151 : vector<1x256xi1> to vector<24x256xi1>
    %153 = vector.broadcast %cst_56 : f32 to vector<24x256xf32>
    %154 = arith.select %152, %141, %153 : vector<24x256xi1>, vector<24x256xf32>
    %155 = vector.extract_strided_slice %123 {offsets = [0, 112], sizes = [24, 256], strides = [1, 1]} : vector<24x512xf32> to vector<24x256xf32>
    %156 = vector.extract_strided_slice %123 {offsets = [0, 113], sizes = [24, 256], strides = [1, 1]} : vector<24x512xf32> to vector<24x256xf32>
    %c1_i32_57 = arith.constant 1 : i32
    %157 = vector.broadcast %c1_i32_57 : i32 to vector<1x256xi32>
    %158 = arith.addi %140, %157 : vector<1x256xi32>
    %c0_i32_58 = arith.constant 0 : i32
    %159 = vector.broadcast %c0_i32_58 : i32 to vector<1x256xi32>
    %160 = arith.cmpi sge, %158, %159 : vector<1x256xi32>
    %c1_i32_59 = arith.constant 1 : i32
    %161 = vector.broadcast %c1_i32_59 : i32 to vector<1x256xi32>
    %162 = arith.addi %140, %161 : vector<1x256xi32>
    %c16_i32_60 = arith.constant 16 : i32
    %163 = vector.broadcast %c16_i32_60 : i32 to vector<1x256xi32>
    %164 = arith.cmpi slt, %162, %163 : vector<1x256xi32>
    %165 = arith.andi %160, %164 : vector<1x256xi1>
    %cst_61 = arith.constant 0.000000e+00 : f32
    %166 = vector.shape_cast %165 : vector<1x256xi1> to vector<1x256xi1>
    %167 = vector.broadcast %166 : vector<1x256xi1> to vector<24x256xi1>
    %168 = vector.broadcast %cst_61 : f32 to vector<24x256xf32>
    %169 = arith.select %167, %156, %168 : vector<24x256xi1>, vector<24x256xf32>
    %170 = vector.extract_strided_slice %123 {offsets = [0, 127], sizes = [24, 256], strides = [1, 1]} : vector<24x512xf32> to vector<24x256xf32>
    %c-1_i32_62 = arith.constant -1 : i32
    %171 = vector.broadcast %c-1_i32_62 : i32 to vector<1x256xi32>
    %172 = arith.addi %140, %171 : vector<1x256xi32>
    %c0_i32_63 = arith.constant 0 : i32
    %173 = vector.broadcast %c0_i32_63 : i32 to vector<1x256xi32>
    %174 = arith.cmpi sge, %172, %173 : vector<1x256xi32>
    %c-1_i32_64 = arith.constant -1 : i32
    %175 = vector.broadcast %c-1_i32_64 : i32 to vector<1x256xi32>
    %176 = arith.addi %140, %175 : vector<1x256xi32>
    %c16_i32_65 = arith.constant 16 : i32
    %177 = vector.broadcast %c16_i32_65 : i32 to vector<1x256xi32>
    %178 = arith.cmpi slt, %176, %177 : vector<1x256xi32>
    %179 = arith.andi %174, %178 : vector<1x256xi1>
    %cst_66 = arith.constant 0.000000e+00 : f32
    %180 = vector.shape_cast %179 : vector<1x256xi1> to vector<1x256xi1>
    %181 = vector.broadcast %180 : vector<1x256xi1> to vector<24x256xi1>
    %182 = vector.broadcast %cst_66 : f32 to vector<24x256xf32>
    %183 = arith.select %181, %170, %182 : vector<24x256xi1>, vector<24x256xf32>
    %184 = vector.extract_strided_slice %123 {offsets = [0, 128], sizes = [24, 256], strides = [1, 1]} : vector<24x512xf32> to vector<24x256xf32>
    %185 = vector.extract_strided_slice %123 {offsets = [0, 129], sizes = [24, 256], strides = [1, 1]} : vector<24x512xf32> to vector<24x256xf32>
    %c1_i32_67 = arith.constant 1 : i32
    %186 = vector.broadcast %c1_i32_67 : i32 to vector<1x256xi32>
    %187 = arith.addi %140, %186 : vector<1x256xi32>
    %c0_i32_68 = arith.constant 0 : i32
    %188 = vector.broadcast %c0_i32_68 : i32 to vector<1x256xi32>
    %189 = arith.cmpi sge, %187, %188 : vector<1x256xi32>
    %c1_i32_69 = arith.constant 1 : i32
    %190 = vector.broadcast %c1_i32_69 : i32 to vector<1x256xi32>
    %191 = arith.addi %140, %190 : vector<1x256xi32>
    %c16_i32_70 = arith.constant 16 : i32
    %192 = vector.broadcast %c16_i32_70 : i32 to vector<1x256xi32>
    %193 = arith.cmpi slt, %191, %192 : vector<1x256xi32>
    %194 = arith.andi %189, %193 : vector<1x256xi1>
    %cst_71 = arith.constant 0.000000e+00 : f32
    %195 = vector.shape_cast %194 : vector<1x256xi1> to vector<1x256xi1>
    %196 = vector.broadcast %195 : vector<1x256xi1> to vector<24x256xi1>
    %197 = vector.broadcast %cst_71 : f32 to vector<24x256xf32>
    %198 = arith.select %196, %185, %197 : vector<24x256xi1>, vector<24x256xf32>
    %199 = vector.extract_strided_slice %123 {offsets = [0, 143], sizes = [24, 256], strides = [1, 1]} : vector<24x512xf32> to vector<24x256xf32>
    %c-1_i32_72 = arith.constant -1 : i32
    %200 = vector.broadcast %c-1_i32_72 : i32 to vector<1x256xi32>
    %201 = arith.addi %140, %200 : vector<1x256xi32>
    %c0_i32_73 = arith.constant 0 : i32
    %202 = vector.broadcast %c0_i32_73 : i32 to vector<1x256xi32>
    %203 = arith.cmpi sge, %201, %202 : vector<1x256xi32>
    %c-1_i32_74 = arith.constant -1 : i32
    %204 = vector.broadcast %c-1_i32_74 : i32 to vector<1x256xi32>
    %205 = arith.addi %140, %204 : vector<1x256xi32>
    %c16_i32_75 = arith.constant 16 : i32
    %206 = vector.broadcast %c16_i32_75 : i32 to vector<1x256xi32>
    %207 = arith.cmpi slt, %205, %206 : vector<1x256xi32>
    %208 = arith.andi %203, %207 : vector<1x256xi1>
    %cst_76 = arith.constant 0.000000e+00 : f32
    %209 = vector.shape_cast %208 : vector<1x256xi1> to vector<1x256xi1>
    %210 = vector.broadcast %209 : vector<1x256xi1> to vector<24x256xi1>
    %211 = vector.broadcast %cst_76 : f32 to vector<24x256xf32>
    %212 = arith.select %210, %199, %211 : vector<24x256xi1>, vector<24x256xf32>
    %213 = vector.extract_strided_slice %123 {offsets = [0, 144], sizes = [24, 256], strides = [1, 1]} : vector<24x512xf32> to vector<24x256xf32>
    %214 = vector.extract_strided_slice %123 {offsets = [0, 145], sizes = [24, 256], strides = [1, 1]} : vector<24x512xf32> to vector<24x256xf32>
    %c1_i32_77 = arith.constant 1 : i32
    %215 = vector.broadcast %c1_i32_77 : i32 to vector<1x256xi32>
    %216 = arith.addi %140, %215 : vector<1x256xi32>
    %c0_i32_78 = arith.constant 0 : i32
    %217 = vector.broadcast %c0_i32_78 : i32 to vector<1x256xi32>
    %218 = arith.cmpi sge, %216, %217 : vector<1x256xi32>
    %c1_i32_79 = arith.constant 1 : i32
    %219 = vector.broadcast %c1_i32_79 : i32 to vector<1x256xi32>
    %220 = arith.addi %140, %219 : vector<1x256xi32>
    %c16_i32_80 = arith.constant 16 : i32
    %221 = vector.broadcast %c16_i32_80 : i32 to vector<1x256xi32>
    %222 = arith.cmpi slt, %220, %221 : vector<1x256xi32>
    %223 = arith.andi %218, %222 : vector<1x256xi1>
    %cst_81 = arith.constant 0.000000e+00 : f32
    %224 = vector.shape_cast %223 : vector<1x256xi1> to vector<1x256xi1>
    %225 = vector.broadcast %224 : vector<1x256xi1> to vector<24x256xi1>
    %226 = vector.broadcast %cst_81 : f32 to vector<24x256xf32>
    %227 = arith.select %225, %214, %226 : vector<24x256xi1>, vector<24x256xf32>
    %228 = tpu.concatenate %154, %155, %169, %183, %184, %198, %212, %213, %227 in 0 : vector<24x256xf32>, vector<24x256xf32>, vector<24x256xf32>, vector<24x256xf32>, vector<24x256xf32>, vector<24x256xf32>, vector<24x256xf32>, vector<24x256xf32>, vector<24x256xf32> -> vector<216x256xf32>
    %cst_82 = arith.constant dense<0.000000e+00> : vector<8x256xf32>
    %229 = tpu.matmul %120, %228, %cst_82 {dimension_numbers = #tpu.dot_dimension_numbers<[1], [0], [0], [1], [0, 0, 1, 1], [], []>} : vector<8x216xf32>, vector<216x256xf32>, vector<8x256xf32> -> vector<8x256xf32>
    %230 = vector.broadcast %121 : vector<8x1xf32> to vector<8x256xf32>
    %231 = arith.addf %229, %230 : vector<8x256xf32>
    %cst_83 = arith.constant 0.000000e+00 : f32
    %232 = vector.broadcast %cst_83 : f32 to vector<8x256xf32>
    %233 = arith.cmpf oge, %231, %232 : vector<8x256xf32>
    %cst_84 = arith.constant 2.000000e-01 : f32
    %234 = vector.broadcast %cst_84 : f32 to vector<8x256xf32>
    %235 = arith.mulf %234, %231 : vector<8x256xf32>
    %236 = arith.select %233, %231, %235 : vector<8x256xi1>, vector<8x256xf32>
    %237 = tpu.concatenate %119, %236 in 0 : vector<24x256xf32>, vector<8x256xf32> -> vector<32x256xf32>
    %c0_85 = arith.constant 0 : index
    %c0_86 = arith.constant 0 : index
    %238 = vector.load %arg6[%c0_85, %c0_86] : memref<8x288xf32, #tpu.memory_space<vmem>>, vector<8x288xf32>
    %c0_87 = arith.constant 0 : index
    %c0_88 = arith.constant 0 : index
    %239 = vector.load %arg7[%c0_87, %c0_88] : memref<8x1xf32, #tpu.memory_space<vmem>>, vector<8x1xf32>
    %cst_89 = arith.constant 0.000000e+00 : f32
    %240 = vector.broadcast %cst_89 : f32 to vector<32x128xf32>
    %241 = tpu.concatenate %240, %237, %240 in 1 : vector<32x128xf32>, vector<32x256xf32>, vector<32x128xf32> -> vector<32x512xf32>
    %242 = tpu.iota {dimensions = array<i32: 1>} : vector<1x256xi32>
    %c16_i32_90 = arith.constant 16 : i32
    %c0_i32_91 = arith.constant 0 : i32
    %243 = arith.cmpi eq, %c16_i32_90, %c0_i32_91 : i32
    %c1_i32_92 = arith.constant 1 : i32
    %244 = arith.select %243, %c1_i32_92, %c16_i32_90 : i32
    %245 = vector.broadcast %244 : i32 to vector<1x256xi32>
    %246 = arith.remsi %242, %245 : vector<1x256xi32>
    %c0_i32_93 = arith.constant 0 : i32
    %247 = vector.broadcast %c0_i32_93 : i32 to vector<1x256xi32>
    %248 = arith.cmpi ne, %246, %247 : vector<1x256xi32>
    %c0_i32_94 = arith.constant 0 : i32
    %249 = vector.broadcast %c0_i32_94 : i32 to vector<1x256xi32>
    %250 = arith.cmpi slt, %246, %249 : vector<1x256xi32>
    %c0_i32_95 = arith.constant 0 : i32
    %251 = arith.cmpi slt, %244, %c0_i32_95 : i32
    %252 = vector.broadcast %251 : i1 to vector<1x256xi1>
    %253 = vector.broadcast %252 : vector<1x256xi1> to vector<1x256xi1>
    %254 = arith.xori %250, %253 : vector<1x256xi1>
    %255 = arith.andi %254, %248 : vector<1x256xi1>
    %256 = vector.broadcast %244 : i32 to vector<1x256xi32>
    %257 = arith.addi %246, %256 : vector<1x256xi32>
    %258 = arith.select %255, %257, %246 : vector<1x256xi1>, vector<1x256xi32>
    %259 = vector.extract_strided_slice %241 {offsets = [0, 111], sizes = [32, 256], strides = [1, 1]} : vector<32x512xf32> to vector<32x256xf32>
    %c-1_i32_96 = arith.constant -1 : i32
    %260 = vector.broadcast %c-1_i32_96 : i32 to vector<1x256xi32>
    %261 = arith.addi %258, %260 : vector<1x256xi32>
    %c0_i32_97 = arith.constant 0 : i32
    %262 = vector.broadcast %c0_i32_97 : i32 to vector<1x256xi32>
    %263 = arith.cmpi sge, %261, %262 : vector<1x256xi32>
    %c-1_i32_98 = arith.constant -1 : i32
    %264 = vector.broadcast %c-1_i32_98 : i32 to vector<1x256xi32>
    %265 = arith.addi %258, %264 : vector<1x256xi32>
    %c16_i32_99 = arith.constant 16 : i32
    %266 = vector.broadcast %c16_i32_99 : i32 to vector<1x256xi32>
    %267 = arith.cmpi slt, %265, %266 : vector<1x256xi32>
    %268 = arith.andi %263, %267 : vector<1x256xi1>
    %cst_100 = arith.constant 0.000000e+00 : f32
    %269 = vector.shape_cast %268 : vector<1x256xi1> to vector<1x256xi1>
    %270 = vector.broadcast %269 : vector<1x256xi1> to vector<32x256xi1>
    %271 = vector.broadcast %cst_100 : f32 to vector<32x256xf32>
    %272 = arith.select %270, %259, %271 : vector<32x256xi1>, vector<32x256xf32>
    %273 = vector.extract_strided_slice %241 {offsets = [0, 112], sizes = [32, 256], strides = [1, 1]} : vector<32x512xf32> to vector<32x256xf32>
    %274 = vector.extract_strided_slice %241 {offsets = [0, 113], sizes = [32, 256], strides = [1, 1]} : vector<32x512xf32> to vector<32x256xf32>
    %c1_i32_101 = arith.constant 1 : i32
    %275 = vector.broadcast %c1_i32_101 : i32 to vector<1x256xi32>
    %276 = arith.addi %258, %275 : vector<1x256xi32>
    %c0_i32_102 = arith.constant 0 : i32
    %277 = vector.broadcast %c0_i32_102 : i32 to vector<1x256xi32>
    %278 = arith.cmpi sge, %276, %277 : vector<1x256xi32>
    %c1_i32_103 = arith.constant 1 : i32
    %279 = vector.broadcast %c1_i32_103 : i32 to vector<1x256xi32>
    %280 = arith.addi %258, %279 : vector<1x256xi32>
    %c16_i32_104 = arith.constant 16 : i32
    %281 = vector.broadcast %c16_i32_104 : i32 to vector<1x256xi32>
    %282 = arith.cmpi slt, %280, %281 : vector<1x256xi32>
    %283 = arith.andi %278, %282 : vector<1x256xi1>
    %cst_105 = arith.constant 0.000000e+00 : f32
    %284 = vector.shape_cast %283 : vector<1x256xi1> to vector<1x256xi1>
    %285 = vector.broadcast %284 : vector<1x256xi1> to vector<32x256xi1>
    %286 = vector.broadcast %cst_105 : f32 to vector<32x256xf32>
    %287 = arith.select %285, %274, %286 : vector<32x256xi1>, vector<32x256xf32>
    %288 = vector.extract_strided_slice %241 {offsets = [0, 127], sizes = [32, 256], strides = [1, 1]} : vector<32x512xf32> to vector<32x256xf32>
    %c-1_i32_106 = arith.constant -1 : i32
    %289 = vector.broadcast %c-1_i32_106 : i32 to vector<1x256xi32>
    %290 = arith.addi %258, %289 : vector<1x256xi32>
    %c0_i32_107 = arith.constant 0 : i32
    %291 = vector.broadcast %c0_i32_107 : i32 to vector<1x256xi32>
    %292 = arith.cmpi sge, %290, %291 : vector<1x256xi32>
    %c-1_i32_108 = arith.constant -1 : i32
    %293 = vector.broadcast %c-1_i32_108 : i32 to vector<1x256xi32>
    %294 = arith.addi %258, %293 : vector<1x256xi32>
    %c16_i32_109 = arith.constant 16 : i32
    %295 = vector.broadcast %c16_i32_109 : i32 to vector<1x256xi32>
    %296 = arith.cmpi slt, %294, %295 : vector<1x256xi32>
    %297 = arith.andi %292, %296 : vector<1x256xi1>
    %cst_110 = arith.constant 0.000000e+00 : f32
    %298 = vector.shape_cast %297 : vector<1x256xi1> to vector<1x256xi1>
    %299 = vector.broadcast %298 : vector<1x256xi1> to vector<32x256xi1>
    %300 = vector.broadcast %cst_110 : f32 to vector<32x256xf32>
    %301 = arith.select %299, %288, %300 : vector<32x256xi1>, vector<32x256xf32>
    %302 = vector.extract_strided_slice %241 {offsets = [0, 128], sizes = [32, 256], strides = [1, 1]} : vector<32x512xf32> to vector<32x256xf32>
    %303 = vector.extract_strided_slice %241 {offsets = [0, 129], sizes = [32, 256], strides = [1, 1]} : vector<32x512xf32> to vector<32x256xf32>
    %c1_i32_111 = arith.constant 1 : i32
    %304 = vector.broadcast %c1_i32_111 : i32 to vector<1x256xi32>
    %305 = arith.addi %258, %304 : vector<1x256xi32>
    %c0_i32_112 = arith.constant 0 : i32
    %306 = vector.broadcast %c0_i32_112 : i32 to vector<1x256xi32>
    %307 = arith.cmpi sge, %305, %306 : vector<1x256xi32>
    %c1_i32_113 = arith.constant 1 : i32
    %308 = vector.broadcast %c1_i32_113 : i32 to vector<1x256xi32>
    %309 = arith.addi %258, %308 : vector<1x256xi32>
    %c16_i32_114 = arith.constant 16 : i32
    %310 = vector.broadcast %c16_i32_114 : i32 to vector<1x256xi32>
    %311 = arith.cmpi slt, %309, %310 : vector<1x256xi32>
    %312 = arith.andi %307, %311 : vector<1x256xi1>
    %cst_115 = arith.constant 0.000000e+00 : f32
    %313 = vector.shape_cast %312 : vector<1x256xi1> to vector<1x256xi1>
    %314 = vector.broadcast %313 : vector<1x256xi1> to vector<32x256xi1>
    %315 = vector.broadcast %cst_115 : f32 to vector<32x256xf32>
    %316 = arith.select %314, %303, %315 : vector<32x256xi1>, vector<32x256xf32>
    %317 = vector.extract_strided_slice %241 {offsets = [0, 143], sizes = [32, 256], strides = [1, 1]} : vector<32x512xf32> to vector<32x256xf32>
    %c-1_i32_116 = arith.constant -1 : i32
    %318 = vector.broadcast %c-1_i32_116 : i32 to vector<1x256xi32>
    %319 = arith.addi %258, %318 : vector<1x256xi32>
    %c0_i32_117 = arith.constant 0 : i32
    %320 = vector.broadcast %c0_i32_117 : i32 to vector<1x256xi32>
    %321 = arith.cmpi sge, %319, %320 : vector<1x256xi32>
    %c-1_i32_118 = arith.constant -1 : i32
    %322 = vector.broadcast %c-1_i32_118 : i32 to vector<1x256xi32>
    %323 = arith.addi %258, %322 : vector<1x256xi32>
    %c16_i32_119 = arith.constant 16 : i32
    %324 = vector.broadcast %c16_i32_119 : i32 to vector<1x256xi32>
    %325 = arith.cmpi slt, %323, %324 : vector<1x256xi32>
    %326 = arith.andi %321, %325 : vector<1x256xi1>
    %cst_120 = arith.constant 0.000000e+00 : f32
    %327 = vector.shape_cast %326 : vector<1x256xi1> to vector<1x256xi1>
    %328 = vector.broadcast %327 : vector<1x256xi1> to vector<32x256xi1>
    %329 = vector.broadcast %cst_120 : f32 to vector<32x256xf32>
    %330 = arith.select %328, %317, %329 : vector<32x256xi1>, vector<32x256xf32>
    %331 = vector.extract_strided_slice %241 {offsets = [0, 144], sizes = [32, 256], strides = [1, 1]} : vector<32x512xf32> to vector<32x256xf32>
    %332 = vector.extract_strided_slice %241 {offsets = [0, 145], sizes = [32, 256], strides = [1, 1]} : vector<32x512xf32> to vector<32x256xf32>
    %c1_i32_121 = arith.constant 1 : i32
    %333 = vector.broadcast %c1_i32_121 : i32 to vector<1x256xi32>
    %334 = arith.addi %258, %333 : vector<1x256xi32>
    %c0_i32_122 = arith.constant 0 : i32
    %335 = vector.broadcast %c0_i32_122 : i32 to vector<1x256xi32>
    %336 = arith.cmpi sge, %334, %335 : vector<1x256xi32>
    %c1_i32_123 = arith.constant 1 : i32
    %337 = vector.broadcast %c1_i32_123 : i32 to vector<1x256xi32>
    %338 = arith.addi %258, %337 : vector<1x256xi32>
    %c16_i32_124 = arith.constant 16 : i32
    %339 = vector.broadcast %c16_i32_124 : i32 to vector<1x256xi32>
    %340 = arith.cmpi slt, %338, %339 : vector<1x256xi32>
    %341 = arith.andi %336, %340 : vector<1x256xi1>
    %cst_125 = arith.constant 0.000000e+00 : f32
    %342 = vector.shape_cast %341 : vector<1x256xi1> to vector<1x256xi1>
    %343 = vector.broadcast %342 : vector<1x256xi1> to vector<32x256xi1>
    %344 = vector.broadcast %cst_125 : f32 to vector<32x256xf32>
    %345 = arith.select %343, %332, %344 : vector<32x256xi1>, vector<32x256xf32>
    %346 = tpu.concatenate %272, %273, %287, %301, %302, %316, %330, %331, %345 in 0 : vector<32x256xf32>, vector<32x256xf32>, vector<32x256xf32>, vector<32x256xf32>, vector<32x256xf32>, vector<32x256xf32>, vector<32x256xf32>, vector<32x256xf32>, vector<32x256xf32> -> vector<288x256xf32>
    %cst_126 = arith.constant dense<0.000000e+00> : vector<8x256xf32>
    %347 = tpu.matmul %238, %346, %cst_126 {dimension_numbers = #tpu.dot_dimension_numbers<[1], [0], [0], [1], [0, 0, 1, 1], [], []>} : vector<8x288xf32>, vector<288x256xf32>, vector<8x256xf32> -> vector<8x256xf32>
    %348 = vector.broadcast %239 : vector<8x1xf32> to vector<8x256xf32>
    %349 = arith.addf %347, %348 : vector<8x256xf32>
    %cst_127 = arith.constant 0.000000e+00 : f32
    %350 = vector.broadcast %cst_127 : f32 to vector<8x256xf32>
    %351 = arith.cmpf oge, %349, %350 : vector<8x256xf32>
    %cst_128 = arith.constant 2.000000e-01 : f32
    %352 = vector.broadcast %cst_128 : f32 to vector<8x256xf32>
    %353 = arith.mulf %352, %349 : vector<8x256xf32>
    %354 = arith.select %351, %349, %353 : vector<8x256xi1>, vector<8x256xf32>
    %355 = tpu.concatenate %237, %354 in 0 : vector<32x256xf32>, vector<8x256xf32> -> vector<40x256xf32>
    %c0_129 = arith.constant 0 : index
    %c0_130 = arith.constant 0 : index
    %356 = vector.load %arg8[%c0_129, %c0_130] : memref<8x360xf32, #tpu.memory_space<vmem>>, vector<8x360xf32>
    %c0_131 = arith.constant 0 : index
    %c0_132 = arith.constant 0 : index
    %357 = vector.load %arg9[%c0_131, %c0_132] : memref<8x1xf32, #tpu.memory_space<vmem>>, vector<8x1xf32>
    %cst_133 = arith.constant 0.000000e+00 : f32
    %358 = vector.broadcast %cst_133 : f32 to vector<40x128xf32>
    %359 = tpu.concatenate %358, %355, %358 in 1 : vector<40x128xf32>, vector<40x256xf32>, vector<40x128xf32> -> vector<40x512xf32>
    %360 = tpu.iota {dimensions = array<i32: 1>} : vector<1x256xi32>
    %c16_i32_134 = arith.constant 16 : i32
    %c0_i32_135 = arith.constant 0 : i32
    %361 = arith.cmpi eq, %c16_i32_134, %c0_i32_135 : i32
    %c1_i32_136 = arith.constant 1 : i32
    %362 = arith.select %361, %c1_i32_136, %c16_i32_134 : i32
    %363 = vector.broadcast %362 : i32 to vector<1x256xi32>
    %364 = arith.remsi %360, %363 : vector<1x256xi32>
    %c0_i32_137 = arith.constant 0 : i32
    %365 = vector.broadcast %c0_i32_137 : i32 to vector<1x256xi32>
    %366 = arith.cmpi ne, %364, %365 : vector<1x256xi32>
    %c0_i32_138 = arith.constant 0 : i32
    %367 = vector.broadcast %c0_i32_138 : i32 to vector<1x256xi32>
    %368 = arith.cmpi slt, %364, %367 : vector<1x256xi32>
    %c0_i32_139 = arith.constant 0 : i32
    %369 = arith.cmpi slt, %362, %c0_i32_139 : i32
    %370 = vector.broadcast %369 : i1 to vector<1x256xi1>
    %371 = vector.broadcast %370 : vector<1x256xi1> to vector<1x256xi1>
    %372 = arith.xori %368, %371 : vector<1x256xi1>
    %373 = arith.andi %372, %366 : vector<1x256xi1>
    %374 = vector.broadcast %362 : i32 to vector<1x256xi32>
    %375 = arith.addi %364, %374 : vector<1x256xi32>
    %376 = arith.select %373, %375, %364 : vector<1x256xi1>, vector<1x256xi32>
    %377 = vector.extract_strided_slice %359 {offsets = [0, 111], sizes = [40, 256], strides = [1, 1]} : vector<40x512xf32> to vector<40x256xf32>
    %c-1_i32_140 = arith.constant -1 : i32
    %378 = vector.broadcast %c-1_i32_140 : i32 to vector<1x256xi32>
    %379 = arith.addi %376, %378 : vector<1x256xi32>
    %c0_i32_141 = arith.constant 0 : i32
    %380 = vector.broadcast %c0_i32_141 : i32 to vector<1x256xi32>
    %381 = arith.cmpi sge, %379, %380 : vector<1x256xi32>
    %c-1_i32_142 = arith.constant -1 : i32
    %382 = vector.broadcast %c-1_i32_142 : i32 to vector<1x256xi32>
    %383 = arith.addi %376, %382 : vector<1x256xi32>
    %c16_i32_143 = arith.constant 16 : i32
    %384 = vector.broadcast %c16_i32_143 : i32 to vector<1x256xi32>
    %385 = arith.cmpi slt, %383, %384 : vector<1x256xi32>
    %386 = arith.andi %381, %385 : vector<1x256xi1>
    %cst_144 = arith.constant 0.000000e+00 : f32
    %387 = vector.shape_cast %386 : vector<1x256xi1> to vector<1x256xi1>
    %388 = vector.broadcast %387 : vector<1x256xi1> to vector<40x256xi1>
    %389 = vector.broadcast %cst_144 : f32 to vector<40x256xf32>
    %390 = arith.select %388, %377, %389 : vector<40x256xi1>, vector<40x256xf32>
    %391 = vector.extract_strided_slice %359 {offsets = [0, 112], sizes = [40, 256], strides = [1, 1]} : vector<40x512xf32> to vector<40x256xf32>
    %392 = vector.extract_strided_slice %359 {offsets = [0, 113], sizes = [40, 256], strides = [1, 1]} : vector<40x512xf32> to vector<40x256xf32>
    %c1_i32_145 = arith.constant 1 : i32
    %393 = vector.broadcast %c1_i32_145 : i32 to vector<1x256xi32>
    %394 = arith.addi %376, %393 : vector<1x256xi32>
    %c0_i32_146 = arith.constant 0 : i32
    %395 = vector.broadcast %c0_i32_146 : i32 to vector<1x256xi32>
    %396 = arith.cmpi sge, %394, %395 : vector<1x256xi32>
    %c1_i32_147 = arith.constant 1 : i32
    %397 = vector.broadcast %c1_i32_147 : i32 to vector<1x256xi32>
    %398 = arith.addi %376, %397 : vector<1x256xi32>
    %c16_i32_148 = arith.constant 16 : i32
    %399 = vector.broadcast %c16_i32_148 : i32 to vector<1x256xi32>
    %400 = arith.cmpi slt, %398, %399 : vector<1x256xi32>
    %401 = arith.andi %396, %400 : vector<1x256xi1>
    %cst_149 = arith.constant 0.000000e+00 : f32
    %402 = vector.shape_cast %401 : vector<1x256xi1> to vector<1x256xi1>
    %403 = vector.broadcast %402 : vector<1x256xi1> to vector<40x256xi1>
    %404 = vector.broadcast %cst_149 : f32 to vector<40x256xf32>
    %405 = arith.select %403, %392, %404 : vector<40x256xi1>, vector<40x256xf32>
    %406 = vector.extract_strided_slice %359 {offsets = [0, 127], sizes = [40, 256], strides = [1, 1]} : vector<40x512xf32> to vector<40x256xf32>
    %c-1_i32_150 = arith.constant -1 : i32
    %407 = vector.broadcast %c-1_i32_150 : i32 to vector<1x256xi32>
    %408 = arith.addi %376, %407 : vector<1x256xi32>
    %c0_i32_151 = arith.constant 0 : i32
    %409 = vector.broadcast %c0_i32_151 : i32 to vector<1x256xi32>
    %410 = arith.cmpi sge, %408, %409 : vector<1x256xi32>
    %c-1_i32_152 = arith.constant -1 : i32
    %411 = vector.broadcast %c-1_i32_152 : i32 to vector<1x256xi32>
    %412 = arith.addi %376, %411 : vector<1x256xi32>
    %c16_i32_153 = arith.constant 16 : i32
    %413 = vector.broadcast %c16_i32_153 : i32 to vector<1x256xi32>
    %414 = arith.cmpi slt, %412, %413 : vector<1x256xi32>
    %415 = arith.andi %410, %414 : vector<1x256xi1>
    %cst_154 = arith.constant 0.000000e+00 : f32
    %416 = vector.shape_cast %415 : vector<1x256xi1> to vector<1x256xi1>
    %417 = vector.broadcast %416 : vector<1x256xi1> to vector<40x256xi1>
    %418 = vector.broadcast %cst_154 : f32 to vector<40x256xf32>
    %419 = arith.select %417, %406, %418 : vector<40x256xi1>, vector<40x256xf32>
    %420 = vector.extract_strided_slice %359 {offsets = [0, 128], sizes = [40, 256], strides = [1, 1]} : vector<40x512xf32> to vector<40x256xf32>
    %421 = vector.extract_strided_slice %359 {offsets = [0, 129], sizes = [40, 256], strides = [1, 1]} : vector<40x512xf32> to vector<40x256xf32>
    %c1_i32_155 = arith.constant 1 : i32
    %422 = vector.broadcast %c1_i32_155 : i32 to vector<1x256xi32>
    %423 = arith.addi %376, %422 : vector<1x256xi32>
    %c0_i32_156 = arith.constant 0 : i32
    %424 = vector.broadcast %c0_i32_156 : i32 to vector<1x256xi32>
    %425 = arith.cmpi sge, %423, %424 : vector<1x256xi32>
    %c1_i32_157 = arith.constant 1 : i32
    %426 = vector.broadcast %c1_i32_157 : i32 to vector<1x256xi32>
    %427 = arith.addi %376, %426 : vector<1x256xi32>
    %c16_i32_158 = arith.constant 16 : i32
    %428 = vector.broadcast %c16_i32_158 : i32 to vector<1x256xi32>
    %429 = arith.cmpi slt, %427, %428 : vector<1x256xi32>
    %430 = arith.andi %425, %429 : vector<1x256xi1>
    %cst_159 = arith.constant 0.000000e+00 : f32
    %431 = vector.shape_cast %430 : vector<1x256xi1> to vector<1x256xi1>
    %432 = vector.broadcast %431 : vector<1x256xi1> to vector<40x256xi1>
    %433 = vector.broadcast %cst_159 : f32 to vector<40x256xf32>
    %434 = arith.select %432, %421, %433 : vector<40x256xi1>, vector<40x256xf32>
    %435 = vector.extract_strided_slice %359 {offsets = [0, 143], sizes = [40, 256], strides = [1, 1]} : vector<40x512xf32> to vector<40x256xf32>
    %c-1_i32_160 = arith.constant -1 : i32
    %436 = vector.broadcast %c-1_i32_160 : i32 to vector<1x256xi32>
    %437 = arith.addi %376, %436 : vector<1x256xi32>
    %c0_i32_161 = arith.constant 0 : i32
    %438 = vector.broadcast %c0_i32_161 : i32 to vector<1x256xi32>
    %439 = arith.cmpi sge, %437, %438 : vector<1x256xi32>
    %c-1_i32_162 = arith.constant -1 : i32
    %440 = vector.broadcast %c-1_i32_162 : i32 to vector<1x256xi32>
    %441 = arith.addi %376, %440 : vector<1x256xi32>
    %c16_i32_163 = arith.constant 16 : i32
    %442 = vector.broadcast %c16_i32_163 : i32 to vector<1x256xi32>
    %443 = arith.cmpi slt, %441, %442 : vector<1x256xi32>
    %444 = arith.andi %439, %443 : vector<1x256xi1>
    %cst_164 = arith.constant 0.000000e+00 : f32
    %445 = vector.shape_cast %444 : vector<1x256xi1> to vector<1x256xi1>
    %446 = vector.broadcast %445 : vector<1x256xi1> to vector<40x256xi1>
    %447 = vector.broadcast %cst_164 : f32 to vector<40x256xf32>
    %448 = arith.select %446, %435, %447 : vector<40x256xi1>, vector<40x256xf32>
    %449 = vector.extract_strided_slice %359 {offsets = [0, 144], sizes = [40, 256], strides = [1, 1]} : vector<40x512xf32> to vector<40x256xf32>
    %450 = vector.extract_strided_slice %359 {offsets = [0, 145], sizes = [40, 256], strides = [1, 1]} : vector<40x512xf32> to vector<40x256xf32>
    %c1_i32_165 = arith.constant 1 : i32
    %451 = vector.broadcast %c1_i32_165 : i32 to vector<1x256xi32>
    %452 = arith.addi %376, %451 : vector<1x256xi32>
    %c0_i32_166 = arith.constant 0 : i32
    %453 = vector.broadcast %c0_i32_166 : i32 to vector<1x256xi32>
    %454 = arith.cmpi sge, %452, %453 : vector<1x256xi32>
    %c1_i32_167 = arith.constant 1 : i32
    %455 = vector.broadcast %c1_i32_167 : i32 to vector<1x256xi32>
    %456 = arith.addi %376, %455 : vector<1x256xi32>
    %c16_i32_168 = arith.constant 16 : i32
    %457 = vector.broadcast %c16_i32_168 : i32 to vector<1x256xi32>
    %458 = arith.cmpi slt, %456, %457 : vector<1x256xi32>
    %459 = arith.andi %454, %458 : vector<1x256xi1>
    %cst_169 = arith.constant 0.000000e+00 : f32
    %460 = vector.shape_cast %459 : vector<1x256xi1> to vector<1x256xi1>
    %461 = vector.broadcast %460 : vector<1x256xi1> to vector<40x256xi1>
    %462 = vector.broadcast %cst_169 : f32 to vector<40x256xf32>
    %463 = arith.select %461, %450, %462 : vector<40x256xi1>, vector<40x256xf32>
    %464 = tpu.concatenate %390, %391, %405, %419, %420, %434, %448, %449, %463 in 0 : vector<40x256xf32>, vector<40x256xf32>, vector<40x256xf32>, vector<40x256xf32>, vector<40x256xf32>, vector<40x256xf32>, vector<40x256xf32>, vector<40x256xf32>, vector<40x256xf32> -> vector<360x256xf32>
    %cst_170 = arith.constant dense<0.000000e+00> : vector<8x256xf32>
    %465 = tpu.matmul %356, %464, %cst_170 {dimension_numbers = #tpu.dot_dimension_numbers<[1], [0], [0], [1], [0, 0, 1, 1], [], []>} : vector<8x360xf32>, vector<360x256xf32>, vector<8x256xf32> -> vector<8x256xf32>
    %466 = vector.broadcast %357 : vector<8x1xf32> to vector<8x256xf32>
    %467 = arith.addf %465, %466 : vector<8x256xf32>
    %cst_171 = arith.constant 0.000000e+00 : f32
    %468 = vector.broadcast %cst_171 : f32 to vector<8x256xf32>
    %469 = arith.cmpf oge, %467, %468 : vector<8x256xf32>
    %cst_172 = arith.constant 2.000000e-01 : f32
    %470 = vector.broadcast %cst_172 : f32 to vector<8x256xf32>
    %471 = arith.mulf %470, %467 : vector<8x256xf32>
    %472 = arith.select %469, %467, %471 : vector<8x256xi1>, vector<8x256xf32>
    %473 = tpu.concatenate %355, %472 in 0 : vector<40x256xf32>, vector<8x256xf32> -> vector<48x256xf32>
    %c0_173 = arith.constant 0 : index
    %c0_174 = arith.constant 0 : index
    %474 = vector.load %arg10[%c0_173, %c0_174] : memref<16x432xf32, #tpu.memory_space<vmem>>, vector<16x432xf32>
    %c0_175 = arith.constant 0 : index
    %c0_176 = arith.constant 0 : index
    %475 = vector.load %arg11[%c0_175, %c0_176] : memref<16x1xf32, #tpu.memory_space<vmem>>, vector<16x1xf32>
    %cst_177 = arith.constant 0.000000e+00 : f32
    %476 = vector.broadcast %cst_177 : f32 to vector<48x128xf32>
    %477 = tpu.concatenate %476, %473, %476 in 1 : vector<48x128xf32>, vector<48x256xf32>, vector<48x128xf32> -> vector<48x512xf32>
    %478 = tpu.iota {dimensions = array<i32: 1>} : vector<1x256xi32>
    %c16_i32_178 = arith.constant 16 : i32
    %c0_i32_179 = arith.constant 0 : i32
    %479 = arith.cmpi eq, %c16_i32_178, %c0_i32_179 : i32
    %c1_i32_180 = arith.constant 1 : i32
    %480 = arith.select %479, %c1_i32_180, %c16_i32_178 : i32
    %481 = vector.broadcast %480 : i32 to vector<1x256xi32>
    %482 = arith.remsi %478, %481 : vector<1x256xi32>
    %c0_i32_181 = arith.constant 0 : i32
    %483 = vector.broadcast %c0_i32_181 : i32 to vector<1x256xi32>
    %484 = arith.cmpi ne, %482, %483 : vector<1x256xi32>
    %c0_i32_182 = arith.constant 0 : i32
    %485 = vector.broadcast %c0_i32_182 : i32 to vector<1x256xi32>
    %486 = arith.cmpi slt, %482, %485 : vector<1x256xi32>
    %c0_i32_183 = arith.constant 0 : i32
    %487 = arith.cmpi slt, %480, %c0_i32_183 : i32
    %488 = vector.broadcast %487 : i1 to vector<1x256xi1>
    %489 = vector.broadcast %488 : vector<1x256xi1> to vector<1x256xi1>
    %490 = arith.xori %486, %489 : vector<1x256xi1>
    %491 = arith.andi %490, %484 : vector<1x256xi1>
    %492 = vector.broadcast %480 : i32 to vector<1x256xi32>
    %493 = arith.addi %482, %492 : vector<1x256xi32>
    %494 = arith.select %491, %493, %482 : vector<1x256xi1>, vector<1x256xi32>
    %495 = vector.extract_strided_slice %477 {offsets = [0, 111], sizes = [48, 256], strides = [1, 1]} : vector<48x512xf32> to vector<48x256xf32>
    %c-1_i32_184 = arith.constant -1 : i32
    %496 = vector.broadcast %c-1_i32_184 : i32 to vector<1x256xi32>
    %497 = arith.addi %494, %496 : vector<1x256xi32>
    %c0_i32_185 = arith.constant 0 : i32
    %498 = vector.broadcast %c0_i32_185 : i32 to vector<1x256xi32>
    %499 = arith.cmpi sge, %497, %498 : vector<1x256xi32>
    %c-1_i32_186 = arith.constant -1 : i32
    %500 = vector.broadcast %c-1_i32_186 : i32 to vector<1x256xi32>
    %501 = arith.addi %494, %500 : vector<1x256xi32>
    %c16_i32_187 = arith.constant 16 : i32
    %502 = vector.broadcast %c16_i32_187 : i32 to vector<1x256xi32>
    %503 = arith.cmpi slt, %501, %502 : vector<1x256xi32>
    %504 = arith.andi %499, %503 : vector<1x256xi1>
    %cst_188 = arith.constant 0.000000e+00 : f32
    %505 = vector.shape_cast %504 : vector<1x256xi1> to vector<1x256xi1>
    %506 = vector.broadcast %505 : vector<1x256xi1> to vector<48x256xi1>
    %507 = vector.broadcast %cst_188 : f32 to vector<48x256xf32>
    %508 = arith.select %506, %495, %507 : vector<48x256xi1>, vector<48x256xf32>
    %509 = vector.extract_strided_slice %477 {offsets = [0, 112], sizes = [48, 256], strides = [1, 1]} : vector<48x512xf32> to vector<48x256xf32>
    %510 = vector.extract_strided_slice %477 {offsets = [0, 113], sizes = [48, 256], strides = [1, 1]} : vector<48x512xf32> to vector<48x256xf32>
    %c1_i32_189 = arith.constant 1 : i32
    %511 = vector.broadcast %c1_i32_189 : i32 to vector<1x256xi32>
    %512 = arith.addi %494, %511 : vector<1x256xi32>
    %c0_i32_190 = arith.constant 0 : i32
    %513 = vector.broadcast %c0_i32_190 : i32 to vector<1x256xi32>
    %514 = arith.cmpi sge, %512, %513 : vector<1x256xi32>
    %c1_i32_191 = arith.constant 1 : i32
    %515 = vector.broadcast %c1_i32_191 : i32 to vector<1x256xi32>
    %516 = arith.addi %494, %515 : vector<1x256xi32>
    %c16_i32_192 = arith.constant 16 : i32
    %517 = vector.broadcast %c16_i32_192 : i32 to vector<1x256xi32>
    %518 = arith.cmpi slt, %516, %517 : vector<1x256xi32>
    %519 = arith.andi %514, %518 : vector<1x256xi1>
    %cst_193 = arith.constant 0.000000e+00 : f32
    %520 = vector.shape_cast %519 : vector<1x256xi1> to vector<1x256xi1>
    %521 = vector.broadcast %520 : vector<1x256xi1> to vector<48x256xi1>
    %522 = vector.broadcast %cst_193 : f32 to vector<48x256xf32>
    %523 = arith.select %521, %510, %522 : vector<48x256xi1>, vector<48x256xf32>
    %524 = vector.extract_strided_slice %477 {offsets = [0, 127], sizes = [48, 256], strides = [1, 1]} : vector<48x512xf32> to vector<48x256xf32>
    %c-1_i32_194 = arith.constant -1 : i32
    %525 = vector.broadcast %c-1_i32_194 : i32 to vector<1x256xi32>
    %526 = arith.addi %494, %525 : vector<1x256xi32>
    %c0_i32_195 = arith.constant 0 : i32
    %527 = vector.broadcast %c0_i32_195 : i32 to vector<1x256xi32>
    %528 = arith.cmpi sge, %526, %527 : vector<1x256xi32>
    %c-1_i32_196 = arith.constant -1 : i32
    %529 = vector.broadcast %c-1_i32_196 : i32 to vector<1x256xi32>
    %530 = arith.addi %494, %529 : vector<1x256xi32>
    %c16_i32_197 = arith.constant 16 : i32
    %531 = vector.broadcast %c16_i32_197 : i32 to vector<1x256xi32>
    %532 = arith.cmpi slt, %530, %531 : vector<1x256xi32>
    %533 = arith.andi %528, %532 : vector<1x256xi1>
    %cst_198 = arith.constant 0.000000e+00 : f32
    %534 = vector.shape_cast %533 : vector<1x256xi1> to vector<1x256xi1>
    %535 = vector.broadcast %534 : vector<1x256xi1> to vector<48x256xi1>
    %536 = vector.broadcast %cst_198 : f32 to vector<48x256xf32>
    %537 = arith.select %535, %524, %536 : vector<48x256xi1>, vector<48x256xf32>
    %538 = vector.extract_strided_slice %477 {offsets = [0, 128], sizes = [48, 256], strides = [1, 1]} : vector<48x512xf32> to vector<48x256xf32>
    %539 = vector.extract_strided_slice %477 {offsets = [0, 129], sizes = [48, 256], strides = [1, 1]} : vector<48x512xf32> to vector<48x256xf32>
    %c1_i32_199 = arith.constant 1 : i32
    %540 = vector.broadcast %c1_i32_199 : i32 to vector<1x256xi32>
    %541 = arith.addi %494, %540 : vector<1x256xi32>
    %c0_i32_200 = arith.constant 0 : i32
    %542 = vector.broadcast %c0_i32_200 : i32 to vector<1x256xi32>
    %543 = arith.cmpi sge, %541, %542 : vector<1x256xi32>
    %c1_i32_201 = arith.constant 1 : i32
    %544 = vector.broadcast %c1_i32_201 : i32 to vector<1x256xi32>
    %545 = arith.addi %494, %544 : vector<1x256xi32>
    %c16_i32_202 = arith.constant 16 : i32
    %546 = vector.broadcast %c16_i32_202 : i32 to vector<1x256xi32>
    %547 = arith.cmpi slt, %545, %546 : vector<1x256xi32>
    %548 = arith.andi %543, %547 : vector<1x256xi1>
    %cst_203 = arith.constant 0.000000e+00 : f32
    %549 = vector.shape_cast %548 : vector<1x256xi1> to vector<1x256xi1>
    %550 = vector.broadcast %549 : vector<1x256xi1> to vector<48x256xi1>
    %551 = vector.broadcast %cst_203 : f32 to vector<48x256xf32>
    %552 = arith.select %550, %539, %551 : vector<48x256xi1>, vector<48x256xf32>
    %553 = vector.extract_strided_slice %477 {offsets = [0, 143], sizes = [48, 256], strides = [1, 1]} : vector<48x512xf32> to vector<48x256xf32>
    %c-1_i32_204 = arith.constant -1 : i32
    %554 = vector.broadcast %c-1_i32_204 : i32 to vector<1x256xi32>
    %555 = arith.addi %494, %554 : vector<1x256xi32>
    %c0_i32_205 = arith.constant 0 : i32
    %556 = vector.broadcast %c0_i32_205 : i32 to vector<1x256xi32>
    %557 = arith.cmpi sge, %555, %556 : vector<1x256xi32>
    %c-1_i32_206 = arith.constant -1 : i32
    %558 = vector.broadcast %c-1_i32_206 : i32 to vector<1x256xi32>
    %559 = arith.addi %494, %558 : vector<1x256xi32>
    %c16_i32_207 = arith.constant 16 : i32
    %560 = vector.broadcast %c16_i32_207 : i32 to vector<1x256xi32>
    %561 = arith.cmpi slt, %559, %560 : vector<1x256xi32>
    %562 = arith.andi %557, %561 : vector<1x256xi1>
    %cst_208 = arith.constant 0.000000e+00 : f32
    %563 = vector.shape_cast %562 : vector<1x256xi1> to vector<1x256xi1>
    %564 = vector.broadcast %563 : vector<1x256xi1> to vector<48x256xi1>
    %565 = vector.broadcast %cst_208 : f32 to vector<48x256xf32>
    %566 = arith.select %564, %553, %565 : vector<48x256xi1>, vector<48x256xf32>
    %567 = vector.extract_strided_slice %477 {offsets = [0, 144], sizes = [48, 256], strides = [1, 1]} : vector<48x512xf32> to vector<48x256xf32>
    %568 = vector.extract_strided_slice %477 {offsets = [0, 145], sizes = [48, 256], strides = [1, 1]} : vector<48x512xf32> to vector<48x256xf32>
    %c1_i32_209 = arith.constant 1 : i32
    %569 = vector.broadcast %c1_i32_209 : i32 to vector<1x256xi32>
    %570 = arith.addi %494, %569 : vector<1x256xi32>
    %c0_i32_210 = arith.constant 0 : i32
    %571 = vector.broadcast %c0_i32_210 : i32 to vector<1x256xi32>
    %572 = arith.cmpi sge, %570, %571 : vector<1x256xi32>
    %c1_i32_211 = arith.constant 1 : i32
    %573 = vector.broadcast %c1_i32_211 : i32 to vector<1x256xi32>
    %574 = arith.addi %494, %573 : vector<1x256xi32>
    %c16_i32_212 = arith.constant 16 : i32
    %575 = vector.broadcast %c16_i32_212 : i32 to vector<1x256xi32>
    %576 = arith.cmpi slt, %574, %575 : vector<1x256xi32>
    %577 = arith.andi %572, %576 : vector<1x256xi1>
    %cst_213 = arith.constant 0.000000e+00 : f32
    %578 = vector.shape_cast %577 : vector<1x256xi1> to vector<1x256xi1>
    %579 = vector.broadcast %578 : vector<1x256xi1> to vector<48x256xi1>
    %580 = vector.broadcast %cst_213 : f32 to vector<48x256xf32>
    %581 = arith.select %579, %568, %580 : vector<48x256xi1>, vector<48x256xf32>
    %582 = tpu.concatenate %508, %509, %523, %537, %538, %552, %566, %567, %581 in 0 : vector<48x256xf32>, vector<48x256xf32>, vector<48x256xf32>, vector<48x256xf32>, vector<48x256xf32>, vector<48x256xf32>, vector<48x256xf32>, vector<48x256xf32>, vector<48x256xf32> -> vector<432x256xf32>
    %cst_214 = arith.constant dense<0.000000e+00> : vector<16x256xf32>
    %583 = tpu.matmul %474, %582, %cst_214 {dimension_numbers = #tpu.dot_dimension_numbers<[1], [0], [0], [1], [0, 0, 1, 1], [], []>} : vector<16x432xf32>, vector<432x256xf32>, vector<16x256xf32> -> vector<16x256xf32>
    %584 = vector.broadcast %475 : vector<16x1xf32> to vector<16x256xf32>
    %585 = arith.addf %583, %584 : vector<16x256xf32>
    %cst_215 = arith.constant 2.000000e-01 : f32
    %586 = vector.broadcast %cst_215 : f32 to vector<16x256xf32>
    %587 = arith.mulf %585, %586 : vector<16x256xf32>
    %588 = arith.addf %587, %1 : vector<16x256xf32>
    %c0_216 = arith.constant 0 : index
    %c0_217 = arith.constant 0 : index
    %c0_218 = arith.constant 0 : index
    %589 = vector.load %arg12[%c0_216, %c0_217, %c0_218] : memref<1x16x256xf32, #tpu.memory_space<vmem>>, vector<1x16x256xf32>
    %590 = vector.shape_cast %589 : vector<1x16x256xf32> to vector<16x256xf32>
    %591 = vector.shape_cast %588 : vector<16x256xf32> to vector<1x16x256xf32>
    tpu.vector_store %arg12[%c0_216, %c0_217, %c0_218], %591 {strides = array<i32>} : memref<1x16x256xf32, #tpu.memory_space<vmem>>, vector<1x16x256xf32>,
    return
  }
  func.func @transform_0(%arg0: i32) -> (i32, i32, i32) {
    %c0_i32 = arith.constant 0 : i32
    %c0_i32_0 = arith.constant 0 : i32
    %c0_i32_1 = arith.constant 0 : i32
    return %arg0, %c0_i32, %c0_i32_0 : i32, i32, i32
  }
  func.func @transform_1(%arg0: i32) -> (i32, i32) {
    %c0_i32 = arith.constant 0 : i32
    %c0_i32_0 = arith.constant 0 : i32
    %c0_i32_1 = arith.constant 0 : i32
    return %c0_i32, %c0_i32_0 : i32, i32
  }
  func.func @transform_2(%arg0: i32) -> (i32, i32) {
    %c0_i32 = arith.constant 0 : i32
    %c0_i32_0 = arith.constant 0 : i32
    %c0_i32_1 = arith.constant 0 : i32
    return %c0_i32, %c0_i32_0 : i32, i32
  }
  func.func @transform_3(%arg0: i32) -> (i32, i32) {
    %c0_i32 = arith.constant 0 : i32
    %c0_i32_0 = arith.constant 0 : i32
    %c0_i32_1 = arith.constant 0 : i32
    return %c0_i32, %c0_i32_0 : i32, i32
  }
  func.func @transform_4(%arg0: i32) -> (i32, i32) {
    %c0_i32 = arith.constant 0 : i32
    %c0_i32_0 = arith.constant 0 : i32
    %c0_i32_1 = arith.constant 0 : i32
    return %c0_i32, %c0_i32_0 : i32, i32
  }
  func.func @transform_5(%arg0: i32) -> (i32, i32) {
    %c0_i32 = arith.constant 0 : i32
    %c0_i32_0 = arith.constant 0 : i32
    %c0_i32_1 = arith.constant 0 : i32
    return %c0_i32, %c0_i32_0 : i32, i32
  }
  func.func @transform_6(%arg0: i32) -> (i32, i32) {
    %c0_i32 = arith.constant 0 : i32
    %c0_i32_0 = arith.constant 0 : i32
    %c0_i32_1 = arith.constant 0 : i32
    return %c0_i32, %c0_i32_0 : i32, i32
  }
  func.func @transform_7(%arg0: i32) -> (i32, i32) {
    %c0_i32 = arith.constant 0 : i32
    %c0_i32_0 = arith.constant 0 : i32
    %c0_i32_1 = arith.constant 0 : i32
    return %c0_i32, %c0_i32_0 : i32, i32
  }
  func.func @transform_8(%arg0: i32) -> (i32, i32) {
    %c0_i32 = arith.constant 0 : i32
    %c0_i32_0 = arith.constant 0 : i32
    %c0_i32_1 = arith.constant 0 : i32
    return %c0_i32, %c0_i32_0 : i32, i32
  }
  func.func @transform_9(%arg0: i32) -> (i32, i32) {
    %c0_i32 = arith.constant 0 : i32
    %c0_i32_0 = arith.constant 0 : i32
    %c0_i32_1 = arith.constant 0 : i32
    return %c0_i32, %c0_i32_0 : i32, i32
  }
  func.func @transform_10(%arg0: i32) -> (i32, i32) {
    %c0_i32 = arith.constant 0 : i32
    %c0_i32_0 = arith.constant 0 : i32
    %c0_i32_1 = arith.constant 0 : i32
    return %c0_i32, %c0_i32_0 : i32, i32
  }
  func.func @transform_11(%arg0: i32) -> (i32, i32, i32) {
    %c0_i32 = arith.constant 0 : i32
    %c0_i32_0 = arith.constant 0 : i32
    %c0_i32_1 = arith.constant 0 : i32
    return %arg0, %c0_i32, %c0_i32_0 : i32, i32, i32
  }
}

module attributes {stable_mosaic.version = 11 : i64} {
  func.func @_rdb_kernel(%arg0: i32, %arg1: memref<1x16x256xf32, #tpu.memory_space<vmem>>, %arg2: memref<1x16x256xf32, #tpu.memory_space<vmem>>, %arg3: memref<8x144xf32, #tpu.memory_space<vmem>>, %arg4: memref<8x1xf32, #tpu.memory_space<vmem>>, %arg5: memref<8x216xf32, #tpu.memory_space<vmem>>, %arg6: memref<8x1xf32, #tpu.memory_space<vmem>>, %arg7: memref<8x288xf32, #tpu.memory_space<vmem>>, %arg8: memref<8x1xf32, #tpu.memory_space<vmem>>, %arg9: memref<8x360xf32, #tpu.memory_space<vmem>>, %arg10: memref<8x1xf32, #tpu.memory_space<vmem>>, %arg11: memref<16x432xf32, #tpu.memory_space<vmem>>, %arg12: memref<16x1xf32, #tpu.memory_space<vmem>>, %arg13: memref<1x16x256xf32, #tpu.memory_space<vmem>>) attributes {dimension_semantics = [#tpu.dimension_semantics<parallel>], iteration_bounds = array<i64: 2>, scalar_prefetch = 0 : i64, scratch_operands = 0 : i64, tpu.core_type = #tpu.core_type<tc>, window_params = [{transform_indices = @transform_0, window_bounds = array<i64: 1, 16, 256>}, {transform_indices = @transform_1, window_bounds = array<i64: 1, 16, 256>}, {pipeline_mode = #tpu.pipeline_mode<synchronous>, transform_indices = @transform_2, window_bounds = array<i64: 8, 144>}, {pipeline_mode = #tpu.pipeline_mode<synchronous>, transform_indices = @transform_3, window_bounds = array<i64: 8, 1>}, {pipeline_mode = #tpu.pipeline_mode<synchronous>, transform_indices = @transform_4, window_bounds = array<i64: 8, 216>}, {pipeline_mode = #tpu.pipeline_mode<synchronous>, transform_indices = @transform_5, window_bounds = array<i64: 8, 1>}, {pipeline_mode = #tpu.pipeline_mode<synchronous>, transform_indices = @transform_6, window_bounds = array<i64: 8, 288>}, {pipeline_mode = #tpu.pipeline_mode<synchronous>, transform_indices = @transform_7, window_bounds = array<i64: 8, 1>}, {pipeline_mode = #tpu.pipeline_mode<synchronous>, transform_indices = @transform_8, window_bounds = array<i64: 8, 360>}, {pipeline_mode = #tpu.pipeline_mode<synchronous>, transform_indices = @transform_9, window_bounds = array<i64: 8, 1>}, {pipeline_mode = #tpu.pipeline_mode<synchronous>, transform_indices = @transform_10, window_bounds = array<i64: 16, 432>}, {pipeline_mode = #tpu.pipeline_mode<synchronous>, transform_indices = @transform_11, window_bounds = array<i64: 16, 1>}, {transform_indices = @transform_12, window_bounds = array<i64: 1, 16, 256>}]} {
    %c0 = arith.constant 0 : index
    %c0_0 = arith.constant 0 : index
    %c0_1 = arith.constant 0 : index
    %0 = vector.load %arg1[%c0, %c0_0, %c0_1] : memref<1x16x256xf32, #tpu.memory_space<vmem>>, vector<1x16x256xf32>
    %1 = vector.shape_cast %0 : vector<1x16x256xf32> to vector<16x256xf32>
    %c0_2 = arith.constant 0 : index
    %c0_3 = arith.constant 0 : index
    %2 = vector.load %arg3[%c0_2, %c0_3] : memref<8x144xf32, #tpu.memory_space<vmem>>, vector<8x144xf32>
    %c0_4 = arith.constant 0 : index
    %c0_5 = arith.constant 0 : index
    %3 = vector.load %arg4[%c0_4, %c0_5] : memref<8x1xf32, #tpu.memory_space<vmem>>, vector<8x1xf32>
    %cst = arith.constant 0.000000e+00 : f32
    %4 = vector.broadcast %cst : f32 to vector<16x128xf32>
    %5 = tpu.concatenate %4, %1, %4 in 1 : vector<16x128xf32>, vector<16x256xf32>, vector<16x128xf32> -> vector<16x512xf32>
    %6 = tpu.iota {dimensions = array<i32: 1>} : vector<1x256xi32>
    %c16_i32 = arith.constant 16 : i32
    %c0_i32 = arith.constant 0 : i32
    %7 = arith.cmpi eq, %c16_i32, %c0_i32 : i32
    %c1_i32 = arith.constant 1 : i32
    %8 = arith.select %7, %c1_i32, %c16_i32 : i32
    %9 = vector.broadcast %8 : i32 to vector<1x256xi32>
    %10 = arith.remsi %6, %9 : vector<1x256xi32>
    %c0_i32_6 = arith.constant 0 : i32
    %11 = vector.broadcast %c0_i32_6 : i32 to vector<1x256xi32>
    %12 = arith.cmpi ne, %10, %11 : vector<1x256xi32>
    %c0_i32_7 = arith.constant 0 : i32
    %13 = vector.broadcast %c0_i32_7 : i32 to vector<1x256xi32>
    %14 = arith.cmpi slt, %10, %13 : vector<1x256xi32>
    %c0_i32_8 = arith.constant 0 : i32
    %15 = arith.cmpi slt, %8, %c0_i32_8 : i32
    %16 = vector.broadcast %15 : i1 to vector<1x256xi1>
    %17 = vector.broadcast %16 : vector<1x256xi1> to vector<1x256xi1>
    %18 = arith.xori %14, %17 : vector<1x256xi1>
    %19 = arith.andi %18, %12 : vector<1x256xi1>
    %20 = vector.broadcast %8 : i32 to vector<1x256xi32>
    %21 = arith.addi %10, %20 : vector<1x256xi32>
    %22 = arith.select %19, %21, %10 : vector<1x256xi1>, vector<1x256xi32>
    %23 = vector.extract_strided_slice %5 {offsets = [0, 111], sizes = [16, 256], strides = [1, 1]} : vector<16x512xf32> to vector<16x256xf32>
    %c-1_i32 = arith.constant -1 : i32
    %24 = vector.broadcast %c-1_i32 : i32 to vector<1x256xi32>
    %25 = arith.addi %22, %24 : vector<1x256xi32>
    %c0_i32_9 = arith.constant 0 : i32
    %26 = vector.broadcast %c0_i32_9 : i32 to vector<1x256xi32>
    %27 = arith.cmpi sge, %25, %26 : vector<1x256xi32>
    %c-1_i32_10 = arith.constant -1 : i32
    %28 = vector.broadcast %c-1_i32_10 : i32 to vector<1x256xi32>
    %29 = arith.addi %22, %28 : vector<1x256xi32>
    %c16_i32_11 = arith.constant 16 : i32
    %30 = vector.broadcast %c16_i32_11 : i32 to vector<1x256xi32>
    %31 = arith.cmpi slt, %29, %30 : vector<1x256xi32>
    %32 = arith.andi %27, %31 : vector<1x256xi1>
    %cst_12 = arith.constant 0.000000e+00 : f32
    %33 = vector.shape_cast %32 : vector<1x256xi1> to vector<1x256xi1>
    %34 = vector.broadcast %33 : vector<1x256xi1> to vector<16x256xi1>
    %35 = vector.broadcast %cst_12 : f32 to vector<16x256xf32>
    %36 = arith.select %34, %23, %35 : vector<16x256xi1>, vector<16x256xf32>
    %37 = vector.extract_strided_slice %5 {offsets = [0, 112], sizes = [16, 256], strides = [1, 1]} : vector<16x512xf32> to vector<16x256xf32>
    %38 = vector.extract_strided_slice %5 {offsets = [0, 113], sizes = [16, 256], strides = [1, 1]} : vector<16x512xf32> to vector<16x256xf32>
    %c1_i32_13 = arith.constant 1 : i32
    %39 = vector.broadcast %c1_i32_13 : i32 to vector<1x256xi32>
    %40 = arith.addi %22, %39 : vector<1x256xi32>
    %c0_i32_14 = arith.constant 0 : i32
    %41 = vector.broadcast %c0_i32_14 : i32 to vector<1x256xi32>
    %42 = arith.cmpi sge, %40, %41 : vector<1x256xi32>
    %c1_i32_15 = arith.constant 1 : i32
    %43 = vector.broadcast %c1_i32_15 : i32 to vector<1x256xi32>
    %44 = arith.addi %22, %43 : vector<1x256xi32>
    %c16_i32_16 = arith.constant 16 : i32
    %45 = vector.broadcast %c16_i32_16 : i32 to vector<1x256xi32>
    %46 = arith.cmpi slt, %44, %45 : vector<1x256xi32>
    %47 = arith.andi %42, %46 : vector<1x256xi1>
    %cst_17 = arith.constant 0.000000e+00 : f32
    %48 = vector.shape_cast %47 : vector<1x256xi1> to vector<1x256xi1>
    %49 = vector.broadcast %48 : vector<1x256xi1> to vector<16x256xi1>
    %50 = vector.broadcast %cst_17 : f32 to vector<16x256xf32>
    %51 = arith.select %49, %38, %50 : vector<16x256xi1>, vector<16x256xf32>
    %52 = vector.extract_strided_slice %5 {offsets = [0, 127], sizes = [16, 256], strides = [1, 1]} : vector<16x512xf32> to vector<16x256xf32>
    %c-1_i32_18 = arith.constant -1 : i32
    %53 = vector.broadcast %c-1_i32_18 : i32 to vector<1x256xi32>
    %54 = arith.addi %22, %53 : vector<1x256xi32>
    %c0_i32_19 = arith.constant 0 : i32
    %55 = vector.broadcast %c0_i32_19 : i32 to vector<1x256xi32>
    %56 = arith.cmpi sge, %54, %55 : vector<1x256xi32>
    %c-1_i32_20 = arith.constant -1 : i32
    %57 = vector.broadcast %c-1_i32_20 : i32 to vector<1x256xi32>
    %58 = arith.addi %22, %57 : vector<1x256xi32>
    %c16_i32_21 = arith.constant 16 : i32
    %59 = vector.broadcast %c16_i32_21 : i32 to vector<1x256xi32>
    %60 = arith.cmpi slt, %58, %59 : vector<1x256xi32>
    %61 = arith.andi %56, %60 : vector<1x256xi1>
    %cst_22 = arith.constant 0.000000e+00 : f32
    %62 = vector.shape_cast %61 : vector<1x256xi1> to vector<1x256xi1>
    %63 = vector.broadcast %62 : vector<1x256xi1> to vector<16x256xi1>
    %64 = vector.broadcast %cst_22 : f32 to vector<16x256xf32>
    %65 = arith.select %63, %52, %64 : vector<16x256xi1>, vector<16x256xf32>
    %66 = vector.extract_strided_slice %5 {offsets = [0, 128], sizes = [16, 256], strides = [1, 1]} : vector<16x512xf32> to vector<16x256xf32>
    %67 = vector.extract_strided_slice %5 {offsets = [0, 129], sizes = [16, 256], strides = [1, 1]} : vector<16x512xf32> to vector<16x256xf32>
    %c1_i32_23 = arith.constant 1 : i32
    %68 = vector.broadcast %c1_i32_23 : i32 to vector<1x256xi32>
    %69 = arith.addi %22, %68 : vector<1x256xi32>
    %c0_i32_24 = arith.constant 0 : i32
    %70 = vector.broadcast %c0_i32_24 : i32 to vector<1x256xi32>
    %71 = arith.cmpi sge, %69, %70 : vector<1x256xi32>
    %c1_i32_25 = arith.constant 1 : i32
    %72 = vector.broadcast %c1_i32_25 : i32 to vector<1x256xi32>
    %73 = arith.addi %22, %72 : vector<1x256xi32>
    %c16_i32_26 = arith.constant 16 : i32
    %74 = vector.broadcast %c16_i32_26 : i32 to vector<1x256xi32>
    %75 = arith.cmpi slt, %73, %74 : vector<1x256xi32>
    %76 = arith.andi %71, %75 : vector<1x256xi1>
    %cst_27 = arith.constant 0.000000e+00 : f32
    %77 = vector.shape_cast %76 : vector<1x256xi1> to vector<1x256xi1>
    %78 = vector.broadcast %77 : vector<1x256xi1> to vector<16x256xi1>
    %79 = vector.broadcast %cst_27 : f32 to vector<16x256xf32>
    %80 = arith.select %78, %67, %79 : vector<16x256xi1>, vector<16x256xf32>
    %81 = vector.extract_strided_slice %5 {offsets = [0, 143], sizes = [16, 256], strides = [1, 1]} : vector<16x512xf32> to vector<16x256xf32>
    %c-1_i32_28 = arith.constant -1 : i32
    %82 = vector.broadcast %c-1_i32_28 : i32 to vector<1x256xi32>
    %83 = arith.addi %22, %82 : vector<1x256xi32>
    %c0_i32_29 = arith.constant 0 : i32
    %84 = vector.broadcast %c0_i32_29 : i32 to vector<1x256xi32>
    %85 = arith.cmpi sge, %83, %84 : vector<1x256xi32>
    %c-1_i32_30 = arith.constant -1 : i32
    %86 = vector.broadcast %c-1_i32_30 : i32 to vector<1x256xi32>
    %87 = arith.addi %22, %86 : vector<1x256xi32>
    %c16_i32_31 = arith.constant 16 : i32
    %88 = vector.broadcast %c16_i32_31 : i32 to vector<1x256xi32>
    %89 = arith.cmpi slt, %87, %88 : vector<1x256xi32>
    %90 = arith.andi %85, %89 : vector<1x256xi1>
    %cst_32 = arith.constant 0.000000e+00 : f32
    %91 = vector.shape_cast %90 : vector<1x256xi1> to vector<1x256xi1>
    %92 = vector.broadcast %91 : vector<1x256xi1> to vector<16x256xi1>
    %93 = vector.broadcast %cst_32 : f32 to vector<16x256xf32>
    %94 = arith.select %92, %81, %93 : vector<16x256xi1>, vector<16x256xf32>
    %95 = vector.extract_strided_slice %5 {offsets = [0, 144], sizes = [16, 256], strides = [1, 1]} : vector<16x512xf32> to vector<16x256xf32>
    %96 = vector.extract_strided_slice %5 {offsets = [0, 145], sizes = [16, 256], strides = [1, 1]} : vector<16x512xf32> to vector<16x256xf32>
    %c1_i32_33 = arith.constant 1 : i32
    %97 = vector.broadcast %c1_i32_33 : i32 to vector<1x256xi32>
    %98 = arith.addi %22, %97 : vector<1x256xi32>
    %c0_i32_34 = arith.constant 0 : i32
    %99 = vector.broadcast %c0_i32_34 : i32 to vector<1x256xi32>
    %100 = arith.cmpi sge, %98, %99 : vector<1x256xi32>
    %c1_i32_35 = arith.constant 1 : i32
    %101 = vector.broadcast %c1_i32_35 : i32 to vector<1x256xi32>
    %102 = arith.addi %22, %101 : vector<1x256xi32>
    %c16_i32_36 = arith.constant 16 : i32
    %103 = vector.broadcast %c16_i32_36 : i32 to vector<1x256xi32>
    %104 = arith.cmpi slt, %102, %103 : vector<1x256xi32>
    %105 = arith.andi %100, %104 : vector<1x256xi1>
    %cst_37 = arith.constant 0.000000e+00 : f32
    %106 = vector.shape_cast %105 : vector<1x256xi1> to vector<1x256xi1>
    %107 = vector.broadcast %106 : vector<1x256xi1> to vector<16x256xi1>
    %108 = vector.broadcast %cst_37 : f32 to vector<16x256xf32>
    %109 = arith.select %107, %96, %108 : vector<16x256xi1>, vector<16x256xf32>
    %110 = tpu.concatenate %36, %37, %51, %65, %66, %80, %94, %95, %109 in 0 : vector<16x256xf32>, vector<16x256xf32>, vector<16x256xf32>, vector<16x256xf32>, vector<16x256xf32>, vector<16x256xf32>, vector<16x256xf32>, vector<16x256xf32>, vector<16x256xf32> -> vector<144x256xf32>
    %cst_38 = arith.constant dense<0.000000e+00> : vector<8x256xf32>
    %111 = tpu.matmul %2, %110, %cst_38 {dimension_numbers = #tpu.dot_dimension_numbers<[1], [0], [0], [1], [0, 0, 1, 1], [], []>} : vector<8x144xf32>, vector<144x256xf32>, vector<8x256xf32> -> vector<8x256xf32>
    %112 = vector.broadcast %3 : vector<8x1xf32> to vector<8x256xf32>
    %113 = arith.addf %111, %112 : vector<8x256xf32>
    %cst_39 = arith.constant 0.000000e+00 : f32
    %114 = vector.broadcast %cst_39 : f32 to vector<8x256xf32>
    %115 = arith.cmpf oge, %113, %114 : vector<8x256xf32>
    %cst_40 = arith.constant 2.000000e-01 : f32
    %116 = vector.broadcast %cst_40 : f32 to vector<8x256xf32>
    %117 = arith.mulf %116, %113 : vector<8x256xf32>
    %118 = arith.select %115, %113, %117 : vector<8x256xi1>, vector<8x256xf32>
    %119 = tpu.concatenate %1, %118 in 0 : vector<16x256xf32>, vector<8x256xf32> -> vector<24x256xf32>
    %c0_41 = arith.constant 0 : index
    %c0_42 = arith.constant 0 : index
    %120 = vector.load %arg5[%c0_41, %c0_42] : memref<8x216xf32, #tpu.memory_space<vmem>>, vector<8x216xf32>
    %c0_43 = arith.constant 0 : index
    %c0_44 = arith.constant 0 : index
    %121 = vector.load %arg6[%c0_43, %c0_44] : memref<8x1xf32, #tpu.memory_space<vmem>>, vector<8x1xf32>
    %cst_45 = arith.constant 0.000000e+00 : f32
    %122 = vector.broadcast %cst_45 : f32 to vector<24x128xf32>
    %123 = tpu.concatenate %122, %119, %122 in 1 : vector<24x128xf32>, vector<24x256xf32>, vector<24x128xf32> -> vector<24x512xf32>
    %124 = tpu.iota {dimensions = array<i32: 1>} : vector<1x256xi32>
    %c16_i32_46 = arith.constant 16 : i32
    %c0_i32_47 = arith.constant 0 : i32
    %125 = arith.cmpi eq, %c16_i32_46, %c0_i32_47 : i32
    %c1_i32_48 = arith.constant 1 : i32
    %126 = arith.select %125, %c1_i32_48, %c16_i32_46 : i32
    %127 = vector.broadcast %126 : i32 to vector<1x256xi32>
    %128 = arith.remsi %124, %127 : vector<1x256xi32>
    %c0_i32_49 = arith.constant 0 : i32
    %129 = vector.broadcast %c0_i32_49 : i32 to vector<1x256xi32>
    %130 = arith.cmpi ne, %128, %129 : vector<1x256xi32>
    %c0_i32_50 = arith.constant 0 : i32
    %131 = vector.broadcast %c0_i32_50 : i32 to vector<1x256xi32>
    %132 = arith.cmpi slt, %128, %131 : vector<1x256xi32>
    %c0_i32_51 = arith.constant 0 : i32
    %133 = arith.cmpi slt, %126, %c0_i32_51 : i32
    %134 = vector.broadcast %133 : i1 to vector<1x256xi1>
    %135 = vector.broadcast %134 : vector<1x256xi1> to vector<1x256xi1>
    %136 = arith.xori %132, %135 : vector<1x256xi1>
    %137 = arith.andi %136, %130 : vector<1x256xi1>
    %138 = vector.broadcast %126 : i32 to vector<1x256xi32>
    %139 = arith.addi %128, %138 : vector<1x256xi32>
    %140 = arith.select %137, %139, %128 : vector<1x256xi1>, vector<1x256xi32>
    %141 = vector.extract_strided_slice %123 {offsets = [0, 111], sizes = [24, 256], strides = [1, 1]} : vector<24x512xf32> to vector<24x256xf32>
    %c-1_i32_52 = arith.constant -1 : i32
    %142 = vector.broadcast %c-1_i32_52 : i32 to vector<1x256xi32>
    %143 = arith.addi %140, %142 : vector<1x256xi32>
    %c0_i32_53 = arith.constant 0 : i32
    %144 = vector.broadcast %c0_i32_53 : i32 to vector<1x256xi32>
    %145 = arith.cmpi sge, %143, %144 : vector<1x256xi32>
    %c-1_i32_54 = arith.constant -1 : i32
    %146 = vector.broadcast %c-1_i32_54 : i32 to vector<1x256xi32>
    %147 = arith.addi %140, %146 : vector<1x256xi32>
    %c16_i32_55 = arith.constant 16 : i32
    %148 = vector.broadcast %c16_i32_55 : i32 to vector<1x256xi32>
    %149 = arith.cmpi slt, %147, %148 : vector<1x256xi32>
    %150 = arith.andi %145, %149 : vector<1x256xi1>
    %cst_56 = arith.constant 0.000000e+00 : f32
    %151 = vector.shape_cast %150 : vector<1x256xi1> to vector<1x256xi1>
    %152 = vector.broadcast %151 : vector<1x256xi1> to vector<24x256xi1>
    %153 = vector.broadcast %cst_56 : f32 to vector<24x256xf32>
    %154 = arith.select %152, %141, %153 : vector<24x256xi1>, vector<24x256xf32>
    %155 = vector.extract_strided_slice %123 {offsets = [0, 112], sizes = [24, 256], strides = [1, 1]} : vector<24x512xf32> to vector<24x256xf32>
    %156 = vector.extract_strided_slice %123 {offsets = [0, 113], sizes = [24, 256], strides = [1, 1]} : vector<24x512xf32> to vector<24x256xf32>
    %c1_i32_57 = arith.constant 1 : i32
    %157 = vector.broadcast %c1_i32_57 : i32 to vector<1x256xi32>
    %158 = arith.addi %140, %157 : vector<1x256xi32>
    %c0_i32_58 = arith.constant 0 : i32
    %159 = vector.broadcast %c0_i32_58 : i32 to vector<1x256xi32>
    %160 = arith.cmpi sge, %158, %159 : vector<1x256xi32>
    %c1_i32_59 = arith.constant 1 : i32
    %161 = vector.broadcast %c1_i32_59 : i32 to vector<1x256xi32>
    %162 = arith.addi %140, %161 : vector<1x256xi32>
    %c16_i32_60 = arith.constant 16 : i32
    %163 = vector.broadcast %c16_i32_60 : i32 to vector<1x256xi32>
    %164 = arith.cmpi slt, %162, %163 : vector<1x256xi32>
    %165 = arith.andi %160, %164 : vector<1x256xi1>
    %cst_61 = arith.constant 0.000000e+00 : f32
    %166 = vector.shape_cast %165 : vector<1x256xi1> to vector<1x256xi1>
    %167 = vector.broadcast %166 : vector<1x256xi1> to vector<24x256xi1>
    %168 = vector.broadcast %cst_61 : f32 to vector<24x256xf32>
    %169 = arith.select %167, %156, %168 : vector<24x256xi1>, vector<24x256xf32>
    %170 = vector.extract_strided_slice %123 {offsets = [0, 127], sizes = [24, 256], strides = [1, 1]} : vector<24x512xf32> to vector<24x256xf32>
    %c-1_i32_62 = arith.constant -1 : i32
    %171 = vector.broadcast %c-1_i32_62 : i32 to vector<1x256xi32>
    %172 = arith.addi %140, %171 : vector<1x256xi32>
    %c0_i32_63 = arith.constant 0 : i32
    %173 = vector.broadcast %c0_i32_63 : i32 to vector<1x256xi32>
    %174 = arith.cmpi sge, %172, %173 : vector<1x256xi32>
    %c-1_i32_64 = arith.constant -1 : i32
    %175 = vector.broadcast %c-1_i32_64 : i32 to vector<1x256xi32>
    %176 = arith.addi %140, %175 : vector<1x256xi32>
    %c16_i32_65 = arith.constant 16 : i32
    %177 = vector.broadcast %c16_i32_65 : i32 to vector<1x256xi32>
    %178 = arith.cmpi slt, %176, %177 : vector<1x256xi32>
    %179 = arith.andi %174, %178 : vector<1x256xi1>
    %cst_66 = arith.constant 0.000000e+00 : f32
    %180 = vector.shape_cast %179 : vector<1x256xi1> to vector<1x256xi1>
    %181 = vector.broadcast %180 : vector<1x256xi1> to vector<24x256xi1>
    %182 = vector.broadcast %cst_66 : f32 to vector<24x256xf32>
    %183 = arith.select %181, %170, %182 : vector<24x256xi1>, vector<24x256xf32>
    %184 = vector.extract_strided_slice %123 {offsets = [0, 128], sizes = [24, 256], strides = [1, 1]} : vector<24x512xf32> to vector<24x256xf32>
    %185 = vector.extract_strided_slice %123 {offsets = [0, 129], sizes = [24, 256], strides = [1, 1]} : vector<24x512xf32> to vector<24x256xf32>
    %c1_i32_67 = arith.constant 1 : i32
    %186 = vector.broadcast %c1_i32_67 : i32 to vector<1x256xi32>
    %187 = arith.addi %140, %186 : vector<1x256xi32>
    %c0_i32_68 = arith.constant 0 : i32
    %188 = vector.broadcast %c0_i32_68 : i32 to vector<1x256xi32>
    %189 = arith.cmpi sge, %187, %188 : vector<1x256xi32>
    %c1_i32_69 = arith.constant 1 : i32
    %190 = vector.broadcast %c1_i32_69 : i32 to vector<1x256xi32>
    %191 = arith.addi %140, %190 : vector<1x256xi32>
    %c16_i32_70 = arith.constant 16 : i32
    %192 = vector.broadcast %c16_i32_70 : i32 to vector<1x256xi32>
    %193 = arith.cmpi slt, %191, %192 : vector<1x256xi32>
    %194 = arith.andi %189, %193 : vector<1x256xi1>
    %cst_71 = arith.constant 0.000000e+00 : f32
    %195 = vector.shape_cast %194 : vector<1x256xi1> to vector<1x256xi1>
    %196 = vector.broadcast %195 : vector<1x256xi1> to vector<24x256xi1>
    %197 = vector.broadcast %cst_71 : f32 to vector<24x256xf32>
    %198 = arith.select %196, %185, %197 : vector<24x256xi1>, vector<24x256xf32>
    %199 = vector.extract_strided_slice %123 {offsets = [0, 143], sizes = [24, 256], strides = [1, 1]} : vector<24x512xf32> to vector<24x256xf32>
    %c-1_i32_72 = arith.constant -1 : i32
    %200 = vector.broadcast %c-1_i32_72 : i32 to vector<1x256xi32>
    %201 = arith.addi %140, %200 : vector<1x256xi32>
    %c0_i32_73 = arith.constant 0 : i32
    %202 = vector.broadcast %c0_i32_73 : i32 to vector<1x256xi32>
    %203 = arith.cmpi sge, %201, %202 : vector<1x256xi32>
    %c-1_i32_74 = arith.constant -1 : i32
    %204 = vector.broadcast %c-1_i32_74 : i32 to vector<1x256xi32>
    %205 = arith.addi %140, %204 : vector<1x256xi32>
    %c16_i32_75 = arith.constant 16 : i32
    %206 = vector.broadcast %c16_i32_75 : i32 to vector<1x256xi32>
    %207 = arith.cmpi slt, %205, %206 : vector<1x256xi32>
    %208 = arith.andi %203, %207 : vector<1x256xi1>
    %cst_76 = arith.constant 0.000000e+00 : f32
    %209 = vector.shape_cast %208 : vector<1x256xi1> to vector<1x256xi1>
    %210 = vector.broadcast %209 : vector<1x256xi1> to vector<24x256xi1>
    %211 = vector.broadcast %cst_76 : f32 to vector<24x256xf32>
    %212 = arith.select %210, %199, %211 : vector<24x256xi1>, vector<24x256xf32>
    %213 = vector.extract_strided_slice %123 {offsets = [0, 144], sizes = [24, 256], strides = [1, 1]} : vector<24x512xf32> to vector<24x256xf32>
    %214 = vector.extract_strided_slice %123 {offsets = [0, 145], sizes = [24, 256], strides = [1, 1]} : vector<24x512xf32> to vector<24x256xf32>
    %c1_i32_77 = arith.constant 1 : i32
    %215 = vector.broadcast %c1_i32_77 : i32 to vector<1x256xi32>
    %216 = arith.addi %140, %215 : vector<1x256xi32>
    %c0_i32_78 = arith.constant 0 : i32
    %217 = vector.broadcast %c0_i32_78 : i32 to vector<1x256xi32>
    %218 = arith.cmpi sge, %216, %217 : vector<1x256xi32>
    %c1_i32_79 = arith.constant 1 : i32
    %219 = vector.broadcast %c1_i32_79 : i32 to vector<1x256xi32>
    %220 = arith.addi %140, %219 : vector<1x256xi32>
    %c16_i32_80 = arith.constant 16 : i32
    %221 = vector.broadcast %c16_i32_80 : i32 to vector<1x256xi32>
    %222 = arith.cmpi slt, %220, %221 : vector<1x256xi32>
    %223 = arith.andi %218, %222 : vector<1x256xi1>
    %cst_81 = arith.constant 0.000000e+00 : f32
    %224 = vector.shape_cast %223 : vector<1x256xi1> to vector<1x256xi1>
    %225 = vector.broadcast %224 : vector<1x256xi1> to vector<24x256xi1>
    %226 = vector.broadcast %cst_81 : f32 to vector<24x256xf32>
    %227 = arith.select %225, %214, %226 : vector<24x256xi1>, vector<24x256xf32>
    %228 = tpu.concatenate %154, %155, %169, %183, %184, %198, %212, %213, %227 in 0 : vector<24x256xf32>, vector<24x256xf32>, vector<24x256xf32>, vector<24x256xf32>, vector<24x256xf32>, vector<24x256xf32>, vector<24x256xf32>, vector<24x256xf32>, vector<24x256xf32> -> vector<216x256xf32>
    %cst_82 = arith.constant dense<0.000000e+00> : vector<8x256xf32>
    %229 = tpu.matmul %120, %228, %cst_82 {dimension_numbers = #tpu.dot_dimension_numbers<[1], [0], [0], [1], [0, 0, 1, 1], [], []>} : vector<8x216xf32>, vector<216x256xf32>, vector<8x256xf32> -> vector<8x256xf32>
    %230 = vector.broadcast %121 : vector<8x1xf32> to vector<8x256xf32>
    %231 = arith.addf %229, %230 : vector<8x256xf32>
    %cst_83 = arith.constant 0.000000e+00 : f32
    %232 = vector.broadcast %cst_83 : f32 to vector<8x256xf32>
    %233 = arith.cmpf oge, %231, %232 : vector<8x256xf32>
    %cst_84 = arith.constant 2.000000e-01 : f32
    %234 = vector.broadcast %cst_84 : f32 to vector<8x256xf32>
    %235 = arith.mulf %234, %231 : vector<8x256xf32>
    %236 = arith.select %233, %231, %235 : vector<8x256xi1>, vector<8x256xf32>
    %237 = tpu.concatenate %119, %236 in 0 : vector<24x256xf32>, vector<8x256xf32> -> vector<32x256xf32>
    %c0_85 = arith.constant 0 : index
    %c0_86 = arith.constant 0 : index
    %238 = vector.load %arg7[%c0_85, %c0_86] : memref<8x288xf32, #tpu.memory_space<vmem>>, vector<8x288xf32>
    %c0_87 = arith.constant 0 : index
    %c0_88 = arith.constant 0 : index
    %239 = vector.load %arg8[%c0_87, %c0_88] : memref<8x1xf32, #tpu.memory_space<vmem>>, vector<8x1xf32>
    %cst_89 = arith.constant 0.000000e+00 : f32
    %240 = vector.broadcast %cst_89 : f32 to vector<32x128xf32>
    %241 = tpu.concatenate %240, %237, %240 in 1 : vector<32x128xf32>, vector<32x256xf32>, vector<32x128xf32> -> vector<32x512xf32>
    %242 = tpu.iota {dimensions = array<i32: 1>} : vector<1x256xi32>
    %c16_i32_90 = arith.constant 16 : i32
    %c0_i32_91 = arith.constant 0 : i32
    %243 = arith.cmpi eq, %c16_i32_90, %c0_i32_91 : i32
    %c1_i32_92 = arith.constant 1 : i32
    %244 = arith.select %243, %c1_i32_92, %c16_i32_90 : i32
    %245 = vector.broadcast %244 : i32 to vector<1x256xi32>
    %246 = arith.remsi %242, %245 : vector<1x256xi32>
    %c0_i32_93 = arith.constant 0 : i32
    %247 = vector.broadcast %c0_i32_93 : i32 to vector<1x256xi32>
    %248 = arith.cmpi ne, %246, %247 : vector<1x256xi32>
    %c0_i32_94 = arith.constant 0 : i32
    %249 = vector.broadcast %c0_i32_94 : i32 to vector<1x256xi32>
    %250 = arith.cmpi slt, %246, %249 : vector<1x256xi32>
    %c0_i32_95 = arith.constant 0 : i32
    %251 = arith.cmpi slt, %244, %c0_i32_95 : i32
    %252 = vector.broadcast %251 : i1 to vector<1x256xi1>
    %253 = vector.broadcast %252 : vector<1x256xi1> to vector<1x256xi1>
    %254 = arith.xori %250, %253 : vector<1x256xi1>
    %255 = arith.andi %254, %248 : vector<1x256xi1>
    %256 = vector.broadcast %244 : i32 to vector<1x256xi32>
    %257 = arith.addi %246, %256 : vector<1x256xi32>
    %258 = arith.select %255, %257, %246 : vector<1x256xi1>, vector<1x256xi32>
    %259 = vector.extract_strided_slice %241 {offsets = [0, 111], sizes = [32, 256], strides = [1, 1]} : vector<32x512xf32> to vector<32x256xf32>
    %c-1_i32_96 = arith.constant -1 : i32
    %260 = vector.broadcast %c-1_i32_96 : i32 to vector<1x256xi32>
    %261 = arith.addi %258, %260 : vector<1x256xi32>
    %c0_i32_97 = arith.constant 0 : i32
    %262 = vector.broadcast %c0_i32_97 : i32 to vector<1x256xi32>
    %263 = arith.cmpi sge, %261, %262 : vector<1x256xi32>
    %c-1_i32_98 = arith.constant -1 : i32
    %264 = vector.broadcast %c-1_i32_98 : i32 to vector<1x256xi32>
    %265 = arith.addi %258, %264 : vector<1x256xi32>
    %c16_i32_99 = arith.constant 16 : i32
    %266 = vector.broadcast %c16_i32_99 : i32 to vector<1x256xi32>
    %267 = arith.cmpi slt, %265, %266 : vector<1x256xi32>
    %268 = arith.andi %263, %267 : vector<1x256xi1>
    %cst_100 = arith.constant 0.000000e+00 : f32
    %269 = vector.shape_cast %268 : vector<1x256xi1> to vector<1x256xi1>
    %270 = vector.broadcast %269 : vector<1x256xi1> to vector<32x256xi1>
    %271 = vector.broadcast %cst_100 : f32 to vector<32x256xf32>
    %272 = arith.select %270, %259, %271 : vector<32x256xi1>, vector<32x256xf32>
    %273 = vector.extract_strided_slice %241 {offsets = [0, 112], sizes = [32, 256], strides = [1, 1]} : vector<32x512xf32> to vector<32x256xf32>
    %274 = vector.extract_strided_slice %241 {offsets = [0, 113], sizes = [32, 256], strides = [1, 1]} : vector<32x512xf32> to vector<32x256xf32>
    %c1_i32_101 = arith.constant 1 : i32
    %275 = vector.broadcast %c1_i32_101 : i32 to vector<1x256xi32>
    %276 = arith.addi %258, %275 : vector<1x256xi32>
    %c0_i32_102 = arith.constant 0 : i32
    %277 = vector.broadcast %c0_i32_102 : i32 to vector<1x256xi32>
    %278 = arith.cmpi sge, %276, %277 : vector<1x256xi32>
    %c1_i32_103 = arith.constant 1 : i32
    %279 = vector.broadcast %c1_i32_103 : i32 to vector<1x256xi32>
    %280 = arith.addi %258, %279 : vector<1x256xi32>
    %c16_i32_104 = arith.constant 16 : i32
    %281 = vector.broadcast %c16_i32_104 : i32 to vector<1x256xi32>
    %282 = arith.cmpi slt, %280, %281 : vector<1x256xi32>
    %283 = arith.andi %278, %282 : vector<1x256xi1>
    %cst_105 = arith.constant 0.000000e+00 : f32
    %284 = vector.shape_cast %283 : vector<1x256xi1> to vector<1x256xi1>
    %285 = vector.broadcast %284 : vector<1x256xi1> to vector<32x256xi1>
    %286 = vector.broadcast %cst_105 : f32 to vector<32x256xf32>
    %287 = arith.select %285, %274, %286 : vector<32x256xi1>, vector<32x256xf32>
    %288 = vector.extract_strided_slice %241 {offsets = [0, 127], sizes = [32, 256], strides = [1, 1]} : vector<32x512xf32> to vector<32x256xf32>
    %c-1_i32_106 = arith.constant -1 : i32
    %289 = vector.broadcast %c-1_i32_106 : i32 to vector<1x256xi32>
    %290 = arith.addi %258, %289 : vector<1x256xi32>
    %c0_i32_107 = arith.constant 0 : i32
    %291 = vector.broadcast %c0_i32_107 : i32 to vector<1x256xi32>
    %292 = arith.cmpi sge, %290, %291 : vector<1x256xi32>
    %c-1_i32_108 = arith.constant -1 : i32
    %293 = vector.broadcast %c-1_i32_108 : i32 to vector<1x256xi32>
    %294 = arith.addi %258, %293 : vector<1x256xi32>
    %c16_i32_109 = arith.constant 16 : i32
    %295 = vector.broadcast %c16_i32_109 : i32 to vector<1x256xi32>
    %296 = arith.cmpi slt, %294, %295 : vector<1x256xi32>
    %297 = arith.andi %292, %296 : vector<1x256xi1>
    %cst_110 = arith.constant 0.000000e+00 : f32
    %298 = vector.shape_cast %297 : vector<1x256xi1> to vector<1x256xi1>
    %299 = vector.broadcast %298 : vector<1x256xi1> to vector<32x256xi1>
    %300 = vector.broadcast %cst_110 : f32 to vector<32x256xf32>
    %301 = arith.select %299, %288, %300 : vector<32x256xi1>, vector<32x256xf32>
    %302 = vector.extract_strided_slice %241 {offsets = [0, 128], sizes = [32, 256], strides = [1, 1]} : vector<32x512xf32> to vector<32x256xf32>
    %303 = vector.extract_strided_slice %241 {offsets = [0, 129], sizes = [32, 256], strides = [1, 1]} : vector<32x512xf32> to vector<32x256xf32>
    %c1_i32_111 = arith.constant 1 : i32
    %304 = vector.broadcast %c1_i32_111 : i32 to vector<1x256xi32>
    %305 = arith.addi %258, %304 : vector<1x256xi32>
    %c0_i32_112 = arith.constant 0 : i32
    %306 = vector.broadcast %c0_i32_112 : i32 to vector<1x256xi32>
    %307 = arith.cmpi sge, %305, %306 : vector<1x256xi32>
    %c1_i32_113 = arith.constant 1 : i32
    %308 = vector.broadcast %c1_i32_113 : i32 to vector<1x256xi32>
    %309 = arith.addi %258, %308 : vector<1x256xi32>
    %c16_i32_114 = arith.constant 16 : i32
    %310 = vector.broadcast %c16_i32_114 : i32 to vector<1x256xi32>
    %311 = arith.cmpi slt, %309, %310 : vector<1x256xi32>
    %312 = arith.andi %307, %311 : vector<1x256xi1>
    %cst_115 = arith.constant 0.000000e+00 : f32
    %313 = vector.shape_cast %312 : vector<1x256xi1> to vector<1x256xi1>
    %314 = vector.broadcast %313 : vector<1x256xi1> to vector<32x256xi1>
    %315 = vector.broadcast %cst_115 : f32 to vector<32x256xf32>
    %316 = arith.select %314, %303, %315 : vector<32x256xi1>, vector<32x256xf32>
    %317 = vector.extract_strided_slice %241 {offsets = [0, 143], sizes = [32, 256], strides = [1, 1]} : vector<32x512xf32> to vector<32x256xf32>
    %c-1_i32_116 = arith.constant -1 : i32
    %318 = vector.broadcast %c-1_i32_116 : i32 to vector<1x256xi32>
    %319 = arith.addi %258, %318 : vector<1x256xi32>
    %c0_i32_117 = arith.constant 0 : i32
    %320 = vector.broadcast %c0_i32_117 : i32 to vector<1x256xi32>
    %321 = arith.cmpi sge, %319, %320 : vector<1x256xi32>
    %c-1_i32_118 = arith.constant -1 : i32
    %322 = vector.broadcast %c-1_i32_118 : i32 to vector<1x256xi32>
    %323 = arith.addi %258, %322 : vector<1x256xi32>
    %c16_i32_119 = arith.constant 16 : i32
    %324 = vector.broadcast %c16_i32_119 : i32 to vector<1x256xi32>
    %325 = arith.cmpi slt, %323, %324 : vector<1x256xi32>
    %326 = arith.andi %321, %325 : vector<1x256xi1>
    %cst_120 = arith.constant 0.000000e+00 : f32
    %327 = vector.shape_cast %326 : vector<1x256xi1> to vector<1x256xi1>
    %328 = vector.broadcast %327 : vector<1x256xi1> to vector<32x256xi1>
    %329 = vector.broadcast %cst_120 : f32 to vector<32x256xf32>
    %330 = arith.select %328, %317, %329 : vector<32x256xi1>, vector<32x256xf32>
    %331 = vector.extract_strided_slice %241 {offsets = [0, 144], sizes = [32, 256], strides = [1, 1]} : vector<32x512xf32> to vector<32x256xf32>
    %332 = vector.extract_strided_slice %241 {offsets = [0, 145], sizes = [32, 256], strides = [1, 1]} : vector<32x512xf32> to vector<32x256xf32>
    %c1_i32_121 = arith.constant 1 : i32
    %333 = vector.broadcast %c1_i32_121 : i32 to vector<1x256xi32>
    %334 = arith.addi %258, %333 : vector<1x256xi32>
    %c0_i32_122 = arith.constant 0 : i32
    %335 = vector.broadcast %c0_i32_122 : i32 to vector<1x256xi32>
    %336 = arith.cmpi sge, %334, %335 : vector<1x256xi32>
    %c1_i32_123 = arith.constant 1 : i32
    %337 = vector.broadcast %c1_i32_123 : i32 to vector<1x256xi32>
    %338 = arith.addi %258, %337 : vector<1x256xi32>
    %c16_i32_124 = arith.constant 16 : i32
    %339 = vector.broadcast %c16_i32_124 : i32 to vector<1x256xi32>
    %340 = arith.cmpi slt, %338, %339 : vector<1x256xi32>
    %341 = arith.andi %336, %340 : vector<1x256xi1>
    %cst_125 = arith.constant 0.000000e+00 : f32
    %342 = vector.shape_cast %341 : vector<1x256xi1> to vector<1x256xi1>
    %343 = vector.broadcast %342 : vector<1x256xi1> to vector<32x256xi1>
    %344 = vector.broadcast %cst_125 : f32 to vector<32x256xf32>
    %345 = arith.select %343, %332, %344 : vector<32x256xi1>, vector<32x256xf32>
    %346 = tpu.concatenate %272, %273, %287, %301, %302, %316, %330, %331, %345 in 0 : vector<32x256xf32>, vector<32x256xf32>, vector<32x256xf32>, vector<32x256xf32>, vector<32x256xf32>, vector<32x256xf32>, vector<32x256xf32>, vector<32x256xf32>, vector<32x256xf32> -> vector<288x256xf32>
    %cst_126 = arith.constant dense<0.000000e+00> : vector<8x256xf32>
    %347 = tpu.matmul %238, %346, %cst_126 {dimension_numbers = #tpu.dot_dimension_numbers<[1], [0], [0], [1], [0, 0, 1, 1], [], []>} : vector<8x288xf32>, vector<288x256xf32>, vector<8x256xf32> -> vector<8x256xf32>
    %348 = vector.broadcast %239 : vector<8x1xf32> to vector<8x256xf32>
    %349 = arith.addf %347, %348 : vector<8x256xf32>
    %cst_127 = arith.constant 0.000000e+00 : f32
    %350 = vector.broadcast %cst_127 : f32 to vector<8x256xf32>
    %351 = arith.cmpf oge, %349, %350 : vector<8x256xf32>
    %cst_128 = arith.constant 2.000000e-01 : f32
    %352 = vector.broadcast %cst_128 : f32 to vector<8x256xf32>
    %353 = arith.mulf %352, %349 : vector<8x256xf32>
    %354 = arith.select %351, %349, %353 : vector<8x256xi1>, vector<8x256xf32>
    %355 = tpu.concatenate %237, %354 in 0 : vector<32x256xf32>, vector<8x256xf32> -> vector<40x256xf32>
    %c0_129 = arith.constant 0 : index
    %c0_130 = arith.constant 0 : index
    %356 = vector.load %arg9[%c0_129, %c0_130] : memref<8x360xf32, #tpu.memory_space<vmem>>, vector<8x360xf32>
    %c0_131 = arith.constant 0 : index
    %c0_132 = arith.constant 0 : index
    %357 = vector.load %arg10[%c0_131, %c0_132] : memref<8x1xf32, #tpu.memory_space<vmem>>, vector<8x1xf32>
    %cst_133 = arith.constant 0.000000e+00 : f32
    %358 = vector.broadcast %cst_133 : f32 to vector<40x128xf32>
    %359 = tpu.concatenate %358, %355, %358 in 1 : vector<40x128xf32>, vector<40x256xf32>, vector<40x128xf32> -> vector<40x512xf32>
    %360 = tpu.iota {dimensions = array<i32: 1>} : vector<1x256xi32>
    %c16_i32_134 = arith.constant 16 : i32
    %c0_i32_135 = arith.constant 0 : i32
    %361 = arith.cmpi eq, %c16_i32_134, %c0_i32_135 : i32
    %c1_i32_136 = arith.constant 1 : i32
    %362 = arith.select %361, %c1_i32_136, %c16_i32_134 : i32
    %363 = vector.broadcast %362 : i32 to vector<1x256xi32>
    %364 = arith.remsi %360, %363 : vector<1x256xi32>
    %c0_i32_137 = arith.constant 0 : i32
    %365 = vector.broadcast %c0_i32_137 : i32 to vector<1x256xi32>
    %366 = arith.cmpi ne, %364, %365 : vector<1x256xi32>
    %c0_i32_138 = arith.constant 0 : i32
    %367 = vector.broadcast %c0_i32_138 : i32 to vector<1x256xi32>
    %368 = arith.cmpi slt, %364, %367 : vector<1x256xi32>
    %c0_i32_139 = arith.constant 0 : i32
    %369 = arith.cmpi slt, %362, %c0_i32_139 : i32
    %370 = vector.broadcast %369 : i1 to vector<1x256xi1>
    %371 = vector.broadcast %370 : vector<1x256xi1> to vector<1x256xi1>
    %372 = arith.xori %368, %371 : vector<1x256xi1>
    %373 = arith.andi %372, %366 : vector<1x256xi1>
    %374 = vector.broadcast %362 : i32 to vector<1x256xi32>
    %375 = arith.addi %364, %374 : vector<1x256xi32>
    %376 = arith.select %373, %375, %364 : vector<1x256xi1>, vector<1x256xi32>
    %377 = vector.extract_strided_slice %359 {offsets = [0, 111], sizes = [40, 256], strides = [1, 1]} : vector<40x512xf32> to vector<40x256xf32>
    %c-1_i32_140 = arith.constant -1 : i32
    %378 = vector.broadcast %c-1_i32_140 : i32 to vector<1x256xi32>
    %379 = arith.addi %376, %378 : vector<1x256xi32>
    %c0_i32_141 = arith.constant 0 : i32
    %380 = vector.broadcast %c0_i32_141 : i32 to vector<1x256xi32>
    %381 = arith.cmpi sge, %379, %380 : vector<1x256xi32>
    %c-1_i32_142 = arith.constant -1 : i32
    %382 = vector.broadcast %c-1_i32_142 : i32 to vector<1x256xi32>
    %383 = arith.addi %376, %382 : vector<1x256xi32>
    %c16_i32_143 = arith.constant 16 : i32
    %384 = vector.broadcast %c16_i32_143 : i32 to vector<1x256xi32>
    %385 = arith.cmpi slt, %383, %384 : vector<1x256xi32>
    %386 = arith.andi %381, %385 : vector<1x256xi1>
    %cst_144 = arith.constant 0.000000e+00 : f32
    %387 = vector.shape_cast %386 : vector<1x256xi1> to vector<1x256xi1>
    %388 = vector.broadcast %387 : vector<1x256xi1> to vector<40x256xi1>
    %389 = vector.broadcast %cst_144 : f32 to vector<40x256xf32>
    %390 = arith.select %388, %377, %389 : vector<40x256xi1>, vector<40x256xf32>
    %391 = vector.extract_strided_slice %359 {offsets = [0, 112], sizes = [40, 256], strides = [1, 1]} : vector<40x512xf32> to vector<40x256xf32>
    %392 = vector.extract_strided_slice %359 {offsets = [0, 113], sizes = [40, 256], strides = [1, 1]} : vector<40x512xf32> to vector<40x256xf32>
    %c1_i32_145 = arith.constant 1 : i32
    %393 = vector.broadcast %c1_i32_145 : i32 to vector<1x256xi32>
    %394 = arith.addi %376, %393 : vector<1x256xi32>
    %c0_i32_146 = arith.constant 0 : i32
    %395 = vector.broadcast %c0_i32_146 : i32 to vector<1x256xi32>
    %396 = arith.cmpi sge, %394, %395 : vector<1x256xi32>
    %c1_i32_147 = arith.constant 1 : i32
    %397 = vector.broadcast %c1_i32_147 : i32 to vector<1x256xi32>
    %398 = arith.addi %376, %397 : vector<1x256xi32>
    %c16_i32_148 = arith.constant 16 : i32
    %399 = vector.broadcast %c16_i32_148 : i32 to vector<1x256xi32>
    %400 = arith.cmpi slt, %398, %399 : vector<1x256xi32>
    %401 = arith.andi %396, %400 : vector<1x256xi1>
    %cst_149 = arith.constant 0.000000e+00 : f32
    %402 = vector.shape_cast %401 : vector<1x256xi1> to vector<1x256xi1>
    %403 = vector.broadcast %402 : vector<1x256xi1> to vector<40x256xi1>
    %404 = vector.broadcast %cst_149 : f32 to vector<40x256xf32>
    %405 = arith.select %403, %392, %404 : vector<40x256xi1>, vector<40x256xf32>
    %406 = vector.extract_strided_slice %359 {offsets = [0, 127], sizes = [40, 256], strides = [1, 1]} : vector<40x512xf32> to vector<40x256xf32>
    %c-1_i32_150 = arith.constant -1 : i32
    %407 = vector.broadcast %c-1_i32_150 : i32 to vector<1x256xi32>
    %408 = arith.addi %376, %407 : vector<1x256xi32>
    %c0_i32_151 = arith.constant 0 : i32
    %409 = vector.broadcast %c0_i32_151 : i32 to vector<1x256xi32>
    %410 = arith.cmpi sge, %408, %409 : vector<1x256xi32>
    %c-1_i32_152 = arith.constant -1 : i32
    %411 = vector.broadcast %c-1_i32_152 : i32 to vector<1x256xi32>
    %412 = arith.addi %376, %411 : vector<1x256xi32>
    %c16_i32_153 = arith.constant 16 : i32
    %413 = vector.broadcast %c16_i32_153 : i32 to vector<1x256xi32>
    %414 = arith.cmpi slt, %412, %413 : vector<1x256xi32>
    %415 = arith.andi %410, %414 : vector<1x256xi1>
    %cst_154 = arith.constant 0.000000e+00 : f32
    %416 = vector.shape_cast %415 : vector<1x256xi1> to vector<1x256xi1>
    %417 = vector.broadcast %416 : vector<1x256xi1> to vector<40x256xi1>
    %418 = vector.broadcast %cst_154 : f32 to vector<40x256xf32>
    %419 = arith.select %417, %406, %418 : vector<40x256xi1>, vector<40x256xf32>
    %420 = vector.extract_strided_slice %359 {offsets = [0, 128], sizes = [40, 256], strides = [1, 1]} : vector<40x512xf32> to vector<40x256xf32>
    %421 = vector.extract_strided_slice %359 {offsets = [0, 129], sizes = [40, 256], strides = [1, 1]} : vector<40x512xf32> to vector<40x256xf32>
    %c1_i32_155 = arith.constant 1 : i32
    %422 = vector.broadcast %c1_i32_155 : i32 to vector<1x256xi32>
    %423 = arith.addi %376, %422 : vector<1x256xi32>
    %c0_i32_156 = arith.constant 0 : i32
    %424 = vector.broadcast %c0_i32_156 : i32 to vector<1x256xi32>
    %425 = arith.cmpi sge, %423, %424 : vector<1x256xi32>
    %c1_i32_157 = arith.constant 1 : i32
    %426 = vector.broadcast %c1_i32_157 : i32 to vector<1x256xi32>
    %427 = arith.addi %376, %426 : vector<1x256xi32>
    %c16_i32_158 = arith.constant 16 : i32
    %428 = vector.broadcast %c16_i32_158 : i32 to vector<1x256xi32>
    %429 = arith.cmpi slt, %427, %428 : vector<1x256xi32>
    %430 = arith.andi %425, %429 : vector<1x256xi1>
    %cst_159 = arith.constant 0.000000e+00 : f32
    %431 = vector.shape_cast %430 : vector<1x256xi1> to vector<1x256xi1>
    %432 = vector.broadcast %431 : vector<1x256xi1> to vector<40x256xi1>
    %433 = vector.broadcast %cst_159 : f32 to vector<40x256xf32>
    %434 = arith.select %432, %421, %433 : vector<40x256xi1>, vector<40x256xf32>
    %435 = vector.extract_strided_slice %359 {offsets = [0, 143], sizes = [40, 256], strides = [1, 1]} : vector<40x512xf32> to vector<40x256xf32>
    %c-1_i32_160 = arith.constant -1 : i32
    %436 = vector.broadcast %c-1_i32_160 : i32 to vector<1x256xi32>
    %437 = arith.addi %376, %436 : vector<1x256xi32>
    %c0_i32_161 = arith.constant 0 : i32
    %438 = vector.broadcast %c0_i32_161 : i32 to vector<1x256xi32>
    %439 = arith.cmpi sge, %437, %438 : vector<1x256xi32>
    %c-1_i32_162 = arith.constant -1 : i32
    %440 = vector.broadcast %c-1_i32_162 : i32 to vector<1x256xi32>
    %441 = arith.addi %376, %440 : vector<1x256xi32>
    %c16_i32_163 = arith.constant 16 : i32
    %442 = vector.broadcast %c16_i32_163 : i32 to vector<1x256xi32>
    %443 = arith.cmpi slt, %441, %442 : vector<1x256xi32>
    %444 = arith.andi %439, %443 : vector<1x256xi1>
    %cst_164 = arith.constant 0.000000e+00 : f32
    %445 = vector.shape_cast %444 : vector<1x256xi1> to vector<1x256xi1>
    %446 = vector.broadcast %445 : vector<1x256xi1> to vector<40x256xi1>
    %447 = vector.broadcast %cst_164 : f32 to vector<40x256xf32>
    %448 = arith.select %446, %435, %447 : vector<40x256xi1>, vector<40x256xf32>
    %449 = vector.extract_strided_slice %359 {offsets = [0, 144], sizes = [40, 256], strides = [1, 1]} : vector<40x512xf32> to vector<40x256xf32>
    %450 = vector.extract_strided_slice %359 {offsets = [0, 145], sizes = [40, 256], strides = [1, 1]} : vector<40x512xf32> to vector<40x256xf32>
    %c1_i32_165 = arith.constant 1 : i32
    %451 = vector.broadcast %c1_i32_165 : i32 to vector<1x256xi32>
    %452 = arith.addi %376, %451 : vector<1x256xi32>
    %c0_i32_166 = arith.constant 0 : i32
    %453 = vector.broadcast %c0_i32_166 : i32 to vector<1x256xi32>
    %454 = arith.cmpi sge, %452, %453 : vector<1x256xi32>
    %c1_i32_167 = arith.constant 1 : i32
    %455 = vector.broadcast %c1_i32_167 : i32 to vector<1x256xi32>
    %456 = arith.addi %376, %455 : vector<1x256xi32>
    %c16_i32_168 = arith.constant 16 : i32
    %457 = vector.broadcast %c16_i32_168 : i32 to vector<1x256xi32>
    %458 = arith.cmpi slt, %456, %457 : vector<1x256xi32>
    %459 = arith.andi %454, %458 : vector<1x256xi1>
    %cst_169 = arith.constant 0.000000e+00 : f32
    %460 = vector.shape_cast %459 : vector<1x256xi1> to vector<1x256xi1>
    %461 = vector.broadcast %460 : vector<1x256xi1> to vector<40x256xi1>
    %462 = vector.broadcast %cst_169 : f32 to vector<40x256xf32>
    %463 = arith.select %461, %450, %462 : vector<40x256xi1>, vector<40x256xf32>
    %464 = tpu.concatenate %390, %391, %405, %419, %420, %434, %448, %449, %463 in 0 : vector<40x256xf32>, vector<40x256xf32>, vector<40x256xf32>, vector<40x256xf32>, vector<40x256xf32>, vector<40x256xf32>, vector<40x256xf32>, vector<40x256xf32>, vector<40x256xf32> -> vector<360x256xf32>
    %cst_170 = arith.constant dense<0.000000e+00> : vector<8x256xf32>
    %465 = tpu.matmul %356, %464, %cst_170 {dimension_numbers = #tpu.dot_dimension_numbers<[1], [0], [0], [1], [0, 0, 1, 1], [], []>} : vector<8x360xf32>, vector<360x256xf32>, vector<8x256xf32> -> vector<8x256xf32>
    %466 = vector.broadcast %357 : vector<8x1xf32> to vector<8x256xf32>
    %467 = arith.addf %465, %466 : vector<8x256xf32>
    %cst_171 = arith.constant 0.000000e+00 : f32
    %468 = vector.broadcast %cst_171 : f32 to vector<8x256xf32>
    %469 = arith.cmpf oge, %467, %468 : vector<8x256xf32>
    %cst_172 = arith.constant 2.000000e-01 : f32
    %470 = vector.broadcast %cst_172 : f32 to vector<8x256xf32>
    %471 = arith.mulf %470, %467 : vector<8x256xf32>
    %472 = arith.select %469, %467, %471 : vector<8x256xi1>, vector<8x256xf32>
    %473 = tpu.concatenate %355, %472 in 0 : vector<40x256xf32>, vector<8x256xf32> -> vector<48x256xf32>
    %c0_173 = arith.constant 0 : index
    %c0_174 = arith.constant 0 : index
    %474 = vector.load %arg11[%c0_173, %c0_174] : memref<16x432xf32, #tpu.memory_space<vmem>>, vector<16x432xf32>
    %c0_175 = arith.constant 0 : index
    %c0_176 = arith.constant 0 : index
    %475 = vector.load %arg12[%c0_175, %c0_176] : memref<16x1xf32, #tpu.memory_space<vmem>>, vector<16x1xf32>
    %cst_177 = arith.constant 0.000000e+00 : f32
    %476 = vector.broadcast %cst_177 : f32 to vector<48x128xf32>
    %477 = tpu.concatenate %476, %473, %476 in 1 : vector<48x128xf32>, vector<48x256xf32>, vector<48x128xf32> -> vector<48x512xf32>
    %478 = tpu.iota {dimensions = array<i32: 1>} : vector<1x256xi32>
    %c16_i32_178 = arith.constant 16 : i32
    %c0_i32_179 = arith.constant 0 : i32
    %479 = arith.cmpi eq, %c16_i32_178, %c0_i32_179 : i32
    %c1_i32_180 = arith.constant 1 : i32
    %480 = arith.select %479, %c1_i32_180, %c16_i32_178 : i32
    %481 = vector.broadcast %480 : i32 to vector<1x256xi32>
    %482 = arith.remsi %478, %481 : vector<1x256xi32>
    %c0_i32_181 = arith.constant 0 : i32
    %483 = vector.broadcast %c0_i32_181 : i32 to vector<1x256xi32>
    %484 = arith.cmpi ne, %482, %483 : vector<1x256xi32>
    %c0_i32_182 = arith.constant 0 : i32
    %485 = vector.broadcast %c0_i32_182 : i32 to vector<1x256xi32>
    %486 = arith.cmpi slt, %482, %485 : vector<1x256xi32>
    %c0_i32_183 = arith.constant 0 : i32
    %487 = arith.cmpi slt, %480, %c0_i32_183 : i32
    %488 = vector.broadcast %487 : i1 to vector<1x256xi1>
    %489 = vector.broadcast %488 : vector<1x256xi1> to vector<1x256xi1>
    %490 = arith.xori %486, %489 : vector<1x256xi1>
    %491 = arith.andi %490, %484 : vector<1x256xi1>
    %492 = vector.broadcast %480 : i32 to vector<1x256xi32>
    %493 = arith.addi %482, %492 : vector<1x256xi32>
    %494 = arith.select %491, %493, %482 : vector<1x256xi1>, vector<1x256xi32>
    %495 = vector.extract_strided_slice %477 {offsets = [0, 111], sizes = [48, 256], strides = [1, 1]} : vector<48x512xf32> to vector<48x256xf32>
    %c-1_i32_184 = arith.constant -1 : i32
    %496 = vector.broadcast %c-1_i32_184 : i32 to vector<1x256xi32>
    %497 = arith.addi %494, %496 : vector<1x256xi32>
    %c0_i32_185 = arith.constant 0 : i32
    %498 = vector.broadcast %c0_i32_185 : i32 to vector<1x256xi32>
    %499 = arith.cmpi sge, %497, %498 : vector<1x256xi32>
    %c-1_i32_186 = arith.constant -1 : i32
    %500 = vector.broadcast %c-1_i32_186 : i32 to vector<1x256xi32>
    %501 = arith.addi %494, %500 : vector<1x256xi32>
    %c16_i32_187 = arith.constant 16 : i32
    %502 = vector.broadcast %c16_i32_187 : i32 to vector<1x256xi32>
    %503 = arith.cmpi slt, %501, %502 : vector<1x256xi32>
    %504 = arith.andi %499, %503 : vector<1x256xi1>
    %cst_188 = arith.constant 0.000000e+00 : f32
    %505 = vector.shape_cast %504 : vector<1x256xi1> to vector<1x256xi1>
    %506 = vector.broadcast %505 : vector<1x256xi1> to vector<48x256xi1>
    %507 = vector.broadcast %cst_188 : f32 to vector<48x256xf32>
    %508 = arith.select %506, %495, %507 : vector<48x256xi1>, vector<48x256xf32>
    %509 = vector.extract_strided_slice %477 {offsets = [0, 112], sizes = [48, 256], strides = [1, 1]} : vector<48x512xf32> to vector<48x256xf32>
    %510 = vector.extract_strided_slice %477 {offsets = [0, 113], sizes = [48, 256], strides = [1, 1]} : vector<48x512xf32> to vector<48x256xf32>
    %c1_i32_189 = arith.constant 1 : i32
    %511 = vector.broadcast %c1_i32_189 : i32 to vector<1x256xi32>
    %512 = arith.addi %494, %511 : vector<1x256xi32>
    %c0_i32_190 = arith.constant 0 : i32
    %513 = vector.broadcast %c0_i32_190 : i32 to vector<1x256xi32>
    %514 = arith.cmpi sge, %512, %513 : vector<1x256xi32>
    %c1_i32_191 = arith.constant 1 : i32
    %515 = vector.broadcast %c1_i32_191 : i32 to vector<1x256xi32>
    %516 = arith.addi %494, %515 : vector<1x256xi32>
    %c16_i32_192 = arith.constant 16 : i32
    %517 = vector.broadcast %c16_i32_192 : i32 to vector<1x256xi32>
    %518 = arith.cmpi slt, %516, %517 : vector<1x256xi32>
    %519 = arith.andi %514, %518 : vector<1x256xi1>
    %cst_193 = arith.constant 0.000000e+00 : f32
    %520 = vector.shape_cast %519 : vector<1x256xi1> to vector<1x256xi1>
    %521 = vector.broadcast %520 : vector<1x256xi1> to vector<48x256xi1>
    %522 = vector.broadcast %cst_193 : f32 to vector<48x256xf32>
    %523 = arith.select %521, %510, %522 : vector<48x256xi1>, vector<48x256xf32>
    %524 = vector.extract_strided_slice %477 {offsets = [0, 127], sizes = [48, 256], strides = [1, 1]} : vector<48x512xf32> to vector<48x256xf32>
    %c-1_i32_194 = arith.constant -1 : i32
    %525 = vector.broadcast %c-1_i32_194 : i32 to vector<1x256xi32>
    %526 = arith.addi %494, %525 : vector<1x256xi32>
    %c0_i32_195 = arith.constant 0 : i32
    %527 = vector.broadcast %c0_i32_195 : i32 to vector<1x256xi32>
    %528 = arith.cmpi sge, %526, %527 : vector<1x256xi32>
    %c-1_i32_196 = arith.constant -1 : i32
    %529 = vector.broadcast %c-1_i32_196 : i32 to vector<1x256xi32>
    %530 = arith.addi %494, %529 : vector<1x256xi32>
    %c16_i32_197 = arith.constant 16 : i32
    %531 = vector.broadcast %c16_i32_197 : i32 to vector<1x256xi32>
    %532 = arith.cmpi slt, %530, %531 : vector<1x256xi32>
    %533 = arith.andi %528, %532 : vector<1x256xi1>
    %cst_198 = arith.constant 0.000000e+00 : f32
    %534 = vector.shape_cast %533 : vector<1x256xi1> to vector<1x256xi1>
    %535 = vector.broadcast %534 : vector<1x256xi1> to vector<48x256xi1>
    %536 = vector.broadcast %cst_198 : f32 to vector<48x256xf32>
    %537 = arith.select %535, %524, %536 : vector<48x256xi1>, vector<48x256xf32>
    %538 = vector.extract_strided_slice %477 {offsets = [0, 128], sizes = [48, 256], strides = [1, 1]} : vector<48x512xf32> to vector<48x256xf32>
    %539 = vector.extract_strided_slice %477 {offsets = [0, 129], sizes = [48, 256], strides = [1, 1]} : vector<48x512xf32> to vector<48x256xf32>
    %c1_i32_199 = arith.constant 1 : i32
    %540 = vector.broadcast %c1_i32_199 : i32 to vector<1x256xi32>
    %541 = arith.addi %494, %540 : vector<1x256xi32>
    %c0_i32_200 = arith.constant 0 : i32
    %542 = vector.broadcast %c0_i32_200 : i32 to vector<1x256xi32>
    %543 = arith.cmpi sge, %541, %542 : vector<1x256xi32>
    %c1_i32_201 = arith.constant 1 : i32
    %544 = vector.broadcast %c1_i32_201 : i32 to vector<1x256xi32>
    %545 = arith.addi %494, %544 : vector<1x256xi32>
    %c16_i32_202 = arith.constant 16 : i32
    %546 = vector.broadcast %c16_i32_202 : i32 to vector<1x256xi32>
    %547 = arith.cmpi slt, %545, %546 : vector<1x256xi32>
    %548 = arith.andi %543, %547 : vector<1x256xi1>
    %cst_203 = arith.constant 0.000000e+00 : f32
    %549 = vector.shape_cast %548 : vector<1x256xi1> to vector<1x256xi1>
    %550 = vector.broadcast %549 : vector<1x256xi1> to vector<48x256xi1>
    %551 = vector.broadcast %cst_203 : f32 to vector<48x256xf32>
    %552 = arith.select %550, %539, %551 : vector<48x256xi1>, vector<48x256xf32>
    %553 = vector.extract_strided_slice %477 {offsets = [0, 143], sizes = [48, 256], strides = [1, 1]} : vector<48x512xf32> to vector<48x256xf32>
    %c-1_i32_204 = arith.constant -1 : i32
    %554 = vector.broadcast %c-1_i32_204 : i32 to vector<1x256xi32>
    %555 = arith.addi %494, %554 : vector<1x256xi32>
    %c0_i32_205 = arith.constant 0 : i32
    %556 = vector.broadcast %c0_i32_205 : i32 to vector<1x256xi32>
    %557 = arith.cmpi sge, %555, %556 : vector<1x256xi32>
    %c-1_i32_206 = arith.constant -1 : i32
    %558 = vector.broadcast %c-1_i32_206 : i32 to vector<1x256xi32>
    %559 = arith.addi %494, %558 : vector<1x256xi32>
    %c16_i32_207 = arith.constant 16 : i32
    %560 = vector.broadcast %c16_i32_207 : i32 to vector<1x256xi32>
    %561 = arith.cmpi slt, %559, %560 : vector<1x256xi32>
    %562 = arith.andi %557, %561 : vector<1x256xi1>
    %cst_208 = arith.constant 0.000000e+00 : f32
    %563 = vector.shape_cast %562 : vector<1x256xi1> to vector<1x256xi1>
    %564 = vector.broadcast %563 : vector<1x256xi1> to vector<48x256xi1>
    %565 = vector.broadcast %cst_208 : f32 to vector<48x256xf32>
    %566 = arith.select %564, %553, %565 : vector<48x256xi1>, vector<48x256xf32>
    %567 = vector.extract_strided_slice %477 {offsets = [0, 144], sizes = [48, 256], strides = [1, 1]} : vector<48x512xf32> to vector<48x256xf32>
    %568 = vector.extract_strided_slice %477 {offsets = [0, 145], sizes = [48, 256], strides = [1, 1]} : vector<48x512xf32> to vector<48x256xf32>
    %c1_i32_209 = arith.constant 1 : i32
    %569 = vector.broadcast %c1_i32_209 : i32 to vector<1x256xi32>
    %570 = arith.addi %494, %569 : vector<1x256xi32>
    %c0_i32_210 = arith.constant 0 : i32
    %571 = vector.broadcast %c0_i32_210 : i32 to vector<1x256xi32>
    %572 = arith.cmpi sge, %570, %571 : vector<1x256xi32>
    %c1_i32_211 = arith.constant 1 : i32
    %573 = vector.broadcast %c1_i32_211 : i32 to vector<1x256xi32>
    %574 = arith.addi %494, %573 : vector<1x256xi32>
    %c16_i32_212 = arith.constant 16 : i32
    %575 = vector.broadcast %c16_i32_212 : i32 to vector<1x256xi32>
    %576 = arith.cmpi slt, %574, %575 : vector<1x256xi32>
    %577 = arith.andi %572, %576 : vector<1x256xi1>
    %cst_213 = arith.constant 0.000000e+00 : f32
    %578 = vector.shape_cast %577 : vector<1x256xi1> to vector<1x256xi1>
    %579 = vector.broadcast %578 : vector<1x256xi1> to vector<48x256xi1>
    %580 = vector.broadcast %cst_213 : f32 to vector<48x256xf32>
    %581 = arith.select %579, %568, %580 : vector<48x256xi1>, vector<48x256xf32>
    %582 = tpu.concatenate %508, %509, %523, %537, %538, %552, %566, %567, %581 in 0 : vector<48x256xf32>, vector<48x256xf32>, vector<48x256xf32>, vector<48x256xf32>, vector<48x256xf32>, vector<48x256xf32>, vector<48x256xf32>, vector<48x256xf32>, vector<48x256xf32> -> vector<432x256xf32>
    %cst_214 = arith.constant dense<0.000000e+00> : vector<16x256xf32>
    %583 = tpu.matmul %474, %582, %cst_214 {dimension_numbers = #tpu.dot_dimension_numbers<[1], [0], [0], [1], [0, 0, 1, 1], [], []>} : vector<16x432xf32>, vector<432x256xf32>, vector<16x256xf32> -> vector<16x256xf32>
    %584 = vector.broadcast %475 : vector<16x1xf32> to vector<16x256xf32>
    %585 = arith.addf %583, %584 : vector<16x256xf32>
    %cst_215 = arith.constant 2.000000e-01 : f32
    %586 = vector.broadcast %cst_215 : f32 to vector<16x256xf32>
    %587 = arith.mulf %585, %586 : vector<16x256xf32>
    %588 = arith.addf %587, %1 : vector<16x256xf32>
    %cst_216 = arith.constant 2.000000e-01 : f32
    %589 = vector.broadcast %cst_216 : f32 to vector<16x256xf32>
    %590 = arith.mulf %588, %589 : vector<16x256xf32>
    %c0_217 = arith.constant 0 : index
    %c0_218 = arith.constant 0 : index
    %c0_219 = arith.constant 0 : index
    %591 = vector.load %arg2[%c0_217, %c0_218, %c0_219] : memref<1x16x256xf32, #tpu.memory_space<vmem>>, vector<1x16x256xf32>
    %592 = vector.shape_cast %591 : vector<1x16x256xf32> to vector<16x256xf32>
    %593 = arith.addf %590, %592 : vector<16x256xf32>
    %c0_220 = arith.constant 0 : index
    %c0_221 = arith.constant 0 : index
    %c0_222 = arith.constant 0 : index
    %594 = vector.load %arg13[%c0_220, %c0_221, %c0_222] : memref<1x16x256xf32, #tpu.memory_space<vmem>>, vector<1x16x256xf32>
    %595 = vector.shape_cast %594 : vector<1x16x256xf32> to vector<16x256xf32>
    %596 = vector.shape_cast %593 : vector<16x256xf32> to vector<1x16x256xf32>
    tpu.vector_store %arg13[%c0_220, %c0_221, %c0_222], %596 {strides = array<i32>} : memref<1x16x256xf32, #tpu.memory_space<vmem>>, vector<1x16x256xf32>,
    return
  }
  func.func @transform_0(%arg0: i32) -> (i32, i32, i32) {
    %c0_i32 = arith.constant 0 : i32
    %c0_i32_0 = arith.constant 0 : i32
    %c0_i32_1 = arith.constant 0 : i32
    return %arg0, %c0_i32, %c0_i32_0 : i32, i32, i32
  }
  func.func @transform_1(%arg0: i32) -> (i32, i32, i32) {
    %c0_i32 = arith.constant 0 : i32
    %c0_i32_0 = arith.constant 0 : i32
    %c0_i32_1 = arith.constant 0 : i32
    return %arg0, %c0_i32, %c0_i32_0 : i32, i32, i32
  }
  func.func @transform_2(%arg0: i32) -> (i32, i32) {
    %c0_i32 = arith.constant 0 : i32
    %c0_i32_0 = arith.constant 0 : i32
    %c0_i32_1 = arith.constant 0 : i32
    return %c0_i32, %c0_i32_0 : i32, i32
  }
  func.func @transform_3(%arg0: i32) -> (i32, i32) {
    %c0_i32 = arith.constant 0 : i32
    %c0_i32_0 = arith.constant 0 : i32
    %c0_i32_1 = arith.constant 0 : i32
    return %c0_i32, %c0_i32_0 : i32, i32
  }
  func.func @transform_4(%arg0: i32) -> (i32, i32) {
    %c0_i32 = arith.constant 0 : i32
    %c0_i32_0 = arith.constant 0 : i32
    %c0_i32_1 = arith.constant 0 : i32
    return %c0_i32, %c0_i32_0 : i32, i32
  }
  func.func @transform_5(%arg0: i32) -> (i32, i32) {
    %c0_i32 = arith.constant 0 : i32
    %c0_i32_0 = arith.constant 0 : i32
    %c0_i32_1 = arith.constant 0 : i32
    return %c0_i32, %c0_i32_0 : i32, i32
  }
  func.func @transform_6(%arg0: i32) -> (i32, i32) {
    %c0_i32 = arith.constant 0 : i32
    %c0_i32_0 = arith.constant 0 : i32
    %c0_i32_1 = arith.constant 0 : i32
    return %c0_i32, %c0_i32_0 : i32, i32
  }
  func.func @transform_7(%arg0: i32) -> (i32, i32) {
    %c0_i32 = arith.constant 0 : i32
    %c0_i32_0 = arith.constant 0 : i32
    %c0_i32_1 = arith.constant 0 : i32
    return %c0_i32, %c0_i32_0 : i32, i32
  }
  func.func @transform_8(%arg0: i32) -> (i32, i32) {
    %c0_i32 = arith.constant 0 : i32
    %c0_i32_0 = arith.constant 0 : i32
    %c0_i32_1 = arith.constant 0 : i32
    return %c0_i32, %c0_i32_0 : i32, i32
  }
  func.func @transform_9(%arg0: i32) -> (i32, i32) {
    %c0_i32 = arith.constant 0 : i32
    %c0_i32_0 = arith.constant 0 : i32
    %c0_i32_1 = arith.constant 0 : i32
    return %c0_i32, %c0_i32_0 : i32, i32
  }
  func.func @transform_10(%arg0: i32) -> (i32, i32) {
    %c0_i32 = arith.constant 0 : i32
    %c0_i32_0 = arith.constant 0 : i32
    %c0_i32_1 = arith.constant 0 : i32
    return %c0_i32, %c0_i32_0 : i32, i32
  }
  func.func @transform_11(%arg0: i32) -> (i32, i32) {
    %c0_i32 = arith.constant 0 : i32
    %c0_i32_0 = arith.constant 0 : i32
    %c0_i32_1 = arith.constant 0 : i32
    return %c0_i32, %c0_i32_0 : i32, i32
  }
  func.func @transform_12(%arg0: i32) -> (i32, i32, i32) {
    %c0_i32 = arith.constant 0 : i32
    %c0_i32_0 = arith.constant 0 : i32
    %c0_i32_1 = arith.constant 0 : i32
    return %arg0, %c0_i32, %c0_i32_0 : i32, i32, i32
  }
}

module attributes {stable_mosaic.version = 11 : i64} {
  func.func @_conv_kernel(%arg0: i32, %arg1: memref<1x16x256xf32, #tpu.memory_space<vmem>>, %arg2: memref<3x144xf32, #tpu.memory_space<vmem>>, %arg3: memref<3x1xf32, #tpu.memory_space<vmem>>, %arg4: memref<1x3x256xf32, #tpu.memory_space<vmem>>) attributes {dimension_semantics = [#tpu.dimension_semantics<parallel>], iteration_bounds = array<i64: 2>, scalar_prefetch = 0 : i64, scratch_operands = 0 : i64, tpu.core_type = #tpu.core_type<tc>, window_params = [{transform_indices = @transform_0, window_bounds = array<i64: 1, 16, 256>}, {pipeline_mode = #tpu.pipeline_mode<synchronous>, transform_indices = @transform_1, window_bounds = array<i64: 3, 144>}, {pipeline_mode = #tpu.pipeline_mode<synchronous>, transform_indices = @transform_2, window_bounds = array<i64: 3, 1>}, {transform_indices = @transform_3, window_bounds = array<i64: 1, 3, 256>}]} {
    %c0 = arith.constant 0 : index
    %c0_0 = arith.constant 0 : index
    %c0_1 = arith.constant 0 : index
    %0 = vector.load %arg1[%c0, %c0_0, %c0_1] : memref<1x16x256xf32, #tpu.memory_space<vmem>>, vector<1x16x256xf32>
    %1 = vector.shape_cast %0 : vector<1x16x256xf32> to vector<16x256xf32>
    %c0_2 = arith.constant 0 : index
    %c0_3 = arith.constant 0 : index
    %2 = vector.load %arg2[%c0_2, %c0_3] : memref<3x144xf32, #tpu.memory_space<vmem>>, vector<3x144xf32>
    %c0_4 = arith.constant 0 : index
    %c0_5 = arith.constant 0 : index
    %3 = vector.load %arg3[%c0_4, %c0_5] : memref<3x1xf32, #tpu.memory_space<vmem>>, vector<3x1xf32>
    %cst = arith.constant 0.000000e+00 : f32
    %4 = vector.broadcast %cst : f32 to vector<16x128xf32>
    %5 = tpu.concatenate %4, %1, %4 in 1 : vector<16x128xf32>, vector<16x256xf32>, vector<16x128xf32> -> vector<16x512xf32>
    %6 = tpu.iota {dimensions = array<i32: 1>} : vector<1x256xi32>
    %c16_i32 = arith.constant 16 : i32
    %c0_i32 = arith.constant 0 : i32
    %7 = arith.cmpi eq, %c16_i32, %c0_i32 : i32
    %c1_i32 = arith.constant 1 : i32
    %8 = arith.select %7, %c1_i32, %c16_i32 : i32
    %9 = vector.broadcast %8 : i32 to vector<1x256xi32>
    %10 = arith.remsi %6, %9 : vector<1x256xi32>
    %c0_i32_6 = arith.constant 0 : i32
    %11 = vector.broadcast %c0_i32_6 : i32 to vector<1x256xi32>
    %12 = arith.cmpi ne, %10, %11 : vector<1x256xi32>
    %c0_i32_7 = arith.constant 0 : i32
    %13 = vector.broadcast %c0_i32_7 : i32 to vector<1x256xi32>
    %14 = arith.cmpi slt, %10, %13 : vector<1x256xi32>
    %c0_i32_8 = arith.constant 0 : i32
    %15 = arith.cmpi slt, %8, %c0_i32_8 : i32
    %16 = vector.broadcast %15 : i1 to vector<1x256xi1>
    %17 = vector.broadcast %16 : vector<1x256xi1> to vector<1x256xi1>
    %18 = arith.xori %14, %17 : vector<1x256xi1>
    %19 = arith.andi %18, %12 : vector<1x256xi1>
    %20 = vector.broadcast %8 : i32 to vector<1x256xi32>
    %21 = arith.addi %10, %20 : vector<1x256xi32>
    %22 = arith.select %19, %21, %10 : vector<1x256xi1>, vector<1x256xi32>
    %23 = vector.extract_strided_slice %5 {offsets = [0, 111], sizes = [16, 256], strides = [1, 1]} : vector<16x512xf32> to vector<16x256xf32>
    %c-1_i32 = arith.constant -1 : i32
    %24 = vector.broadcast %c-1_i32 : i32 to vector<1x256xi32>
    %25 = arith.addi %22, %24 : vector<1x256xi32>
    %c0_i32_9 = arith.constant 0 : i32
    %26 = vector.broadcast %c0_i32_9 : i32 to vector<1x256xi32>
    %27 = arith.cmpi sge, %25, %26 : vector<1x256xi32>
    %c-1_i32_10 = arith.constant -1 : i32
    %28 = vector.broadcast %c-1_i32_10 : i32 to vector<1x256xi32>
    %29 = arith.addi %22, %28 : vector<1x256xi32>
    %c16_i32_11 = arith.constant 16 : i32
    %30 = vector.broadcast %c16_i32_11 : i32 to vector<1x256xi32>
    %31 = arith.cmpi slt, %29, %30 : vector<1x256xi32>
    %32 = arith.andi %27, %31 : vector<1x256xi1>
    %cst_12 = arith.constant 0.000000e+00 : f32
    %33 = vector.shape_cast %32 : vector<1x256xi1> to vector<1x256xi1>
    %34 = vector.broadcast %33 : vector<1x256xi1> to vector<16x256xi1>
    %35 = vector.broadcast %cst_12 : f32 to vector<16x256xf32>
    %36 = arith.select %34, %23, %35 : vector<16x256xi1>, vector<16x256xf32>
    %37 = vector.extract_strided_slice %5 {offsets = [0, 112], sizes = [16, 256], strides = [1, 1]} : vector<16x512xf32> to vector<16x256xf32>
    %38 = vector.extract_strided_slice %5 {offsets = [0, 113], sizes = [16, 256], strides = [1, 1]} : vector<16x512xf32> to vector<16x256xf32>
    %c1_i32_13 = arith.constant 1 : i32
    %39 = vector.broadcast %c1_i32_13 : i32 to vector<1x256xi32>
    %40 = arith.addi %22, %39 : vector<1x256xi32>
    %c0_i32_14 = arith.constant 0 : i32
    %41 = vector.broadcast %c0_i32_14 : i32 to vector<1x256xi32>
    %42 = arith.cmpi sge, %40, %41 : vector<1x256xi32>
    %c1_i32_15 = arith.constant 1 : i32
    %43 = vector.broadcast %c1_i32_15 : i32 to vector<1x256xi32>
    %44 = arith.addi %22, %43 : vector<1x256xi32>
    %c16_i32_16 = arith.constant 16 : i32
    %45 = vector.broadcast %c16_i32_16 : i32 to vector<1x256xi32>
    %46 = arith.cmpi slt, %44, %45 : vector<1x256xi32>
    %47 = arith.andi %42, %46 : vector<1x256xi1>
    %cst_17 = arith.constant 0.000000e+00 : f32
    %48 = vector.shape_cast %47 : vector<1x256xi1> to vector<1x256xi1>
    %49 = vector.broadcast %48 : vector<1x256xi1> to vector<16x256xi1>
    %50 = vector.broadcast %cst_17 : f32 to vector<16x256xf32>
    %51 = arith.select %49, %38, %50 : vector<16x256xi1>, vector<16x256xf32>
    %52 = vector.extract_strided_slice %5 {offsets = [0, 127], sizes = [16, 256], strides = [1, 1]} : vector<16x512xf32> to vector<16x256xf32>
    %c-1_i32_18 = arith.constant -1 : i32
    %53 = vector.broadcast %c-1_i32_18 : i32 to vector<1x256xi32>
    %54 = arith.addi %22, %53 : vector<1x256xi32>
    %c0_i32_19 = arith.constant 0 : i32
    %55 = vector.broadcast %c0_i32_19 : i32 to vector<1x256xi32>
    %56 = arith.cmpi sge, %54, %55 : vector<1x256xi32>
    %c-1_i32_20 = arith.constant -1 : i32
    %57 = vector.broadcast %c-1_i32_20 : i32 to vector<1x256xi32>
    %58 = arith.addi %22, %57 : vector<1x256xi32>
    %c16_i32_21 = arith.constant 16 : i32
    %59 = vector.broadcast %c16_i32_21 : i32 to vector<1x256xi32>
    %60 = arith.cmpi slt, %58, %59 : vector<1x256xi32>
    %61 = arith.andi %56, %60 : vector<1x256xi1>
    %cst_22 = arith.constant 0.000000e+00 : f32
    %62 = vector.shape_cast %61 : vector<1x256xi1> to vector<1x256xi1>
    %63 = vector.broadcast %62 : vector<1x256xi1> to vector<16x256xi1>
    %64 = vector.broadcast %cst_22 : f32 to vector<16x256xf32>
    %65 = arith.select %63, %52, %64 : vector<16x256xi1>, vector<16x256xf32>
    %66 = vector.extract_strided_slice %5 {offsets = [0, 128], sizes = [16, 256], strides = [1, 1]} : vector<16x512xf32> to vector<16x256xf32>
    %67 = vector.extract_strided_slice %5 {offsets = [0, 129], sizes = [16, 256], strides = [1, 1]} : vector<16x512xf32> to vector<16x256xf32>
    %c1_i32_23 = arith.constant 1 : i32
    %68 = vector.broadcast %c1_i32_23 : i32 to vector<1x256xi32>
    %69 = arith.addi %22, %68 : vector<1x256xi32>
    %c0_i32_24 = arith.constant 0 : i32
    %70 = vector.broadcast %c0_i32_24 : i32 to vector<1x256xi32>
    %71 = arith.cmpi sge, %69, %70 : vector<1x256xi32>
    %c1_i32_25 = arith.constant 1 : i32
    %72 = vector.broadcast %c1_i32_25 : i32 to vector<1x256xi32>
    %73 = arith.addi %22, %72 : vector<1x256xi32>
    %c16_i32_26 = arith.constant 16 : i32
    %74 = vector.broadcast %c16_i32_26 : i32 to vector<1x256xi32>
    %75 = arith.cmpi slt, %73, %74 : vector<1x256xi32>
    %76 = arith.andi %71, %75 : vector<1x256xi1>
    %cst_27 = arith.constant 0.000000e+00 : f32
    %77 = vector.shape_cast %76 : vector<1x256xi1> to vector<1x256xi1>
    %78 = vector.broadcast %77 : vector<1x256xi1> to vector<16x256xi1>
    %79 = vector.broadcast %cst_27 : f32 to vector<16x256xf32>
    %80 = arith.select %78, %67, %79 : vector<16x256xi1>, vector<16x256xf32>
    %81 = vector.extract_strided_slice %5 {offsets = [0, 143], sizes = [16, 256], strides = [1, 1]} : vector<16x512xf32> to vector<16x256xf32>
    %c-1_i32_28 = arith.constant -1 : i32
    %82 = vector.broadcast %c-1_i32_28 : i32 to vector<1x256xi32>
    %83 = arith.addi %22, %82 : vector<1x256xi32>
    %c0_i32_29 = arith.constant 0 : i32
    %84 = vector.broadcast %c0_i32_29 : i32 to vector<1x256xi32>
    %85 = arith.cmpi sge, %83, %84 : vector<1x256xi32>
    %c-1_i32_30 = arith.constant -1 : i32
    %86 = vector.broadcast %c-1_i32_30 : i32 to vector<1x256xi32>
    %87 = arith.addi %22, %86 : vector<1x256xi32>
    %c16_i32_31 = arith.constant 16 : i32
    %88 = vector.broadcast %c16_i32_31 : i32 to vector<1x256xi32>
    %89 = arith.cmpi slt, %87, %88 : vector<1x256xi32>
    %90 = arith.andi %85, %89 : vector<1x256xi1>
    %cst_32 = arith.constant 0.000000e+00 : f32
    %91 = vector.shape_cast %90 : vector<1x256xi1> to vector<1x256xi1>
    %92 = vector.broadcast %91 : vector<1x256xi1> to vector<16x256xi1>
    %93 = vector.broadcast %cst_32 : f32 to vector<16x256xf32>
    %94 = arith.select %92, %81, %93 : vector<16x256xi1>, vector<16x256xf32>
    %95 = vector.extract_strided_slice %5 {offsets = [0, 144], sizes = [16, 256], strides = [1, 1]} : vector<16x512xf32> to vector<16x256xf32>
    %96 = vector.extract_strided_slice %5 {offsets = [0, 145], sizes = [16, 256], strides = [1, 1]} : vector<16x512xf32> to vector<16x256xf32>
    %c1_i32_33 = arith.constant 1 : i32
    %97 = vector.broadcast %c1_i32_33 : i32 to vector<1x256xi32>
    %98 = arith.addi %22, %97 : vector<1x256xi32>
    %c0_i32_34 = arith.constant 0 : i32
    %99 = vector.broadcast %c0_i32_34 : i32 to vector<1x256xi32>
    %100 = arith.cmpi sge, %98, %99 : vector<1x256xi32>
    %c1_i32_35 = arith.constant 1 : i32
    %101 = vector.broadcast %c1_i32_35 : i32 to vector<1x256xi32>
    %102 = arith.addi %22, %101 : vector<1x256xi32>
    %c16_i32_36 = arith.constant 16 : i32
    %103 = vector.broadcast %c16_i32_36 : i32 to vector<1x256xi32>
    %104 = arith.cmpi slt, %102, %103 : vector<1x256xi32>
    %105 = arith.andi %100, %104 : vector<1x256xi1>
    %cst_37 = arith.constant 0.000000e+00 : f32
    %106 = vector.shape_cast %105 : vector<1x256xi1> to vector<1x256xi1>
    %107 = vector.broadcast %106 : vector<1x256xi1> to vector<16x256xi1>
    %108 = vector.broadcast %cst_37 : f32 to vector<16x256xf32>
    %109 = arith.select %107, %96, %108 : vector<16x256xi1>, vector<16x256xf32>
    %110 = tpu.concatenate %36, %37, %51, %65, %66, %80, %94, %95, %109 in 0 : vector<16x256xf32>, vector<16x256xf32>, vector<16x256xf32>, vector<16x256xf32>, vector<16x256xf32>, vector<16x256xf32>, vector<16x256xf32>, vector<16x256xf32>, vector<16x256xf32> -> vector<144x256xf32>
    %cst_38 = arith.constant dense<0.000000e+00> : vector<3x256xf32>
    %111 = tpu.matmul %2, %110, %cst_38 {dimension_numbers = #tpu.dot_dimension_numbers<[1], [0], [0], [1], [0, 0, 1, 1], [], []>} : vector<3x144xf32>, vector<144x256xf32>, vector<3x256xf32> -> vector<3x256xf32>
    %112 = vector.broadcast %3 : vector<3x1xf32> to vector<3x256xf32>
    %113 = arith.addf %111, %112 : vector<3x256xf32>
    %c0_39 = arith.constant 0 : index
    %c0_40 = arith.constant 0 : index
    %c0_41 = arith.constant 0 : index
    %114 = vector.load %arg4[%c0_39, %c0_40, %c0_41] : memref<1x3x256xf32, #tpu.memory_space<vmem>>, vector<1x3x256xf32>
    %115 = vector.shape_cast %114 : vector<1x3x256xf32> to vector<3x256xf32>
    %116 = vector.shape_cast %113 : vector<3x256xf32> to vector<1x3x256xf32>
    tpu.vector_store %arg4[%c0_39, %c0_40, %c0_41], %116 {strides = array<i32>} : memref<1x3x256xf32, #tpu.memory_space<vmem>>, vector<1x3x256xf32>,
    return
  }
  func.func @transform_0(%arg0: i32) -> (i32, i32, i32) {
    %c0_i32 = arith.constant 0 : i32
    %c0_i32_0 = arith.constant 0 : i32
    %c0_i32_1 = arith.constant 0 : i32
    return %arg0, %c0_i32, %c0_i32_0 : i32, i32, i32
  }
  func.func @transform_1(%arg0: i32) -> (i32, i32) {
    %c0_i32 = arith.constant 0 : i32
    %c0_i32_0 = arith.constant 0 : i32
    %c0_i32_1 = arith.constant 0 : i32
    return %c0_i32, %c0_i32_0 : i32, i32
  }
  func.func @transform_2(%arg0: i32) -> (i32, i32) {
    %c0_i32 = arith.constant 0 : i32
    %c0_i32_0 = arith.constant 0 : i32
    %c0_i32_1 = arith.constant 0 : i32
    return %c0_i32, %c0_i32_0 : i32, i32
  }
  func.func @transform_3(%arg0: i32) -> (i32, i32, i32) {
    %c0_i32 = arith.constant 0 : i32
    %c0_i32_0 = arith.constant 0 : i32
    %c0_i32_1 = arith.constant 0 : i32
    return %arg0, %c0_i32, %c0_i32_0 : i32, i32, i32
  }
}

module attributes {stable_mosaic.version = 11 : i64} {
  func.func @_conv_kernel(%arg0: i32, %arg1: memref<1x16x256xf32, #tpu.memory_space<vmem>>, %arg2: memref<16x144xf32, #tpu.memory_space<vmem>>, %arg3: memref<16x1xf32, #tpu.memory_space<vmem>>, %arg4: memref<1x16x256xf32, #tpu.memory_space<vmem>>) attributes {dimension_semantics = [#tpu.dimension_semantics<parallel>], iteration_bounds = array<i64: 2>, scalar_prefetch = 0 : i64, scratch_operands = 0 : i64, tpu.core_type = #tpu.core_type<tc>, window_params = [{transform_indices = @transform_0, window_bounds = array<i64: 1, 16, 256>}, {pipeline_mode = #tpu.pipeline_mode<synchronous>, transform_indices = @transform_1, window_bounds = array<i64: 16, 144>}, {pipeline_mode = #tpu.pipeline_mode<synchronous>, transform_indices = @transform_2, window_bounds = array<i64: 16, 1>}, {transform_indices = @transform_3, window_bounds = array<i64: 1, 16, 256>}]} {
    %c0 = arith.constant 0 : index
    %c0_0 = arith.constant 0 : index
    %c0_1 = arith.constant 0 : index
    %0 = vector.load %arg1[%c0, %c0_0, %c0_1] : memref<1x16x256xf32, #tpu.memory_space<vmem>>, vector<1x16x256xf32>
    %1 = vector.shape_cast %0 : vector<1x16x256xf32> to vector<16x256xf32>
    %c0_2 = arith.constant 0 : index
    %c0_3 = arith.constant 0 : index
    %2 = vector.load %arg2[%c0_2, %c0_3] : memref<16x144xf32, #tpu.memory_space<vmem>>, vector<16x144xf32>
    %c0_4 = arith.constant 0 : index
    %c0_5 = arith.constant 0 : index
    %3 = vector.load %arg3[%c0_4, %c0_5] : memref<16x1xf32, #tpu.memory_space<vmem>>, vector<16x1xf32>
    %cst = arith.constant 0.000000e+00 : f32
    %4 = vector.broadcast %cst : f32 to vector<16x128xf32>
    %5 = tpu.concatenate %4, %1, %4 in 1 : vector<16x128xf32>, vector<16x256xf32>, vector<16x128xf32> -> vector<16x512xf32>
    %6 = tpu.iota {dimensions = array<i32: 1>} : vector<1x256xi32>
    %c16_i32 = arith.constant 16 : i32
    %c0_i32 = arith.constant 0 : i32
    %7 = arith.cmpi eq, %c16_i32, %c0_i32 : i32
    %c1_i32 = arith.constant 1 : i32
    %8 = arith.select %7, %c1_i32, %c16_i32 : i32
    %9 = vector.broadcast %8 : i32 to vector<1x256xi32>
    %10 = arith.remsi %6, %9 : vector<1x256xi32>
    %c0_i32_6 = arith.constant 0 : i32
    %11 = vector.broadcast %c0_i32_6 : i32 to vector<1x256xi32>
    %12 = arith.cmpi ne, %10, %11 : vector<1x256xi32>
    %c0_i32_7 = arith.constant 0 : i32
    %13 = vector.broadcast %c0_i32_7 : i32 to vector<1x256xi32>
    %14 = arith.cmpi slt, %10, %13 : vector<1x256xi32>
    %c0_i32_8 = arith.constant 0 : i32
    %15 = arith.cmpi slt, %8, %c0_i32_8 : i32
    %16 = vector.broadcast %15 : i1 to vector<1x256xi1>
    %17 = vector.broadcast %16 : vector<1x256xi1> to vector<1x256xi1>
    %18 = arith.xori %14, %17 : vector<1x256xi1>
    %19 = arith.andi %18, %12 : vector<1x256xi1>
    %20 = vector.broadcast %8 : i32 to vector<1x256xi32>
    %21 = arith.addi %10, %20 : vector<1x256xi32>
    %22 = arith.select %19, %21, %10 : vector<1x256xi1>, vector<1x256xi32>
    %23 = vector.extract_strided_slice %5 {offsets = [0, 111], sizes = [16, 256], strides = [1, 1]} : vector<16x512xf32> to vector<16x256xf32>
    %c-1_i32 = arith.constant -1 : i32
    %24 = vector.broadcast %c-1_i32 : i32 to vector<1x256xi32>
    %25 = arith.addi %22, %24 : vector<1x256xi32>
    %c0_i32_9 = arith.constant 0 : i32
    %26 = vector.broadcast %c0_i32_9 : i32 to vector<1x256xi32>
    %27 = arith.cmpi sge, %25, %26 : vector<1x256xi32>
    %c-1_i32_10 = arith.constant -1 : i32
    %28 = vector.broadcast %c-1_i32_10 : i32 to vector<1x256xi32>
    %29 = arith.addi %22, %28 : vector<1x256xi32>
    %c16_i32_11 = arith.constant 16 : i32
    %30 = vector.broadcast %c16_i32_11 : i32 to vector<1x256xi32>
    %31 = arith.cmpi slt, %29, %30 : vector<1x256xi32>
    %32 = arith.andi %27, %31 : vector<1x256xi1>
    %cst_12 = arith.constant 0.000000e+00 : f32
    %33 = vector.shape_cast %32 : vector<1x256xi1> to vector<1x256xi1>
    %34 = vector.broadcast %33 : vector<1x256xi1> to vector<16x256xi1>
    %35 = vector.broadcast %cst_12 : f32 to vector<16x256xf32>
    %36 = arith.select %34, %23, %35 : vector<16x256xi1>, vector<16x256xf32>
    %37 = vector.extract_strided_slice %5 {offsets = [0, 112], sizes = [16, 256], strides = [1, 1]} : vector<16x512xf32> to vector<16x256xf32>
    %38 = vector.extract_strided_slice %5 {offsets = [0, 113], sizes = [16, 256], strides = [1, 1]} : vector<16x512xf32> to vector<16x256xf32>
    %c1_i32_13 = arith.constant 1 : i32
    %39 = vector.broadcast %c1_i32_13 : i32 to vector<1x256xi32>
    %40 = arith.addi %22, %39 : vector<1x256xi32>
    %c0_i32_14 = arith.constant 0 : i32
    %41 = vector.broadcast %c0_i32_14 : i32 to vector<1x256xi32>
    %42 = arith.cmpi sge, %40, %41 : vector<1x256xi32>
    %c1_i32_15 = arith.constant 1 : i32
    %43 = vector.broadcast %c1_i32_15 : i32 to vector<1x256xi32>
    %44 = arith.addi %22, %43 : vector<1x256xi32>
    %c16_i32_16 = arith.constant 16 : i32
    %45 = vector.broadcast %c16_i32_16 : i32 to vector<1x256xi32>
    %46 = arith.cmpi slt, %44, %45 : vector<1x256xi32>
    %47 = arith.andi %42, %46 : vector<1x256xi1>
    %cst_17 = arith.constant 0.000000e+00 : f32
    %48 = vector.shape_cast %47 : vector<1x256xi1> to vector<1x256xi1>
    %49 = vector.broadcast %48 : vector<1x256xi1> to vector<16x256xi1>
    %50 = vector.broadcast %cst_17 : f32 to vector<16x256xf32>
    %51 = arith.select %49, %38, %50 : vector<16x256xi1>, vector<16x256xf32>
    %52 = vector.extract_strided_slice %5 {offsets = [0, 127], sizes = [16, 256], strides = [1, 1]} : vector<16x512xf32> to vector<16x256xf32>
    %c-1_i32_18 = arith.constant -1 : i32
    %53 = vector.broadcast %c-1_i32_18 : i32 to vector<1x256xi32>
    %54 = arith.addi %22, %53 : vector<1x256xi32>
    %c0_i32_19 = arith.constant 0 : i32
    %55 = vector.broadcast %c0_i32_19 : i32 to vector<1x256xi32>
    %56 = arith.cmpi sge, %54, %55 : vector<1x256xi32>
    %c-1_i32_20 = arith.constant -1 : i32
    %57 = vector.broadcast %c-1_i32_20 : i32 to vector<1x256xi32>
    %58 = arith.addi %22, %57 : vector<1x256xi32>
    %c16_i32_21 = arith.constant 16 : i32
    %59 = vector.broadcast %c16_i32_21 : i32 to vector<1x256xi32>
    %60 = arith.cmpi slt, %58, %59 : vector<1x256xi32>
    %61 = arith.andi %56, %60 : vector<1x256xi1>
    %cst_22 = arith.constant 0.000000e+00 : f32
    %62 = vector.shape_cast %61 : vector<1x256xi1> to vector<1x256xi1>
    %63 = vector.broadcast %62 : vector<1x256xi1> to vector<16x256xi1>
    %64 = vector.broadcast %cst_22 : f32 to vector<16x256xf32>
    %65 = arith.select %63, %52, %64 : vector<16x256xi1>, vector<16x256xf32>
    %66 = vector.extract_strided_slice %5 {offsets = [0, 128], sizes = [16, 256], strides = [1, 1]} : vector<16x512xf32> to vector<16x256xf32>
    %67 = vector.extract_strided_slice %5 {offsets = [0, 129], sizes = [16, 256], strides = [1, 1]} : vector<16x512xf32> to vector<16x256xf32>
    %c1_i32_23 = arith.constant 1 : i32
    %68 = vector.broadcast %c1_i32_23 : i32 to vector<1x256xi32>
    %69 = arith.addi %22, %68 : vector<1x256xi32>
    %c0_i32_24 = arith.constant 0 : i32
    %70 = vector.broadcast %c0_i32_24 : i32 to vector<1x256xi32>
    %71 = arith.cmpi sge, %69, %70 : vector<1x256xi32>
    %c1_i32_25 = arith.constant 1 : i32
    %72 = vector.broadcast %c1_i32_25 : i32 to vector<1x256xi32>
    %73 = arith.addi %22, %72 : vector<1x256xi32>
    %c16_i32_26 = arith.constant 16 : i32
    %74 = vector.broadcast %c16_i32_26 : i32 to vector<1x256xi32>
    %75 = arith.cmpi slt, %73, %74 : vector<1x256xi32>
    %76 = arith.andi %71, %75 : vector<1x256xi1>
    %cst_27 = arith.constant 0.000000e+00 : f32
    %77 = vector.shape_cast %76 : vector<1x256xi1> to vector<1x256xi1>
    %78 = vector.broadcast %77 : vector<1x256xi1> to vector<16x256xi1>
    %79 = vector.broadcast %cst_27 : f32 to vector<16x256xf32>
    %80 = arith.select %78, %67, %79 : vector<16x256xi1>, vector<16x256xf32>
    %81 = vector.extract_strided_slice %5 {offsets = [0, 143], sizes = [16, 256], strides = [1, 1]} : vector<16x512xf32> to vector<16x256xf32>
    %c-1_i32_28 = arith.constant -1 : i32
    %82 = vector.broadcast %c-1_i32_28 : i32 to vector<1x256xi32>
    %83 = arith.addi %22, %82 : vector<1x256xi32>
    %c0_i32_29 = arith.constant 0 : i32
    %84 = vector.broadcast %c0_i32_29 : i32 to vector<1x256xi32>
    %85 = arith.cmpi sge, %83, %84 : vector<1x256xi32>
    %c-1_i32_30 = arith.constant -1 : i32
    %86 = vector.broadcast %c-1_i32_30 : i32 to vector<1x256xi32>
    %87 = arith.addi %22, %86 : vector<1x256xi32>
    %c16_i32_31 = arith.constant 16 : i32
    %88 = vector.broadcast %c16_i32_31 : i32 to vector<1x256xi32>
    %89 = arith.cmpi slt, %87, %88 : vector<1x256xi32>
    %90 = arith.andi %85, %89 : vector<1x256xi1>
    %cst_32 = arith.constant 0.000000e+00 : f32
    %91 = vector.shape_cast %90 : vector<1x256xi1> to vector<1x256xi1>
    %92 = vector.broadcast %91 : vector<1x256xi1> to vector<16x256xi1>
    %93 = vector.broadcast %cst_32 : f32 to vector<16x256xf32>
    %94 = arith.select %92, %81, %93 : vector<16x256xi1>, vector<16x256xf32>
    %95 = vector.extract_strided_slice %5 {offsets = [0, 144], sizes = [16, 256], strides = [1, 1]} : vector<16x512xf32> to vector<16x256xf32>
    %96 = vector.extract_strided_slice %5 {offsets = [0, 145], sizes = [16, 256], strides = [1, 1]} : vector<16x512xf32> to vector<16x256xf32>
    %c1_i32_33 = arith.constant 1 : i32
    %97 = vector.broadcast %c1_i32_33 : i32 to vector<1x256xi32>
    %98 = arith.addi %22, %97 : vector<1x256xi32>
    %c0_i32_34 = arith.constant 0 : i32
    %99 = vector.broadcast %c0_i32_34 : i32 to vector<1x256xi32>
    %100 = arith.cmpi sge, %98, %99 : vector<1x256xi32>
    %c1_i32_35 = arith.constant 1 : i32
    %101 = vector.broadcast %c1_i32_35 : i32 to vector<1x256xi32>
    %102 = arith.addi %22, %101 : vector<1x256xi32>
    %c16_i32_36 = arith.constant 16 : i32
    %103 = vector.broadcast %c16_i32_36 : i32 to vector<1x256xi32>
    %104 = arith.cmpi slt, %102, %103 : vector<1x256xi32>
    %105 = arith.andi %100, %104 : vector<1x256xi1>
    %cst_37 = arith.constant 0.000000e+00 : f32
    %106 = vector.shape_cast %105 : vector<1x256xi1> to vector<1x256xi1>
    %107 = vector.broadcast %106 : vector<1x256xi1> to vector<16x256xi1>
    %108 = vector.broadcast %cst_37 : f32 to vector<16x256xf32>
    %109 = arith.select %107, %96, %108 : vector<16x256xi1>, vector<16x256xf32>
    %110 = tpu.concatenate %36, %37, %51, %65, %66, %80, %94, %95, %109 in 0 : vector<16x256xf32>, vector<16x256xf32>, vector<16x256xf32>, vector<16x256xf32>, vector<16x256xf32>, vector<16x256xf32>, vector<16x256xf32>, vector<16x256xf32>, vector<16x256xf32> -> vector<144x256xf32>
    %cst_38 = arith.constant dense<0.000000e+00> : vector<16x256xf32>
    %111 = tpu.matmul %2, %110, %cst_38 {dimension_numbers = #tpu.dot_dimension_numbers<[1], [0], [0], [1], [0, 0, 1, 1], [], []>} : vector<16x144xf32>, vector<144x256xf32>, vector<16x256xf32> -> vector<16x256xf32>
    %112 = vector.broadcast %3 : vector<16x1xf32> to vector<16x256xf32>
    %113 = arith.addf %111, %112 : vector<16x256xf32>
    %cst_39 = arith.constant 0.000000e+00 : f32
    %114 = vector.broadcast %cst_39 : f32 to vector<16x256xf32>
    %115 = arith.cmpf oge, %113, %114 : vector<16x256xf32>
    %cst_40 = arith.constant 2.000000e-01 : f32
    %116 = vector.broadcast %cst_40 : f32 to vector<16x256xf32>
    %117 = arith.mulf %116, %113 : vector<16x256xf32>
    %118 = arith.select %115, %113, %117 : vector<16x256xi1>, vector<16x256xf32>
    %c0_41 = arith.constant 0 : index
    %c0_42 = arith.constant 0 : index
    %c0_43 = arith.constant 0 : index
    %119 = vector.load %arg4[%c0_41, %c0_42, %c0_43] : memref<1x16x256xf32, #tpu.memory_space<vmem>>, vector<1x16x256xf32>
    %120 = vector.shape_cast %119 : vector<1x16x256xf32> to vector<16x256xf32>
    %121 = vector.shape_cast %118 : vector<16x256xf32> to vector<1x16x256xf32>
    tpu.vector_store %arg4[%c0_41, %c0_42, %c0_43], %121 {strides = array<i32>} : memref<1x16x256xf32, #tpu.memory_space<vmem>>, vector<1x16x256xf32>,
    return
  }
  func.func @transform_0(%arg0: i32) -> (i32, i32, i32) {
    %c0_i32 = arith.constant 0 : i32
    %c0_i32_0 = arith.constant 0 : i32
    %c0_i32_1 = arith.constant 0 : i32
    return %arg0, %c0_i32, %c0_i32_0 : i32, i32, i32
  }
  func.func @transform_1(%arg0: i32) -> (i32, i32) {
    %c0_i32 = arith.constant 0 : i32
    %c0_i32_0 = arith.constant 0 : i32
    %c0_i32_1 = arith.constant 0 : i32
    return %c0_i32, %c0_i32_0 : i32, i32
  }
  func.func @transform_2(%arg0: i32) -> (i32, i32) {
    %c0_i32 = arith.constant 0 : i32
    %c0_i32_0 = arith.constant 0 : i32
    %c0_i32_1 = arith.constant 0 : i32
    return %c0_i32, %c0_i32_0 : i32, i32
  }
  func.func @transform_3(%arg0: i32) -> (i32, i32, i32) {
    %c0_i32 = arith.constant 0 : i32
    %c0_i32_0 = arith.constant 0 : i32
    %c0_i32_1 = arith.constant 0 : i32
    return %arg0, %c0_i32, %c0_i32_0 : i32, i32, i32
  }
}

</mosaic_0001>

<bundles_post_ra>
// kernel: post_processing_forward.11
= control target key start
LH: loop header
LB: loop body
LE: loop exit
PB: predicated region body
PF: predicated region fallthrough
CT: control target
= control target key end

     0   :  { %s883_s15 = smov 0   ;;  %s1016_s0 = inlined_call_operand.vmem [shape: f32[2,16,256], index: 0, kind: input, shape index: {}]   ;;  %s1017_s1 = inlined_call_operand.vmem [shape: f32[2,16,256], index: 1, kind: input, shape index: {}]   ;;  %s1018_s2 = inlined_call_operand.vmem [shape: f32[16,144], index: 2, kind: input, shape index: {}]   ;;  %s1019_s3 = inlined_call_operand.vmem [shape: f32[16,1], index: 3, kind: input, shape index: {}]   ;;  %s1020_s4 = inlined_call_operand.vmem [shape: f32[2,16,256], index: 4, kind: output, shape index: {}]  }
   0x1 LB: > { %s632_s16 = sadd.s32 4294967295, %s846_s15   ;;  %p636_p0 = scmp.ge.s32.totalorder %s846_s15, 1  ;;  %s846_s15 = sphi %s883_s15, %s14_s15  }
   0x2   : > { %p172_p1 = scmp.lt.s32.totalorder %s846_s15, 3 }
   0x4   : > { %p173_p2 = pnand %p636_p0, %p172_p1 }
   0x5   : > { %p203_p3 = scmp.lt.s32.totalorder (!%p173_p2), %s632_s16, 1  ;;  %v848_v0 = vmov (!%p173_p2), 0.0   ;;  %s849_s17 = smov (!%p173_p2), 17   ;;  %vm432_vm0 = vcmask (!%p173_p2), 130048   ;;  %v223_v11 = vld [vmem:[%s1018_s2 + $0x8] sm:$0xff] (!%p173_p2)  ;;  %v225_v12 = vld [vmem:[%s1018_s2 + $0x18] sm:$0xff] (!%p173_p2)  ;;  %v228_v16 = vlaneseq (!%p173_p2) }
   0x6   : > { %176 = sbr.rel (%p173_p2) target bundleno = 405 (0x195), region = 36  ;;  %272 = vrot.lane.b32.xlu1 (!%p173_p2), %v848_v0, %s849_s17  ;;  %s850_s22 = smov (!%p173_p2), 16   ;;  %667 = vmatprep.mubr.msk.f32.mxu0 (!%p173_p2), %vm432_vm0, %v223_v11  ;;  %v857_v13 = vmov (!%p173_p2), 0   ;;  %v227_v14 = vld [vmem:[%s1019_s3 + $0x8] sm:$0xff] (!%p173_p2)  ;;  %v226_v15 = vld [vmem:[%s1019_s3] sm:$0xff] (!%p173_p2)  ;;  %vm282_vm2 = vcmask (!%p173_p2), 138240  }
   0x7   : > { %s851_s23 = smov (!%p173_p2), 15   ;;  %s852_s24 = smov (!%p173_p2), 1   ;;  %668 = vmatprep.mubr.msk.f32.mxu1 (!%p173_p2), %vm432_vm0, %v225_v12  ;;  %839 = vset.pattern.permute.xlu1 (!%p173_p2), %v857_v13  ;;  %v229_v17 = vand.u32 (!%p173_p2), 127, %v228_v16  ;;  %vm317_vm6 = vcmask (!%p173_p2), 121856   ;;  %vm340_vm11 = vcmask (!%p173_p2), 7168   ;;  %vm363_vm12 = vcmask (!%p173_p2), 1039360  }
   0x8   : > { %s853_s25 = smov (!%p173_p2), 127   ;;  %s854_s26 = smov (!%p173_p2), 113   ;;  %838 = vset.pattern.permute.xlu0 (!%p173_p2), %v857_v13  ;;  %vm386_vm13 = vcmask (!%p173_p2), 924672   ;;  %vm451_vm14 = vcmask (!%p173_p2), 916480   ;;  %vm409_vm15 = vcmask (!%p173_p2), 908288  }
   0x9   : > { %s855_s27 = smov (!%p173_p2), 112   ;;  %s856_s28 = smov (!%p173_p2), 111   ;;  %v230_v18 = vadd.s32 (!%p173_p2), 128, %v229_v17  ;;  %v235_v21 = vand.u32 (!%p173_p2), 15, %v229_v17 }
   0xb   : > { %v242_v20 = vand.u32 (!%p173_p2), 15, %v230_v18  ;;  %v255_v25 = vadd.s32 (!%p173_p2), 4294967295, %v235_v21  ;;  %v295_v51 = vadd.s32 (!%p173_p2), 1, %v235_v21 }
   0xd   : > { %s1030_s16 = smov (!%p203_p3, %s632_s16), 1  ;;  %v256_v24 = vadd.s32 4294967295, %v242_v20  ;;  %vm257_vm3 = vcmp.ge.s32.totalorder %v255_v25, 0  ;;  %v296_v34 = vadd.s32 1, %v242_v20  ;;  %vm299_vm8 = vcmp.lt.s32.totalorder %v295_v51, 16 }
   0xe   : > { %s891_s18 = sshll.u32 %s1030_s16, 5  ;;  %vm920_vm5 = vmpackc.low %vm257_vm3, %vm257_vm3 }
   0xf   : > { %s207_s21 = scalar_lea.vmem %s1016_s0, %s891_s18  ;;  %vm258_vm1 = vcmp.ge.s32.totalorder %v256_v24, 0  ;;  %vm300_vm7 = vcmp.lt.s32.totalorder %v296_v34, 16  ;;  %vm943_vm10 = vmpackc.low %vm299_vm8, %vm299_vm8  ;;  %s212_s19 = scalar_lea.vmem %s1017_s1, %s891_s18 }
  0x10   : > { %v218_v1 = vld [vmem:[%s207_s21] sm:$0xff]  ;;  %v219_v2 = vld [vmem:[%s207_s21 + $0x8] sm:$0xff]  ;;  %v220_v3 = vld [vmem:[%s207_s21 + $0x10] sm:$0xff] }
  0x11   : > { %v758_v4 = vpack.i.bf16 %v219_v2, %v218_v1  ;;  %v221_v5 = vld [vmem:[%s207_s21 + $0x18] sm:$0xff]  ;;  %v899_v8 = vpack.c.bf16 %v220_v3, %v218_v1  ;;  %v798_v10 = vpack.i.bf16 %v848_v0, %v219_v2  ;;  %vm915_vm4 = vmpackc.low %vm258_vm1, %vm258_vm1 }
  0x12   : > { %v763_v6 = vpack.i.bf16 %v221_v5, %v220_v3  ;;  %v897_v7 = vpack.c.bf16 %v221_v5, %v219_v2  ;;  %v803_v9 = vpack.i.bf16 %v218_v1, %v221_v5  ;;  %vm937_vm9 = vmpackc.low %vm300_vm7, %vm300_vm7 }
  0x13   : > { %759 = vrot.lane.b32.xlu0 %v758_v4, %s849_s17  ;;  %769 = vrot.lane.b32.xlu1 %v758_v4, %s850_s22 }
  0x17   : > { %764 = vrot.lane.b32.xlu0 %v763_v6, %s849_s17  ;;  %422 = vrot.lane.b32.xlu1 %v848_v0, %s850_s22 }
  0x1b   : > { %774 = vrot.lane.b32.xlu0 %v763_v6, %s850_s22  ;;  %784 = vrot.lane.b32.xlu1 %v763_v6, %s851_s23  ;;  %s217_s22 = scalar_lea.vmem %s1020_s4, %s891_s18 }
  0x1f   : > { %779 = vrot.lane.b32.xlu0 %v758_v4, %s851_s23  ;;  %789 = vrot.lane.b32.xlu1 %v758_v4, %s852_s24 }
  0x23   : > { %307 = vrot.lane.b32.xlu0 %v848_v0, %s851_s23  ;;  %330 = vrot.lane.b32.xlu1 %v848_v0, %s852_s24 }
  0x27   : > { %794 = vrot.lane.b32.xlu0 %v763_v6, %s852_s24  ;;  %804 = vrot.lane.b32.xlu1 %v803_v9, %s853_s25  ;;  %v553_v6 = vld [vmem:[%s212_s19] sm:$0xff] }
  0x2b   : > { %799 = vrot.lane.b32.xlu0 %v798_v10, %s853_s25  ;;  %809 = vrot.lane.b32.xlu1 %v798_v10, %s854_s26 }
  0x2f   : > { %359 = vrot.lane.b32.xlu0 %v220_v3, %s853_s25  ;;  %382 = vrot.lane.b32.xlu1 %v220_v3, %s854_s26 }
  0x33   : > { %814 = vrot.lane.b32.xlu0 %v803_v9, %s854_s26  ;;  %824 = vrot.lane.b32.xlu1 %v803_v9, %s855_s27 }
  0x37   : > { %819 = vrot.lane.b32.xlu0 %v798_v10, %s855_s27  ;;  %829 = vrot.lane.b32.xlu1 %v798_v10, %s856_s28 }
  0x3b   : > { %447 = vrot.lane.b32.xlu0 %v220_v3, %s855_s27  ;;  %405 = vrot.lane.b32.xlu1 %v220_v3, %s856_s28 }
  0x3f   : > { %834 = vrot.lane.b32.xlu0 %v803_v9, %s856_s28  ;;  %467 = vperm.xlu1 %839, %v227_v14  }
  0x43   : > { %462 = vperm.xlu0 %838, %v226_v15  }
  0x78   : > { %v273_v19 = vpop.permute.xlu1 %272 }
  0x85   : > { %v760_v22 = vpop.permute.xlu0 %759  ;;  %v770_v23 = vpop.permute.xlu1 %769 }
  0x86   : > { %v762_v26 = vunpack.i.h.bf16 %v760_v22  ;;  %v761_v27 = vunpack.i.l.bf16 %v760_v22  ;;  %v772_v28 = vunpack.i.h.bf16 %v770_v23  ;;  %v771_v29 = vunpack.i.l.bf16 %v770_v23 }
  0x88   : > { %v284_v35 = vsel %vm282_vm2, %v761_v27, %v762_v26  ;;  %v283_v38 = vsel %vm282_vm2, %v273_v19, %v761_v27  ;;  %v434_v46 = vsel %vm432_vm0, %v771_v29, %v772_v28 }
  0x89   : > { %v765_v30 = vpop.permute.xlu0 %764  ;;  %v423_v31 = vpop.permute.xlu1 %422 }
  0x8a   : > { %v767_v32 = vunpack.i.h.bf16 %v765_v30  ;;  %v766_v33 = vunpack.i.l.bf16 %v765_v30  ;;  %v433_v40 = vsel %vm432_vm0, %v423_v31, %v771_v29 }
  0x8c   : > { %v286_v36 = vsel %vm282_vm2, %v766_v33, %v767_v32  ;;  %v285_v39 = vsel %vm282_vm2, %v273_v19, %v766_v33 }
  0x8d   : > { %v775_v41 = vpop.permute.xlu0 %774  ;;  %v674_v42 = vpack.c.bf16 %v286_v36, %v284_v35  ;;  %v677_v43 = vpack.c.bf16 %v285_v39, %v283_v38  ;;  %v785_v45 = vpop.permute.xlu1 %784 }
  0x8e   : > { %v777_v47 = vunpack.i.h.bf16 %v775_v41  ;;  %v776_v48 = vunpack.i.l.bf16 %v775_v41  ;;  %v787_v49 = vunpack.i.h.bf16 %v785_v45  ;;  %v786_v50 = vunpack.i.l.bf16 %v785_v45 }
  0x8f   : > { %676 = vmatprep.subr.msk.bf16.mxu0 %vm915_vm4, %v674_v42  ;;  %722 = vmatprep.subr.msk.bf16.mxu1 %vm915_vm4, %v674_v42 }
  0x90   : > { %679 = vmatpush1.bf16.msk.msra.mxu0 %vm920_vm5, %v677_v43  ;;  %731 = vmatpush1.bf16.msk.msra.mxu1 %vm920_vm5, %v677_v43  ;;  %v436_v52 = vsel %vm432_vm0, %v776_v48, %v777_v47  ;;  %v435_v53 = vsel %vm432_vm0, %v423_v31, %v776_v48  ;;  %v321_v60 = vsel %vm317_vm6, %v786_v50, %v787_v49 }
  0x91   : > { %v780_v54 = vpop.permute.xlu0 %779  ;;  %v680_v55 = vpack.c.bf16 %v436_v52, %v434_v46  ;;  %v682_v56 = vpack.c.bf16 %v435_v53, %v433_v40  ;;  %v790_v57 = vpop.permute.xlu1 %789 }
  0x92   : > { %v782_v58 = vunpack.i.h.bf16 %v780_v54  ;;  %v781_v59 = vunpack.i.l.bf16 %v780_v54  ;;  %v792_v2 = vunpack.i.h.bf16 %v790_v57  ;;  %v791_v3 = vunpack.i.l.bf16 %v790_v57 }
  0x93   : > { %681 = vmatprep.subr.bf16.mxu0 %v680_v55  ;;  %723 = vmatprep.subr.bf16.mxu1 %v680_v55 }
  0x94   : > { %683 = vmatpush1.bf16.msra.mxu0 %v682_v56  ;;  %732 = vmatpush1.bf16.msra.mxu1 %v682_v56  ;;  %v319_v61 = vsel %vm317_vm6, %v781_v59, %v782_v58  ;;  %v342_v15 = vsel %vm340_vm11, %v791_v3, %v792_v2 }
  0x95   : > { %v308_v63 = vpop.permute.xlu0 %307  ;;  %v684_v0 = vpack.c.bf16 %v321_v60, %v319_v61  ;;  %v331_v1 = vpop.permute.xlu1 %330 }
  0x96   : > { %v318_v4 = vsel %vm317_vm6, %v308_v63, %v781_v59  ;;  %v320_v5 = vsel %vm317_vm6, %v308_v63, %v786_v50  ;;  %v341_v12 = vsel %vm340_vm11, %v331_v1, %v791_v3 }
  0x97   : > { %v687_v9 = vpack.c.bf16 %v320_v5, %v318_v4  ;;  %686 = vmatprep.subr.msk.bf16.mxu0 %vm937_vm9, %v684_v0  ;;  %724 = vmatprep.subr.msk.bf16.mxu1 %vm937_vm9, %v684_v0 }
  0x99   : > { %v795_v10 = vpop.permute.xlu0 %794  ;;  %689 = vmatpush1.bf16.msk.msra.mxu0 %vm943_vm10, %v687_v9  ;;  %733 = vmatpush1.bf16.msk.msra.mxu1 %vm943_vm10, %v687_v9  ;;  %v805_v11 = vpop.permute.xlu1 %804  ;;  %v222_v9 = vld [vmem:[%s1018_s2] sm:$0xff] }
  0x9a   : > { %v797_v13 = vunpack.i.h.bf16 %v795_v10  ;;  %v796_v14 = vunpack.i.l.bf16 %v795_v10  ;;  %v806_v19 = vunpack.i.l.bf16 %v805_v11  ;;  %v807_v26 = vunpack.i.h.bf16 %v805_v11  ;;  %v224_v10 = vld [vmem:[%s1018_s2 + $0x10] sm:$0xff] }
  0x9c   : > { %v343_v16 = vsel %vm340_vm11, %v331_v1, %v796_v14  ;;  %v344_v17 = vsel %vm340_vm11, %v796_v14, %v797_v13  ;;  %v555_v14 = vld [vmem:[%s212_s19 + $0x10] sm:$0xff] }
  0x9d   : > { %v693_v18 = vpack.c.bf16 %v343_v16, %v341_v12  ;;  %v800_v20 = vpop.permute.xlu0 %799  ;;  %v690_v21 = vpack.c.bf16 %v344_v17, %v342_v15  ;;  %v810_v22 = vpop.permute.xlu1 %809 }
  0x9e   : > { %v802_v23 = vunpack.i.h.bf16 %v800_v20  ;;  %v801_v24 = vunpack.i.l.bf16 %v800_v20  ;;  %v812_v30 = vunpack.i.h.bf16 %v810_v22  ;;  %v811_v31 = vunpack.i.l.bf16 %v810_v22  ;;  %v556_v20 = vld [vmem:[%s212_s19 + $0x18] sm:$0xff] }
  0x9f   : > { %692 = vmatprep.subr.msk.bf16.mxu0 %vm915_vm4, %v690_v21  ;;  %725 = vmatprep.subr.msk.bf16.mxu1 %vm915_vm4, %v690_v21 }
  0xa0   : > { %695 = vmatpush1.bf16.msk.msra.mxu0 %vm920_vm5, %v693_v18  ;;  %734 = vmatpush1.bf16.msk.msra.mxu1 %vm920_vm5, %v693_v18  ;;  %v365_v25 = vsel %vm363_vm12, %v801_v24, %v802_v23  ;;  %v367_v29 = vsel %vm363_vm12, %v806_v19, %v802_v23  ;;  %v364_v34 = vsel %vm363_vm12, %v807_v26, %v801_v24  ;;  %v554_v18 = vld [vmem:[%s212_s19 + $0x8] sm:$0xff] }
  0xa1   : > { %v360_v27 = vpop.permute.xlu0 %359  ;;  %697 = vmatprep.subr.bf16.mxu0 %v897_v7  ;;  %726 = vmatprep.subr.bf16.mxu1 %v897_v7  ;;  %v383_v28 = vpop.permute.xlu1 %382  ;;  %v700_v33 = vpack.c.bf16 %v367_v29, %v365_v25  ;;  %v388_v36 = vsel %vm386_vm13, %v811_v31, %v812_v30 }
  0xa2   : > { %v366_v32 = vsel %vm363_vm12, %v360_v27, %v806_v19 }
  0xa3   : > { %v703_v38 = vpack.c.bf16 %v366_v32, %v364_v34 }
  0xa4   : > { %699 = vmatpush1.bf16.msra.mxu0 %v899_v8  ;;  %735 = vmatpush1.bf16.msra.mxu1 %v899_v8 }
  0xa5   : > { %v815_v35 = vpop.permute.xlu0 %814  ;;  %702 = vmatprep.subr.msk.bf16.mxu0 %vm937_vm9, %v700_v33  ;;  %727 = vmatprep.subr.msk.bf16.mxu1 %vm937_vm9, %v700_v33  ;;  %v825_v7 = vpop.permute.xlu1 %824 }
  0xa6   : > { %v817_v39 = vunpack.i.h.bf16 %v815_v35  ;;  %v816_v40 = vunpack.i.l.bf16 %v815_v35  ;;  %v826_v43 = vunpack.i.l.bf16 %v825_v7  ;;  %v827_v48 = vunpack.i.h.bf16 %v825_v7 }
  0xa8   : > { %v387_v41 = vsel %vm386_vm13, %v817_v39, %v811_v31  ;;  %v389_v42 = vsel %vm386_vm13, %v383_v28, %v816_v40  ;;  %v390_v8 = vsel %vm386_vm13, %v816_v40, %v812_v30  ;;  %705 = vmatpush1.bf16.msk.msra.mxu0 %vm943_vm10, %v703_v38  ;;  %736 = vmatpush1.bf16.msk.msra.mxu1 %vm943_vm10, %v703_v38 }
  0xa9   : > { %v706_v45 = vpack.c.bf16 %v390_v8, %v388_v36  ;;  %v709_v46 = vpack.c.bf16 %v389_v42, %v387_v41  ;;  %v820_v47 = vpop.permute.xlu0 %819  ;;  %v830_v51 = vpop.permute.xlu1 %829 }
  0xaa   : > { %v822_v49 = vunpack.i.h.bf16 %v820_v47  ;;  %v821_v50 = vunpack.i.l.bf16 %v820_v47  ;;  %v832_v58 = vunpack.i.h.bf16 %v830_v51  ;;  %v831_v59 = vunpack.i.l.bf16 %v830_v51 }
  0xab   : > { %708 = vmatprep.subr.msk.bf16.mxu0 %vm915_vm4, %v706_v45  ;;  %728 = vmatprep.subr.msk.bf16.mxu1 %vm915_vm4, %v706_v45 }
  0xac   : > { %711 = vmatpush1.bf16.msk.msra.mxu0 %vm920_vm5, %v709_v46  ;;  %737 = vmatpush1.bf16.msk.msra.mxu1 %vm920_vm5, %v709_v46  ;;  %v453_v52 = vsel %vm451_vm14, %v821_v50, %v822_v49  ;;  %v455_v53 = vsel %vm451_vm14, %v826_v43, %v822_v49  ;;  %v452_v56 = vsel %vm451_vm14, %v827_v48, %v821_v50 }
  0xad   : > { %v448_v54 = vpop.permute.xlu0 %447  ;;  %v712_v55 = vpack.c.bf16 %v455_v53, %v453_v52  ;;  %v406_v61 = vpop.permute.xlu1 %405  ;;  %v411_v0 = vsel %vm409_vm15, %v831_v59, %v832_v58 }
  0xae   : > { %v454_v57 = vsel %vm451_vm14, %v448_v54, %v826_v43 }
  0xaf   : > { %v714_v60 = vpack.c.bf16 %v454_v57, %v452_v56  ;;  %713 = vmatprep.subr.bf16.mxu0 %v712_v55  ;;  %729 = vmatprep.subr.bf16.mxu1 %v712_v55 }
  0xb1   : > { %v835_v37 = vpop.permute.xlu0 %834  ;;  %715 = vmatpush1.bf16.msra.mxu0 %v714_v60  ;;  %738 = vmatpush1.bf16.msra.mxu1 %v714_v60 }
  0xb2   : > { %v837_v63 = vunpack.i.h.bf16 %v835_v37  ;;  %v836_v44 = vunpack.i.l.bf16 %v835_v37 }
  0xb4   : > { %v410_v1 = vsel %vm409_vm15, %v837_v63, %v831_v59  ;;  %v412_v2 = vsel %vm409_vm15, %v406_v61, %v836_v44  ;;  %v413_v3 = vsel %vm409_vm15, %v836_v44, %v832_v58 }
  0xb5   : > { %v719_v4 = vpack.c.bf16 %v412_v2, %v410_v1  ;;  %v716_v5 = vpack.c.bf16 %v413_v3, %v411_v0 }
  0xb7   : > { %718 = vmatprep.subr.msk.bf16.mxu0 %vm937_vm9, %v716_v5  ;;  %730 = vmatprep.subr.msk.bf16.mxu1 %vm937_vm9, %v716_v5 }
  0xb8   : > { %721 = vmatpush1.bf16.msk.msra.mxu0 %vm943_vm10, %v719_v4  ;;  %739 = vmatpush1.bf16.msk.msra.mxu1 %vm943_vm10, %v719_v4 }
  0xbb   : > { %541 = vmatmul.mubr.f32.vlgmr.msra.gmra.mrb[0].mxu0 %v222_v9  ;;  %547 = vmatmul.mubr.f32.vlgmr.msra.gmra.mrb[0].mxu1 %v224_v10 }
  0xbe   : > { %v468_v62 = vpop.permute.xlu1 %467 }
  0xc2   : > { %v463_v11 = vpop.permute.xlu0 %462 }
 0x18e   : > { %v542_v12 = vpop.f32.mrb[0].mxu0  ;;  %v548_v13 = vpop.f32.mrb[0].mxu1 }
 0x18f   : > { %v543_v15 = vadd.f32 %v542_v12, %v463_v11  ;;  %v549_v16 = vadd.f32 %v548_v13, %v468_v62  ;;  %v544_v17 = vpop.f32.mrb[1].mxu0  ;;  %v550_v19 = vpop.f32.mrb[1].mxu1 }
 0x190   : > { %v545_v21 = vadd.f32 %v544_v17, %v463_v11  ;;  %v551_v22 = vadd.f32 %v550_v19, %v468_v62 }
 0x191   : > { %v557_v23 = vadd.f32 %v553_v6, %v543_v15  ;;  %v559_v24 = vadd.f32 %v555_v14, %v549_v16 }
 0x192   : > { %v558_v25 = vadd.f32 %v554_v18, %v545_v21  ;;  %v560_v26 = vadd.f32 %v556_v20, %v551_v22 }
 0x193   : > { %561 = vst [vmem:[%s217_s22] sm:$0xff] %v557_v23  ;;  %563 = vst [vmem:[%s217_s22 + $0x10] sm:$0xff] %v559_v24 }
 0x194   : > { %562 = vst [vmem:[%s217_s22 + $0x8] sm:$0xff] %v558_v25  ;;  %564 = vst [vmem:[%s217_s22 + $0x18] sm:$0xff] %v560_v26 }
 0x195 PF: > { %s14_s15 = sadd.s32 1, %s846_s15  }
 0x196   : > { %p11_p4 = scmp.ge.s32.totalorder %s14_s15, 4  }
 0x198   :  { %13 = sbr.rel (!%p11_p4) target bundleno = 1 (0x1), region = 69 }

// kernel: post_processing_forward.8
= control target key start
LH: loop header
LB: loop body
LE: loop exit
PB: predicated region body
PF: predicated region fallthrough
CT: control target
= control target key end

     0   :  { %s1396_s12 = smov 0   ;;  %s1583_s0 = inlined_call_operand.vmem [shape: f32[2,3,256], index: 0, kind: input, shape index: {}]   ;;  %s1584_s1 = inlined_call_operand.vmem [shape: f32[16,27], index: 1, kind: input, shape index: {}]   ;;  %s1585_s2 = inlined_call_operand.vmem [shape: f32[16,1], index: 2, kind: input, shape index: {}]   ;;  %s1586_s3 = inlined_call_operand.vmem [shape: f32[2,16,256], index: 3, kind: output, shape index: {}]  }
   0x1 LB: > { %s1240_s13 = sadd.s32 4294967295, %s1357_s12   ;;  %p1244_p0 = scmp.ge.s32.totalorder %s1357_s12, 1  ;;  %s1357_s12 = sphi %s1396_s12, %s13_s12  }
   0x2   : > { %p137_p1 = scmp.lt.s32.totalorder %s1357_s12, 3 }
   0x4   : > { %p138_p2 = pnand %p1244_p0, %p137_p1 }
   0x5   : > { %v1407_v0 = vld [vmem:[%s1584_s1] sm:$0xff] (!%p138_p2)  ;;  %v1359_v1 = vmov (!%p138_p2), 0.0   ;;  %s1360_s16 = smov (!%p138_p2), 16   ;;  %s1361_s17 = smov (!%p138_p2), 116   ;;  %vm328_vm0 = vcmask (!%p138_p2), 1042432   ;;  %v1438_v4 = vld [vmem:[%s1584_s1 + $0x8] sm:$0xff] (!%p138_p2)  ;;  %v178_v8 = vlaneseq (!%p138_p2) }
   0x6   : > { %141 = sbr.rel (%p138_p2) target bundleno = 425 (0x1a9), region = 32  ;;  %314 = vrot.lane.b32.xlu1 (!%p138_p2), %v1359_v1, %s1360_s16  ;;  %687 = vrot.lane.b32.xlu0 (!%p138_p2), %v1407_v0, %s1361_s17  ;;  %p161_p3 = scmp.lt.s32.totalorder (!%p138_p2), %s1240_s13, 1  ;;  %v1374_v5 = vmov (!%p138_p2), 0   ;;  %v175_v6 = vld [vmem:[%s1585_s2 + $0x8] sm:$0xff] (!%p138_p2)  ;;  %v174_v7 = vld [vmem:[%s1585_s2] sm:$0xff] (!%p138_p2)  ;;  %vm323_vm1 = vcmask (!%p138_p2), 23552  }
   0x7   : > { %763 = vmatprep.mubr.f32.mxu0 (!%p138_p2), %v1359_v1  ;;  %397 = vmatprep.mubr.f32.mxu1 (!%p138_p2), %v1359_v1  ;;  %s1362_s18 = smov (!%p138_p2), 125   ;;  %s1363_s23 = smov (!%p138_p2), 17   ;;  %v179_v9 = vand.u32 (!%p138_p2), 127, %v178_v8  ;;  %vm320_vm2 = vcmask (!%p138_p2), 130048   ;;  %vm224_vm3 = vcmask (!%p138_p2), 138240   ;;  %vm275_vm5 = vcmask (!%p138_p2), 1039360  }
   0x8   : > { %s1364_s24 = smov (!%p138_p2), 127   ;;  %s1365_s27 = smov (!%p138_p2), 15   ;;  %1348 = vset.pattern.permute.xlu0 (!%p138_p2), %v1374_v5  ;;  %1349 = vset.pattern.permute.xlu1 (!%p138_p2), %v1374_v5  ;;  %vm249_vm9 = vcmask (!%p138_p2), 121856   ;;  %vm288_vm10 = vcmask (!%p138_p2), 924672   ;;  %vm262_vm11 = vcmask (!%p138_p2), 7168   ;;  %vm980_vm12 = vcmask (!%p138_p2), 916480  }
   0x9   : > { %s1366_s28 = smov (!%p138_p2), 113   ;;  %s1367_s29 = smov (!%p138_p2), 110   ;;  %v180_v12 = vadd.s32 (!%p138_p2), 128, %v179_v9  ;;  %v185_v19 = vand.u32 (!%p138_p2), 15, %v179_v9  ;;  %vm301_vm13 = vcmask (!%p138_p2), 908288  }
   0xa   : > { %310 = vrot.lane.b32.xlu1 (!%p138_p2), %v1407_v0, %s1362_s18  ;;  %s1368_s30 = smov (!%p138_p2), 122   ;;  %s1369_s4 = smov (!%p138_p2), 1  }
   0xb   : > { %s1370_s5 = smov (!%p138_p2), 112   ;;  %s1371_s6 = smov (!%p138_p2), 107   ;;  %v192_v14 = vand.u32 (!%p138_p2), 15, %v180_v12  ;;  %v1490_v25 = vadd.s32 (!%p138_p2), 1, %v185_v19  ;;  %v1498_v29 = vadd.s32 (!%p138_p2), 4294967295, %v185_v19 }
   0xc   : > { %s1372_s7 = smov (!%p138_p2), 119   ;;  %s1373_s8 = smov (!%p138_p2), 111  }
   0xd   : > { %s1588_s13 = smov (!%p161_p3, %s1240_s13), 1  ;;  %s1375_s9 = smov 104   ;;  %v1482_v17 = vadd.s32 4294967295, %v192_v14  ;;  %v1487_v23 = vadd.s32 1, %v192_v14  ;;  %vm235_vm7 = vcmp.lt.s32.totalorder %v1490_v25, 16  ;;  %vm207_vm8 = vcmp.ge.s32.totalorder %v1498_v29, 0 }
   0xe   : > { %s1287_s19 = sshll.u32 %s1588_s13, 3 }
   0xf   : > { %s165_s22 = scalar_lea.vmem %s1583_s0, %s1287_s19  ;;  %vm208_vm4 = vcmp.ge.s32.totalorder %v1482_v17, 0  ;;  %vm236_vm6 = vcmp.lt.s32.totalorder %v1487_v23, 16 }
  0x10   : > { %v1421_v2 = vld [vmem:[%s165_s22] sm:$0x77] }
  0x11   : > { %316 = vrot.lane.b32.xlu0 %v1421_v2, %s1360_s16  ;;  %v1426_v3 = vcombine.high %v1421_v2, %v1421_v2  ;;  %220 = vrot.lane.b32.xlu1 %v1421_v2, %s1363_s23 }
  0x13   : > { %1265 = vmatprep.subr.msk.mxu0 %vm328_vm0, %v1426_v3 }
  0x14   : > { %1266 = vmatpush1.msk.msra.mxu0 %vm328_vm0, %v1421_v2 }
  0x15   : > { %318 = vrot.lane.b32.xlu0 %v1426_v3, %s1360_s16  ;;  %271 = vrot.lane.b32.xlu1 %v1426_v3, %s1364_s24  ;;  %s1288_s16 = sshll.u32 %s1588_s13, 5 }
  0x16   : > { %s170_s19 = scalar_lea.vmem %s1586_s3, %s1288_s16 }
  0x19   : > { %222 = vrot.lane.b32.xlu0 %v1426_v3, %s1363_s23  ;;  %312 = vrot.lane.b32.xlu1 %v1438_v4, %s1362_s18 }
  0x1d   : > { %273 = vrot.lane.b32.xlu0 %v1359_v1, %s1364_s24  ;;  %269 = vrot.lane.b32.xlu1 %v1421_v2, %s1364_s24 }
  0x21   : > { %218 = vrot.lane.b32.xlu0 %v1359_v1, %s1363_s23  ;;  %245 = vrot.lane.b32.xlu1 %v1421_v2, %s1365_s27 }
  0x25   : > { %780 = vrot.lane.b32.xlu0 %v1407_v0, %s1366_s28  ;;  %284 = vrot.lane.b32.xlu1 %v1426_v3, %s1366_s28 }
  0x29   : > { %247 = vrot.lane.b32.xlu0 %v1426_v3, %s1365_s27  ;;  %782 = vrot.lane.b32.xlu1 %v1438_v4, %s1366_s28 }
  0x2d   : > { %286 = vrot.lane.b32.xlu0 %v1359_v1, %s1366_s28  ;;  %282 = vrot.lane.b32.xlu1 %v1421_v2, %s1366_s28 }
  0x31   : > { %243 = vrot.lane.b32.xlu0 %v1359_v1, %s1365_s27  ;;  %875 = vrot.lane.b32.xlu1 %v1407_v0, %s1367_s29 }
  0x35   : > { %497 = vrot.lane.b32.xlu0 %v1407_v0, %s1368_s30  ;;  %260 = vrot.lane.b32.xlu1 %v1426_v3, %s1369_s4 }
  0x39   : > { %258 = vrot.lane.b32.xlu0 %v1421_v2, %s1369_s4  ;;  %877 = vrot.lane.b32.xlu1 %v1438_v4, %s1367_s29 }
  0x3d   : > { %499 = vrot.lane.b32.xlu0 %v1438_v4, %s1368_s30  ;;  %976 = vrot.lane.b32.xlu1 %v1426_v3, %s1370_s5 }
  0x41   : > { %256 = vrot.lane.b32.xlu0 %v1359_v1, %s1369_s4  ;;  %974 = vrot.lane.b32.xlu1 %v1421_v2, %s1370_s5 }
  0x45   : > { %978 = vrot.lane.b32.xlu0 %v1359_v1, %s1370_s5  ;;  %970 = vrot.lane.b32.xlu1 %v1407_v0, %s1371_s6 }
  0x49   : > { %592 = vrot.lane.b32.xlu0 %v1407_v0, %s1372_s7  ;;  %299 = vrot.lane.b32.xlu1 %v1359_v1, %s1373_s8 }
  0x4d   : > { %297 = vrot.lane.b32.xlu0 %v1426_v3, %s1373_s8  ;;  %972 = vrot.lane.b32.xlu1 %v1438_v4, %s1371_s6 }
  0x51   : > { %594 = vrot.lane.b32.xlu0 %v1438_v4, %s1372_s7  ;;  %1072 = vrot.lane.b32.xlu1 %v1407_v0, %s1375_s9 }
  0x55   : > { %295 = vrot.lane.b32.xlu0 %v1421_v2, %s1373_s8  ;;  %1074 = vrot.lane.b32.xlu1 %v1438_v4, %s1375_s9 }
  0x59   : > { %689 = vrot.lane.b32.xlu0 %v1438_v4, %s1361_s17  ;;  %1174 = vperm.xlu1 %1349, %v175_v6  }
  0x5d   : > { %1169 = vperm.xlu0 %1348, %v174_v7  }
  0x78   : > { %v315_v10 = vpop.permute.xlu1 %314  ;;  %v688_v11 = vpop.permute.xlu0 %687 }
  0x79   : > { %1267 = vmatmul.mubr.msk.f32.vlgmr.msra.gmra.mrb[0].mxu0 %vm323_vm1, %v688_v11 }
  0x7a   : > { %858 = vmatprep.mubr.f32.mxu0 %v1359_v1 }
  0x7c   : > { %v311_v13 = vpop.permute.xlu1 %310 }
  0x83   : > { %v317_v15 = vpop.permute.xlu0 %316  ;;  %v221_v16 = vpop.permute.xlu1 %220 }
  0x84   : > { %v321_v22 = vsel %vm320_vm2, %v315_v10, %v317_v15 }
  0x87   : > { %v319_v18 = vpop.permute.xlu0 %318  ;;  %v272_v21 = vpop.permute.xlu1 %271 }
  0x88   : > { %v322_v20 = vsel %vm320_vm2, %v317_v15, %v319_v18 }
  0x89   : > { %1249 = vmatprep.subr.msk.mxu1 %vm328_vm0, %v322_v20 }
  0x8a   : > { %1250 = vmatpush1.msk.msra.mxu1 %vm328_vm0, %v321_v22 }
  0x8b   : > { %1251 = vmatmul.mubr.msk.f32.vlgmr.msra.gmra.mrb[0].mxu1 %vm323_vm1, %v311_v13  ;;  %v223_v24 = vpop.permute.xlu0 %222  ;;  %v313_v27 = vpop.permute.xlu1 %312 }
  0x8c   : > { %v226_v26 = vsel %vm224_vm3, %v221_v16, %v223_v24  ;;  %403 = vmatprep.mubr.f32.mxu1 %v1359_v1 }
  0x8d   : > { %v230_v28 = vsel %vm208_vm4, %v226_v26, 0.0 }
  0x8e   : > { %1253 = vmatprep.subr.msk.mxu1 %vm328_vm0, %v230_v28 }
  0x8f   : > { %v274_v30 = vpop.permute.xlu0 %273  ;;  %1252 = vmatmul.mubr.msk.f32.gmra.mrb[2].mxu1 %vm323_vm1, %v313_v27  ;;  %v270_v32 = vpop.permute.xlu1 %269 }
  0x90   : > { %v277_v31 = vsel %vm275_vm5, %v272_v21, %v274_v30  ;;  %484 = vmatprep.mubr.f32.mxu1 %v1359_v1  ;;  %v276_v34 = vsel %vm275_vm5, %v270_v32, %v272_v21 }
  0x91   : > { %v281_v33 = vsel %vm236_vm6, %v277_v31, 0.0  ;;  %v280_v35 = vsel %vm235_vm7, %v276_v34, 0.0 }
  0x92   : > { %1269 = vmatprep.subr.msk.mxu0 %vm328_vm0, %v281_v33 }
  0x93   : > { %v219_v36 = vpop.permute.xlu0 %218  ;;  %1270 = vmatpush1.msk.msra.mxu0 %vm328_vm0, %v280_v35  ;;  %v246_v38 = vpop.permute.xlu1 %245 }
  0x94   : > { %v225_v37 = vsel %vm224_vm3, %v219_v36, %v221_v16 }
  0x95   : > { %v229_v39 = vsel %vm207_vm8, %v225_v37, 0.0 }
  0x96   : > { %1254 = vmatpush1.msk.msra.mxu1 %vm328_vm0, %v229_v39 }
  0x97   : > { %v781_v40 = vpop.permute.xlu0 %780  ;;  %1255 = vmatmul.mubr.msk.f32.vlgmr.msra.gmra.mrb[0].mxu1 %vm323_vm1, %v1407_v0  ;;  %v285_v41 = vpop.permute.xlu1 %284 }
  0x98   : > { %1271 = vmatmul.mubr.msk.f32.vlgmr.msra.gmra.mrb[0].mxu0 %vm323_vm1, %v781_v40  ;;  %490 = vmatprep.mubr.f32.mxu1 %v1359_v1 }
  0x99   : > { %864 = vmatprep.mubr.f32.mxu0 %v1359_v1 }
  0x9b   : > { %v248_v42 = vpop.permute.xlu0 %247  ;;  %1256 = vmatmul.mubr.msk.f32.gmra.mrb[2].mxu1 %vm323_vm1, %v1438_v4  ;;  %v783_v44 = vpop.permute.xlu1 %782 }
  0x9c   : > { %v251_v43 = vsel %vm249_vm9, %v246_v38, %v248_v42  ;;  %575 = vmatprep.mubr.f32.mxu1 %v1359_v1  ;;  %1272 = vmatmul.mubr.msk.f32.gmra.mrb[2].mxu0 %vm323_vm1, %v783_v44 }
  0x9d   : > { %v255_v45 = vsel %vm236_vm6, %v251_v43, 0.0  ;;  %953 = vmatprep.mubr.f32.mxu0 %v1359_v1 }
  0x9e   : > { %1257 = vmatprep.subr.msk.mxu1 %vm328_vm0, %v255_v45 }
  0x9f   : > { %v287_v46 = vpop.permute.xlu0 %286  ;;  %v283_v48 = vpop.permute.xlu1 %282 }
  0xa0   : > { %v290_v47 = vsel %vm288_vm10, %v285_v41, %v287_v46  ;;  %v289_v50 = vsel %vm288_vm10, %v283_v48, %v285_v41 }
  0xa1   : > { %v294_v49 = vsel %vm208_vm4, %v290_v47, 0.0  ;;  %v293_v51 = vsel %vm207_vm8, %v289_v50, 0.0 }
  0xa2   : > { %1273 = vmatprep.subr.msk.mxu0 %vm328_vm0, %v294_v49 }
  0xa3   : > { %v244_v52 = vpop.permute.xlu0 %243  ;;  %1274 = vmatpush1.msk.msra.mxu0 %vm328_vm0, %v293_v51  ;;  %v876_v54 = vpop.permute.xlu1 %875 }
  0xa4   : > { %v250_v53 = vsel %vm249_vm9, %v244_v52, %v246_v38  ;;  %1275 = vmatmul.mubr.msk.f32.vlgmr.msra.gmra.mrb[0].mxu0 %vm323_vm1, %v876_v54 }
  0xa5   : > { %v254_v55 = vsel %vm235_vm7, %v250_v53, 0.0  ;;  %959 = vmatprep.mubr.f32.mxu0 %v1359_v1 }
  0xa6   : > { %1258 = vmatpush1.msk.msra.mxu1 %vm328_vm0, %v254_v55 }
  0xa7   : > { %v498_v56 = vpop.permute.xlu0 %497  ;;  %v261_v57 = vpop.permute.xlu1 %260 }
  0xa8   : > { %1259 = vmatmul.mubr.msk.f32.vlgmr.msra.gmra.mrb[0].mxu1 %vm323_vm1, %v498_v56 }
  0xa9   : > { %581 = vmatprep.mubr.f32.mxu1 %v1359_v1 }
  0xab   : > { %v259_v58 = vpop.permute.xlu0 %258  ;;  %v878_v60 = vpop.permute.xlu1 %877 }
  0xac   : > { %v264_v59 = vsel %vm262_vm11, %v259_v58, %v261_v57  ;;  %1276 = vmatmul.mubr.msk.f32.gmra.mrb[2].mxu0 %vm323_vm1, %v878_v60 }
  0xad   : > { %v268_v61 = vsel %vm208_vm4, %v264_v59, 0.0  ;;  %1055 = vmatprep.mubr.f32.mxu0 %v1359_v1 }
  0xae   : > { %1261 = vmatprep.subr.msk.mxu1 %vm328_vm0, %v268_v61 }
  0xaf   : > { %v500_v62 = vpop.permute.xlu0 %499  ;;  %v977_v63 = vpop.permute.xlu1 %976 }
  0xb0   : > { %1260 = vmatmul.mubr.msk.f32.gmra.mrb[2].mxu1 %vm323_vm1, %v500_v62 }
  0xb1   : > { %670 = vmatprep.mubr.f32.mxu1 %v1359_v1 }
  0xb3   : > { %v257_v0 = vpop.permute.xlu0 %256  ;;  %v975_v5 = vpop.permute.xlu1 %974 }
  0xb4   : > { %v263_v4 = vsel %vm262_vm11, %v257_v0, %v259_v58  ;;  %v981_v10 = vsel %vm980_vm12, %v975_v5, %v977_v63 }
  0xb5   : > { %v267_v6 = vsel %vm207_vm8, %v263_v4, 0.0 }
  0xb6   : > { %1262 = vmatpush1.msk.msra.mxu1 %vm328_vm0, %v267_v6 }
  0xb7   : > { %v979_v7 = vpop.permute.xlu0 %978  ;;  %1289 = vmatprep.subr.msk.mxu1 %vm328_vm0, %v1426_v3  ;;  %v971_v9 = vpop.permute.xlu1 %970 }
  0xb8   : > { %v982_v8 = vsel %vm980_vm12, %v977_v63, %v979_v7 }
  0xb9   : > { %1277 = vmatprep.subr.msk.mxu0 %vm328_vm0, %v982_v8 }
  0xba   : > { %1278 = vmatpush1.msk.msra.mxu0 %vm328_vm0, %v981_v10 }
  0xbb   : > { %v593_v11 = vpop.permute.xlu0 %592  ;;  %1279 = vmatmul.mubr.msk.f32.vlgmr.msra.gmra.mrb[0].mxu0 %vm323_vm1, %v971_v9  ;;  %v300_v12 = vpop.permute.xlu1 %299 }
  0xbc   : > { %1263 = vmatmul.mubr.msk.f32.vlgmr.msra.gmra.mrb[0].mxu1 %vm323_vm1, %v593_v11  ;;  %1061 = vmatprep.mubr.f32.mxu0 %v1359_v1 }
  0xbd   : > { %676 = vmatprep.mubr.f32.mxu1 %v1359_v1  ;;  %1290 = vmatpush1.msk.msra.mxu1 %vm328_vm0, %v1421_v2 }
  0xbf   : > { %v298_v3 = vpop.permute.xlu0 %297  ;;  %v973_v14 = vpop.permute.xlu1 %972 }
  0xc0   : > { %v303_v13 = vsel %vm301_vm13, %v298_v3, %v300_v12  ;;  %1280 = vmatmul.mubr.msk.f32.gmra.mrb[2].mxu0 %vm323_vm1, %v973_v14 }
  0xc1   : > { %v307_v15 = vsel %vm236_vm6, %v303_v13, 0.0  ;;  %1150 = vmatprep.mubr.f32.mxu0 %v1359_v1 }
  0xc2   : > { %1281 = vmatprep.subr.msk.mxu0 %vm328_vm0, %v307_v15 }
  0xc3   : > { %v595_v16 = vpop.permute.xlu0 %594  ;;  %v1073_v17 = vpop.permute.xlu1 %1072 }
  0xc4   : > { %1264 = vmatmul.mubr.msk.f32.gmra.mrb[2].mxu1 %vm323_vm1, %v595_v16 }
  0xc5   : > { %769 = vmatprep.mubr.f32.mxu1 %v1359_v1 }
  0xc7   : > { %v296_v2 = vpop.permute.xlu0 %295  ;;  %v1075_v21 = vpop.permute.xlu1 %1074 }
  0xc8   : > { %v302_v18 = vsel %vm301_vm13, %v296_v2, %v298_v3 }
  0xc9   : > { %v306_v19 = vsel %vm235_vm7, %v302_v18, 0.0 }
  0xca   : > { %1282 = vmatpush1.msk.msra.mxu0 %vm328_vm0, %v306_v19 }
  0xcb   : > { %v690_v20 = vpop.permute.xlu0 %689  ;;  %1283 = vmatmul.mubr.msk.f32.vlgmr.msra.gmra.mrb[0].mxu0 %vm323_vm1, %v1073_v17 }
  0xcc   : > { %1268 = vmatmul.mubr.msk.f32.vlgmr.msra.gmra.mrb[2].mxu1 %vm323_vm1, %v690_v20  ;;  %1156 = vmatprep.mubr.f32.mxu0 %v1359_v1 }
  0xcf   : > { %1284 = vmatmul.mubr.msk.f32.gmra.mrb[2].mxu0 %vm323_vm1, %v1075_v21 }
  0xd8   : > { %v1175_v1 = vpop.permute.xlu1 %1174 }
  0xdc   : > { %v1170_v26 = vpop.permute.xlu0 %1169 }
 0x18f   : > { %v672_v22 = vpop.f32.mrb[0].mxu1 }
 0x190   : > { %v674_v23 = vpop.f32.mrb[1].mxu1 }
 0x19e   : > { %v1152_v24 = vpop.f32.mrb[0].mxu0 }
 0x19f   : > { %v1291_v27 = vadd.f32 %v1152_v24, %v672_v22  ;;  %v771_v25 = vpop.f32.mrb[2].mxu1  ;;  %v1154_v28 = vpop.f32.mrb[1].mxu0 }
 0x1a0   : > { %v1292_v29 = vadd.f32 %v1154_v28, %v674_v23  ;;  %v773_v30 = vpop.f32.mrb[3].mxu1 }
 0x1a1   : > { %v1177_v31 = vadd.f32 %v1291_v27, %v1170_v26 }
 0x1a2   : > { %v1178_v32 = vadd.f32 %v1292_v29, %v1170_v26  ;;  %v1158_v33 = vpop.f32.mrb[2].mxu0 }
 0x1a3   : > { %1181 = vst [vmem:[%s170_s19] sm:$0xff] %v1177_v31  ;;  %v1293_v34 = vadd.f32 %v1158_v33, %v771_v25  ;;  %v1160_v35 = vpop.f32.mrb[3].mxu0 }
 0x1a4   : > { %1182 = vst [vmem:[%s170_s19 + $0x8] sm:$0xff] %v1178_v32  ;;  %v1294_v36 = vadd.f32 %v1160_v35, %v773_v30 }
 0x1a5   : > { %v1179_v37 = vadd.f32 %v1293_v34, %v1175_v1 }
 0x1a6   : > { %v1180_v38 = vadd.f32 %v1294_v36, %v1175_v1 }
 0x1a7   : > { %1183 = vst [vmem:[%s170_s19 + $0x10] sm:$0xff] %v1179_v37 }
 0x1a8   : > { %1184 = vst [vmem:[%s170_s19 + $0x18] sm:$0xff] %v1180_v38 }
 0x1a9 PF: > { %s13_s12 = sadd.s32 1, %s1357_s12  }
 0x1aa   : > { %p10_p4 = scmp.ge.s32.totalorder %s13_s12, 4  }
 0x1ac   :  { %12 = sbr.rel (!%p10_p4) target bundleno = 1 (0x1), region = 62 }

// kernel: post_processing_forward.9
= control target key start
LH: loop header
LB: loop body
LE: loop exit
PB: predicated region body
PF: predicated region fallthrough
CT: control target
= control target key end

     0   :  { %s2771_s17 = smov 0   ;;  %s3967_s0 = inlined_call_operand.vmem [shape: f32[2,16,256], index: 0, kind: input, shape index: {}]   ;;  %s3968_s1 = inlined_call_operand.vmem [shape: f32[8,144], index: 1, kind: input, shape index: {}]   ;;  %s3969_s2 = inlined_call_operand.vmem [shape: f32[8,1], index: 2, kind: input, shape index: {}]   ;;  %s3970_s3 = inlined_call_operand.vmem [shape: f32[8,216], index: 3, kind: input, shape index: {}]   ;;  %s3971_s4 = inlined_call_operand.vmem [shape: f32[8,1], index: 4, kind: input, shape index: {}]   ;;  %s3972_s5 = inlined_call_operand.vmem [shape: f32[8,288], index: 5, kind: input, shape index: {}]   ;;  %s3973_s6 = inlined_call_operand.vmem [shape: f32[8,1], index: 6, kind: input, shape index: {}]   ;;  %s3974_s7 = inlined_call_operand.vmem [shape: f32[8,360], index: 7, kind: input, shape index: {}]   ;;  %s3975_s8 = inlined_call_operand.vmem [shape: f32[8,1], index: 8, kind: input, shape index: {}]   ;;  %s3976_s9 = inlined_call_operand.vmem [shape: f32[16,432], index: 9, kind: input, shape index: {}]   ;;  %s3977_s10 = inlined_call_operand.vmem [shape: f32[16,1], index: 10, kind: input, shape index: {}]   ;;  %s3978_s11 = inlined_call_operand.vmem [shape: f32[2,16,256], index: 11, kind: output, shape index: {}]  }
   0x1 LB: > { %s1682_s18 = sadd.s32 4294967295, %s2698_s17   ;;  %p1686_p0 = scmp.ge.s32.totalorder %s2698_s17, 1  ;;  %s2698_s17 = sphi %s2771_s17, %s21_s17  }
   0x2   : > { %p337_p1 = scmp.lt.s32.totalorder %s2698_s17, 3 }
   0x4   : > { %p338_p2 = pnand %p1686_p0, %p337_p1 }
   0x6   : > { %341 = sbr.rel (%p338_p2) target bundleno = 2073 (0x819), region = 64 }
   0xd   : > { %p377_p3 = scmp.lt.s32.totalorder %s1682_s18, 1  ;;  %v3982_v0 = vmov 0.0   ;;  %s2701_s19 = smov 17   ;;  %vm3992_vm0 = vcmask 130048   ;;  %v392_v9 = vld [vmem:[%s3968_s1 + $0x8] sm:$0xff]  ;;  %v2709_v10 = vmov 0   ;;  %v394_v12 = vlaneseq }
   0xe   : > { %438 = vrot.lane.b32.xlu1 %v3982_v0, %s2701_s19  ;;  %s2702_s24 = smov 16   ;;  %s2703_s25 = smov 15   ;;  %1715 = vmatprep.mubr.msk.f32.mxu1 %vm3992_vm0, %v392_v9  ;;  %v393_v11 = vld [vmem:[%s3969_s2] sm:$0xff]  ;;  %vm3981_vm1 = vcmask 138240   ;;  %vm483_vm6 = vcmask 121856   ;;  %vm3993_vm11 = vcmask 7168  }
   0xf   : > { %s4144_s18 = smov (!%p377_p3, %s1682_s18), 1  ;;  %s2704_s26 = smov 1   ;;  %2536 = vset.pattern.permute.xlu0 %v2709_v10  ;;  %2572 = vset.pattern.permute.xlu1 %v2709_v10  ;;  %v395_v13 = vand.u32 127, %v394_v12  ;;  %vm4000_vm12 = vcmask 1039360   ;;  %vm552_vm13 = vcmask 924672   ;;  %vm3980_vm14 = vcmask 916480  }
  0x10   : > { %s1939_s20 = sshll.u32 %s4144_s18, 5  ;;  %s2705_s27 = smov 127   ;;  %vm3979_vm15 = vcmask 908288   ;;  %v1362_v58 = vld [vmem:[%s3976_s9 + $0x30] sm:$0xff] }
  0x11   : > { %s2789_s23 = scalar_lea.vmem %s3967_s0, %s1939_s20  ;;  %s2706_s28 = smov 113   ;;  %v396_v14 = vadd.s32 128, %v395_v13  ;;  %v401_v17 = vand.u32 15, %v395_v13 }
  0x12   : > { %v2792_v1 = vld [vmem:[%s2789_s23] sm:$0xff]  ;;  %v2795_v2 = vld [vmem:[%s2789_s23 + $0x8] sm:$0xff]  ;;  %v2798_v3 = vld [vmem:[%s2789_s23 + $0x10] sm:$0xff]  ;;  %s2707_s29 = smov 112   ;;  %s2708_s30 = smov 111  }
  0x13   : > { %v2456_v4 = vpack.i.bf16 %v2795_v2, %v2792_v1  ;;  %v2803_v5 = vld [vmem:[%s2789_s23 + $0x18] sm:$0xff]  ;;  %v2496_v8 = vpack.i.bf16 %v3982_v0, %v2795_v2  ;;  %v408_v16 = vand.u32 15, %v396_v14  ;;  %v2852_v21 = vadd.s32 4294967295, %v401_v17 }
  0x14   : > { %v2461_v6 = vpack.i.bf16 %v2803_v5, %v2798_v3  ;;  %v2501_v7 = vpack.i.bf16 %v2792_v1, %v2803_v5  ;;  %v2897_v47 = vadd.s32 1, %v401_v17 }
  0x15   : > { %2457 = vrot.lane.b32.xlu0 %v2456_v4, %s2701_s19  ;;  %2467 = vrot.lane.b32.xlu1 %v2456_v4, %s2702_s24  ;;  %v2850_v20 = vadd.s32 4294967295, %v408_v16  ;;  %vm423_vm3 = vcmp.ge.s32.totalorder %v2852_v21, 0  ;;  %v2858_v30 = vadd.s32 1, %v408_v16 }
  0x16   : > { %vm2880_vm5 = vmpackc.low %vm423_vm3, %vm423_vm3  ;;  %4027 = vst [vmem:[#allocation5_spill] sm:$0xff] %v2897_v47  ;;  %vm4018_vm8 = vcmp.lt.s32.totalorder %v2897_v47, 16 }
  0x17   : > { %vm424_vm2 = vcmp.ge.s32.totalorder %v2850_v20, 0  ;;  %4020 = vst [vmem:[#allocation2_spill] sm:$0xff] %v2858_v30  ;;  %vm466_vm7 = vcmp.lt.s32.totalorder %v2858_v30, 16  ;;  %vm2946_vm10 = vmpackc.low %vm4018_vm8, %vm4018_vm8 }
  0x18   : > { %vm2869_vm4 = vmpackc.low %vm424_vm2, %vm424_vm2 }
  0x19   : > { %2462 = vrot.lane.b32.xlu0 %v2461_v6, %s2701_s19  ;;  %588 = vrot.lane.b32.xlu1 %v3982_v0, %s2702_s24  ;;  %vm2929_vm9 = vmpackc.low %vm466_vm7, %vm466_vm7 }
  0x1d   : > { %2472 = vrot.lane.b32.xlu0 %v2461_v6, %s2702_s24  ;;  %2482 = vrot.lane.b32.xlu1 %v2461_v6, %s2703_s25 }
  0x21   : > { %2477 = vrot.lane.b32.xlu0 %v2456_v4, %s2703_s25  ;;  %2487 = vrot.lane.b32.xlu1 %v2456_v4, %s2704_s26 }
  0x25   : > { %473 = vrot.lane.b32.xlu0 %v3982_v0, %s2703_s25  ;;  %496 = vrot.lane.b32.xlu1 %v3982_v0, %s2704_s26 }
  0x29   : > { %2492 = vrot.lane.b32.xlu0 %v2461_v6, %s2704_s26  ;;  %2502 = vrot.lane.b32.xlu1 %v2501_v7, %s2705_s27 }
  0x2d   : > { %2497 = vrot.lane.b32.xlu0 %v2496_v8, %s2705_s27  ;;  %2507 = vrot.lane.b32.xlu1 %v2496_v8, %s2706_s28 }
  0x31   : > { %525 = vrot.lane.b32.xlu0 %v2798_v3, %s2705_s27  ;;  %548 = vrot.lane.b32.xlu1 %v2798_v3, %s2706_s28 }
  0x35   : > { %2512 = vrot.lane.b32.xlu0 %v2501_v7, %s2706_s28  ;;  %2522 = vrot.lane.b32.xlu1 %v2501_v7, %s2707_s29 }
  0x39   : > { %2517 = vrot.lane.b32.xlu0 %v2496_v8, %s2707_s29  ;;  %2527 = vrot.lane.b32.xlu1 %v2496_v8, %s2708_s30 }
  0x3d   : > { %613 = vrot.lane.b32.xlu0 %v2798_v3, %s2707_s29  ;;  %571 = vrot.lane.b32.xlu1 %v2798_v3, %s2708_s30 }
  0x41   : > { %2532 = vrot.lane.b32.xlu0 %v2501_v7, %s2708_s30 }
  0x45   : > { %628 = vperm.xlu0 %2536, %v393_v11  }
  0x80   : > { %v2848_v15 = vpop.permute.xlu1 %438 }
  0x87   : > { %v2458_v18 = vpop.permute.xlu0 %2457  ;;  %v2468_v19 = vpop.permute.xlu1 %2467 }
  0x88   : > { %v2460_v22 = vunpack.i.h.bf16 %v2458_v18  ;;  %v2459_v23 = vunpack.i.l.bf16 %v2458_v18  ;;  %v2470_v24 = vunpack.i.h.bf16 %v2468_v19  ;;  %v2469_v25 = vunpack.i.l.bf16 %v2468_v19 }
  0x8a   : > { %v449_v31 = vsel %vm3981_vm1, %v2848_v15, %v2459_v23  ;;  %v450_v32 = vsel %vm3981_vm1, %v2459_v23, %v2460_v22  ;;  %v2885_v41 = vsel %vm3992_vm0, %v2469_v25, %v2470_v24 }
  0x8b   : > { %v2463_v26 = vpop.permute.xlu0 %2462  ;;  %v2854_v27 = vpop.permute.xlu1 %588  ;;  %4025 = vst [vmem:[#allocation3_spill] sm:$0xff] %v2885_v41 }
  0x8c   : > { %v2465_v28 = vunpack.i.h.bf16 %v2463_v26  ;;  %v2464_v29 = vunpack.i.l.bf16 %v2463_v26  ;;  %v2889_v42 = vsel %vm3992_vm0, %v2854_v27, %v2469_v25  ;;  %v2982_v25 = vpack.c.bf16 %v2803_v5, %v2795_v2 }
  0x8d   : > { %4026 = vst [vmem:[#allocation4_spill] sm:$0xff] %v2889_v42 }
  0x8e   : > { %v451_v33 = vsel %vm3981_vm1, %v2848_v15, %v2464_v29  ;;  %v452_v34 = vsel %vm3981_vm1, %v2464_v29, %v2465_v28 }
  0x8f   : > { %v2873_v36 = vpack.c.bf16 %v452_v34, %v450_v32  ;;  %v2875_v37 = vpack.c.bf16 %v451_v33, %v449_v31  ;;  %v2473_v38 = vpop.permute.xlu0 %2472  ;;  %v2483_v40 = vpop.permute.xlu1 %2482  ;;  %v2998_v31 = vpack.c.bf16 %v2798_v3, %v2792_v1 }
  0x90   : > { %v2475_v43 = vunpack.i.h.bf16 %v2473_v38  ;;  %v2474_v44 = vunpack.i.l.bf16 %v2473_v38  ;;  %v2485_v45 = vunpack.i.h.bf16 %v2483_v40  ;;  %v2484_v46 = vunpack.i.l.bf16 %v2483_v40 }
  0x91   : > { %1943 = vmatprep.subr.msk.bf16.mxu1 %vm2869_vm4, %v2873_v36  ;;  %2063 = vmatprep.subr.msk.bf16.mxu0 %vm2869_vm4, %v2873_v36 }
  0x92   : > { %1946 = vmatpush1.bf16.msk.msra.mxu1 %vm2880_vm5, %v2875_v37  ;;  %2066 = vmatpush1.bf16.msk.msra.mxu0 %vm2880_vm5, %v2875_v37  ;;  %v2906_v48 = vsel %vm3992_vm0, %v2474_v44, %v2475_v43  ;;  %v2910_v49 = vsel %vm3992_vm0, %v2854_v27, %v2474_v44  ;;  %v487_v54 = vsel %vm483_vm6, %v2484_v46, %v2485_v45 }
  0x93   : > { %v2478_v50 = vpop.permute.xlu0 %2477  ;;  %v2914_v51 = vpack.c.bf16 %v2906_v48, %v2885_v41  ;;  %v2918_v52 = vpack.c.bf16 %v2910_v49, %v2889_v42  ;;  %v2488_v53 = vpop.permute.xlu1 %2487 }
  0x94   : > { %v2480_v55 = vunpack.i.h.bf16 %v2478_v50  ;;  %v2479_v56 = vunpack.i.l.bf16 %v2478_v50  ;;  %v2490_v62 = vunpack.i.h.bf16 %v2488_v53  ;;  %v2489_v63 = vunpack.i.l.bf16 %v2488_v53 }
  0x95   : > { %1948 = vmatprep.subr.bf16.mxu1 %v2914_v51 }
  0x96   : > { %v485_v57 = vsel %vm483_vm6, %v2479_v56, %v2480_v55  ;;  %1950 = vmatpush1.bf16.msra.mxu1 %v2918_v52  ;;  %v2959_v11 = vsel %vm3993_vm11, %v2489_v63, %v2490_v62 }
  0x97   : > { %v2933_v59 = vpack.c.bf16 %v487_v54, %v485_v57  ;;  %v2935_v60 = vpop.permute.xlu0 %473  ;;  %v2937_v61 = vpop.permute.xlu1 %496 }
  0x98   : > { %v484_v4 = vsel %vm483_vm6, %v2935_v60, %v2479_v56  ;;  %v486_v6 = vsel %vm483_vm6, %v2935_v60, %v2484_v46  ;;  %v2963_v12 = vsel %vm3993_vm11, %v2937_v61, %v2489_v63 }
  0x99   : > { %1953 = vmatprep.subr.msk.bf16.mxu1 %vm2929_vm9, %v2933_v59  ;;  %v2953_v8 = vpack.c.bf16 %v486_v6, %v484_v4  ;;  %4032 = vst [vmem:[#allocation6_spill] sm:$0xff] %v2963_v12 }
  0x9b   : > { %v2493_v9 = vpop.permute.xlu0 %2492  ;;  %1956 = vmatpush1.bf16.msk.msra.mxu1 %vm2946_vm10, %v2953_v8  ;;  %v2503_v10 = vpop.permute.xlu1 %2502 }
  0x9c   : > { %v2495_v13 = vunpack.i.h.bf16 %v2493_v9  ;;  %v2494_v14 = vunpack.i.l.bf16 %v2493_v9  ;;  %v2504_v18 = vunpack.i.l.bf16 %v2503_v10  ;;  %v2505_v5 = vunpack.i.h.bf16 %v2503_v10 }
  0x9e   : > { %v2967_v16 = vsel %vm3993_vm11, %v2937_v61, %v2494_v14  ;;  %v2970_v17 = vsel %vm3993_vm11, %v2494_v14, %v2495_v13 }
  0x9f   : > { %v2974_v19 = vpack.c.bf16 %v2970_v17, %v2959_v11  ;;  %v2978_v22 = vpack.c.bf16 %v2967_v16, %v2963_v12  ;;  %v2498_v23 = vpop.permute.xlu0 %2497  ;;  %v2508_v24 = vpop.permute.xlu1 %2507 }
  0xa0   : > { %v2984_v26 = vunpack.i.h.bf16 %v2498_v23  ;;  %v2499_v28 = vunpack.i.l.bf16 %v2498_v23  ;;  %v3005_v34 = vunpack.i.h.bf16 %v2508_v24  ;;  %v2509_v38 = vunpack.i.l.bf16 %v2508_v24 }
  0xa1   : > { %1959 = vmatprep.subr.msk.bf16.mxu1 %vm2869_vm4, %v2974_v19 }
  0xa2   : > { %v2991_v29 = vsel %vm4000_vm12, %v2499_v28, %v2984_v26  ;;  %1962 = vmatpush1.bf16.msk.msra.mxu1 %vm2880_vm5, %v2978_v22  ;;  %v3002_v2 = vsel %vm4000_vm12, %v2504_v18, %v2984_v26  ;;  %v3016_v3 = vsel %vm4000_vm12, %v2505_v5, %v2499_v28  ;;  %v554_v45 = vsel %vm552_vm13, %v2509_v38, %v3005_v34 }
  0xa3   : > { %4033 = vst [vmem:[#allocation7_spill] sm:$0xff] %v2991_v29  ;;  %v526_v32 = vpop.permute.xlu0 %525  ;;  %1964 = vmatprep.subr.bf16.mxu1 %v2982_v25  ;;  %v549_v33 = vpop.permute.xlu1 %548  ;;  %v3012_v1 = vpack.c.bf16 %v3002_v2, %v2991_v29  ;;  %4035 = vst [vmem:[#allocation9_spill] sm:$0xff] %v3016_v3 }
  0xa4   : > { %v3008_v40 = vsel %vm4000_vm12, %v526_v32, %v2504_v18 }
  0xa5   : > { %4034 = vst [vmem:[#allocation8_spill] sm:$0xff] %v3012_v1  ;;  %v3025_v46 = vpack.c.bf16 %v3008_v40, %v3016_v3 }
  0xa6   : > { %1966 = vmatpush1.bf16.msra.mxu1 %v2998_v31 }
  0xa7   : > { %v2513_v43 = vpop.permute.xlu0 %2512  ;;  %1969 = vmatprep.subr.msk.bf16.mxu1 %vm2929_vm9, %v3012_v1  ;;  %v2523_v44 = vpop.permute.xlu1 %2522  ;;  %4036 = vst [vmem:[#allocation10_spill] sm:$0xff] %v3025_v46 }
  0xa8   : > { %v2515_v50 = vunpack.i.h.bf16 %v2513_v43  ;;  %v2514_v53 = vunpack.i.l.bf16 %v2513_v43  ;;  %v2524_v57 = vunpack.i.l.bf16 %v2523_v44  ;;  %v2525_v6 = vunpack.i.h.bf16 %v2523_v44 }
  0xaa   : > { %v553_v54 = vsel %vm552_vm13, %v2515_v50, %v2509_v38  ;;  %v555_v55 = vsel %vm552_vm13, %v549_v33, %v2514_v53  ;;  %v556_v56 = vsel %vm552_vm13, %v2514_v53, %v3005_v34  ;;  %1972 = vmatpush1.bf16.msk.msra.mxu1 %vm2946_vm10, %v3025_v46 }
  0xab   : > { %v3034_v62 = vpack.c.bf16 %v556_v56, %v554_v45  ;;  %v3036_v63 = vpack.c.bf16 %v555_v55, %v553_v54  ;;  %v2518_v4 = vpop.permute.xlu0 %2517  ;;  %v2528_v13 = vpop.permute.xlu1 %2527 }
  0xac   : > { %v3038_v9 = vunpack.i.h.bf16 %v2518_v4  ;;  %v2519_v10 = vunpack.i.l.bf16 %v2518_v4  ;;  %v3064_v32 = vunpack.i.h.bf16 %v2528_v13  ;;  %v2529_v33 = vunpack.i.l.bf16 %v2528_v13 }
  0xad   : > { %1975 = vmatprep.subr.msk.bf16.mxu1 %vm2869_vm4, %v3034_v62 }
  0xae   : > { %1978 = vmatpush1.bf16.msk.msra.mxu1 %vm2880_vm5, %v3036_v63  ;;  %v3048_v14 = vsel %vm3980_vm14, %v2519_v10, %v3038_v9  ;;  %v3052_v18 = vsel %vm3980_vm14, %v2524_v57, %v3038_v9  ;;  %v3059_v28 = vsel %vm3980_vm14, %v2525_v6, %v2519_v10  ;;  %v577_v45 = vsel %vm3979_vm15, %v2529_v33, %v3064_v32  ;;  %v391_v6 = vld [vmem:[%s3968_s1] sm:$0xff] }
  0xaf   : > { %4037 = vst [vmem:[#allocation11_spill] sm:$0xff] %v3048_v14  ;;  %v614_v23 = vpop.permute.xlu0 %613  ;;  %v3056_v24 = vpack.c.bf16 %v3052_v18, %v3048_v14  ;;  %4039 = vst [vmem:[#allocation13_spill] sm:$0xff] %v3059_v28  ;;  %v572_v44 = vpop.permute.xlu1 %571 }
  0xb0   : > { %v3062_v5 = vsel %vm3980_vm14, %v614_v23, %v2524_v57 }
  0xb1   : > { %4038 = vst [vmem:[#allocation12_spill] sm:$0xff] %v3056_v24  ;;  %v3068_v38 = vpack.c.bf16 %v3062_v5, %v3059_v28  ;;  %1980 = vmatprep.subr.bf16.mxu1 %v3056_v24 }
  0xb3   : > { %4040 = vst [vmem:[#allocation14_spill] sm:$0xff] %v3068_v38  ;;  %v2533_v43 = vpop.permute.xlu0 %2532  ;;  %1982 = vmatpush1.bf16.msra.mxu1 %v3068_v38 }
  0xb4   : > { %v2535_v50 = vunpack.i.h.bf16 %v2533_v43  ;;  %v2534_v53 = vunpack.i.l.bf16 %v2533_v43 }
  0xb6   : > { %v579_v54 = vsel %vm3979_vm15, %v2534_v53, %v3064_v32  ;;  %v576_v55 = vsel %vm3979_vm15, %v2535_v50, %v2529_v33  ;;  %v578_v56 = vsel %vm3979_vm15, %v572_v44, %v2534_v53 }
  0xb7   : > { %v3078_v57 = vpack.c.bf16 %v579_v54, %v577_v45  ;;  %v3080_v4 = vpack.c.bf16 %v578_v56, %v576_v55  ;;  %v712_v56 = vld [vmem:[%s3970_s3 + $0x8] sm:$0xff] }
  0xb9   : > { %1985 = vmatprep.subr.msk.bf16.mxu1 %vm2929_vm9, %v3078_v57 }
  0xba   : > { %1988 = vmatpush1.bf16.msk.msra.mxu1 %vm2946_vm10, %v3080_v4 }
  0xbb   : > { %1991 = vmatprep.subr.msk.bf16.mxu1 %vm2869_vm4, %v2873_v36 }
  0xbd   : > { %699 = vmatmul.mubr.f32.vlgmr.msra.gmra.mrb[0].mxu1 %v391_v6  ;;  %v713_v6 = vld [vmem:[%s3971_s4] sm:$0xff] }
  0xbe   : > { %1994 = vmatpush1.bf16.msk.msra.mxu1 %vm2880_vm5, %v2875_v37 }
  0xc4   : > { %v629_v10 = vpop.permute.xlu0 %628 }
 0x190   : > { %v700_v13 = vpop.f32.mrb[0].mxu1 }
 0x191   : > { %v701_v23 = vadd.f32 %v700_v13, %v629_v10  ;;  %v702_v33 = vpop.f32.mrb[1].mxu1 }
 0x192   : > { %v703_v43 = vadd.f32 %v702_v33, %v629_v10 }
 0x193   : > { %vm705_vm15 = vcmp.ge.f32.partialorder %v701_v23, 0.0  ;;  %v707_v44 = vmul.f32 0.2, %v701_v23 }
 0x194   : > { %vm706_vm14 = vcmp.ge.f32.partialorder %v703_v43, 0.0  ;;  %v708_v45 = vmul.f32 0.2, %v703_v43 }
 0x195   : > { %v3097_v50 = vsel %vm705_vm15, %v701_v23, %v707_v44  ;;  %vm2710_vm15 = vmmov 1  }
 0x196   : > { %v3099_v53 = vsel %vm706_vm14, %v703_v43, %v708_v45  ;;  %vm797_vm14 = vcmask 719872  }
 0x197   : > { %v2547_v54 = vpack.i.bf16 %v3099_v53, %v3097_v50  ;;  %v2557_v55 = vpack.i.bf16 %v3097_v50, %v3099_v53  ;;  %1752 = vmatprep.mubr.msk.f32.mxu1 %vm797_vm14, %v712_v56  ;;  %vm3132_vm14 = vmpackc.low %vm2710_vm15, %vm424_vm2 }
 0x199   : > { %2548 = vrot.lane.b32.xlu0 %v2547_v54, %s2703_s25  ;;  %2538 = vrot.lane.b32.xlu1 %v2547_v54, %s2701_s19 }
 0x19d   : > { %2558 = vrot.lane.b32.xlu0 %v2557_v55, %s2705_s27  ;;  %2543 = vrot.lane.b32.xlu1 %v2547_v54, %s2702_s24 }
 0x1a1   : > { %2568 = vrot.lane.b32.xlu0 %v2557_v55, %s2707_s29  ;;  %2553 = vrot.lane.b32.xlu1 %v2547_v54, %s2704_s26 }
 0x1a5   : > { %766 = vrot.lane.b32.xlu0 %v3097_v50, %s2708_s30  ;;  %2563 = vrot.lane.b32.xlu1 %v2557_v55, %s2706_s28 }
 0x1a9   : > { %768 = vrot.lane.b32.xlu1 %v3099_v53, %s2708_s30 }
 0x1ad   : > { %794 = vperm.xlu1 %2572, %v713_v6  }
 0x20b   : > { %v2539_v10 = vpop.permute.xlu1 %2538  ;;  %v2549_v45 = vpop.permute.xlu0 %2548 }
 0x20c   : > { %v2541_v13 = vunpack.i.h.bf16 %v2539_v10  ;;  %v2540_v23 = vunpack.i.l.bf16 %v2539_v10  ;;  %v2550_v0 = vunpack.i.l.bf16 %v2549_v45 }
 0x20e   : > { %v3124_v33 = vsel %vm3981_vm1, %v2848_v15, %v2540_v23  ;;  %v3127_v43 = vsel %vm3981_vm1, %v2540_v23, %v2541_v13  ;;  %vm3143_vm1 = vmpackc.low %vm2710_vm15, %vm423_vm3  ;;  %v2551_v23 = vunpack.i.h.bf16 %v2549_v45 }
 0x20f   : > { %v1995_v54 = vpack.c.bf16 %v2885_v41, %v3127_v43  ;;  %v1998_v55 = vpack.c.bf16 %v2889_v42, %v3124_v33  ;;  %v2544_v56 = vpop.permute.xlu1 %2543 }
 0x210   : > { %v2546_v10 = vunpack.i.h.bf16 %v2544_v56  ;;  %v2545_v13 = vunpack.i.l.bf16 %v2544_v56  ;;  %v3168_v45 = vsel %vm483_vm6, %v2550_v0, %v2551_v23  ;;  %v2559_v23 = vpop.permute.xlu0 %2558 }
 0x211   : > { %1997 = vmatprep.subr.msk.bf16.mxu1 %vm3132_vm14, %v1995_v54 }
 0x212   : > { %v3151_v41 = vsel %vm3992_vm0, %v2854_v27, %v2545_v13  ;;  %2000 = vmatpush1.bf16.msk.msra.mxu1 %vm3143_vm1, %v1998_v55  ;;  %v3156_v42 = vsel %vm3992_vm0, %v2545_v13, %v2546_v10  ;;  %vm3178_vm0 = vmpackc.low %vm424_vm2, %vm466_vm7  ;;  %v2011_v55 = vpack.c.bf16 %v2959_v11, %v3168_v45 }
 0x213   : > { %v3160_v38 = vpack.c.bf16 %v3151_v41, %v2910_v49  ;;  %v2554_v56 = vpop.permute.xlu1 %2553  ;;  %v3164_v54 = vpack.c.bf16 %v3156_v42, %v2906_v48  ;;  %v3184_v49 = vsel %vm483_vm6, %v2935_v60, %v2550_v0  ;;  %vm3200_vm2 = vmpackc.low %vm423_vm3, %vm4018_vm8  ;;  %v4047_v0 = vmov 0 }
 0x214   : > { %v2556_v24 = vunpack.i.h.bf16 %v2554_v56  ;;  %v2555_v46 = vunpack.i.l.bf16 %v2554_v56  ;;  %v4048_v0 = vsel %vm3200_vm2, 4294967295, %v4047_v0  ;;  %v2014_v20 = vpack.c.bf16 %v2963_v12, %v3184_v49  ;;  %vm3230_vm3 = vmpackc.low %vm466_vm7, %vm2710_vm15 }
 0x215   : > { %2002 = vmatprep.subr.bf16.mxu1 %v3164_v54  ;;  %4049 = vst [vmem:[#allocation15_spill] sm:$0xff] %v4048_v0  ;;  %v2560_v56 = vunpack.i.l.bf16 %v2559_v23 }
 0x216   : > { %2004 = vmatpush1.bf16.msra.mxu1 %v3160_v38  ;;  %v3189_v10 = vsel %vm3993_vm11, %v2555_v46, %v2556_v24  ;;  %v3208_v24 = vsel %vm3993_vm11, %v2937_v61, %v2555_v46  ;;  %v2561_v46 = vunpack.i.h.bf16 %v2559_v23  ;;  %vm3246_vm11 = vmpackc.low %vm4018_vm8, %vm2710_vm15  ;;  %v2030_v23 = vpack.c.bf16 %v3016_v3, %v3097_v50 }
 0x217   : > { %2007 = vmatprep.subr.msk.bf16.mxu1 %vm2929_vm9, %v2933_v59  ;;  %v3212_v13 = vpack.c.bf16 %v3189_v10, %v2970_v17  ;;  %v3221_v21 = vpack.c.bf16 %v3208_v24, %v2967_v16  ;;  %v4052_v17 = vmov 0  ;;  %v3238_v16 = vsel %vm4000_vm12, %v2560_v56, %v2984_v26 }
 0x218   : > { %v4053_v17 = vsel %vm3230_vm3, 4294967295, %v4052_v17  ;;  %vm4060_vm15 = vcmask 916480  }
 0x219   : > { %4050 = vst [vmem:[#allocation16_spill] sm:$0xff] %v3212_v13  ;;  %4051 = vst [vmem:[#allocation17_spill] sm:$0xff] %v3221_v21 }
 0x21a   : > { %2010 = vmatpush1.bf16.msk.msra.mxu1 %vm2946_vm10, %v2953_v8  ;;  %4054 = vst [vmem:[#allocation18_spill] sm:$0xff] %v4053_v17 }
 0x21b   : > { %2013 = vmatprep.subr.msk.bf16.mxu1 %vm3178_vm0, %v2011_v55  ;;  %v2027_v55 = vpack.c.bf16 %v2991_v29, %v3099_v53  ;;  %v3253_v29 = vsel %vm4000_vm12, %v2561_v46, %v2560_v56  ;;  %vm4061_vm12 = vmmov %vm4060_vm15 }
 0x21c   : > { %v3266_v17 = vpack.c.bf16 %v3253_v29, %v3008_v40 }
 0x21e   : > { %2016 = vmatpush1.bf16.msk.msra.mxu1 %vm3200_vm2, %v2014_v20  ;;  %v2564_v20 = vpop.permute.xlu1 %2563  ;;  %4059 = vst [vmem:[#allocation21_spill] sm:$0xff] %v3266_v17 }
 0x21f   : > { %2019 = vmatprep.subr.msk.bf16.mxu1 %vm2869_vm4, %v3212_v13  ;;  %v3257_v13 = vpack.c.bf16 %v3238_v16, %v3002_v2  ;;  %v2565_v0 = vunpack.i.l.bf16 %v2564_v20  ;;  %v2566_v3 = vunpack.i.h.bf16 %v2564_v20 }
 0x221   : > { %4058 = vst [vmem:[#allocation20_spill] sm:$0xff] %v3257_v13  ;;  %v3270_v46 = vsel %vm552_vm13, %v2565_v0, %v3005_v34 }
 0x222   : > { %2022 = vmatpush1.bf16.msk.msra.mxu1 %vm2880_vm5, %v3221_v21  ;;  %v4055_v21 = vmov 0  ;;  %v2045_v40 = vpack.c.bf16 %v3048_v14, %v3270_v46 }
 0x223   : > { %2024 = vmatprep.subr.bf16.mxu1 %v2982_v25  ;;  %v4056_v21 = vsel %vm3246_vm11, 4294967295, %v4055_v21 }
 0x224   : > { %4057 = vst [vmem:[#allocation19_spill] sm:$0xff] %v4056_v21 }
 0x226   : > { %2026 = vmatpush1.bf16.msra.mxu1 %v2998_v31 }
 0x227   : > { %2029 = vmatprep.subr.msk.bf16.mxu1 %vm3230_vm3, %v2027_v55  ;;  %v2569_v55 = vpop.permute.xlu0 %2568 }
 0x228   : > { %v2570_v56 = vunpack.i.l.bf16 %v2569_v55  ;;  %v2571_v2 = vunpack.i.h.bf16 %v2569_v55 }
 0x22a   : > { %2032 = vmatpush1.bf16.msk.msra.mxu1 %vm3246_vm11, %v2030_v23  ;;  %v3279_v23 = vsel %vm552_vm13, %v2566_v3, %v2565_v0  ;;  %v3288_v20 = vsel %vm4060_vm15, %v2570_v56, %v3038_v9  ;;  %v3295_v3 = vsel %vm4061_vm12, %v2571_v2, %v2570_v56  ;;  %vm4064_vm12 = vcmask 908288   ;;  %v711_v56 = vld [vmem:[%s3970_s3] sm:$0xff] }
 0x22b   : > { %2035 = vmatprep.subr.msk.bf16.mxu1 %vm2929_vm9, %v3257_v13  ;;  %v2048_v55 = vpack.c.bf16 %v3059_v28, %v3279_v23  ;;  %v3299_v0 = vpack.c.bf16 %v3288_v20, %v3052_v18  ;;  %v3306_v14 = vpack.c.bf16 %v3295_v3, %v3062_v5  ;;  %v767_v5 = vpop.permute.xlu0 %766  ;;  %vm4065_vm15 = vmmov %vm4064_vm12 }
 0x22d   : > { %4062 = vst [vmem:[#allocation22_spill] sm:$0xff] %v3299_v0  ;;  %4063 = vst [vmem:[#allocation23_spill] sm:$0xff] %v3306_v14 }
 0x22e   : > { %2038 = vmatpush1.bf16.msk.msra.mxu1 %vm2946_vm10, %v3266_v17 }
 0x22f   : > { %2041 = vmatprep.subr.msk.bf16.mxu1 %vm2869_vm4, %v3034_v62 }
 0x232   : > { %2044 = vmatpush1.bf16.msk.msra.mxu1 %vm2880_vm5, %v3036_v63 }
 0x233   : > { %2047 = vmatprep.subr.msk.bf16.mxu1 %vm3132_vm14, %v2045_v40  ;;  %v769_v40 = vpop.permute.xlu1 %768 }
 0x234   : > { %v3314_v18 = vsel %vm4064_vm12, %v769_v40, %v3064_v32  ;;  %v3326_v2 = vsel %vm4065_vm15, %v767_v5, %v769_v40 }
 0x236   : > { %2050 = vmatpush1.bf16.msk.msra.mxu1 %vm3143_vm1, %v2048_v55 }
 0x237   : > { %2052 = vmatprep.subr.bf16.mxu1 %v3299_v0  ;;  %v795_v55 = vpop.permute.xlu1 %794 }
 0x23a   : > { %2054 = vmatpush1.bf16.msra.mxu1 %v3306_v14 }
 0x23b   : > { %2057 = vmatprep.subr.msk.bf16.mxu1 %vm2929_vm9, %v3078_v57 }
 0x23e   : > { %2060 = vmatpush1.bf16.msk.msra.mxu1 %vm2946_vm10, %v3080_v4 }
 0x23f   : > { %1750 = vmatprep.subr.msk.mxu1 %vm466_vm7, %v3314_v18 }
 0x242   : > { %1751 = vmatpush1.msk.msra.mxu1 %vm4018_vm8, %v3326_v2  ;;  %vm4093_vm8 = vcmask 130048  }
 0x243   : > { %866 = vmatmul.mubr.f32.vlgmr.msra.gmra.mrb[2].mxu1 %v711_v56  ;;  %2159 = vmatprep.subr.msk.bf16.mxu1 %vm2869_vm4, %v2873_v36 }
 0x244   : > { %2162 = vmatpush1.bf16.msk.msra.mxu1 %vm2880_vm5, %v2875_v37 }
 0x316   : > { %v867_v30 = vpop.f32.mrb[2].mxu1 }
 0x317   : > { %v868_v14 = vadd.f32 %v867_v30, %v795_v55  ;;  %v869_v0 = vpop.f32.mrb[3].mxu1  ;;  %v881_v30 = vld [vmem:[%s3973_s6] sm:$0xff] }
 0x318   : > { %v870_v28 = vadd.f32 %v869_v0, %v795_v55 }
 0x319   : > { %vm872_vm12 = vcmp.ge.f32.partialorder %v868_v14, 0.0  ;;  %v874_v40 = vmul.f32 0.2, %v868_v14 }
 0x31a   : > { %vm873_vm15 = vcmp.ge.f32.partialorder %v870_v28, 0.0  ;;  %v875_v5 = vmul.f32 0.2, %v870_v28 }
 0x31b   : > { %v3337_v47 = vsel %vm872_vm12, %v868_v14, %v874_v40  ;;  %v879_v14 = vld [vmem:[%s3972_s5 + $0x8] sm:$0xff]  ;;  %vm4066_vm12 = vcmask 138240  }
 0x31c   : > { %v877_v56 = vsel %vm873_vm15, %v870_v28, %v875_v5  ;;  %1033 = vmatprep.mubr.f32.mxu0 %v879_v14  ;;  %vm4067_vm15 = vmmov %vm4066_vm12 }
 0x31d   : > { %v2578_v17 = vpack.i.bf16 %v877_v56, %v3337_v47  ;;  %v2598_v13 = vpack.i.bf16 %v3337_v47, %v877_v56 }
 0x31f   : > { %2579 = vrot.lane.b32.xlu1 %v2578_v17, %s2702_s24  ;;  %2574 = vrot.lane.b32.xlu0 %v2578_v17, %s2701_s19 }
 0x323   : > { %2589 = vrot.lane.b32.xlu1 %v2578_v17, %s2704_s26  ;;  %2584 = vrot.lane.b32.xlu0 %v2578_v17, %s2703_s25 }
 0x327   : > { %2599 = vrot.lane.b32.xlu1 %v2598_v13, %s2706_s28  ;;  %2594 = vrot.lane.b32.xlu0 %v2598_v13, %s2705_s27 }
 0x32b   : > { %2609 = vrot.lane.b32.xlu1 %v2598_v13, %s2708_s30  ;;  %2604 = vrot.lane.b32.xlu0 %v2598_v13, %s2707_s29 }
 0x32f   : > { %962 = vperm.xlu0 %2536, %v881_v30  }
 0x391   : > { %v2580_v28 = vpop.permute.xlu1 %2579  ;;  %v2575_v17 = vpop.permute.xlu0 %2574 }
 0x392   : > { %v2577_v0 = vunpack.i.h.bf16 %v2575_v17  ;;  %v2576_v55 = vunpack.i.l.bf16 %v2575_v17  ;;  %v2582_v40 = vunpack.i.h.bf16 %v2580_v28  ;;  %v2581_v5 = vunpack.i.l.bf16 %v2580_v28 }
 0x394   : > { %v888_v21 = vsel %vm4066_vm12, %v2848_v15, %v2576_v55  ;;  %v889_v13 = vsel %vm4067_vm15, %v2576_v55, %v2577_v0  ;;  %vm4068_vm12 = vcmask 130048  }
 0x395   : > { %v3359_v12 = vpack.c.bf16 %v889_v13, %v3127_v43  ;;  %v3362_v30 = vpack.c.bf16 %v888_v21, %v3124_v33  ;;  %v3374_v14 = vsel %vm4068_vm12, %v2581_v5, %v2582_v40  ;;  %v2585_v43 = vpop.permute.xlu0 %2584  ;;  %vm4069_vm15 = vmmov %vm4068_vm12  ;;  %vm4070_vm12 = vcmask 7168  }
 0x396   : > { %v3382_v33 = vpack.c.bf16 %v3374_v14, %v3156_v42  ;;  %v3386_v21 = vsel %vm4069_vm15, %v2854_v27, %v2581_v5  ;;  %v2587_v28 = vunpack.i.h.bf16 %v2585_v43  ;;  %v2586_v17 = vunpack.i.l.bf16 %v2585_v43  ;;  %v2590_v42 = vpop.permute.xlu1 %2589  ;;  %vm4071_vm15 = vmmov %vm4070_vm12 }
 0x397   : > { %2069 = vmatprep.subr.msk.bf16.mxu0 %vm2869_vm4, %v3359_v12  ;;  %2165 = vmatprep.subr.msk.bf16.mxu1 %vm2869_vm4, %v3359_v12  ;;  %v3392_v0 = vpack.c.bf16 %v3386_v21, %v3151_v41  ;;  %v2592_v13 = vunpack.i.h.bf16 %v2590_v42  ;;  %v2591_v43 = vunpack.i.l.bf16 %v2590_v42 }
 0x398   : > { %2072 = vmatpush1.bf16.msk.msra.mxu0 %vm2880_vm5, %v3362_v30  ;;  %2168 = vmatpush1.bf16.msk.msra.mxu1 %vm2880_vm5, %v3362_v30  ;;  %v899_v55 = vsel %vm483_vm6, %v2586_v17, %v2587_v28  ;;  %v898_v40 = vsel %vm483_vm6, %v2935_v60, %v2586_v17 }
 0x399   : > { %2074 = vmatprep.subr.bf16.mxu0 %v2914_v51  ;;  %v3402_v5 = vpack.c.bf16 %v899_v55, %v3168_v45  ;;  %v3411_v41 = vpack.c.bf16 %v898_v40, %v3184_v49  ;;  %v3414_v28 = vsel %vm4070_vm12, %v2591_v43, %v2592_v13  ;;  %v3424_v45 = vsel %vm4071_vm15, %v2937_v61, %v2591_v43  ;;  %v2595_v55 = vpop.permute.xlu0 %2594 }
 0x39a   : > { %v3428_v17 = vpack.c.bf16 %v3414_v28, %v3189_v10  ;;  %v3438_v49 = vpack.c.bf16 %v3424_v45, %v3208_v24  ;;  %v3445_v10 = vpack.c.bf16 %v877_v56, %v3099_v53  ;;  %v2596_v42 = vunpack.i.l.bf16 %v2595_v55  ;;  %v2600_v43 = vpop.permute.xlu1 %2599 }
 0x39b   : > { %v3451_v40 = vpack.c.bf16 %v3337_v47, %v3097_v50  ;;  %v2597_v24 = vunpack.i.h.bf16 %v2595_v55  ;;  %vm4074_vm12 = vcmask 1039360   ;;  %v2601_v47 = vunpack.i.l.bf16 %v2600_v43  ;;  %v4077_v50 = vld [vmem:[#allocation10_spill] sm:$0xff] }
 0x39c   : > { %2076 = vmatpush1.bf16.msra.mxu0 %v2918_v52  ;;  %4072 = vst [vmem:[#allocation24_spill] sm:$0xff] %v3428_v17  ;;  %4073 = vst [vmem:[#allocation25_spill] sm:$0xff] %v3438_v49  ;;  %v3455_v13 = vsel %vm4074_vm12, %v2596_v42, %v2984_v26 }
 0x39d   : > { %2078 = vmatprep.subr.bf16.mxu0 %v3382_v33  ;;  %vm4075_vm15 = vmmov %vm4074_vm12  ;;  %v3466_v56 = vpack.c.bf16 %v3455_v13, %v3238_v16  ;;  %v2605_v16 = vpop.permute.xlu0 %2604  ;;  %vm4079_vm12 = vcmask 916480  }
 0x39e   : > { %v3462_v53 = vsel %vm4075_vm15, %v2597_v24, %v2596_v42  ;;  %v929_v42 = vsel %vm552_vm13, %v2601_v47, %v3005_v34  ;;  %vm4082_vm15 = vmmov %vm4079_vm12 }
 0x39f   : > { %4076 = vst [vmem:[#allocation26_spill] sm:$0xff] %v3466_v56  ;;  %v3476_v55 = vpack.c.bf16 %v3462_v53, %v3253_v29  ;;  %v2606_v29 = vunpack.i.l.bf16 %v2605_v16 }
 0x3a0   : > { %2080 = vmatpush1.bf16.msra.mxu0 %v3392_v0 }
 0x3a1   : > { %2083 = vmatprep.subr.msk.bf16.mxu0 %vm2929_vm9, %v2933_v59  ;;  %4078 = vst [vmem:[#allocation27_spill] sm:$0xff] %v3476_v55 }
 0x3a4   : > { %2086 = vmatpush1.bf16.msk.msra.mxu0 %vm2946_vm10, %v2953_v8 }
 0x3a5   : > { %2089 = vmatprep.subr.msk.bf16.mxu0 %vm2929_vm9, %v3402_v5 }
 0x3a8   : > { %2092 = vmatpush1.bf16.msk.msra.mxu0 %vm2946_vm10, %v3411_v41 }
 0x3a9   : > { %2095 = vmatprep.subr.msk.bf16.mxu0 %vm2869_vm4, %v2974_v19 }
 0x3ac   : > { %2098 = vmatpush1.bf16.msk.msra.mxu0 %vm2880_vm5, %v2978_v22 }
 0x3ad   : > { %2101 = vmatprep.subr.msk.bf16.mxu0 %vm2869_vm4, %v3428_v17 }
 0x3b0   : > { %2104 = vmatpush1.bf16.msk.msra.mxu0 %vm2880_vm5, %v3438_v49 }
 0x3b1   : > { %2106 = vmatprep.subr.bf16.mxu0 %v2982_v25 }
 0x3b4   : > { %2108 = vmatpush1.bf16.msra.mxu0 %v2998_v31 }
 0x3b5   : > { %2110 = vmatprep.subr.bf16.mxu0 %v3445_v10 }
 0x3b8   : > { %2112 = vmatpush1.bf16.msra.mxu0 %v3451_v40 }
 0x3b9   : > { %2115 = vmatprep.subr.msk.bf16.mxu0 %vm2929_vm9, %v3012_v1  ;;  %v2602_v1 = vunpack.i.h.bf16 %v2600_v43 }
 0x3bb   : > { %v928_v24 = vsel %vm552_vm13, %v2602_v1, %v2601_v47  ;;  %v3504_v1 = vsel %vm4079_vm12, %v2606_v29, %v3038_v9  ;;  %v4080_v47 = vld [vmem:[#allocation12_spill] sm:$0xff]  ;;  %vm4085_vm12 = vcmask 908288  }
 0x3bc   : > { %2118 = vmatpush1.bf16.msk.msra.mxu0 %vm2946_vm10, %v4077_v50  ;;  %v3497_v43 = vpack.c.bf16 %v928_v24, %v3279_v23 }
 0x3bd   : > { %2121 = vmatprep.subr.msk.bf16.mxu0 %vm2929_vm9, %v3466_v56  ;;  %v3488_v56 = vpack.c.bf16 %v929_v42, %v3270_v46  ;;  %v2610_v46 = vpop.permute.xlu1 %2609  ;;  %v3509_v42 = vpack.c.bf16 %v3504_v1, %v3288_v20  ;;  %v878_v20 = vld [vmem:[%s3972_s5] sm:$0xff] }
 0x3be   : > { %v2611_v23 = vunpack.i.l.bf16 %v2610_v46  ;;  %v2612_v49 = vunpack.i.h.bf16 %v2610_v46 }
 0x3bf   : > { %4081 = vst [vmem:[#allocation28_spill] sm:$0xff] %v3509_v42 }
 0x3c0   : > { %2124 = vmatpush1.bf16.msk.msra.mxu0 %vm2946_vm10, %v3476_v55  ;;  %v2607_v55 = vunpack.i.h.bf16 %v2605_v16  ;;  %v4083_v16 = vld [vmem:[#allocation14_spill] sm:$0xff] }
 0x3c1   : > { %2127 = vmatprep.subr.msk.bf16.mxu0 %vm2869_vm4, %v3034_v62 }
 0x3c2   : > { %v3512_v50 = vsel %vm4082_vm15, %v2607_v55, %v2606_v29  ;;  %vm4086_vm15 = vmmov %vm4085_vm12 }
 0x3c3   : > { %v3518_v24 = vpack.c.bf16 %v3512_v50, %v3295_v3  ;;  %v938_v55 = vsel %vm4086_vm15, %v2612_v49, %v2611_v23  ;;  %v4087_v3 = vmov 0.0  }
 0x3c4   : > { %2130 = vmatpush1.bf16.msk.msra.mxu0 %vm2880_vm5, %v3036_v63  ;;  %v3541_v46 = vpack.c.bf16 %v938_v55, %v3326_v2  ;;  %v963_v2 = vpop.permute.xlu0 %962 }
 0x3c5   : > { %2133 = vmatprep.subr.msk.bf16.mxu0 %vm2869_vm4, %v3488_v56  ;;  %4084 = vst [vmem:[#allocation29_spill] sm:$0xff] %v3518_v24 }
 0x3c6   : > { %4088 = vst [vmem:[#allocation30_spill] sm:$0xff] %v3541_v46 }
 0x3c8   : > { %2136 = vmatpush1.bf16.msk.msra.mxu0 %vm2880_vm5, %v3497_v43 }
 0x3c9   : > { %2138 = vmatprep.subr.bf16.mxu0 %v4080_v47  ;;  %v939_v47 = vsel %vm4085_vm12, %v2611_v23, %v3064_v32  ;;  %vm965_vm12 = vcmask 261120  }
 0x3ca   : > { %v3531_v29 = vpack.c.bf16 %v939_v47, %v3314_v18  ;;  %v880_v18 = vld [vmem:[%s3972_s5 + $0x10] sm:$0xff] }
 0x3cc   : > { %2140 = vmatpush1.bf16.msra.mxu0 %v4083_v16  ;;  %v4092_v16 = vld [vmem:[#allocation4_spill] sm:$0xff] }
 0x3cd   : > { %2142 = vmatprep.subr.bf16.mxu0 %v3509_v42 }
 0x3d0   : > { %2144 = vmatpush1.bf16.msra.mxu0 %v3518_v24  ;;  %v4091_v24 = vld [vmem:[#allocation3_spill] sm:$0xff] }
 0x3d1   : > { %2147 = vmatprep.subr.msk.bf16.mxu0 %vm2929_vm9, %v3078_v57 }
 0x3d3   : > { %1034 = vmatmul.mubr.f32.vlgmr.msra.gmra.mrb[0].mxu0 %v878_v20 }
 0x3d4   : > { %2150 = vmatpush1.bf16.msk.msra.mxu0 %vm2946_vm10, %v3080_v4  ;;  %1104 = vmatprep.mubr.f32.mxu0 %v4087_v3 }
 0x3d5   : > { %2153 = vmatprep.subr.msk.bf16.mxu0 %vm2929_vm9, %v3531_v29 }
 0x3d8   : > { %2156 = vmatpush1.bf16.msk.msra.mxu0 %vm2946_vm10, %v3541_v46 }
 0x3d9   : > { %2279 = vmatprep.subr.msk.bf16.mxu0 %vm2869_vm4, %v2873_v36 }
 0x3db   : > { %1801 = vmatmul.mubr.msk.f32.vlgmr.msra.gmra.mrb[0].mxu0 %vm965_vm12, %v880_v18 }
 0x3dc   : > { %2282 = vmatpush1.bf16.msk.msra.mxu0 %vm2880_vm5, %v2875_v37 }
 0x3dd   : > { %2285 = vmatprep.subr.msk.bf16.mxu0 %vm2869_vm4, %v3359_v12 }
 0x3e0   : > { %2288 = vmatpush1.bf16.msk.msra.mxu0 %vm2880_vm5, %v3362_v30 }
 0x4ae   : > { %v1106_v49 = vpop.f32.mrb[0].mxu0 }
 0x4af   : > { %v2421_v47 = vadd.f32 %v1106_v49, %v963_v2  ;;  %v1108_v23 = vpop.f32.mrb[1].mxu0  ;;  %v1118_v49 = vld [vmem:[%s3974_s7 + $0x8] sm:$0xff] }
 0x4b0   : > { %v2422_v20 = vadd.f32 %v1108_v23, %v963_v2  ;;  %v1120_v2 = vld [vmem:[%s3975_s8] sm:$0xff]  ;;  %1272 = vmatprep.mubr.f32.mxu1 %v1118_v49 }
 0x4b1   : > { %vm1111_vm15 = vcmp.ge.f32.partialorder %v2421_v47, 0.0  ;;  %v1113_v36 = vmul.f32 0.2, %v2421_v47 }
 0x4b2   : > { %vm1112_vm12 = vcmp.ge.f32.partialorder %v2422_v20, 0.0  ;;  %v1114_v55 = vmul.f32 0.2, %v2422_v20 }
 0x4b3   : > { %v3561_v18 = vsel %vm1111_vm15, %v2421_v47, %v1113_v36  ;;  %vm4089_vm15 = vcmask 138240  }
 0x4b4   : > { %v3563_v37 = vsel %vm1112_vm12, %v2422_v20, %v1114_v55  ;;  %vm4090_vm12 = vmmov %vm4089_vm15 }
 0x4b5   : > { %v2618_v12 = vpack.i.bf16 %v3563_v37, %v3561_v18  ;;  %v2638_v30 = vpack.i.bf16 %v3561_v18, %v3563_v37 }
 0x4b7   : > { %2619 = vrot.lane.b32.xlu0 %v2618_v12, %s2702_s24  ;;  %2614 = vrot.lane.b32.xlu1 %v2618_v12, %s2701_s19 }
 0x4bb   : > { %2629 = vrot.lane.b32.xlu0 %v2618_v12, %s2704_s26  ;;  %2624 = vrot.lane.b32.xlu1 %v2618_v12, %s2703_s25 }
 0x4bf   : > { %2639 = vrot.lane.b32.xlu0 %v2638_v30, %s2706_s28  ;;  %2634 = vrot.lane.b32.xlu1 %v2638_v30, %s2705_s27 }
 0x4c3   : > { %1175 = vrot.lane.b32.xlu0 %v3563_v37, %s2708_s30  ;;  %2644 = vrot.lane.b32.xlu1 %v2638_v30, %s2707_s29 }
 0x4c7   : > { %1201 = vperm.xlu0 %2536, %v1120_v2   ;;  %1173 = vrot.lane.b32.xlu1 %v3561_v18, %s2708_s30 }
 0x529   : > { %v2620_v47 = vpop.permute.xlu0 %2619  ;;  %v2615_v23 = vpop.permute.xlu1 %2614 }
 0x52a   : > { %v2617_v20 = vunpack.i.h.bf16 %v2615_v23  ;;  %v2616_v36 = vunpack.i.l.bf16 %v2615_v23  ;;  %v2622_v55 = vunpack.i.h.bf16 %v2620_v47  ;;  %v2621_v12 = vunpack.i.l.bf16 %v2620_v47 }
 0x52c   : > { %v3588_v30 = vsel %vm4089_vm15, %v2848_v15, %v2616_v36  ;;  %v3591_v2 = vsel %vm4090_vm12, %v2616_v36, %v2617_v20  ;;  %v3602_v49 = vsel %vm4093_vm8, %v2621_v12, %v2622_v55  ;;  %vm4094_vm15 = vmmov %vm4093_vm8  ;;  %v4095_v55 = vld [vmem:[#allocation6_spill] sm:$0xff]  ;;  %vm4096_vm8 = vcmask 7168  }
 0x52d   : > { %v2169_v42 = vpack.c.bf16 %v4091_v24, %v3591_v2  ;;  %v2172_v17 = vpack.c.bf16 %v4092_v16, %v3588_v30  ;;  %v3607_v47 = vsel %vm4094_vm15, %v2854_v27, %v2621_v12  ;;  %v2179_v24 = vpack.c.bf16 %v3602_v49, %v3374_v14  ;;  %v2625_v16 = vpop.permute.xlu1 %2624  ;;  %vm4099_vm12 = vmmov %vm4096_vm8 }
 0x52e   : > { %v2626_v23 = vunpack.i.l.bf16 %v2625_v16 }
 0x52f   : > { %2171 = vmatprep.subr.msk.bf16.mxu1 %vm3132_vm14, %v2169_v42  ;;  %v2181_v42 = vpack.c.bf16 %v3607_v47, %v3386_v21 }
 0x530   : > { %2174 = vmatpush1.bf16.msk.msra.mxu1 %vm3143_vm1, %v2172_v17  ;;  %v2627_v17 = vunpack.i.h.bf16 %v2625_v16  ;;  %v3628_v14 = vsel %vm483_vm6, %v2935_v60, %v2626_v23 }
 0x531   : > { %2176 = vmatprep.subr.bf16.mxu1 %v3164_v54  ;;  %v2198_v12 = vpack.c.bf16 %v4095_v55, %v3628_v14 }
 0x532   : > { %v3618_v54 = vsel %vm483_vm6, %v2626_v23, %v2627_v17  ;;  %v4100_v17 = vld [vmem:[#allocation17_spill] sm:$0xff] }
 0x533   : > { %v2195_v21 = vpack.c.bf16 %v2959_v11, %v3618_v54 }
 0x534   : > { %2178 = vmatpush1.bf16.msra.mxu1 %v3160_v38  ;;  %v2630_v38 = vpop.permute.xlu0 %2629 }
 0x535   : > { %2180 = vmatprep.subr.bf16.mxu1 %v2179_v24  ;;  %v2632_v20 = vunpack.i.h.bf16 %v2630_v38  ;;  %v2631_v36 = vunpack.i.l.bf16 %v2630_v38  ;;  %v2635_v38 = vpop.permute.xlu1 %2634 }
 0x537   : > { %v3640_v24 = vsel %vm4096_vm8, %v2631_v36, %v2632_v20  ;;  %v3649_v11 = vsel %vm4099_vm12, %v2937_v61, %v2631_v36  ;;  %v2636_v20 = vunpack.i.l.bf16 %v2635_v38 }
 0x538   : > { %2182 = vmatpush1.bf16.msra.mxu1 %v2181_v42  ;;  %v4098_v42 = vld [vmem:[#allocation16_spill] sm:$0xff]  ;;  %v2207_v48 = vpack.c.bf16 %v3640_v24, %v3414_v28  ;;  %v2210_v23 = vpack.c.bf16 %v3649_v11, %v3424_v45  ;;  %v4101_v28 = vld [vmem:[#allocation7_spill] sm:$0xff]  ;;  %v4103_v45 = vld [vmem:[#allocation9_spill] sm:$0xff] }
 0x539   : > { %2185 = vmatprep.subr.msk.bf16.mxu1 %vm2929_vm9, %v2933_v59  ;;  %v2224_v55 = vpack.c.bf16 %v4103_v45, %v3561_v18  ;;  %v2645_v45 = vpop.permute.xlu1 %2644 }
 0x53c   : > { %2188 = vmatpush1.bf16.msk.msra.mxu1 %vm2946_vm10, %v2953_v8 }
 0x53d   : > { %2191 = vmatprep.subr.msk.bf16.mxu1 %vm2929_vm9, %v3402_v5 }
 0x540   : > { %2194 = vmatpush1.bf16.msk.msra.mxu1 %vm2946_vm10, %v3411_v41 }
 0x541   : > { %2197 = vmatprep.subr.msk.bf16.mxu1 %vm3178_vm0, %v2195_v21  ;;  %v2221_v21 = vpack.c.bf16 %v4101_v28, %v3563_v37  ;;  %vm4104_vm0 = vcmask 1039360   ;;  %v4108_v28 = vld [vmem:[#allocation21_spill] sm:$0xff] }
 0x542   : > { %v3674_v16 = vsel %vm4104_vm0, %v2636_v20, %v2984_v26 }
 0x544   : > { %2200 = vmatpush1.bf16.msk.msra.mxu1 %vm3200_vm2, %v2198_v12  ;;  %v2637_v12 = vunpack.i.h.bf16 %v2635_v38  ;;  %vm4107_vm2 = vmmov %vm4104_vm0  ;;  %v2640_v38 = vpop.permute.xlu0 %2639  ;;  %vm4120_vm0 = vcmask 138240  }
 0x545   : > { %2203 = vmatprep.subr.msk.bf16.mxu1 %vm2869_vm4, %v4098_v42  ;;  %v2641_v36 = vunpack.i.l.bf16 %v2640_v38 }
 0x548   : > { %2206 = vmatpush1.bf16.msk.msra.mxu1 %vm2880_vm5, %v4100_v17  ;;  %v3682_v17 = vsel %vm4107_vm2, %v2637_v12, %v2636_v20  ;;  %v3700_v20 = vsel %vm552_vm13, %v2641_v36, %v3005_v34  ;;  %v4109_v12 = vld [vmem:[#allocation11_spill] sm:$0xff]  ;;  %v1176_v6 = vpop.permute.xlu0 %1175  ;;  %vm4121_vm2 = vmmov %vm4120_vm0 }
 0x549   : > { %2209 = vmatprep.subr.msk.bf16.mxu1 %vm2869_vm4, %v2207_v48  ;;  %v4106_v48 = vld [vmem:[#allocation20_spill] sm:$0xff]  ;;  %v2251_v42 = vpack.c.bf16 %v4109_v12, %v3700_v20 }
 0x54a   : > { %v1119_v12 = vld [vmem:[%s3974_s7 + $0x10] sm:$0xff] }
 0x54c   : > { %2212 = vmatpush1.bf16.msk.msra.mxu1 %vm2880_vm5, %v2210_v23  ;;  %v2233_v23 = vpack.c.bf16 %v3674_v16, %v3455_v13  ;;  %v2642_v13 = vunpack.i.h.bf16 %v2640_v38  ;;  %v2647_v38 = vunpack.i.h.bf16 %v2645_v45 }
 0x54d   : > { %2214 = vmatprep.subr.bf16.mxu1 %v2982_v25 }
 0x550   : > { %2216 = vmatpush1.bf16.msra.mxu1 %v2998_v31 }
 0x551   : > { %2218 = vmatprep.subr.bf16.mxu1 %v3445_v10 }
 0x554   : > { %2220 = vmatpush1.bf16.msra.mxu1 %v3451_v40 }
 0x555   : > { %2223 = vmatprep.subr.msk.bf16.mxu1 %vm3230_vm3, %v2221_v21  ;;  %v2236_v21 = vpack.c.bf16 %v3682_v17, %v3462_v53  ;;  %v1117_v53 = vld [vmem:[%s3974_s7] sm:$0xff] }
 0x558   : > { %2226 = vmatpush1.bf16.msk.msra.mxu1 %vm3246_vm11, %v2224_v55  ;;  %v3712_v55 = vsel %vm552_vm13, %v2642_v13, %v2641_v36  ;;  %vm4111_vm11 = vcmask 916480   ;;  %v4112_v36 = vld [vmem:[#allocation22_spill] sm:$0xff] }
 0x559   : > { %2229 = vmatprep.subr.msk.bf16.mxu1 %vm2929_vm9, %v4106_v48  ;;  %v2646_v48 = vunpack.i.l.bf16 %v2645_v45  ;;  %vm4113_vm3 = vmmov %vm4111_vm11  ;;  %v1174_v45 = vpop.permute.xlu1 %1173 }
 0x55b   : > { %v3732_v13 = vsel %vm4113_vm3, %v2647_v38, %v2646_v48 }
 0x55c   : > { %2232 = vmatpush1.bf16.msk.msra.mxu1 %vm2946_vm10, %v4108_v28 }
 0x55d   : > { %2235 = vmatprep.subr.msk.bf16.mxu1 %vm2929_vm9, %v2233_v23  ;;  %v4110_v23 = vld [vmem:[#allocation13_spill] sm:$0xff] }
 0x55e   : > { %v2254_v28 = vpack.c.bf16 %v4110_v23, %v3712_v55  ;;  %v1202_v23 = vpop.permute.xlu0 %1201 }
 0x560   : > { %2238 = vmatpush1.bf16.msk.msra.mxu1 %vm2946_vm10, %v2236_v21  ;;  %v3728_v21 = vsel %vm4111_vm11, %v2646_v48, %v3038_v9  ;;  %v4118_v48 = vld [vmem:[#allocation5_spill] sm:$0xff]  ;;  %vm4122_vm11 = vcmask 130048  }
 0x561   : > { %2241 = vmatprep.subr.msk.bf16.mxu1 %vm2869_vm4, %v3034_v62  ;;  %v2261_v44 = vpack.c.bf16 %v3728_v21, %v3504_v1  ;;  %vm4119_vm8 = vcmp.lt.s32.totalorder %v4118_v48, 16  ;;  %v1364_v48 = vld [vmem:[%s3977_s10] sm:$0xff]  ;;  %vm4123_vm3 = vmmov %vm4122_vm11 }
 0x564   : > { %2244 = vmatpush1.bf16.msk.msra.mxu1 %vm2880_vm5, %v3036_v63 }
 0x565   : > { %2247 = vmatprep.subr.msk.bf16.mxu1 %vm2869_vm4, %v3488_v56 }
 0x567   : > { %1273 = vmatmul.mubr.f32.vlgmr.msra.gmra.mrb[4].mxu1 %v1117_v53  ;;  %v2263_v53 = vpack.c.bf16 %v3732_v13, %v3512_v50 }
 0x568   : > { %2250 = vmatpush1.bf16.msk.msra.mxu1 %vm2880_vm5, %v3497_v43  ;;  %1343 = vmatprep.mubr.f32.mxu1 %v4087_v3  ;;  %v4114_v3 = vld [vmem:[#allocation23_spill] sm:$0xff] }
 0x569   : > { %2253 = vmatprep.subr.msk.bf16.mxu1 %vm3132_vm14, %v2251_v42  ;;  %vm1204_vm14 = vcmask 850944  }
 0x56c   : > { %2256 = vmatpush1.bf16.msk.msra.mxu1 %vm3143_vm1, %v2254_v28  ;;  %vm4115_vm1 = vcmask 908288  }
 0x56d   : > { %2258 = vmatprep.subr.bf16.mxu1 %v4112_v36  ;;  %v3750_v1 = vsel %vm4115_vm1, %v1176_v6, %v3064_v32  ;;  %vm4117_vm15 = vmmov %vm4115_vm1 }
 0x56e   : > { %v3762_v42 = vsel %vm4117_vm15, %v1174_v45, %v1176_v6 }
 0x570   : > { %2260 = vmatpush1.bf16.msra.mxu1 %v4114_v3 }
 0x571   : > { %2262 = vmatprep.subr.bf16.mxu1 %v2261_v44 }
 0x574   : > { %2264 = vmatpush1.bf16.msra.mxu1 %v2263_v53 }
 0x575   : > { %2267 = vmatprep.subr.msk.bf16.mxu1 %vm2929_vm9, %v3078_v57 }
 0x578   : > { %2270 = vmatpush1.bf16.msk.msra.mxu1 %vm2946_vm10, %v3080_v4 }
 0x579   : > { %2273 = vmatprep.subr.msk.bf16.mxu1 %vm2929_vm9, %v3531_v29 }
 0x57c   : > { %2276 = vmatpush1.bf16.msk.msra.mxu1 %vm2946_vm10, %v3541_v46 }
 0x57d   : > { %1860 = vmatprep.subr.msk.mxu1 %vm466_vm7, %v3750_v1 }
 0x580   : > { %1861 = vmatpush1.msk.msra.mxu1 %vm4119_vm8, %v3762_v42  ;;  %vm1454_vm8 = vcmask 392192  }
 0x581   : > { %1862 = vmatmul.mubr.msk.f32.vlgmr.msra.gmra.mrb[4].mxu1 %vm1204_vm14, %v1119_v12  ;;  %v1365_v12 = vld [vmem:[%s3977_s10 + $0x8] sm:$0xff]  ;;  %vm4129_vm14 = vcmask 1039360  }
 0x582   : > { %vm4132_vm15 = vmmov %vm4129_vm14 }
 0x654   : > { %v1345_v28 = vpop.f32.mrb[4].mxu1 }
 0x655   : > { %v2423_v38 = vadd.f32 %v1345_v28, %v1202_v23  ;;  %v1347_v36 = vpop.f32.mrb[5].mxu1 }
 0x656   : > { %v2424_v44 = vadd.f32 %v1347_v36, %v1202_v23  ;;  %v1357_v23 = vld [vmem:[%s3976_s9 + $0x8] sm:$0xff] }
 0x657   : > { %vm1350_vm12 = vcmp.ge.f32.partialorder %v2423_v38, 0.0  ;;  %v1352_v3 = vmul.f32 0.2, %v2423_v38  ;;  %1525 = vmatprep.mubr.f32.mxu0 %v1357_v23 }
 0x658   : > { %vm1351_vm7 = vcmp.ge.f32.partialorder %v2424_v44, 0.0  ;;  %v1353_v53 = vmul.f32 0.2, %v2424_v44 }
 0x659   : > { %v3767_v50 = vsel %vm1350_vm12, %v2423_v38, %v1352_v3 }
 0x65a   : > { %v3769_v46 = vsel %vm1351_vm7, %v2424_v44, %v1353_v53 }
 0x65b   : > { %v2653_v6 = vpack.i.bf16 %v3769_v46, %v3767_v50  ;;  %v2673_v45 = vpack.i.bf16 %v3767_v50, %v3769_v46 }
 0x65d   : > { %2654 = vrot.lane.b32.xlu0 %v2653_v6, %s2702_s24  ;;  %2649 = vrot.lane.b32.xlu1 %v2653_v6, %s2701_s19 }
 0x661   : > { %2664 = vrot.lane.b32.xlu0 %v2653_v6, %s2704_s26  ;;  %2659 = vrot.lane.b32.xlu1 %v2653_v6, %s2703_s25 }
 0x665   : > { %2674 = vrot.lane.b32.xlu0 %v2673_v45, %s2706_s28  ;;  %2669 = vrot.lane.b32.xlu1 %v2673_v45, %s2705_s27  ;;  %s386_s27 = scalar_lea.vmem %s3978_s11, %s1939_s20 }
 0x669   : > { %2684 = vrot.lane.b32.xlu0 %v2673_v45, %s2708_s30  ;;  %2679 = vrot.lane.b32.xlu1 %v2673_v45, %s2707_s29 }
 0x66d   : > { %1451 = vperm.xlu0 %2536, %v1365_v12   ;;  %1446 = vperm.xlu1 %2572, %v1364_v48  }
 0x6cf   : > { %v2650_v28 = vpop.permute.xlu1 %2649  ;;  %v2655_v53 = vpop.permute.xlu0 %2654 }
 0x6d0   : > { %v2652_v38 = vunpack.i.h.bf16 %v2650_v28  ;;  %v2651_v36 = vunpack.i.l.bf16 %v2650_v28  ;;  %v2657_v12 = vunpack.i.h.bf16 %v2655_v53  ;;  %v2656_v48 = vunpack.i.l.bf16 %v2655_v53 }
 0x6d2   : > { %v1372_v44 = vsel %vm4120_vm0, %v2848_v15, %v2651_v36  ;;  %v1373_v3 = vsel %vm4121_vm2, %v2651_v36, %v2652_v38  ;;  %v1433_v15 = vsel %vm4122_vm11, %v2656_v48, %v2657_v12 }
 0x6d3   : > { %v2289_v6 = vpack.c.bf16 %v1373_v3, %v3591_v2  ;;  %v2292_v45 = vpack.c.bf16 %v1372_v44, %v3588_v30  ;;  %v1432_v2 = vsel %vm4123_vm3, %v2854_v27, %v2656_v48  ;;  %v2303_v30 = vpack.c.bf16 %v1433_v15, %v3602_v49  ;;  %v2660_v23 = vpop.permute.xlu1 %2659  ;;  %v1359_v3 = vld [vmem:[%s3976_s9 + $0x18] sm:$0xff]  ;;  %v4135_v15 = vld [vmem:[#allocation14_spill] sm:$0xff] }
 0x6d4   : > { %v2305_v28 = vpack.c.bf16 %v1432_v2, %v3607_v47  ;;  %v2662_v38 = vunpack.i.h.bf16 %v2660_v23  ;;  %v2661_v36 = vunpack.i.l.bf16 %v2660_v23  ;;  %v4127_v47 = vld [vmem:[#allocation25_spill] sm:$0xff]  ;;  %v4137_v2 = vld [vmem:[#allocation28_spill] sm:$0xff] }
 0x6d5   : > { %2291 = vmatprep.subr.msk.bf16.mxu0 %vm2869_vm4, %v2289_v6 }
 0x6d6   : > { %2294 = vmatpush1.bf16.msk.msra.mxu0 %vm2880_vm5, %v2292_v45  ;;  %v1382_v27 = vsel %vm483_vm6, %v2935_v60, %v2661_v36 }
 0x6d7   : > { %2296 = vmatprep.subr.bf16.mxu0 %v2914_v51  ;;  %v1383_v51 = vsel %vm483_vm6, %v2661_v36, %v2662_v38  ;;  %vm4124_vm6 = vcmask 7168   ;;  %v4142_v38 = vld [vmem:[#allocation30_spill] sm:$0xff] }
 0x6d8   : > { %vm4126_vm1 = vmmov %vm4124_vm6 }
 0x6da   : > { %2298 = vmatpush1.bf16.msra.mxu0 %v2918_v52  ;;  %v2319_v52 = vpack.c.bf16 %v1383_v51, %v3618_v54  ;;  %v2353_v54 = vpack.c.bf16 %v3767_v50, %v3561_v18  ;;  %v1361_v18 = vld [vmem:[%s3976_s9 + $0x28] sm:$0xff]  ;;  %v1360_v50 = vld [vmem:[%s3976_s9 + $0x20] sm:$0xff] }
 0x6db   : > { %2300 = vmatprep.subr.bf16.mxu0 %v3382_v33  ;;  %v2322_v33 = vpack.c.bf16 %v1382_v27, %v3628_v14 }
 0x6de   : > { %2302 = vmatpush1.bf16.msra.mxu0 %v3392_v0 }
 0x6df   : > { %2304 = vmatprep.subr.bf16.mxu0 %v2303_v30  ;;  %v4139_v30 = vld [vmem:[#allocation29_spill] sm:$0xff] }
 0x6e2   : > { %2306 = vmatpush1.bf16.msra.mxu0 %v2305_v28 }
 0x6e3   : > { %2309 = vmatprep.subr.msk.bf16.mxu0 %vm2929_vm9, %v2933_v59  ;;  %v2665_v59 = vpop.permute.xlu0 %2664 }
 0x6e4   : > { %v2666_v0 = vunpack.i.l.bf16 %v2665_v59 }
 0x6e6   : > { %2312 = vmatpush1.bf16.msk.msra.mxu0 %vm2946_vm10, %v2953_v8  ;;  %v2667_v8 = vunpack.i.h.bf16 %v2665_v59 }
 0x6e7   : > { %2315 = vmatprep.subr.msk.bf16.mxu0 %vm2929_vm9, %v3402_v5  ;;  %v4125_v5 = vld [vmem:[#allocation24_spill] sm:$0xff]  ;;  %v2675_v44 = vpop.permute.xlu0 %2674 }
 0x6e8   : > { %v1393_v60 = vsel %vm4124_vm6, %v2666_v0, %v2667_v8  ;;  %v2676_v53 = vunpack.i.l.bf16 %v2675_v44  ;;  %v2677_v6 = vunpack.i.h.bf16 %v2675_v44 }
 0x6e9   : > { %v2337_v49 = vpack.c.bf16 %v1393_v60, %v3640_v24  ;;  %v4128_v24 = vld [vmem:[#allocation8_spill] sm:$0xff] }
 0x6ea   : > { %2318 = vmatpush1.bf16.msk.msra.mxu0 %vm2946_vm10, %v3411_v41  ;;  %v1392_v41 = vsel %vm4126_vm1, %v2937_v61, %v2666_v0  ;;  %v2351_v61 = vpack.c.bf16 %v3769_v46, %v3563_v37  ;;  %v4131_v46 = vld [vmem:[#allocation26_spill] sm:$0xff]  ;;  %v1413_v45 = vsel %vm552_vm13, %v2676_v53, %v3005_v34 }
 0x6eb   : > { %2321 = vmatprep.subr.msk.bf16.mxu0 %vm2929_vm9, %v2319_v52  ;;  %v2385_v12 = vpack.c.bf16 %v1413_v45, %v3700_v20 }
 0x6ee   : > { %2324 = vmatpush1.bf16.msk.msra.mxu0 %vm2946_vm10, %v2322_v33  ;;  %v2688_v33 = vld [vmem:[%s2789_s23] sm:$0xff] }
 0x6ef   : > { %2327 = vmatprep.subr.msk.bf16.mxu0 %vm2869_vm4, %v2974_v19  ;;  %v2340_v19 = vpack.c.bf16 %v1392_v41, %v3649_v11  ;;  %v4133_v11 = vld [vmem:[#allocation27_spill] sm:$0xff] }
 0x6f2   : > { %2330 = vmatpush1.bf16.msk.msra.mxu0 %vm2880_vm5, %v2978_v22  ;;  %v2670_v22 = vpop.permute.xlu1 %2669 }
 0x6f3   : > { %2333 = vmatprep.subr.msk.bf16.mxu0 %vm2869_vm4, %v4125_v5  ;;  %v2671_v14 = vunpack.i.l.bf16 %v2670_v22  ;;  %v2689_v5 = vld [vmem:[%s2789_s23 + $0x8] sm:$0xff] }
 0x6f6   : > { %2336 = vmatpush1.bf16.msk.msra.mxu0 %vm2880_vm5, %v4127_v47 }
 0x6f7   : > { %2339 = vmatprep.subr.msk.bf16.mxu0 %vm2869_vm4, %v2337_v49 }
 0x6fa   : > { %2342 = vmatpush1.bf16.msk.msra.mxu0 %vm2880_vm5, %v2340_v19 }
 0x6fb   : > { %2344 = vmatprep.subr.bf16.mxu0 %v2982_v25  ;;  %v2672_v25 = vunpack.i.h.bf16 %v2670_v22 }
 0x6fd   : > { %v1402_v37 = vsel %vm4132_vm15, %v2672_v25, %v2671_v14 }
 0x6fe   : > { %2346 = vmatpush1.bf16.msra.mxu0 %v2998_v31  ;;  %v1403_v31 = vsel %vm4129_vm14, %v2671_v14, %v2984_v26 }
 0x6ff   : > { %2348 = vmatprep.subr.bf16.mxu0 %v3445_v10  ;;  %v4130_v10 = vld [vmem:[#allocation10_spill] sm:$0xff]  ;;  %v2367_v26 = vpack.c.bf16 %v1403_v31, %v3674_v16  ;;  %v2370_v16 = vpack.c.bf16 %v1402_v37, %v3682_v17  ;;  %v1412_v17 = vsel %vm552_vm13, %v2677_v6, %v2676_v53  ;;  %vm4136_vm13 = vcmask 916480  }
 0x700   : > { %v2388_v34 = vpack.c.bf16 %v1412_v17, %v3712_v55  ;;  %vm4138_vm12 = vmmov %vm4136_vm13  ;;  %v2685_v55 = vpop.permute.xlu0 %2684 }
 0x701   : > { %v2686_v23 = vunpack.i.l.bf16 %v2685_v55  ;;  %v2687_v28 = vunpack.i.h.bf16 %v2685_v55 }
 0x702   : > { %2350 = vmatpush1.bf16.msra.mxu0 %v3451_v40  ;;  %v1356_v40 = vld [vmem:[%s3976_s9] sm:$0xff] }
 0x703   : > { %2352 = vmatprep.subr.bf16.mxu0 %v2351_v61  ;;  %v2690_v61 = vld [vmem:[%s2789_s23 + $0x10] sm:$0xff] }
 0x704   : > { %v1452_v27 = vpop.permute.xlu0 %1451 }
 0x706   : > { %2354 = vmatpush1.bf16.msra.mxu0 %v2353_v54  ;;  %v2691_v54 = vld [vmem:[%s2789_s23 + $0x18] sm:$0xff] }
 0x707   : > { %2357 = vmatprep.subr.msk.bf16.mxu0 %vm2929_vm9, %v4128_v24 }
 0x70a   : > { %2360 = vmatpush1.bf16.msk.msra.mxu0 %vm2946_vm10, %v4130_v10 }
 0x70b   : > { %2363 = vmatprep.subr.msk.bf16.mxu0 %vm2929_vm9, %v4131_v46 }
 0x70d   : > { %1526 = vmatmul.mubr.f32.vlgmr.msra.gmra.mrb[2].mxu0 %v1356_v40 }
 0x70e   : > { %2366 = vmatpush1.bf16.msk.msra.mxu0 %vm2946_vm10, %v4133_v11  ;;  %1531 = vmatprep.mubr.f32.mxu0 %v1361_v18 }
 0x70f   : > { %2369 = vmatprep.subr.msk.bf16.mxu0 %vm2929_vm9, %v2367_v26 }
 0x711   : > { %1532 = vmatmul.mubr.f32.gmra.mrb[4].mxu0 %v1360_v50 }
 0x712   : > { %2372 = vmatpush1.bf16.msk.msra.mxu0 %vm2946_vm10, %v2370_v16  ;;  %1935 = vmatprep.mubr.msk.f32.mxu0 %vm1454_vm8, %v1359_v3 }
 0x713   : > { %2375 = vmatprep.subr.msk.bf16.mxu0 %vm2869_vm4, %v3034_v62  ;;  %v2680_v62 = vpop.permute.xlu1 %2679 }
 0x714   : > { %v2681_v48 = vunpack.i.l.bf16 %v2680_v62 }
 0x716   : > { %2378 = vmatpush1.bf16.msk.msra.mxu0 %vm2880_vm5, %v3036_v63  ;;  %v4134_v63 = vld [vmem:[#allocation12_spill] sm:$0xff]  ;;  %v1441_v20 = vsel %vm4136_vm13, %v2681_v48, %v3038_v9 }
 0x717   : > { %2381 = vmatprep.subr.msk.bf16.mxu0 %vm2869_vm4, %v3488_v56  ;;  %v2682_v56 = vunpack.i.h.bf16 %v2680_v62  ;;  %v2399_v35 = vpack.c.bf16 %v1441_v20, %v3728_v21  ;;  %v1447_v7 = vpop.permute.xlu1 %1446 }
 0x71a   : > { %2384 = vmatpush1.bf16.msk.msra.mxu0 %vm2880_vm5, %v3497_v43  ;;  %v1440_v43 = vsel %vm4138_vm12, %v2682_v56, %v2681_v48 }
 0x71b   : > { %2387 = vmatprep.subr.msk.bf16.mxu0 %vm2869_vm4, %v2385_v12  ;;  %v2401_v39 = vpack.c.bf16 %v1440_v43, %v3732_v13  ;;  %vm4140_vm4 = vcmask 908288  }
 0x71c   : > { %v1423_v9 = vsel %vm4140_vm4, %v2686_v23, %v3064_v32 }
 0x71d   : > { %v2415_v13 = vpack.c.bf16 %v1423_v9, %v3750_v1 }
 0x71e   : > { %2390 = vmatpush1.bf16.msk.msra.mxu0 %vm2880_vm5, %v2388_v34  ;;  %vm4141_vm5 = vmmov %vm4140_vm4 }
 0x71f   : > { %2392 = vmatprep.subr.bf16.mxu0 %v4134_v63  ;;  %v1422_v21 = vsel %vm4141_vm5, %v2687_v28, %v2686_v23 }
 0x720   : > { %v2418_v32 = vpack.c.bf16 %v1422_v21, %v3762_v42 }
 0x722   : > { %2394 = vmatpush1.bf16.msra.mxu0 %v4135_v15 }
 0x723   : > { %2396 = vmatprep.subr.bf16.mxu0 %v4137_v2 }
 0x726   : > { %2398 = vmatpush1.bf16.msra.mxu0 %v4139_v30 }
 0x727   : > { %2400 = vmatprep.subr.bf16.mxu0 %v2399_v35 }
 0x72a   : > { %2402 = vmatpush1.bf16.msra.mxu0 %v2401_v39 }
 0x72b   : > { %2405 = vmatprep.subr.msk.bf16.mxu0 %vm2929_vm9, %v3078_v57  ;;  %v1358_v57 = vld [vmem:[%s3976_s9 + $0x10] sm:$0xff] }
 0x72e   : > { %2408 = vmatpush1.bf16.msk.msra.mxu0 %vm2946_vm10, %v3080_v4  ;;  %v1363_v4 = vld [vmem:[%s3976_s9 + $0x38] sm:$0xff] }
 0x72f   : > { %2411 = vmatprep.subr.msk.bf16.mxu0 %vm2929_vm9, %v3531_v29 }
 0x732   : > { %2414 = vmatpush1.bf16.msk.msra.mxu0 %vm2946_vm10, %v4142_v38 }
 0x733   : > { %2417 = vmatprep.subr.msk.bf16.mxu0 %vm2929_vm9, %v2415_v13 }
 0x736   : > { %2420 = vmatpush1.bf16.msk.msra.mxu0 %vm2946_vm10, %v2418_v32 }
 0x739   : > { %1603 = vmatmul.mubr.f32.vlgmr.msra.gmra.mrb[2].mxu0 %v1358_v57 }
 0x73a   : > { %1936 = vmatprep.mubr.msk.f32.mxu0 %vm1454_vm8, %v1363_v4 }
 0x73d   : > { %1609 = vmatmul.mubr.f32.gmra.mrb[4].mxu0 %v1362_v58 }
 0x80c   : > { %v1604_v29 = vpop.f32.mrb[2].mxu0 }
 0x80d   : > { %v2425_v1 = vadd.f32 %v1604_v29, %v1447_v7  ;;  %v1606_v42 = vpop.f32.mrb[3].mxu0 }
 0x80e   : > { %v2426_v36 = vadd.f32 %v1606_v42, %v1447_v7 }
 0x80f   : > { %v1615_v51 = vmul.f32 0.2, %v2425_v1 }
 0x810   : > { %v1616_v52 = vmul.f32 0.2, %v2426_v36  ;;  %v1610_v59 = vpop.f32.mrb[4].mxu0 }
 0x811   : > { %v1619_v8 = vadd.f32 %v2688_v33, %v1615_v51  ;;  %v2427_v0 = vadd.f32 %v1610_v59, %v1452_v27  ;;  %v1612_v60 = vpop.f32.mrb[5].mxu0 }
 0x812   : > { %v1620_v41 = vadd.f32 %v2689_v5, %v1616_v52  ;;  %v2428_v49 = vadd.f32 %v1612_v60, %v1452_v27 }
 0x813   : > { %1623 = vst [vmem:[%s386_s27] sm:$0xff] %v1619_v8  ;;  %v1617_v47 = vmul.f32 0.2, %v2427_v0 }
 0x814   : > { %1624 = vst [vmem:[%s386_s27 + $0x8] sm:$0xff] %v1620_v41  ;;  %v1618_v19 = vmul.f32 0.2, %v2428_v49 }
 0x815   : > { %v1621_v22 = vadd.f32 %v2690_v61, %v1617_v47 }
 0x816   : > { %v1622_v14 = vadd.f32 %v2691_v54, %v1618_v19 }
 0x817   : > { %1625 = vst [vmem:[%s386_s27 + $0x10] sm:$0xff] %v1621_v22 }
 0x818   : > { %1626 = vst [vmem:[%s386_s27 + $0x18] sm:$0xff] %v1622_v14 }
 0x819 PF: > { %s21_s17 = sadd.s32 1, %s2698_s17  }
 0x81a   : > { %p18_p4 = scmp.ge.s32.totalorder %s21_s17, 4  }
 0x81c   :  { %20 = sbr.rel (!%p18_p4) target bundleno = 1 (0x1), region = 94 }

// kernel: post_processing_forward.10
= control target key start
LH: loop header
LB: loop body
LE: loop exit
PB: predicated region body
PF: predicated region fallthrough
CT: control target
= control target key end

     0   :  { %s2850_s21 = smov 0   ;;  %s4047_s0 = inlined_call_operand.vmem [shape: f32[2,16,256], index: 0, kind: input, shape index: {}]   ;;  %s4048_s1 = inlined_call_operand.vmem [shape: f32[2,16,256], index: 1, kind: input, shape index: {}]   ;;  %s4049_s2 = inlined_call_operand.vmem [shape: f32[8,144], index: 2, kind: input, shape index: {}]   ;;  %s4050_s3 = inlined_call_operand.vmem [shape: f32[8,1], index: 3, kind: input, shape index: {}]   ;;  %s4051_s4 = inlined_call_operand.vmem [shape: f32[8,216], index: 4, kind: input, shape index: {}]   ;;  %s4052_s5 = inlined_call_operand.vmem [shape: f32[8,1], index: 5, kind: input, shape index: {}]   ;;  %s4053_s6 = inlined_call_operand.vmem [shape: f32[8,288], index: 6, kind: input, shape index: {}]   ;;  %s4054_s7 = inlined_call_operand.vmem [shape: f32[8,1], index: 7, kind: input, shape index: {}]   ;;  %s4055_s8 = inlined_call_operand.vmem [shape: f32[8,360], index: 8, kind: input, shape index: {}]   ;;  %s4056_s9 = inlined_call_operand.vmem [shape: f32[8,1], index: 9, kind: input, shape index: {}]   ;;  %s4057_s10 = inlined_call_operand.vmem [shape: f32[16,432], index: 10, kind: input, shape index: {}]   ;;  %s4058_s11 = inlined_call_operand.vmem [shape: f32[16,1], index: 11, kind: input, shape index: {}]   ;;  %s4059_s12 = inlined_call_operand.vmem [shape: f32[2,16,256], index: 12, kind: output, shape index: {}]  }
   0x1 LB: > { %s1753_s22 = sadd.s32 4294967295, %s2772_s21   ;;  %p1757_p0 = scmp.ge.s32.totalorder %s2772_s21, 1  ;;  %s2772_s21 = sphi %s2850_s21, %s22_s21  }
   0x2   : > { %p372_p1 = scmp.lt.s32.totalorder %s2772_s21, 3 }
   0x4   : > { %p373_p2 = pnand %p1757_p0, %p372_p1 }
   0x6   : > { %376 = sbr.rel (%p373_p2) target bundleno = 2077 (0x81d), region = 68 }
   0xd   : > { %p419_p3 = scmp.lt.s32.totalorder %s1753_s22, 1  ;;  %v4063_v0 = vmov 0.0   ;;  %s2775_s23 = smov 17   ;;  %vm4073_vm0 = vcmask 130048   ;;  %v439_v9 = vld [vmem:[%s4049_s2 + $0x8] sm:$0xff]  ;;  %v2783_v10 = vmov 0   ;;  %v441_v12 = vlaneseq }
   0xe   : > { %485 = vrot.lane.b32.xlu1 %v4063_v0, %s2775_s23  ;;  %s2776_s28 = smov 16   ;;  %s2777_s29 = smov 15   ;;  %1788 = vmatprep.mubr.msk.f32.mxu1 %vm4073_vm0, %v439_v9  ;;  %v440_v11 = vld [vmem:[%s4050_s3] sm:$0xff]  ;;  %vm4062_vm1 = vcmask 138240   ;;  %vm530_vm6 = vcmask 121856   ;;  %vm4074_vm11 = vcmask 7168  }
   0xf   : > { %s4225_s22 = smov (!%p419_p3, %s1753_s22), 1  ;;  %s2778_s30 = smov 1   ;;  %2610 = vset.pattern.permute.xlu0 %v2783_v10  ;;  %2646 = vset.pattern.permute.xlu1 %v2783_v10  ;;  %v442_v13 = vand.u32 127, %v441_v12  ;;  %vm4081_vm12 = vcmask 1039360   ;;  %vm599_vm13 = vcmask 924672   ;;  %vm4061_vm14 = vcmask 916480  }
  0x10   : > { %s2860_s24 = sshll.u32 %s4225_s22, 5  ;;  %s2779_s13 = smov 127   ;;  %vm4060_vm15 = vcmask 908288   ;;  %v1409_v58 = vld [vmem:[%s4057_s10 + $0x30] sm:$0xff] }
  0x11   : > { %s2866_s27 = scalar_lea.vmem %s4047_s0, %s2860_s24  ;;  %s2780_s14 = smov 113   ;;  %v443_v14 = vadd.s32 128, %v442_v13  ;;  %v448_v17 = vand.u32 15, %v442_v13 }
  0x12   : > { %v2869_v1 = vld [vmem:[%s2866_s27] sm:$0xff]  ;;  %v2872_v2 = vld [vmem:[%s2866_s27 + $0x8] sm:$0xff]  ;;  %v2875_v3 = vld [vmem:[%s2866_s27 + $0x10] sm:$0xff]  ;;  %s2781_s15 = smov 112   ;;  %s2782_s16 = smov 111  }
  0x13   : > { %v2530_v4 = vpack.i.bf16 %v2872_v2, %v2869_v1  ;;  %v2880_v5 = vld [vmem:[%s2866_s27 + $0x18] sm:$0xff]  ;;  %v2570_v8 = vpack.i.bf16 %v4063_v0, %v2872_v2  ;;  %v455_v16 = vand.u32 15, %v443_v14  ;;  %v2929_v21 = vadd.s32 4294967295, %v448_v17 }
  0x14   : > { %v2535_v6 = vpack.i.bf16 %v2880_v5, %v2875_v3  ;;  %v2575_v7 = vpack.i.bf16 %v2869_v1, %v2880_v5  ;;  %v2974_v47 = vadd.s32 1, %v448_v17 }
  0x15   : > { %2531 = vrot.lane.b32.xlu0 %v2530_v4, %s2775_s23  ;;  %2541 = vrot.lane.b32.xlu1 %v2530_v4, %s2776_s28  ;;  %v2927_v20 = vadd.s32 4294967295, %v455_v16  ;;  %vm470_vm3 = vcmp.ge.s32.totalorder %v2929_v21, 0  ;;  %v2935_v30 = vadd.s32 1, %v455_v16 }
  0x16   : > { %vm2957_vm5 = vmpackc.low %vm470_vm3, %vm470_vm3  ;;  %4108 = vst [vmem:[#allocation5_spill] sm:$0xff] %v2974_v47  ;;  %vm4099_vm8 = vcmp.lt.s32.totalorder %v2974_v47, 16 }
  0x17   : > { %vm471_vm2 = vcmp.ge.s32.totalorder %v2927_v20, 0  ;;  %4101 = vst [vmem:[#allocation2_spill] sm:$0xff] %v2935_v30  ;;  %vm513_vm7 = vcmp.lt.s32.totalorder %v2935_v30, 16  ;;  %vm3023_vm10 = vmpackc.low %vm4099_vm8, %vm4099_vm8 }
  0x18   : > { %vm2946_vm4 = vmpackc.low %vm471_vm2, %vm471_vm2 }
  0x19   : > { %2536 = vrot.lane.b32.xlu0 %v2535_v6, %s2775_s23  ;;  %635 = vrot.lane.b32.xlu1 %v4063_v0, %s2776_s28  ;;  %vm3006_vm9 = vmpackc.low %vm513_vm7, %vm513_vm7 }
  0x1d   : > { %2546 = vrot.lane.b32.xlu0 %v2535_v6, %s2776_s28  ;;  %2556 = vrot.lane.b32.xlu1 %v2535_v6, %s2777_s29 }
  0x21   : > { %2551 = vrot.lane.b32.xlu0 %v2530_v4, %s2777_s29  ;;  %2561 = vrot.lane.b32.xlu1 %v2530_v4, %s2778_s30 }
  0x25   : > { %520 = vrot.lane.b32.xlu0 %v4063_v0, %s2777_s29  ;;  %543 = vrot.lane.b32.xlu1 %v4063_v0, %s2778_s30 }
  0x29   : > { %2566 = vrot.lane.b32.xlu0 %v2535_v6, %s2778_s30  ;;  %2576 = vrot.lane.b32.xlu1 %v2575_v7, %s2779_s13 }
  0x2d   : > { %2571 = vrot.lane.b32.xlu0 %v2570_v8, %s2779_s13  ;;  %2581 = vrot.lane.b32.xlu1 %v2570_v8, %s2780_s14 }
  0x31   : > { %572 = vrot.lane.b32.xlu0 %v2875_v3, %s2779_s13  ;;  %595 = vrot.lane.b32.xlu1 %v2875_v3, %s2780_s14 }
  0x35   : > { %2586 = vrot.lane.b32.xlu0 %v2575_v7, %s2780_s14  ;;  %2596 = vrot.lane.b32.xlu1 %v2575_v7, %s2781_s15 }
  0x39   : > { %2591 = vrot.lane.b32.xlu0 %v2570_v8, %s2781_s15  ;;  %2601 = vrot.lane.b32.xlu1 %v2570_v8, %s2782_s16 }
  0x3d   : > { %660 = vrot.lane.b32.xlu0 %v2875_v3, %s2781_s15  ;;  %618 = vrot.lane.b32.xlu1 %v2875_v3, %s2782_s16 }
  0x41   : > { %2606 = vrot.lane.b32.xlu0 %v2575_v7, %s2782_s16 }
  0x45   : > { %675 = vperm.xlu0 %2610, %v440_v11  }
  0x80   : > { %v2925_v15 = vpop.permute.xlu1 %485 }
  0x87   : > { %v2532_v18 = vpop.permute.xlu0 %2531  ;;  %v2542_v19 = vpop.permute.xlu1 %2541 }
  0x88   : > { %v2534_v22 = vunpack.i.h.bf16 %v2532_v18  ;;  %v2533_v23 = vunpack.i.l.bf16 %v2532_v18  ;;  %v2544_v24 = vunpack.i.h.bf16 %v2542_v19  ;;  %v2543_v25 = vunpack.i.l.bf16 %v2542_v19 }
  0x8a   : > { %v496_v31 = vsel %vm4062_vm1, %v2925_v15, %v2533_v23  ;;  %v497_v32 = vsel %vm4062_vm1, %v2533_v23, %v2534_v22  ;;  %v2962_v41 = vsel %vm4073_vm0, %v2543_v25, %v2544_v24 }
  0x8b   : > { %v2537_v26 = vpop.permute.xlu0 %2536  ;;  %v2931_v27 = vpop.permute.xlu1 %635  ;;  %4106 = vst [vmem:[#allocation3_spill] sm:$0xff] %v2962_v41 }
  0x8c   : > { %v2539_v28 = vunpack.i.h.bf16 %v2537_v26  ;;  %v2538_v29 = vunpack.i.l.bf16 %v2537_v26  ;;  %v2966_v42 = vsel %vm4073_vm0, %v2931_v27, %v2543_v25  ;;  %v3059_v25 = vpack.c.bf16 %v2880_v5, %v2872_v2 }
  0x8d   : > { %4107 = vst [vmem:[#allocation4_spill] sm:$0xff] %v2966_v42 }
  0x8e   : > { %v498_v33 = vsel %vm4062_vm1, %v2925_v15, %v2538_v29  ;;  %v499_v34 = vsel %vm4062_vm1, %v2538_v29, %v2539_v28 }
  0x8f   : > { %v2950_v36 = vpack.c.bf16 %v499_v34, %v497_v32  ;;  %v2952_v37 = vpack.c.bf16 %v498_v33, %v496_v31  ;;  %v2547_v38 = vpop.permute.xlu0 %2546  ;;  %v2557_v40 = vpop.permute.xlu1 %2556  ;;  %v3075_v31 = vpack.c.bf16 %v2875_v3, %v2869_v1 }
  0x90   : > { %v2549_v43 = vunpack.i.h.bf16 %v2547_v38  ;;  %v2548_v44 = vunpack.i.l.bf16 %v2547_v38  ;;  %v2559_v45 = vunpack.i.h.bf16 %v2557_v40  ;;  %v2558_v46 = vunpack.i.l.bf16 %v2557_v40 }
  0x91   : > { %2017 = vmatprep.subr.msk.bf16.mxu1 %vm2946_vm4, %v2950_v36  ;;  %2137 = vmatprep.subr.msk.bf16.mxu0 %vm2946_vm4, %v2950_v36 }
  0x92   : > { %2020 = vmatpush1.bf16.msk.msra.mxu1 %vm2957_vm5, %v2952_v37  ;;  %2140 = vmatpush1.bf16.msk.msra.mxu0 %vm2957_vm5, %v2952_v37  ;;  %v2983_v48 = vsel %vm4073_vm0, %v2548_v44, %v2549_v43  ;;  %v2987_v49 = vsel %vm4073_vm0, %v2931_v27, %v2548_v44  ;;  %v534_v54 = vsel %vm530_vm6, %v2558_v46, %v2559_v45 }
  0x93   : > { %v2552_v50 = vpop.permute.xlu0 %2551  ;;  %v2991_v51 = vpack.c.bf16 %v2983_v48, %v2962_v41  ;;  %v2995_v52 = vpack.c.bf16 %v2987_v49, %v2966_v42  ;;  %v2562_v53 = vpop.permute.xlu1 %2561 }
  0x94   : > { %v2554_v55 = vunpack.i.h.bf16 %v2552_v50  ;;  %v2553_v56 = vunpack.i.l.bf16 %v2552_v50  ;;  %v2564_v62 = vunpack.i.h.bf16 %v2562_v53  ;;  %v2563_v63 = vunpack.i.l.bf16 %v2562_v53 }
  0x95   : > { %2022 = vmatprep.subr.bf16.mxu1 %v2991_v51 }
  0x96   : > { %v532_v57 = vsel %vm530_vm6, %v2553_v56, %v2554_v55  ;;  %2024 = vmatpush1.bf16.msra.mxu1 %v2995_v52  ;;  %v3036_v11 = vsel %vm4074_vm11, %v2563_v63, %v2564_v62 }
  0x97   : > { %v3010_v59 = vpack.c.bf16 %v534_v54, %v532_v57  ;;  %v3012_v60 = vpop.permute.xlu0 %520  ;;  %v3014_v61 = vpop.permute.xlu1 %543 }
  0x98   : > { %v531_v4 = vsel %vm530_vm6, %v3012_v60, %v2553_v56  ;;  %v533_v6 = vsel %vm530_vm6, %v3012_v60, %v2558_v46  ;;  %v3040_v12 = vsel %vm4074_vm11, %v3014_v61, %v2563_v63 }
  0x99   : > { %2027 = vmatprep.subr.msk.bf16.mxu1 %vm3006_vm9, %v3010_v59  ;;  %v3030_v8 = vpack.c.bf16 %v533_v6, %v531_v4  ;;  %4113 = vst [vmem:[#allocation6_spill] sm:$0xff] %v3040_v12 }
  0x9b   : > { %v2567_v9 = vpop.permute.xlu0 %2566  ;;  %2030 = vmatpush1.bf16.msk.msra.mxu1 %vm3023_vm10, %v3030_v8  ;;  %v2577_v10 = vpop.permute.xlu1 %2576 }
  0x9c   : > { %v2569_v13 = vunpack.i.h.bf16 %v2567_v9  ;;  %v2568_v14 = vunpack.i.l.bf16 %v2567_v9  ;;  %v2578_v18 = vunpack.i.l.bf16 %v2577_v10  ;;  %v2579_v5 = vunpack.i.h.bf16 %v2577_v10 }
  0x9e   : > { %v3044_v16 = vsel %vm4074_vm11, %v3014_v61, %v2568_v14  ;;  %v3047_v17 = vsel %vm4074_vm11, %v2568_v14, %v2569_v13 }
  0x9f   : > { %v3051_v19 = vpack.c.bf16 %v3047_v17, %v3036_v11  ;;  %v3055_v22 = vpack.c.bf16 %v3044_v16, %v3040_v12  ;;  %v2572_v23 = vpop.permute.xlu0 %2571  ;;  %v2582_v24 = vpop.permute.xlu1 %2581 }
  0xa0   : > { %v3061_v26 = vunpack.i.h.bf16 %v2572_v23  ;;  %v2573_v28 = vunpack.i.l.bf16 %v2572_v23  ;;  %v3082_v34 = vunpack.i.h.bf16 %v2582_v24  ;;  %v2583_v38 = vunpack.i.l.bf16 %v2582_v24 }
  0xa1   : > { %2033 = vmatprep.subr.msk.bf16.mxu1 %vm2946_vm4, %v3051_v19 }
  0xa2   : > { %v3068_v29 = vsel %vm4081_vm12, %v2573_v28, %v3061_v26  ;;  %2036 = vmatpush1.bf16.msk.msra.mxu1 %vm2957_vm5, %v3055_v22  ;;  %v3079_v2 = vsel %vm4081_vm12, %v2578_v18, %v3061_v26  ;;  %v3093_v3 = vsel %vm4081_vm12, %v2579_v5, %v2573_v28  ;;  %v601_v45 = vsel %vm599_vm13, %v2583_v38, %v3082_v34 }
  0xa3   : > { %4114 = vst [vmem:[#allocation7_spill] sm:$0xff] %v3068_v29  ;;  %v573_v32 = vpop.permute.xlu0 %572  ;;  %2038 = vmatprep.subr.bf16.mxu1 %v3059_v25  ;;  %v596_v33 = vpop.permute.xlu1 %595  ;;  %v3089_v1 = vpack.c.bf16 %v3079_v2, %v3068_v29  ;;  %4116 = vst [vmem:[#allocation9_spill] sm:$0xff] %v3093_v3 }
  0xa4   : > { %v3085_v40 = vsel %vm4081_vm12, %v573_v32, %v2578_v18 }
  0xa5   : > { %4115 = vst [vmem:[#allocation8_spill] sm:$0xff] %v3089_v1  ;;  %v3102_v46 = vpack.c.bf16 %v3085_v40, %v3093_v3 }
  0xa6   : > { %2040 = vmatpush1.bf16.msra.mxu1 %v3075_v31 }
  0xa7   : > { %v2587_v43 = vpop.permute.xlu0 %2586  ;;  %2043 = vmatprep.subr.msk.bf16.mxu1 %vm3006_vm9, %v3089_v1  ;;  %v2597_v44 = vpop.permute.xlu1 %2596  ;;  %4117 = vst [vmem:[#allocation10_spill] sm:$0xff] %v3102_v46 }
  0xa8   : > { %v2589_v50 = vunpack.i.h.bf16 %v2587_v43  ;;  %v2588_v53 = vunpack.i.l.bf16 %v2587_v43  ;;  %v2598_v57 = vunpack.i.l.bf16 %v2597_v44  ;;  %v2599_v6 = vunpack.i.h.bf16 %v2597_v44 }
  0xaa   : > { %v600_v54 = vsel %vm599_vm13, %v2589_v50, %v2583_v38  ;;  %v602_v55 = vsel %vm599_vm13, %v596_v33, %v2588_v53  ;;  %v603_v56 = vsel %vm599_vm13, %v2588_v53, %v3082_v34  ;;  %2046 = vmatpush1.bf16.msk.msra.mxu1 %vm3023_vm10, %v3102_v46 }
  0xab   : > { %v3111_v62 = vpack.c.bf16 %v603_v56, %v601_v45  ;;  %v3113_v63 = vpack.c.bf16 %v602_v55, %v600_v54  ;;  %v2592_v4 = vpop.permute.xlu0 %2591  ;;  %v2602_v13 = vpop.permute.xlu1 %2601 }
  0xac   : > { %v3115_v9 = vunpack.i.h.bf16 %v2592_v4  ;;  %v2593_v10 = vunpack.i.l.bf16 %v2592_v4  ;;  %v3141_v32 = vunpack.i.h.bf16 %v2602_v13  ;;  %v2603_v33 = vunpack.i.l.bf16 %v2602_v13 }
  0xad   : > { %2049 = vmatprep.subr.msk.bf16.mxu1 %vm2946_vm4, %v3111_v62 }
  0xae   : > { %2052 = vmatpush1.bf16.msk.msra.mxu1 %vm2957_vm5, %v3113_v63  ;;  %v3125_v14 = vsel %vm4061_vm14, %v2593_v10, %v3115_v9  ;;  %v3129_v18 = vsel %vm4061_vm14, %v2598_v57, %v3115_v9  ;;  %v3136_v28 = vsel %vm4061_vm14, %v2599_v6, %v2593_v10  ;;  %v624_v45 = vsel %vm4060_vm15, %v2603_v33, %v3141_v32  ;;  %v438_v6 = vld [vmem:[%s4049_s2] sm:$0xff] }
  0xaf   : > { %4118 = vst [vmem:[#allocation11_spill] sm:$0xff] %v3125_v14  ;;  %v661_v23 = vpop.permute.xlu0 %660  ;;  %v3133_v24 = vpack.c.bf16 %v3129_v18, %v3125_v14  ;;  %4120 = vst [vmem:[#allocation13_spill] sm:$0xff] %v3136_v28  ;;  %v619_v44 = vpop.permute.xlu1 %618 }
  0xb0   : > { %v3139_v5 = vsel %vm4061_vm14, %v661_v23, %v2598_v57 }
  0xb1   : > { %4119 = vst [vmem:[#allocation12_spill] sm:$0xff] %v3133_v24  ;;  %v3145_v38 = vpack.c.bf16 %v3139_v5, %v3136_v28  ;;  %2054 = vmatprep.subr.bf16.mxu1 %v3133_v24 }
  0xb3   : > { %4121 = vst [vmem:[#allocation14_spill] sm:$0xff] %v3145_v38  ;;  %v2607_v43 = vpop.permute.xlu0 %2606  ;;  %2056 = vmatpush1.bf16.msra.mxu1 %v3145_v38 }
  0xb4   : > { %v2609_v50 = vunpack.i.h.bf16 %v2607_v43  ;;  %v2608_v53 = vunpack.i.l.bf16 %v2607_v43 }
  0xb6   : > { %v626_v54 = vsel %vm4060_vm15, %v2608_v53, %v3141_v32  ;;  %v623_v55 = vsel %vm4060_vm15, %v2609_v50, %v2603_v33  ;;  %v625_v56 = vsel %vm4060_vm15, %v619_v44, %v2608_v53 }
  0xb7   : > { %v3155_v57 = vpack.c.bf16 %v626_v54, %v624_v45  ;;  %v3157_v4 = vpack.c.bf16 %v625_v56, %v623_v55  ;;  %v759_v56 = vld [vmem:[%s4051_s4 + $0x8] sm:$0xff] }
  0xb9   : > { %2059 = vmatprep.subr.msk.bf16.mxu1 %vm3006_vm9, %v3155_v57 }
  0xba   : > { %2062 = vmatpush1.bf16.msk.msra.mxu1 %vm3023_vm10, %v3157_v4 }
  0xbb   : > { %2065 = vmatprep.subr.msk.bf16.mxu1 %vm2946_vm4, %v2950_v36 }
  0xbd   : > { %746 = vmatmul.mubr.f32.vlgmr.msra.gmra.mrb[0].mxu1 %v438_v6  ;;  %v760_v6 = vld [vmem:[%s4052_s5] sm:$0xff] }
  0xbe   : > { %2068 = vmatpush1.bf16.msk.msra.mxu1 %vm2957_vm5, %v2952_v37 }
  0xc4   : > { %v676_v10 = vpop.permute.xlu0 %675 }
 0x190   : > { %v747_v13 = vpop.f32.mrb[0].mxu1 }
 0x191   : > { %v748_v23 = vadd.f32 %v747_v13, %v676_v10  ;;  %v749_v33 = vpop.f32.mrb[1].mxu1 }
 0x192   : > { %v750_v43 = vadd.f32 %v749_v33, %v676_v10 }
 0x193   : > { %vm752_vm15 = vcmp.ge.f32.partialorder %v748_v23, 0.0  ;;  %v754_v44 = vmul.f32 0.2, %v748_v23 }
 0x194   : > { %vm753_vm14 = vcmp.ge.f32.partialorder %v750_v43, 0.0  ;;  %v755_v45 = vmul.f32 0.2, %v750_v43 }
 0x195   : > { %v3174_v50 = vsel %vm752_vm15, %v748_v23, %v754_v44  ;;  %vm2784_vm15 = vmmov 1  }
 0x196   : > { %v3176_v53 = vsel %vm753_vm14, %v750_v43, %v755_v45  ;;  %vm844_vm14 = vcmask 719872  }
 0x197   : > { %v2621_v54 = vpack.i.bf16 %v3176_v53, %v3174_v50  ;;  %v2631_v55 = vpack.i.bf16 %v3174_v50, %v3176_v53  ;;  %1825 = vmatprep.mubr.msk.f32.mxu1 %vm844_vm14, %v759_v56  ;;  %vm3209_vm14 = vmpackc.low %vm2784_vm15, %vm471_vm2 }
 0x199   : > { %2622 = vrot.lane.b32.xlu0 %v2621_v54, %s2777_s29  ;;  %2612 = vrot.lane.b32.xlu1 %v2621_v54, %s2775_s23 }
 0x19d   : > { %2632 = vrot.lane.b32.xlu0 %v2631_v55, %s2779_s13  ;;  %2617 = vrot.lane.b32.xlu1 %v2621_v54, %s2776_s28 }
 0x1a1   : > { %2642 = vrot.lane.b32.xlu0 %v2631_v55, %s2781_s15  ;;  %2627 = vrot.lane.b32.xlu1 %v2621_v54, %s2778_s30 }
 0x1a5   : > { %813 = vrot.lane.b32.xlu0 %v3174_v50, %s2782_s16  ;;  %2637 = vrot.lane.b32.xlu1 %v2631_v55, %s2780_s14 }
 0x1a9   : > { %815 = vrot.lane.b32.xlu1 %v3176_v53, %s2782_s16 }
 0x1ad   : > { %841 = vperm.xlu1 %2646, %v760_v6  }
 0x20b   : > { %v2613_v10 = vpop.permute.xlu1 %2612  ;;  %v2623_v45 = vpop.permute.xlu0 %2622 }
 0x20c   : > { %v2615_v13 = vunpack.i.h.bf16 %v2613_v10  ;;  %v2614_v23 = vunpack.i.l.bf16 %v2613_v10  ;;  %v2624_v0 = vunpack.i.l.bf16 %v2623_v45 }
 0x20e   : > { %v3201_v33 = vsel %vm4062_vm1, %v2925_v15, %v2614_v23  ;;  %v3204_v43 = vsel %vm4062_vm1, %v2614_v23, %v2615_v13  ;;  %vm3220_vm1 = vmpackc.low %vm2784_vm15, %vm470_vm3  ;;  %v2625_v23 = vunpack.i.h.bf16 %v2623_v45 }
 0x20f   : > { %v2069_v54 = vpack.c.bf16 %v2962_v41, %v3204_v43  ;;  %v2072_v55 = vpack.c.bf16 %v2966_v42, %v3201_v33  ;;  %v2618_v56 = vpop.permute.xlu1 %2617 }
 0x210   : > { %v2620_v10 = vunpack.i.h.bf16 %v2618_v56  ;;  %v2619_v13 = vunpack.i.l.bf16 %v2618_v56  ;;  %v3245_v45 = vsel %vm530_vm6, %v2624_v0, %v2625_v23  ;;  %v2633_v23 = vpop.permute.xlu0 %2632 }
 0x211   : > { %2071 = vmatprep.subr.msk.bf16.mxu1 %vm3209_vm14, %v2069_v54 }
 0x212   : > { %v3228_v41 = vsel %vm4073_vm0, %v2931_v27, %v2619_v13  ;;  %2074 = vmatpush1.bf16.msk.msra.mxu1 %vm3220_vm1, %v2072_v55  ;;  %v3233_v42 = vsel %vm4073_vm0, %v2619_v13, %v2620_v10  ;;  %vm3255_vm0 = vmpackc.low %vm471_vm2, %vm513_vm7  ;;  %v2085_v55 = vpack.c.bf16 %v3036_v11, %v3245_v45 }
 0x213   : > { %v3237_v38 = vpack.c.bf16 %v3228_v41, %v2987_v49  ;;  %v2628_v56 = vpop.permute.xlu1 %2627  ;;  %v3241_v54 = vpack.c.bf16 %v3233_v42, %v2983_v48  ;;  %v3261_v49 = vsel %vm530_vm6, %v3012_v60, %v2624_v0  ;;  %vm3277_vm2 = vmpackc.low %vm470_vm3, %vm4099_vm8  ;;  %v4128_v0 = vmov 0 }
 0x214   : > { %v2630_v24 = vunpack.i.h.bf16 %v2628_v56  ;;  %v2629_v46 = vunpack.i.l.bf16 %v2628_v56  ;;  %v4129_v0 = vsel %vm3277_vm2, 4294967295, %v4128_v0  ;;  %v2088_v20 = vpack.c.bf16 %v3040_v12, %v3261_v49  ;;  %vm3307_vm3 = vmpackc.low %vm513_vm7, %vm2784_vm15 }
 0x215   : > { %2076 = vmatprep.subr.bf16.mxu1 %v3241_v54  ;;  %4130 = vst [vmem:[#allocation15_spill] sm:$0xff] %v4129_v0  ;;  %v2634_v56 = vunpack.i.l.bf16 %v2633_v23 }
 0x216   : > { %2078 = vmatpush1.bf16.msra.mxu1 %v3237_v38  ;;  %v3266_v10 = vsel %vm4074_vm11, %v2629_v46, %v2630_v24  ;;  %v3285_v24 = vsel %vm4074_vm11, %v3014_v61, %v2629_v46  ;;  %v2635_v46 = vunpack.i.h.bf16 %v2633_v23  ;;  %vm3323_vm11 = vmpackc.low %vm4099_vm8, %vm2784_vm15  ;;  %v2104_v23 = vpack.c.bf16 %v3093_v3, %v3174_v50 }
 0x217   : > { %2081 = vmatprep.subr.msk.bf16.mxu1 %vm3006_vm9, %v3010_v59  ;;  %v3289_v13 = vpack.c.bf16 %v3266_v10, %v3047_v17  ;;  %v3298_v21 = vpack.c.bf16 %v3285_v24, %v3044_v16  ;;  %v4133_v17 = vmov 0  ;;  %v3315_v16 = vsel %vm4081_vm12, %v2634_v56, %v3061_v26 }
 0x218   : > { %v4134_v17 = vsel %vm3307_vm3, 4294967295, %v4133_v17  ;;  %vm4141_vm15 = vcmask 916480  }
 0x219   : > { %4131 = vst [vmem:[#allocation16_spill] sm:$0xff] %v3289_v13  ;;  %4132 = vst [vmem:[#allocation17_spill] sm:$0xff] %v3298_v21 }
 0x21a   : > { %2084 = vmatpush1.bf16.msk.msra.mxu1 %vm3023_vm10, %v3030_v8  ;;  %4135 = vst [vmem:[#allocation18_spill] sm:$0xff] %v4134_v17 }
 0x21b   : > { %2087 = vmatprep.subr.msk.bf16.mxu1 %vm3255_vm0, %v2085_v55  ;;  %v2101_v55 = vpack.c.bf16 %v3068_v29, %v3176_v53  ;;  %v3330_v29 = vsel %vm4081_vm12, %v2635_v46, %v2634_v56  ;;  %vm4142_vm12 = vmmov %vm4141_vm15 }
 0x21c   : > { %v3343_v17 = vpack.c.bf16 %v3330_v29, %v3085_v40 }
 0x21e   : > { %2090 = vmatpush1.bf16.msk.msra.mxu1 %vm3277_vm2, %v2088_v20  ;;  %v2638_v20 = vpop.permute.xlu1 %2637  ;;  %4140 = vst [vmem:[#allocation21_spill] sm:$0xff] %v3343_v17 }
 0x21f   : > { %2093 = vmatprep.subr.msk.bf16.mxu1 %vm2946_vm4, %v3289_v13  ;;  %v3334_v13 = vpack.c.bf16 %v3315_v16, %v3079_v2  ;;  %v2639_v0 = vunpack.i.l.bf16 %v2638_v20  ;;  %v2640_v3 = vunpack.i.h.bf16 %v2638_v20 }
 0x221   : > { %4139 = vst [vmem:[#allocation20_spill] sm:$0xff] %v3334_v13  ;;  %v3347_v46 = vsel %vm599_vm13, %v2639_v0, %v3082_v34 }
 0x222   : > { %2096 = vmatpush1.bf16.msk.msra.mxu1 %vm2957_vm5, %v3298_v21  ;;  %v4136_v21 = vmov 0  ;;  %v2119_v40 = vpack.c.bf16 %v3125_v14, %v3347_v46 }
 0x223   : > { %2098 = vmatprep.subr.bf16.mxu1 %v3059_v25  ;;  %v4137_v21 = vsel %vm3323_vm11, 4294967295, %v4136_v21 }
 0x224   : > { %4138 = vst [vmem:[#allocation19_spill] sm:$0xff] %v4137_v21 }
 0x226   : > { %2100 = vmatpush1.bf16.msra.mxu1 %v3075_v31 }
 0x227   : > { %2103 = vmatprep.subr.msk.bf16.mxu1 %vm3307_vm3, %v2101_v55  ;;  %v2643_v55 = vpop.permute.xlu0 %2642 }
 0x228   : > { %v2644_v56 = vunpack.i.l.bf16 %v2643_v55  ;;  %v2645_v2 = vunpack.i.h.bf16 %v2643_v55 }
 0x22a   : > { %2106 = vmatpush1.bf16.msk.msra.mxu1 %vm3323_vm11, %v2104_v23  ;;  %v3356_v23 = vsel %vm599_vm13, %v2640_v3, %v2639_v0  ;;  %v3365_v20 = vsel %vm4141_vm15, %v2644_v56, %v3115_v9  ;;  %v3372_v3 = vsel %vm4142_vm12, %v2645_v2, %v2644_v56  ;;  %vm4145_vm12 = vcmask 908288   ;;  %v758_v56 = vld [vmem:[%s4051_s4] sm:$0xff] }
 0x22b   : > { %2109 = vmatprep.subr.msk.bf16.mxu1 %vm3006_vm9, %v3334_v13  ;;  %v2122_v55 = vpack.c.bf16 %v3136_v28, %v3356_v23  ;;  %v3376_v0 = vpack.c.bf16 %v3365_v20, %v3129_v18  ;;  %v3383_v14 = vpack.c.bf16 %v3372_v3, %v3139_v5  ;;  %v814_v5 = vpop.permute.xlu0 %813  ;;  %vm4146_vm15 = vmmov %vm4145_vm12 }
 0x22d   : > { %4143 = vst [vmem:[#allocation22_spill] sm:$0xff] %v3376_v0  ;;  %4144 = vst [vmem:[#allocation23_spill] sm:$0xff] %v3383_v14 }
 0x22e   : > { %2112 = vmatpush1.bf16.msk.msra.mxu1 %vm3023_vm10, %v3343_v17 }
 0x22f   : > { %2115 = vmatprep.subr.msk.bf16.mxu1 %vm2946_vm4, %v3111_v62 }
 0x232   : > { %2118 = vmatpush1.bf16.msk.msra.mxu1 %vm2957_vm5, %v3113_v63 }
 0x233   : > { %2121 = vmatprep.subr.msk.bf16.mxu1 %vm3209_vm14, %v2119_v40  ;;  %v816_v40 = vpop.permute.xlu1 %815 }
 0x234   : > { %v3391_v18 = vsel %vm4145_vm12, %v816_v40, %v3141_v32  ;;  %v3403_v2 = vsel %vm4146_vm15, %v814_v5, %v816_v40 }
 0x236   : > { %2124 = vmatpush1.bf16.msk.msra.mxu1 %vm3220_vm1, %v2122_v55 }
 0x237   : > { %2126 = vmatprep.subr.bf16.mxu1 %v3376_v0  ;;  %v842_v55 = vpop.permute.xlu1 %841 }
 0x23a   : > { %2128 = vmatpush1.bf16.msra.mxu1 %v3383_v14 }
 0x23b   : > { %2131 = vmatprep.subr.msk.bf16.mxu1 %vm3006_vm9, %v3155_v57 }
 0x23e   : > { %2134 = vmatpush1.bf16.msk.msra.mxu1 %vm3023_vm10, %v3157_v4 }
 0x23f   : > { %1823 = vmatprep.subr.msk.mxu1 %vm513_vm7, %v3391_v18 }
 0x242   : > { %1824 = vmatpush1.msk.msra.mxu1 %vm4099_vm8, %v3403_v2  ;;  %vm4174_vm8 = vcmask 130048  }
 0x243   : > { %913 = vmatmul.mubr.f32.vlgmr.msra.gmra.mrb[2].mxu1 %v758_v56  ;;  %2233 = vmatprep.subr.msk.bf16.mxu1 %vm2946_vm4, %v2950_v36 }
 0x244   : > { %2236 = vmatpush1.bf16.msk.msra.mxu1 %vm2957_vm5, %v2952_v37 }
 0x316   : > { %v914_v30 = vpop.f32.mrb[2].mxu1 }
 0x317   : > { %v915_v14 = vadd.f32 %v914_v30, %v842_v55  ;;  %v916_v0 = vpop.f32.mrb[3].mxu1  ;;  %v928_v30 = vld [vmem:[%s4054_s7] sm:$0xff] }
 0x318   : > { %v917_v28 = vadd.f32 %v916_v0, %v842_v55 }
 0x319   : > { %vm919_vm12 = vcmp.ge.f32.partialorder %v915_v14, 0.0  ;;  %v921_v40 = vmul.f32 0.2, %v915_v14 }
 0x31a   : > { %vm920_vm15 = vcmp.ge.f32.partialorder %v917_v28, 0.0  ;;  %v922_v5 = vmul.f32 0.2, %v917_v28 }
 0x31b   : > { %v3414_v47 = vsel %vm919_vm12, %v915_v14, %v921_v40  ;;  %v926_v14 = vld [vmem:[%s4053_s6 + $0x8] sm:$0xff]  ;;  %vm4147_vm12 = vcmask 138240  }
 0x31c   : > { %v924_v56 = vsel %vm920_vm15, %v917_v28, %v922_v5  ;;  %1080 = vmatprep.mubr.f32.mxu0 %v926_v14  ;;  %vm4148_vm15 = vmmov %vm4147_vm12 }
 0x31d   : > { %v2652_v17 = vpack.i.bf16 %v924_v56, %v3414_v47  ;;  %v2672_v13 = vpack.i.bf16 %v3414_v47, %v924_v56 }
 0x31f   : > { %2653 = vrot.lane.b32.xlu1 %v2652_v17, %s2776_s28  ;;  %2648 = vrot.lane.b32.xlu0 %v2652_v17, %s2775_s23 }
 0x323   : > { %2663 = vrot.lane.b32.xlu1 %v2652_v17, %s2778_s30  ;;  %2658 = vrot.lane.b32.xlu0 %v2652_v17, %s2777_s29 }
 0x327   : > { %2673 = vrot.lane.b32.xlu1 %v2672_v13, %s2780_s14  ;;  %2668 = vrot.lane.b32.xlu0 %v2672_v13, %s2779_s13 }
 0x32b   : > { %2683 = vrot.lane.b32.xlu1 %v2672_v13, %s2782_s16  ;;  %2678 = vrot.lane.b32.xlu0 %v2672_v13, %s2781_s15 }
 0x32f   : > { %1009 = vperm.xlu0 %2610, %v928_v30  }
 0x391   : > { %v2654_v28 = vpop.permute.xlu1 %2653  ;;  %v2649_v17 = vpop.permute.xlu0 %2648 }
 0x392   : > { %v2651_v0 = vunpack.i.h.bf16 %v2649_v17  ;;  %v2650_v55 = vunpack.i.l.bf16 %v2649_v17  ;;  %v2656_v40 = vunpack.i.h.bf16 %v2654_v28  ;;  %v2655_v5 = vunpack.i.l.bf16 %v2654_v28 }
 0x394   : > { %v935_v21 = vsel %vm4147_vm12, %v2925_v15, %v2650_v55  ;;  %v936_v13 = vsel %vm4148_vm15, %v2650_v55, %v2651_v0  ;;  %vm4149_vm12 = vcmask 130048  }
 0x395   : > { %v3436_v12 = vpack.c.bf16 %v936_v13, %v3204_v43  ;;  %v3439_v30 = vpack.c.bf16 %v935_v21, %v3201_v33  ;;  %v3451_v14 = vsel %vm4149_vm12, %v2655_v5, %v2656_v40  ;;  %v2659_v43 = vpop.permute.xlu0 %2658  ;;  %vm4150_vm15 = vmmov %vm4149_vm12  ;;  %vm4151_vm12 = vcmask 7168  }
 0x396   : > { %v3459_v33 = vpack.c.bf16 %v3451_v14, %v3233_v42  ;;  %v3463_v21 = vsel %vm4150_vm15, %v2931_v27, %v2655_v5  ;;  %v2661_v28 = vunpack.i.h.bf16 %v2659_v43  ;;  %v2660_v17 = vunpack.i.l.bf16 %v2659_v43  ;;  %v2664_v42 = vpop.permute.xlu1 %2663  ;;  %vm4152_vm15 = vmmov %vm4151_vm12 }
 0x397   : > { %2143 = vmatprep.subr.msk.bf16.mxu0 %vm2946_vm4, %v3436_v12  ;;  %2239 = vmatprep.subr.msk.bf16.mxu1 %vm2946_vm4, %v3436_v12  ;;  %v3469_v0 = vpack.c.bf16 %v3463_v21, %v3228_v41  ;;  %v2666_v13 = vunpack.i.h.bf16 %v2664_v42  ;;  %v2665_v43 = vunpack.i.l.bf16 %v2664_v42 }
 0x398   : > { %2146 = vmatpush1.bf16.msk.msra.mxu0 %vm2957_vm5, %v3439_v30  ;;  %2242 = vmatpush1.bf16.msk.msra.mxu1 %vm2957_vm5, %v3439_v30  ;;  %v946_v55 = vsel %vm530_vm6, %v2660_v17, %v2661_v28  ;;  %v945_v40 = vsel %vm530_vm6, %v3012_v60, %v2660_v17 }
 0x399   : > { %2148 = vmatprep.subr.bf16.mxu0 %v2991_v51  ;;  %v3479_v5 = vpack.c.bf16 %v946_v55, %v3245_v45  ;;  %v3488_v41 = vpack.c.bf16 %v945_v40, %v3261_v49  ;;  %v3491_v28 = vsel %vm4151_vm12, %v2665_v43, %v2666_v13  ;;  %v3501_v45 = vsel %vm4152_vm15, %v3014_v61, %v2665_v43  ;;  %v2669_v55 = vpop.permute.xlu0 %2668 }
 0x39a   : > { %v3505_v17 = vpack.c.bf16 %v3491_v28, %v3266_v10  ;;  %v3515_v49 = vpack.c.bf16 %v3501_v45, %v3285_v24  ;;  %v3522_v10 = vpack.c.bf16 %v924_v56, %v3176_v53  ;;  %v2670_v42 = vunpack.i.l.bf16 %v2669_v55  ;;  %v2674_v43 = vpop.permute.xlu1 %2673 }
 0x39b   : > { %v3528_v40 = vpack.c.bf16 %v3414_v47, %v3174_v50  ;;  %v2671_v24 = vunpack.i.h.bf16 %v2669_v55  ;;  %vm4155_vm12 = vcmask 1039360   ;;  %v2675_v47 = vunpack.i.l.bf16 %v2674_v43  ;;  %v4158_v50 = vld [vmem:[#allocation10_spill] sm:$0xff] }
 0x39c   : > { %2150 = vmatpush1.bf16.msra.mxu0 %v2995_v52  ;;  %4153 = vst [vmem:[#allocation24_spill] sm:$0xff] %v3505_v17  ;;  %4154 = vst [vmem:[#allocation25_spill] sm:$0xff] %v3515_v49  ;;  %v3532_v13 = vsel %vm4155_vm12, %v2670_v42, %v3061_v26 }
 0x39d   : > { %2152 = vmatprep.subr.bf16.mxu0 %v3459_v33  ;;  %vm4156_vm15 = vmmov %vm4155_vm12  ;;  %v3543_v56 = vpack.c.bf16 %v3532_v13, %v3315_v16  ;;  %v2679_v16 = vpop.permute.xlu0 %2678  ;;  %vm4160_vm12 = vcmask 916480  }
 0x39e   : > { %v3539_v53 = vsel %vm4156_vm15, %v2671_v24, %v2670_v42  ;;  %v976_v42 = vsel %vm599_vm13, %v2675_v47, %v3082_v34  ;;  %vm4163_vm15 = vmmov %vm4160_vm12 }
 0x39f   : > { %4157 = vst [vmem:[#allocation26_spill] sm:$0xff] %v3543_v56  ;;  %v3553_v55 = vpack.c.bf16 %v3539_v53, %v3330_v29  ;;  %v2680_v29 = vunpack.i.l.bf16 %v2679_v16 }
 0x3a0   : > { %2154 = vmatpush1.bf16.msra.mxu0 %v3469_v0 }
 0x3a1   : > { %2157 = vmatprep.subr.msk.bf16.mxu0 %vm3006_vm9, %v3010_v59  ;;  %4159 = vst [vmem:[#allocation27_spill] sm:$0xff] %v3553_v55 }
 0x3a4   : > { %2160 = vmatpush1.bf16.msk.msra.mxu0 %vm3023_vm10, %v3030_v8 }
 0x3a5   : > { %2163 = vmatprep.subr.msk.bf16.mxu0 %vm3006_vm9, %v3479_v5 }
 0x3a8   : > { %2166 = vmatpush1.bf16.msk.msra.mxu0 %vm3023_vm10, %v3488_v41 }
 0x3a9   : > { %2169 = vmatprep.subr.msk.bf16.mxu0 %vm2946_vm4, %v3051_v19 }
 0x3ac   : > { %2172 = vmatpush1.bf16.msk.msra.mxu0 %vm2957_vm5, %v3055_v22 }
 0x3ad   : > { %2175 = vmatprep.subr.msk.bf16.mxu0 %vm2946_vm4, %v3505_v17 }
 0x3b0   : > { %2178 = vmatpush1.bf16.msk.msra.mxu0 %vm2957_vm5, %v3515_v49 }
 0x3b1   : > { %2180 = vmatprep.subr.bf16.mxu0 %v3059_v25 }
 0x3b4   : > { %2182 = vmatpush1.bf16.msra.mxu0 %v3075_v31 }
 0x3b5   : > { %2184 = vmatprep.subr.bf16.mxu0 %v3522_v10 }
 0x3b8   : > { %2186 = vmatpush1.bf16.msra.mxu0 %v3528_v40 }
 0x3b9   : > { %2189 = vmatprep.subr.msk.bf16.mxu0 %vm3006_vm9, %v3089_v1  ;;  %v2676_v1 = vunpack.i.h.bf16 %v2674_v43 }
 0x3bb   : > { %v975_v24 = vsel %vm599_vm13, %v2676_v1, %v2675_v47  ;;  %v3581_v1 = vsel %vm4160_vm12, %v2680_v29, %v3115_v9  ;;  %v4161_v47 = vld [vmem:[#allocation12_spill] sm:$0xff]  ;;  %vm4166_vm12 = vcmask 908288  }
 0x3bc   : > { %2192 = vmatpush1.bf16.msk.msra.mxu0 %vm3023_vm10, %v4158_v50  ;;  %v3574_v43 = vpack.c.bf16 %v975_v24, %v3356_v23 }
 0x3bd   : > { %2195 = vmatprep.subr.msk.bf16.mxu0 %vm3006_vm9, %v3543_v56  ;;  %v3565_v56 = vpack.c.bf16 %v976_v42, %v3347_v46  ;;  %v2684_v46 = vpop.permute.xlu1 %2683  ;;  %v3586_v42 = vpack.c.bf16 %v3581_v1, %v3365_v20  ;;  %v925_v20 = vld [vmem:[%s4053_s6] sm:$0xff] }
 0x3be   : > { %v2685_v23 = vunpack.i.l.bf16 %v2684_v46  ;;  %v2686_v49 = vunpack.i.h.bf16 %v2684_v46 }
 0x3bf   : > { %4162 = vst [vmem:[#allocation28_spill] sm:$0xff] %v3586_v42 }
 0x3c0   : > { %2198 = vmatpush1.bf16.msk.msra.mxu0 %vm3023_vm10, %v3553_v55  ;;  %v2681_v55 = vunpack.i.h.bf16 %v2679_v16  ;;  %v4164_v16 = vld [vmem:[#allocation14_spill] sm:$0xff] }
 0x3c1   : > { %2201 = vmatprep.subr.msk.bf16.mxu0 %vm2946_vm4, %v3111_v62 }
 0x3c2   : > { %v3589_v50 = vsel %vm4163_vm15, %v2681_v55, %v2680_v29  ;;  %vm4167_vm15 = vmmov %vm4166_vm12 }
 0x3c3   : > { %v3595_v24 = vpack.c.bf16 %v3589_v50, %v3372_v3  ;;  %v985_v55 = vsel %vm4167_vm15, %v2686_v49, %v2685_v23  ;;  %v4168_v3 = vmov 0.0  }
 0x3c4   : > { %2204 = vmatpush1.bf16.msk.msra.mxu0 %vm2957_vm5, %v3113_v63  ;;  %v3618_v46 = vpack.c.bf16 %v985_v55, %v3403_v2  ;;  %v1010_v2 = vpop.permute.xlu0 %1009 }
 0x3c5   : > { %2207 = vmatprep.subr.msk.bf16.mxu0 %vm2946_vm4, %v3565_v56  ;;  %4165 = vst [vmem:[#allocation29_spill] sm:$0xff] %v3595_v24 }
 0x3c6   : > { %4169 = vst [vmem:[#allocation30_spill] sm:$0xff] %v3618_v46 }
 0x3c8   : > { %2210 = vmatpush1.bf16.msk.msra.mxu0 %vm2957_vm5, %v3574_v43 }
 0x3c9   : > { %2212 = vmatprep.subr.bf16.mxu0 %v4161_v47  ;;  %v986_v47 = vsel %vm4166_vm12, %v2685_v23, %v3141_v32  ;;  %vm1012_vm12 = vcmask 261120  }
 0x3ca   : > { %v3608_v29 = vpack.c.bf16 %v986_v47, %v3391_v18  ;;  %v927_v18 = vld [vmem:[%s4053_s6 + $0x10] sm:$0xff] }
 0x3cc   : > { %2214 = vmatpush1.bf16.msra.mxu0 %v4164_v16  ;;  %v4173_v16 = vld [vmem:[#allocation4_spill] sm:$0xff] }
 0x3cd   : > { %2216 = vmatprep.subr.bf16.mxu0 %v3586_v42 }
 0x3d0   : > { %2218 = vmatpush1.bf16.msra.mxu0 %v3595_v24  ;;  %v4172_v24 = vld [vmem:[#allocation3_spill] sm:$0xff] }
 0x3d1   : > { %2221 = vmatprep.subr.msk.bf16.mxu0 %vm3006_vm9, %v3155_v57 }
 0x3d3   : > { %1081 = vmatmul.mubr.f32.vlgmr.msra.gmra.mrb[0].mxu0 %v925_v20 }
 0x3d4   : > { %2224 = vmatpush1.bf16.msk.msra.mxu0 %vm3023_vm10, %v3157_v4  ;;  %1151 = vmatprep.mubr.f32.mxu0 %v4168_v3 }
 0x3d5   : > { %2227 = vmatprep.subr.msk.bf16.mxu0 %vm3006_vm9, %v3608_v29 }
 0x3d8   : > { %2230 = vmatpush1.bf16.msk.msra.mxu0 %vm3023_vm10, %v3618_v46 }
 0x3d9   : > { %2353 = vmatprep.subr.msk.bf16.mxu0 %vm2946_vm4, %v2950_v36 }
 0x3db   : > { %1874 = vmatmul.mubr.msk.f32.vlgmr.msra.gmra.mrb[0].mxu0 %vm1012_vm12, %v927_v18 }
 0x3dc   : > { %2356 = vmatpush1.bf16.msk.msra.mxu0 %vm2957_vm5, %v2952_v37 }
 0x3dd   : > { %2359 = vmatprep.subr.msk.bf16.mxu0 %vm2946_vm4, %v3436_v12 }
 0x3e0   : > { %2362 = vmatpush1.bf16.msk.msra.mxu0 %vm2957_vm5, %v3439_v30 }
 0x4ae   : > { %v1153_v49 = vpop.f32.mrb[0].mxu0 }
 0x4af   : > { %v2495_v47 = vadd.f32 %v1153_v49, %v1010_v2  ;;  %v1155_v23 = vpop.f32.mrb[1].mxu0  ;;  %v1165_v49 = vld [vmem:[%s4055_s8 + $0x8] sm:$0xff] }
 0x4b0   : > { %v2496_v20 = vadd.f32 %v1155_v23, %v1010_v2  ;;  %v1167_v2 = vld [vmem:[%s4056_s9] sm:$0xff]  ;;  %1319 = vmatprep.mubr.f32.mxu1 %v1165_v49 }
 0x4b1   : > { %vm1158_vm15 = vcmp.ge.f32.partialorder %v2495_v47, 0.0  ;;  %v1160_v36 = vmul.f32 0.2, %v2495_v47 }
 0x4b2   : > { %vm1159_vm12 = vcmp.ge.f32.partialorder %v2496_v20, 0.0  ;;  %v1161_v55 = vmul.f32 0.2, %v2496_v20 }
 0x4b3   : > { %v3638_v18 = vsel %vm1158_vm15, %v2495_v47, %v1160_v36  ;;  %vm4170_vm15 = vcmask 138240  }
 0x4b4   : > { %v3640_v37 = vsel %vm1159_vm12, %v2496_v20, %v1161_v55  ;;  %vm4171_vm12 = vmmov %vm4170_vm15 }
 0x4b5   : > { %v2692_v12 = vpack.i.bf16 %v3640_v37, %v3638_v18  ;;  %v2712_v30 = vpack.i.bf16 %v3638_v18, %v3640_v37 }
 0x4b7   : > { %2693 = vrot.lane.b32.xlu0 %v2692_v12, %s2776_s28  ;;  %2688 = vrot.lane.b32.xlu1 %v2692_v12, %s2775_s23 }
 0x4bb   : > { %2703 = vrot.lane.b32.xlu0 %v2692_v12, %s2778_s30  ;;  %2698 = vrot.lane.b32.xlu1 %v2692_v12, %s2777_s29 }
 0x4bf   : > { %2713 = vrot.lane.b32.xlu0 %v2712_v30, %s2780_s14  ;;  %2708 = vrot.lane.b32.xlu1 %v2712_v30, %s2779_s13 }
 0x4c3   : > { %1222 = vrot.lane.b32.xlu0 %v3640_v37, %s2782_s16  ;;  %2718 = vrot.lane.b32.xlu1 %v2712_v30, %s2781_s15 }
 0x4c7   : > { %1248 = vperm.xlu0 %2610, %v1167_v2   ;;  %1220 = vrot.lane.b32.xlu1 %v3638_v18, %s2782_s16 }
 0x529   : > { %v2694_v47 = vpop.permute.xlu0 %2693  ;;  %v2689_v23 = vpop.permute.xlu1 %2688 }
 0x52a   : > { %v2691_v20 = vunpack.i.h.bf16 %v2689_v23  ;;  %v2690_v36 = vunpack.i.l.bf16 %v2689_v23  ;;  %v2696_v55 = vunpack.i.h.bf16 %v2694_v47  ;;  %v2695_v12 = vunpack.i.l.bf16 %v2694_v47 }
 0x52c   : > { %v3665_v30 = vsel %vm4170_vm15, %v2925_v15, %v2690_v36  ;;  %v3668_v2 = vsel %vm4171_vm12, %v2690_v36, %v2691_v20  ;;  %v3679_v49 = vsel %vm4174_vm8, %v2695_v12, %v2696_v55  ;;  %vm4175_vm15 = vmmov %vm4174_vm8  ;;  %v4176_v55 = vld [vmem:[#allocation6_spill] sm:$0xff]  ;;  %vm4177_vm8 = vcmask 7168  }
 0x52d   : > { %v2243_v42 = vpack.c.bf16 %v4172_v24, %v3668_v2  ;;  %v2246_v17 = vpack.c.bf16 %v4173_v16, %v3665_v30  ;;  %v3684_v47 = vsel %vm4175_vm15, %v2931_v27, %v2695_v12  ;;  %v2253_v24 = vpack.c.bf16 %v3679_v49, %v3451_v14  ;;  %v2699_v16 = vpop.permute.xlu1 %2698  ;;  %vm4180_vm12 = vmmov %vm4177_vm8 }
 0x52e   : > { %v2700_v23 = vunpack.i.l.bf16 %v2699_v16 }
 0x52f   : > { %2245 = vmatprep.subr.msk.bf16.mxu1 %vm3209_vm14, %v2243_v42  ;;  %v2255_v42 = vpack.c.bf16 %v3684_v47, %v3463_v21 }
 0x530   : > { %2248 = vmatpush1.bf16.msk.msra.mxu1 %vm3220_vm1, %v2246_v17  ;;  %v2701_v17 = vunpack.i.h.bf16 %v2699_v16  ;;  %v3705_v14 = vsel %vm530_vm6, %v3012_v60, %v2700_v23 }
 0x531   : > { %2250 = vmatprep.subr.bf16.mxu1 %v3241_v54  ;;  %v2272_v12 = vpack.c.bf16 %v4176_v55, %v3705_v14 }
 0x532   : > { %v3695_v54 = vsel %vm530_vm6, %v2700_v23, %v2701_v17  ;;  %v4181_v17 = vld [vmem:[#allocation17_spill] sm:$0xff] }
 0x533   : > { %v2269_v21 = vpack.c.bf16 %v3036_v11, %v3695_v54 }
 0x534   : > { %2252 = vmatpush1.bf16.msra.mxu1 %v3237_v38  ;;  %v2704_v38 = vpop.permute.xlu0 %2703 }
 0x535   : > { %2254 = vmatprep.subr.bf16.mxu1 %v2253_v24  ;;  %v2706_v20 = vunpack.i.h.bf16 %v2704_v38  ;;  %v2705_v36 = vunpack.i.l.bf16 %v2704_v38  ;;  %v2709_v38 = vpop.permute.xlu1 %2708 }
 0x537   : > { %v3717_v24 = vsel %vm4177_vm8, %v2705_v36, %v2706_v20  ;;  %v3726_v11 = vsel %vm4180_vm12, %v3014_v61, %v2705_v36  ;;  %v2710_v20 = vunpack.i.l.bf16 %v2709_v38 }
 0x538   : > { %2256 = vmatpush1.bf16.msra.mxu1 %v2255_v42  ;;  %v4179_v42 = vld [vmem:[#allocation16_spill] sm:$0xff]  ;;  %v2281_v48 = vpack.c.bf16 %v3717_v24, %v3491_v28  ;;  %v2284_v23 = vpack.c.bf16 %v3726_v11, %v3501_v45  ;;  %v4182_v28 = vld [vmem:[#allocation7_spill] sm:$0xff]  ;;  %v4184_v45 = vld [vmem:[#allocation9_spill] sm:$0xff] }
 0x539   : > { %2259 = vmatprep.subr.msk.bf16.mxu1 %vm3006_vm9, %v3010_v59  ;;  %v2298_v55 = vpack.c.bf16 %v4184_v45, %v3638_v18  ;;  %v2719_v45 = vpop.permute.xlu1 %2718 }
 0x53c   : > { %2262 = vmatpush1.bf16.msk.msra.mxu1 %vm3023_vm10, %v3030_v8 }
 0x53d   : > { %2265 = vmatprep.subr.msk.bf16.mxu1 %vm3006_vm9, %v3479_v5 }
 0x540   : > { %2268 = vmatpush1.bf16.msk.msra.mxu1 %vm3023_vm10, %v3488_v41 }
 0x541   : > { %2271 = vmatprep.subr.msk.bf16.mxu1 %vm3255_vm0, %v2269_v21  ;;  %v2295_v21 = vpack.c.bf16 %v4182_v28, %v3640_v37  ;;  %vm4185_vm0 = vcmask 1039360   ;;  %v4189_v28 = vld [vmem:[#allocation21_spill] sm:$0xff] }
 0x542   : > { %v3751_v16 = vsel %vm4185_vm0, %v2710_v20, %v3061_v26 }
 0x544   : > { %2274 = vmatpush1.bf16.msk.msra.mxu1 %vm3277_vm2, %v2272_v12  ;;  %v2711_v12 = vunpack.i.h.bf16 %v2709_v38  ;;  %vm4188_vm2 = vmmov %vm4185_vm0  ;;  %v2714_v38 = vpop.permute.xlu0 %2713  ;;  %vm4201_vm0 = vcmask 138240  }
 0x545   : > { %2277 = vmatprep.subr.msk.bf16.mxu1 %vm2946_vm4, %v4179_v42  ;;  %v2715_v36 = vunpack.i.l.bf16 %v2714_v38 }
 0x548   : > { %2280 = vmatpush1.bf16.msk.msra.mxu1 %vm2957_vm5, %v4181_v17  ;;  %v3759_v17 = vsel %vm4188_vm2, %v2711_v12, %v2710_v20  ;;  %v3777_v20 = vsel %vm599_vm13, %v2715_v36, %v3082_v34  ;;  %v4190_v12 = vld [vmem:[#allocation11_spill] sm:$0xff]  ;;  %v1223_v6 = vpop.permute.xlu0 %1222  ;;  %vm4202_vm2 = vmmov %vm4201_vm0 }
 0x549   : > { %2283 = vmatprep.subr.msk.bf16.mxu1 %vm2946_vm4, %v2281_v48  ;;  %v4187_v48 = vld [vmem:[#allocation20_spill] sm:$0xff]  ;;  %v2325_v42 = vpack.c.bf16 %v4190_v12, %v3777_v20 }
 0x54a   : > { %v1166_v12 = vld [vmem:[%s4055_s8 + $0x10] sm:$0xff] }
 0x54c   : > { %2286 = vmatpush1.bf16.msk.msra.mxu1 %vm2957_vm5, %v2284_v23  ;;  %v2307_v23 = vpack.c.bf16 %v3751_v16, %v3532_v13  ;;  %v2716_v13 = vunpack.i.h.bf16 %v2714_v38  ;;  %v2721_v38 = vunpack.i.h.bf16 %v2719_v45 }
 0x54d   : > { %2288 = vmatprep.subr.bf16.mxu1 %v3059_v25 }
 0x550   : > { %2290 = vmatpush1.bf16.msra.mxu1 %v3075_v31 }
 0x551   : > { %2292 = vmatprep.subr.bf16.mxu1 %v3522_v10 }
 0x554   : > { %2294 = vmatpush1.bf16.msra.mxu1 %v3528_v40 }
 0x555   : > { %2297 = vmatprep.subr.msk.bf16.mxu1 %vm3307_vm3, %v2295_v21  ;;  %v2310_v21 = vpack.c.bf16 %v3759_v17, %v3539_v53  ;;  %v1164_v53 = vld [vmem:[%s4055_s8] sm:$0xff] }
 0x558   : > { %2300 = vmatpush1.bf16.msk.msra.mxu1 %vm3323_vm11, %v2298_v55  ;;  %v3789_v55 = vsel %vm599_vm13, %v2716_v13, %v2715_v36  ;;  %vm4192_vm11 = vcmask 916480   ;;  %v4193_v36 = vld [vmem:[#allocation22_spill] sm:$0xff] }
 0x559   : > { %2303 = vmatprep.subr.msk.bf16.mxu1 %vm3006_vm9, %v4187_v48  ;;  %v2720_v48 = vunpack.i.l.bf16 %v2719_v45  ;;  %vm4194_vm3 = vmmov %vm4192_vm11  ;;  %v1221_v45 = vpop.permute.xlu1 %1220 }
 0x55b   : > { %v3809_v13 = vsel %vm4194_vm3, %v2721_v38, %v2720_v48 }
 0x55c   : > { %2306 = vmatpush1.bf16.msk.msra.mxu1 %vm3023_vm10, %v4189_v28 }
 0x55d   : > { %2309 = vmatprep.subr.msk.bf16.mxu1 %vm3006_vm9, %v2307_v23  ;;  %v4191_v23 = vld [vmem:[#allocation13_spill] sm:$0xff] }
 0x55e   : > { %v2328_v28 = vpack.c.bf16 %v4191_v23, %v3789_v55  ;;  %v1249_v23 = vpop.permute.xlu0 %1248 }
 0x560   : > { %2312 = vmatpush1.bf16.msk.msra.mxu1 %vm3023_vm10, %v2310_v21  ;;  %v3805_v21 = vsel %vm4192_vm11, %v2720_v48, %v3115_v9  ;;  %v4199_v48 = vld [vmem:[#allocation5_spill] sm:$0xff]  ;;  %vm4203_vm11 = vcmask 130048  }
 0x561   : > { %2315 = vmatprep.subr.msk.bf16.mxu1 %vm2946_vm4, %v3111_v62  ;;  %v2335_v44 = vpack.c.bf16 %v3805_v21, %v3581_v1  ;;  %vm4200_vm8 = vcmp.lt.s32.totalorder %v4199_v48, 16  ;;  %v1411_v48 = vld [vmem:[%s4058_s11] sm:$0xff]  ;;  %vm4204_vm3 = vmmov %vm4203_vm11 }
 0x564   : > { %2318 = vmatpush1.bf16.msk.msra.mxu1 %vm2957_vm5, %v3113_v63 }
 0x565   : > { %2321 = vmatprep.subr.msk.bf16.mxu1 %vm2946_vm4, %v3565_v56 }
 0x567   : > { %1320 = vmatmul.mubr.f32.vlgmr.msra.gmra.mrb[4].mxu1 %v1164_v53  ;;  %v2337_v53 = vpack.c.bf16 %v3809_v13, %v3589_v50 }
 0x568   : > { %2324 = vmatpush1.bf16.msk.msra.mxu1 %vm2957_vm5, %v3574_v43  ;;  %1390 = vmatprep.mubr.f32.mxu1 %v4168_v3  ;;  %v4195_v3 = vld [vmem:[#allocation23_spill] sm:$0xff] }
 0x569   : > { %2327 = vmatprep.subr.msk.bf16.mxu1 %vm3209_vm14, %v2325_v42  ;;  %vm1251_vm14 = vcmask 850944  }
 0x56c   : > { %2330 = vmatpush1.bf16.msk.msra.mxu1 %vm3220_vm1, %v2328_v28  ;;  %vm4196_vm1 = vcmask 908288  }
 0x56d   : > { %2332 = vmatprep.subr.bf16.mxu1 %v4193_v36  ;;  %v3827_v1 = vsel %vm4196_vm1, %v1223_v6, %v3141_v32  ;;  %vm4198_vm15 = vmmov %vm4196_vm1 }
 0x56e   : > { %v3839_v42 = vsel %vm4198_vm15, %v1221_v45, %v1223_v6 }
 0x570   : > { %2334 = vmatpush1.bf16.msra.mxu1 %v4195_v3 }
 0x571   : > { %2336 = vmatprep.subr.bf16.mxu1 %v2335_v44 }
 0x574   : > { %2338 = vmatpush1.bf16.msra.mxu1 %v2337_v53 }
 0x575   : > { %2341 = vmatprep.subr.msk.bf16.mxu1 %vm3006_vm9, %v3155_v57 }
 0x578   : > { %2344 = vmatpush1.bf16.msk.msra.mxu1 %vm3023_vm10, %v3157_v4 }
 0x579   : > { %2347 = vmatprep.subr.msk.bf16.mxu1 %vm3006_vm9, %v3608_v29 }
 0x57c   : > { %2350 = vmatpush1.bf16.msk.msra.mxu1 %vm3023_vm10, %v3618_v46 }
 0x57d   : > { %1933 = vmatprep.subr.msk.mxu1 %vm513_vm7, %v3827_v1 }
 0x580   : > { %1934 = vmatpush1.msk.msra.mxu1 %vm4200_vm8, %v3839_v42  ;;  %vm1501_vm8 = vcmask 392192  }
 0x581   : > { %1935 = vmatmul.mubr.msk.f32.vlgmr.msra.gmra.mrb[4].mxu1 %vm1251_vm14, %v1166_v12  ;;  %v1412_v12 = vld [vmem:[%s4058_s11 + $0x8] sm:$0xff]  ;;  %vm4210_vm14 = vcmask 1039360  }
 0x582   : > { %vm4213_vm15 = vmmov %vm4210_vm14 }
 0x654   : > { %v1392_v28 = vpop.f32.mrb[4].mxu1 }
 0x655   : > { %v2497_v38 = vadd.f32 %v1392_v28, %v1249_v23  ;;  %v1394_v36 = vpop.f32.mrb[5].mxu1 }
 0x656   : > { %v2498_v44 = vadd.f32 %v1394_v36, %v1249_v23  ;;  %v1404_v23 = vld [vmem:[%s4057_s10 + $0x8] sm:$0xff] }
 0x657   : > { %vm1397_vm12 = vcmp.ge.f32.partialorder %v2497_v38, 0.0  ;;  %v1399_v3 = vmul.f32 0.2, %v2497_v38  ;;  %1572 = vmatprep.mubr.f32.mxu0 %v1404_v23 }
 0x658   : > { %vm1398_vm7 = vcmp.ge.f32.partialorder %v2498_v44, 0.0  ;;  %v1400_v53 = vmul.f32 0.2, %v2498_v44 }
 0x659   : > { %v3844_v50 = vsel %vm1397_vm12, %v2497_v38, %v1399_v3 }
 0x65a   : > { %v3846_v46 = vsel %vm1398_vm7, %v2498_v44, %v1400_v53 }
 0x65b   : > { %v2727_v6 = vpack.i.bf16 %v3846_v46, %v3844_v50  ;;  %v2747_v45 = vpack.i.bf16 %v3844_v50, %v3846_v46 }
 0x65d   : > { %2728 = vrot.lane.b32.xlu0 %v2727_v6, %s2776_s28  ;;  %2723 = vrot.lane.b32.xlu1 %v2727_v6, %s2775_s23 }
 0x661   : > { %2738 = vrot.lane.b32.xlu0 %v2727_v6, %s2778_s30  ;;  %2733 = vrot.lane.b32.xlu1 %v2727_v6, %s2777_s29 }
 0x665   : > { %2748 = vrot.lane.b32.xlu0 %v2747_v45, %s2780_s14  ;;  %2743 = vrot.lane.b32.xlu1 %v2747_v45, %s2779_s13  ;;  %s428_s13 = scalar_lea.vmem %s4048_s1, %s2860_s24 }
 0x669   : > { %2758 = vrot.lane.b32.xlu0 %v2747_v45, %s2782_s16  ;;  %2753 = vrot.lane.b32.xlu1 %v2747_v45, %s2781_s15  ;;  %s433_s16 = scalar_lea.vmem %s4059_s12, %s2860_s24 }
 0x66d   : > { %1498 = vperm.xlu0 %2610, %v1412_v12   ;;  %1493 = vperm.xlu1 %2646, %v1411_v48  }
 0x6cf   : > { %v2724_v28 = vpop.permute.xlu1 %2723  ;;  %v2729_v53 = vpop.permute.xlu0 %2728 }
 0x6d0   : > { %v2726_v38 = vunpack.i.h.bf16 %v2724_v28  ;;  %v2725_v36 = vunpack.i.l.bf16 %v2724_v28  ;;  %v2731_v12 = vunpack.i.h.bf16 %v2729_v53  ;;  %v2730_v48 = vunpack.i.l.bf16 %v2729_v53 }
 0x6d2   : > { %v1419_v44 = vsel %vm4201_vm0, %v2925_v15, %v2725_v36  ;;  %v1420_v3 = vsel %vm4202_vm2, %v2725_v36, %v2726_v38  ;;  %v1480_v15 = vsel %vm4203_vm11, %v2730_v48, %v2731_v12 }
 0x6d3   : > { %v2363_v6 = vpack.c.bf16 %v1420_v3, %v3668_v2  ;;  %v2366_v45 = vpack.c.bf16 %v1419_v44, %v3665_v30  ;;  %v1479_v2 = vsel %vm4204_vm3, %v2931_v27, %v2730_v48  ;;  %v2377_v30 = vpack.c.bf16 %v1480_v15, %v3679_v49  ;;  %v2734_v23 = vpop.permute.xlu1 %2733  ;;  %v1406_v3 = vld [vmem:[%s4057_s10 + $0x18] sm:$0xff]  ;;  %v4216_v15 = vld [vmem:[#allocation14_spill] sm:$0xff] }
 0x6d4   : > { %v2379_v28 = vpack.c.bf16 %v1479_v2, %v3684_v47  ;;  %v2736_v38 = vunpack.i.h.bf16 %v2734_v23  ;;  %v2735_v36 = vunpack.i.l.bf16 %v2734_v23  ;;  %v4208_v47 = vld [vmem:[#allocation25_spill] sm:$0xff]  ;;  %v4218_v2 = vld [vmem:[#allocation28_spill] sm:$0xff] }
 0x6d5   : > { %2365 = vmatprep.subr.msk.bf16.mxu0 %vm2946_vm4, %v2363_v6 }
 0x6d6   : > { %2368 = vmatpush1.bf16.msk.msra.mxu0 %vm2957_vm5, %v2366_v45  ;;  %v1429_v27 = vsel %vm530_vm6, %v3012_v60, %v2735_v36 }
 0x6d7   : > { %2370 = vmatprep.subr.bf16.mxu0 %v2991_v51  ;;  %v1430_v51 = vsel %vm530_vm6, %v2735_v36, %v2736_v38  ;;  %vm4205_vm6 = vcmask 7168   ;;  %v4223_v38 = vld [vmem:[#allocation30_spill] sm:$0xff] }
 0x6d8   : > { %vm4207_vm1 = vmmov %vm4205_vm6 }
 0x6da   : > { %2372 = vmatpush1.bf16.msra.mxu0 %v2995_v52  ;;  %v2393_v52 = vpack.c.bf16 %v1430_v51, %v3695_v54  ;;  %v2427_v54 = vpack.c.bf16 %v3844_v50, %v3638_v18  ;;  %v1408_v18 = vld [vmem:[%s4057_s10 + $0x28] sm:$0xff]  ;;  %v1407_v50 = vld [vmem:[%s4057_s10 + $0x20] sm:$0xff] }
 0x6db   : > { %2374 = vmatprep.subr.bf16.mxu0 %v3459_v33  ;;  %v2396_v33 = vpack.c.bf16 %v1429_v27, %v3705_v14 }
 0x6de   : > { %2376 = vmatpush1.bf16.msra.mxu0 %v3469_v0 }
 0x6df   : > { %2378 = vmatprep.subr.bf16.mxu0 %v2377_v30  ;;  %v4220_v30 = vld [vmem:[#allocation29_spill] sm:$0xff] }
 0x6e2   : > { %2380 = vmatpush1.bf16.msra.mxu0 %v2379_v28 }
 0x6e3   : > { %2383 = vmatprep.subr.msk.bf16.mxu0 %vm3006_vm9, %v3010_v59  ;;  %v2739_v59 = vpop.permute.xlu0 %2738 }
 0x6e4   : > { %v2740_v0 = vunpack.i.l.bf16 %v2739_v59 }
 0x6e6   : > { %2386 = vmatpush1.bf16.msk.msra.mxu0 %vm3023_vm10, %v3030_v8  ;;  %v2741_v8 = vunpack.i.h.bf16 %v2739_v59 }
 0x6e7   : > { %2389 = vmatprep.subr.msk.bf16.mxu0 %vm3006_vm9, %v3479_v5  ;;  %v4206_v5 = vld [vmem:[#allocation24_spill] sm:$0xff]  ;;  %v2749_v44 = vpop.permute.xlu0 %2748 }
 0x6e8   : > { %v1440_v60 = vsel %vm4205_vm6, %v2740_v0, %v2741_v8  ;;  %v2750_v53 = vunpack.i.l.bf16 %v2749_v44  ;;  %v2751_v6 = vunpack.i.h.bf16 %v2749_v44 }
 0x6e9   : > { %v2411_v49 = vpack.c.bf16 %v1440_v60, %v3717_v24  ;;  %v4209_v24 = vld [vmem:[#allocation8_spill] sm:$0xff] }
 0x6ea   : > { %2392 = vmatpush1.bf16.msk.msra.mxu0 %vm3023_vm10, %v3488_v41  ;;  %v1439_v41 = vsel %vm4207_vm1, %v3014_v61, %v2740_v0  ;;  %v2425_v61 = vpack.c.bf16 %v3846_v46, %v3640_v37  ;;  %v4212_v46 = vld [vmem:[#allocation26_spill] sm:$0xff]  ;;  %v1460_v45 = vsel %vm599_vm13, %v2750_v53, %v3082_v34 }
 0x6eb   : > { %2395 = vmatprep.subr.msk.bf16.mxu0 %vm3006_vm9, %v2393_v52  ;;  %v2459_v12 = vpack.c.bf16 %v1460_v45, %v3777_v20 }
 0x6ee   : > { %2398 = vmatpush1.bf16.msk.msra.mxu0 %vm3023_vm10, %v2396_v33  ;;  %v2762_v33 = vld [vmem:[%s2866_s27] sm:$0xff] }
 0x6ef   : > { %2401 = vmatprep.subr.msk.bf16.mxu0 %vm2946_vm4, %v3051_v19  ;;  %v2414_v19 = vpack.c.bf16 %v1439_v41, %v3726_v11  ;;  %v4214_v11 = vld [vmem:[#allocation27_spill] sm:$0xff] }
 0x6f0   : > { %v2763_v41 = vld [vmem:[%s2866_s27 + $0x8] sm:$0xff] }
 0x6f2   : > { %2404 = vmatpush1.bf16.msk.msra.mxu0 %vm2957_vm5, %v3055_v22  ;;  %v2744_v22 = vpop.permute.xlu1 %2743 }
 0x6f3   : > { %2407 = vmatprep.subr.msk.bf16.mxu0 %vm2946_vm4, %v4206_v5  ;;  %v2745_v14 = vunpack.i.l.bf16 %v2744_v22  ;;  %v1674_v5 = vld [vmem:[%s428_s13] sm:$0xff] }
 0x6f6   : > { %2410 = vmatpush1.bf16.msk.msra.mxu0 %vm2957_vm5, %v4208_v47 }
 0x6f7   : > { %2413 = vmatprep.subr.msk.bf16.mxu0 %vm2946_vm4, %v2411_v49 }
 0x6fa   : > { %2416 = vmatpush1.bf16.msk.msra.mxu0 %vm2957_vm5, %v2414_v19 }
 0x6fb   : > { %2418 = vmatprep.subr.bf16.mxu0 %v3059_v25  ;;  %v2746_v25 = vunpack.i.h.bf16 %v2744_v22 }
 0x6fd   : > { %v1449_v37 = vsel %vm4213_vm15, %v2746_v25, %v2745_v14  ;;  %v2764_v25 = vld [vmem:[%s2866_s27 + $0x10] sm:$0xff] }
 0x6fe   : > { %2420 = vmatpush1.bf16.msra.mxu0 %v3075_v31  ;;  %v1450_v31 = vsel %vm4210_vm14, %v2745_v14, %v3061_v26 }
 0x6ff   : > { %2422 = vmatprep.subr.bf16.mxu0 %v3522_v10  ;;  %v4211_v10 = vld [vmem:[#allocation10_spill] sm:$0xff]  ;;  %v2441_v26 = vpack.c.bf16 %v1450_v31, %v3751_v16  ;;  %v2444_v16 = vpack.c.bf16 %v1449_v37, %v3759_v17  ;;  %v1459_v17 = vsel %vm599_vm13, %v2751_v6, %v2750_v53  ;;  %vm4217_vm13 = vcmask 916480  }
 0x700   : > { %v2462_v34 = vpack.c.bf16 %v1459_v17, %v3789_v55  ;;  %vm4219_vm12 = vmmov %vm4217_vm13  ;;  %v2759_v55 = vpop.permute.xlu0 %2758 }
 0x701   : > { %v2760_v23 = vunpack.i.l.bf16 %v2759_v55  ;;  %v2761_v28 = vunpack.i.h.bf16 %v2759_v55 }
 0x702   : > { %2424 = vmatpush1.bf16.msra.mxu0 %v3528_v40  ;;  %v1403_v40 = vld [vmem:[%s4057_s10] sm:$0xff] }
 0x703   : > { %2426 = vmatprep.subr.bf16.mxu0 %v2425_v61  ;;  %v1675_v61 = vld [vmem:[%s428_s13 + $0x8] sm:$0xff] }
 0x704   : > { %v1499_v27 = vpop.permute.xlu0 %1498 }
 0x706   : > { %2428 = vmatpush1.bf16.msra.mxu0 %v2427_v54 }
 0x707   : > { %2431 = vmatprep.subr.msk.bf16.mxu0 %vm3006_vm9, %v4209_v24 }
 0x70a   : > { %2434 = vmatpush1.bf16.msk.msra.mxu0 %vm3023_vm10, %v4211_v10 }
 0x70b   : > { %2437 = vmatprep.subr.msk.bf16.mxu0 %vm3006_vm9, %v4212_v46  ;;  %v2765_v46 = vld [vmem:[%s2866_s27 + $0x18] sm:$0xff] }
 0x70d   : > { %1573 = vmatmul.mubr.f32.vlgmr.msra.gmra.mrb[2].mxu0 %v1403_v40  ;;  %v1676_v40 = vld [vmem:[%s428_s13 + $0x10] sm:$0xff] }
 0x70e   : > { %2440 = vmatpush1.bf16.msk.msra.mxu0 %vm3023_vm10, %v4214_v11  ;;  %1578 = vmatprep.mubr.f32.mxu0 %v1408_v18 }
 0x70f   : > { %2443 = vmatprep.subr.msk.bf16.mxu0 %vm3006_vm9, %v2441_v26  ;;  %v1677_v26 = vld [vmem:[%s428_s13 + $0x18] sm:$0xff] }
 0x711   : > { %1579 = vmatmul.mubr.f32.gmra.mrb[4].mxu0 %v1407_v50 }
 0x712   : > { %2446 = vmatpush1.bf16.msk.msra.mxu0 %vm3023_vm10, %v2444_v16  ;;  %2008 = vmatprep.mubr.msk.f32.mxu0 %vm1501_vm8, %v1406_v3 }
 0x713   : > { %2449 = vmatprep.subr.msk.bf16.mxu0 %vm2946_vm4, %v3111_v62  ;;  %v2754_v62 = vpop.permute.xlu1 %2753 }
 0x714   : > { %v2755_v48 = vunpack.i.l.bf16 %v2754_v62 }
 0x716   : > { %2452 = vmatpush1.bf16.msk.msra.mxu0 %vm2957_vm5, %v3113_v63  ;;  %v4215_v63 = vld [vmem:[#allocation12_spill] sm:$0xff]  ;;  %v1488_v20 = vsel %vm4217_vm13, %v2755_v48, %v3115_v9 }
 0x717   : > { %2455 = vmatprep.subr.msk.bf16.mxu0 %vm2946_vm4, %v3565_v56  ;;  %v2756_v56 = vunpack.i.h.bf16 %v2754_v62  ;;  %v2473_v35 = vpack.c.bf16 %v1488_v20, %v3805_v21  ;;  %v1494_v7 = vpop.permute.xlu1 %1493 }
 0x71a   : > { %2458 = vmatpush1.bf16.msk.msra.mxu0 %vm2957_vm5, %v3574_v43  ;;  %v1487_v43 = vsel %vm4219_vm12, %v2756_v56, %v2755_v48 }
 0x71b   : > { %2461 = vmatprep.subr.msk.bf16.mxu0 %vm2946_vm4, %v2459_v12  ;;  %v2475_v39 = vpack.c.bf16 %v1487_v43, %v3809_v13  ;;  %vm4221_vm4 = vcmask 908288  }
 0x71c   : > { %v1470_v9 = vsel %vm4221_vm4, %v2760_v23, %v3141_v32 }
 0x71d   : > { %v2489_v13 = vpack.c.bf16 %v1470_v9, %v3827_v1 }
 0x71e   : > { %2464 = vmatpush1.bf16.msk.msra.mxu0 %vm2957_vm5, %v2462_v34  ;;  %vm4222_vm5 = vmmov %vm4221_vm4 }
 0x71f   : > { %2466 = vmatprep.subr.bf16.mxu0 %v4215_v63  ;;  %v1469_v21 = vsel %vm4222_vm5, %v2761_v28, %v2760_v23 }
 0x720   : > { %v2492_v32 = vpack.c.bf16 %v1469_v21, %v3839_v42 }
 0x722   : > { %2468 = vmatpush1.bf16.msra.mxu0 %v4216_v15 }
 0x723   : > { %2470 = vmatprep.subr.bf16.mxu0 %v4218_v2 }
 0x726   : > { %2472 = vmatpush1.bf16.msra.mxu0 %v4220_v30 }
 0x727   : > { %2474 = vmatprep.subr.bf16.mxu0 %v2473_v35 }
 0x72a   : > { %2476 = vmatpush1.bf16.msra.mxu0 %v2475_v39 }
 0x72b   : > { %2479 = vmatprep.subr.msk.bf16.mxu0 %vm3006_vm9, %v3155_v57  ;;  %v1405_v57 = vld [vmem:[%s4057_s10 + $0x10] sm:$0xff] }
 0x72e   : > { %2482 = vmatpush1.bf16.msk.msra.mxu0 %vm3023_vm10, %v3157_v4  ;;  %v1410_v4 = vld [vmem:[%s4057_s10 + $0x38] sm:$0xff] }
 0x72f   : > { %2485 = vmatprep.subr.msk.bf16.mxu0 %vm3006_vm9, %v3608_v29 }
 0x732   : > { %2488 = vmatpush1.bf16.msk.msra.mxu0 %vm3023_vm10, %v4223_v38 }
 0x733   : > { %2491 = vmatprep.subr.msk.bf16.mxu0 %vm3006_vm9, %v2489_v13 }
 0x736   : > { %2494 = vmatpush1.bf16.msk.msra.mxu0 %vm3023_vm10, %v2492_v32 }
 0x739   : > { %1650 = vmatmul.mubr.f32.vlgmr.msra.gmra.mrb[2].mxu0 %v1405_v57 }
 0x73a   : > { %2009 = vmatprep.mubr.msk.f32.mxu0 %vm1501_vm8, %v1410_v4 }
 0x73d   : > { %1656 = vmatmul.mubr.f32.gmra.mrb[4].mxu0 %v1409_v58 }
 0x80c   : > { %v1651_v29 = vpop.f32.mrb[2].mxu0 }
 0x80d   : > { %v2499_v1 = vadd.f32 %v1651_v29, %v1494_v7  ;;  %v1653_v42 = vpop.f32.mrb[3].mxu0 }
 0x80e   : > { %v2500_v36 = vadd.f32 %v1653_v42, %v1494_v7 }
 0x80f   : > { %v1662_v51 = vmul.f32 0.2, %v2499_v1 }
 0x810   : > { %v1663_v52 = vmul.f32 0.2, %v2500_v36  ;;  %v1657_v59 = vpop.f32.mrb[4].mxu0 }
 0x811   : > { %v1666_v8 = vadd.f32 %v2762_v33, %v1662_v51  ;;  %v2501_v0 = vadd.f32 %v1657_v59, %v1499_v27  ;;  %v1659_v60 = vpop.f32.mrb[5].mxu0 }
 0x812   : > { %v1667_v49 = vadd.f32 %v2763_v41, %v1663_v52  ;;  %v2502_v47 = vadd.f32 %v1659_v60, %v1499_v27 }
 0x813   : > { %v1670_v19 = vmul.f32 0.2, %v1666_v8  ;;  %v1664_v22 = vmul.f32 0.2, %v2501_v0 }
 0x814   : > { %v1671_v54 = vmul.f32 0.2, %v1667_v49  ;;  %v1665_v14 = vmul.f32 0.2, %v2502_v47 }
 0x815   : > { %v1678_v24 = vadd.f32 %v1674_v5, %v1670_v19  ;;  %v1668_v31 = vadd.f32 %v2764_v25, %v1664_v22 }
 0x816   : > { %v1679_v10 = vadd.f32 %v1675_v61, %v1671_v54  ;;  %v1669_v18 = vadd.f32 %v2765_v46, %v1665_v14 }
 0x817   : > { %1682 = vst [vmem:[%s433_s16] sm:$0xff] %v1678_v24  ;;  %v1672_v37 = vmul.f32 0.2, %v1668_v31 }
 0x818   : > { %1683 = vst [vmem:[%s433_s16 + $0x8] sm:$0xff] %v1679_v10  ;;  %v1673_v11 = vmul.f32 0.2, %v1669_v18 }
 0x819   : > { %v1680_v50 = vadd.f32 %v1676_v40, %v1672_v37 }
 0x81a   : > { %v1681_v44 = vadd.f32 %v1677_v26, %v1673_v11 }
 0x81b   : > { %1684 = vst [vmem:[%s433_s16 + $0x10] sm:$0xff] %v1680_v50 }
 0x81c   : > { %1685 = vst [vmem:[%s433_s16 + $0x18] sm:$0xff] %v1681_v44 }
 0x81d PF: > { %s22_s21 = sadd.s32 1, %s2772_s21  }
 0x81e   : > { %p19_p4 = scmp.ge.s32.totalorder %s22_s21, 4  }
 0x820   :  { %21 = sbr.rel (!%p19_p4) target bundleno = 1 (0x1), region = 101 }

// kernel: post_processing_forward.15
= control target key start
LH: loop header
LB: loop body
LE: loop exit
PB: predicated region body
PF: predicated region fallthrough
CT: control target
= control target key end

     0   :  { %s773_s12 = smov 0   ;;  %s887_s0 = inlined_call_operand.vmem [shape: f32[2,16,256], index: 0, kind: input, shape index: {}]   ;;  %s888_s1 = inlined_call_operand.vmem [shape: f32[3,144], index: 1, kind: input, shape index: {}]   ;;  %s889_s2 = inlined_call_operand.vmem [shape: f32[3,1], index: 2, kind: input, shape index: {}]   ;;  %s890_s3 = inlined_call_operand.vmem [shape: f32[2,3,256], index: 3, kind: output, shape index: {}]  }
   0x1 LB: > { %s549_s13 = sadd.s32 4294967295, %s741_s12   ;;  %p553_p0 = scmp.ge.s32.totalorder %s741_s12, 1  ;;  %s741_s12 = sphi %s773_s12, %s13_s12  }
   0x2   : > { %p137_p1 = scmp.lt.s32.totalorder %s741_s12, 3 }
   0x4   : > { %p138_p2 = pnand %p553_p0, %p137_p1 }
   0x5   : > { %p161_p3 = scmp.lt.s32.totalorder (!%p138_p2), %s549_s13, 1  ;;  %v743_v0 = vmov (!%p138_p2), 0.0   ;;  %s744_s14 = smov (!%p138_p2), 17   ;;  %v811_v11 = vld [vmem:[%s888_s1] sm:$0x77] (!%p138_p2)  ;;  %vm381_vm0 = vcmask (!%p138_p2), 130048   ;;  %v177_v15 = vlaneseq (!%p138_p2) }
   0x6   : > { %141 = sbr.rel (%p138_p2) target bundleno = 405 (0x195), region = 32  ;;  %221 = vrot.lane.b32.xlu1 (!%p138_p2), %v743_v0, %s744_s14  ;;  %s745_s19 = smov (!%p138_p2), 16   ;;  %v415_v12 = vcombine.high (!%p138_p2), %v811_v11, %v811_v11  ;;  %v752_v13 = vmov (!%p138_p2), 0   ;;  %v176_v14 = vld [vmem:[%s889_s2] sm:$0x7] (!%p138_p2)  ;;  %vm231_vm2 = vcmask (!%p138_p2), 138240  }
   0x7   : > { %s746_s20 = smov (!%p138_p2), 15   ;;  %s747_s21 = smov (!%p138_p2), 1   ;;  %733 = vset.pattern.permute.xlu0 (!%p138_p2), %v752_v13  ;;  %v178_v16 = vand.u32 (!%p138_p2), 127, %v177_v15  ;;  %vm266_vm6 = vcmask (!%p138_p2), 121856   ;;  %vm289_vm11 = vcmask (!%p138_p2), 7168   ;;  %vm312_vm12 = vcmask (!%p138_p2), 1039360  }
   0x8   : > { %s748_s22 = smov (!%p138_p2), 127   ;;  %s749_s23 = smov (!%p138_p2), 113   ;;  %582 = vmatprep.mubr.msk.f32.mxu0 (!%p138_p2), %vm381_vm0, %v415_v12  ;;  %vm335_vm13 = vcmask (!%p138_p2), 924672   ;;  %vm400_vm14 = vcmask (!%p138_p2), 916480   ;;  %vm358_vm15 = vcmask (!%p138_p2), 908288  }
   0x9   : > { %s750_s24 = smov (!%p138_p2), 112   ;;  %s751_s25 = smov (!%p138_p2), 111   ;;  %v179_v17 = vadd.s32 (!%p138_p2), 128, %v178_v16  ;;  %v184_v20 = vand.u32 (!%p138_p2), 15, %v178_v16 }
   0xb   : > { %v191_v19 = vand.u32 (!%p138_p2), 15, %v179_v17  ;;  %v204_v24 = vadd.s32 (!%p138_p2), 4294967295, %v184_v20  ;;  %v244_v50 = vadd.s32 (!%p138_p2), 1, %v184_v20 }
   0xd   : > { %s900_s13 = smov (!%p161_p3, %s549_s13), 1  ;;  %v205_v23 = vadd.s32 4294967295, %v191_v19  ;;  %vm206_vm3 = vcmp.ge.s32.totalorder %v204_v24, 0  ;;  %v245_v33 = vadd.s32 1, %v191_v19  ;;  %vm248_vm8 = vcmp.lt.s32.totalorder %v244_v50, 16 }
   0xe   : > { %s585_s15 = sshll.u32 %s900_s13, 5  ;;  %vm826_vm5 = vmpackc.low %vm206_vm3, %vm206_vm3  ;;  %s586_s30 = sshll.u32 %s900_s13, 3 }
   0xf   : > { %s165_s18 = scalar_lea.vmem %s887_s0, %s585_s15  ;;  %vm207_vm1 = vcmp.ge.s32.totalorder %v205_v23, 0  ;;  %vm249_vm7 = vcmp.lt.s32.totalorder %v245_v33, 16  ;;  %vm845_vm10 = vmpackc.low %vm248_vm8, %vm248_vm8  ;;  %s170_s6 = scalar_lea.vmem %s890_s3, %s586_s30 }
  0x10   : > { %v787_v1 = vld [vmem:[%s165_s18] sm:$0xff]  ;;  %v789_v2 = vld [vmem:[%s165_s18 + $0x8] sm:$0xff]  ;;  %v791_v3 = vld [vmem:[%s165_s18 + $0x10] sm:$0xff] }
  0x11   : > { %v653_v4 = vpack.i.bf16 %v789_v2, %v787_v1  ;;  %v795_v5 = vld [vmem:[%s165_s18 + $0x18] sm:$0xff]  ;;  %v611_v8 = vpack.c.bf16 %v791_v3, %v787_v1  ;;  %v693_v10 = vpack.i.bf16 %v743_v0, %v789_v2  ;;  %vm821_vm4 = vmpackc.low %vm207_vm1, %vm207_vm1 }
  0x12   : > { %v658_v6 = vpack.i.bf16 %v795_v5, %v791_v3  ;;  %v609_v7 = vpack.c.bf16 %v795_v5, %v789_v2  ;;  %v698_v9 = vpack.i.bf16 %v787_v1, %v795_v5  ;;  %vm839_vm9 = vmpackc.low %vm249_vm7, %vm249_vm7 }
  0x13   : > { %654 = vrot.lane.b32.xlu0 %v653_v4, %s744_s14  ;;  %664 = vrot.lane.b32.xlu1 %v653_v4, %s745_s19 }
  0x17   : > { %659 = vrot.lane.b32.xlu0 %v658_v6, %s744_s14  ;;  %371 = vrot.lane.b32.xlu1 %v743_v0, %s745_s19 }
  0x1b   : > { %669 = vrot.lane.b32.xlu0 %v658_v6, %s745_s19  ;;  %679 = vrot.lane.b32.xlu1 %v658_v6, %s746_s20 }
  0x1f   : > { %674 = vrot.lane.b32.xlu0 %v653_v4, %s746_s20  ;;  %684 = vrot.lane.b32.xlu1 %v653_v4, %s747_s21 }
  0x23   : > { %256 = vrot.lane.b32.xlu0 %v743_v0, %s746_s20  ;;  %279 = vrot.lane.b32.xlu1 %v743_v0, %s747_s21 }
  0x27   : > { %689 = vrot.lane.b32.xlu0 %v658_v6, %s747_s21  ;;  %699 = vrot.lane.b32.xlu1 %v698_v9, %s748_s22 }
  0x2b   : > { %694 = vrot.lane.b32.xlu0 %v693_v10, %s748_s22  ;;  %704 = vrot.lane.b32.xlu1 %v693_v10, %s749_s23 }
  0x2f   : > { %308 = vrot.lane.b32.xlu0 %v791_v3, %s748_s22  ;;  %331 = vrot.lane.b32.xlu1 %v791_v3, %s749_s23 }
  0x33   : > { %709 = vrot.lane.b32.xlu0 %v698_v9, %s749_s23  ;;  %719 = vrot.lane.b32.xlu1 %v698_v9, %s750_s24 }
  0x37   : > { %714 = vrot.lane.b32.xlu0 %v693_v10, %s750_s24  ;;  %724 = vrot.lane.b32.xlu1 %v693_v10, %s751_s25 }
  0x3b   : > { %396 = vrot.lane.b32.xlu0 %v791_v3, %s750_s24  ;;  %354 = vrot.lane.b32.xlu1 %v791_v3, %s751_s25 }
  0x3f   : > { %729 = vrot.lane.b32.xlu0 %v698_v9, %s751_s25 }
  0x43   : > { %411 = vperm.xlu0 %733, %v176_v14  }
  0x78   : > { %v222_v18 = vpop.permute.xlu1 %221 }
  0x85   : > { %v655_v21 = vpop.permute.xlu0 %654  ;;  %v665_v22 = vpop.permute.xlu1 %664 }
  0x86   : > { %v657_v25 = vunpack.i.h.bf16 %v655_v21  ;;  %v656_v26 = vunpack.i.l.bf16 %v655_v21  ;;  %v667_v27 = vunpack.i.h.bf16 %v665_v22  ;;  %v666_v28 = vunpack.i.l.bf16 %v665_v22 }
  0x88   : > { %v233_v34 = vsel %vm231_vm2, %v656_v26, %v657_v25  ;;  %v232_v37 = vsel %vm231_vm2, %v222_v18, %v656_v26  ;;  %v383_v45 = vsel %vm381_vm0, %v666_v28, %v667_v27 }
  0x89   : > { %v660_v29 = vpop.permute.xlu0 %659  ;;  %v372_v30 = vpop.permute.xlu1 %371 }
  0x8a   : > { %v662_v31 = vunpack.i.h.bf16 %v660_v29  ;;  %v661_v32 = vunpack.i.l.bf16 %v660_v29  ;;  %v382_v39 = vsel %vm381_vm0, %v372_v30, %v666_v28 }
  0x8c   : > { %v235_v35 = vsel %vm231_vm2, %v661_v32, %v662_v31  ;;  %v234_v38 = vsel %vm231_vm2, %v222_v18, %v661_v32 }
  0x8d   : > { %v670_v40 = vpop.permute.xlu0 %669  ;;  %v587_v41 = vpack.c.bf16 %v235_v35, %v233_v34  ;;  %v590_v42 = vpack.c.bf16 %v234_v38, %v232_v37  ;;  %v680_v44 = vpop.permute.xlu1 %679 }
  0x8e   : > { %v672_v46 = vunpack.i.h.bf16 %v670_v40  ;;  %v671_v47 = vunpack.i.l.bf16 %v670_v40  ;;  %v682_v48 = vunpack.i.h.bf16 %v680_v44  ;;  %v681_v49 = vunpack.i.l.bf16 %v680_v44 }
  0x8f   : > { %589 = vmatprep.subr.msk.bf16.mxu0 %vm821_vm4, %v587_v41 }
  0x90   : > { %592 = vmatpush1.bf16.msk.msra.mxu0 %vm826_vm5, %v590_v42  ;;  %v385_v51 = vsel %vm381_vm0, %v671_v47, %v672_v46  ;;  %v384_v52 = vsel %vm381_vm0, %v372_v30, %v671_v47  ;;  %v270_v59 = vsel %vm266_vm6, %v681_v49, %v682_v48 }
  0x91   : > { %v675_v53 = vpop.permute.xlu0 %674  ;;  %v593_v54 = vpack.c.bf16 %v385_v51, %v383_v45  ;;  %v595_v55 = vpack.c.bf16 %v384_v52, %v382_v39  ;;  %v685_v56 = vpop.permute.xlu1 %684 }
  0x92   : > { %v677_v57 = vunpack.i.h.bf16 %v675_v53  ;;  %v676_v58 = vunpack.i.l.bf16 %v675_v53  ;;  %v687_v4 = vunpack.i.h.bf16 %v685_v56  ;;  %v686_v6 = vunpack.i.l.bf16 %v685_v56 }
  0x93   : > { %594 = vmatprep.subr.bf16.mxu0 %v593_v54 }
  0x94   : > { %596 = vmatpush1.bf16.msra.mxu0 %v595_v55  ;;  %v268_v60 = vsel %vm266_vm6, %v676_v58, %v677_v57  ;;  %v291_v19 = vsel %vm289_vm11, %v686_v6, %v687_v4 }
  0x95   : > { %v257_v62 = vpop.permute.xlu0 %256  ;;  %v597_v63 = vpack.c.bf16 %v270_v59, %v268_v60  ;;  %v280_v0 = vpop.permute.xlu1 %279 }
  0x96   : > { %v267_v9 = vsel %vm266_vm6, %v257_v62, %v676_v58  ;;  %v269_v10 = vsel %vm266_vm6, %v257_v62, %v681_v49  ;;  %v290_v16 = vsel %vm289_vm11, %v280_v0, %v686_v6 }
  0x97   : > { %v600_v13 = vpack.c.bf16 %v269_v10, %v267_v9  ;;  %599 = vmatprep.subr.msk.bf16.mxu0 %vm839_vm9, %v597_v63 }
  0x99   : > { %v690_v14 = vpop.permute.xlu0 %689  ;;  %602 = vmatpush1.bf16.msk.msra.mxu0 %vm845_vm10, %v600_v13  ;;  %v700_v15 = vpop.permute.xlu1 %699 }
  0x9a   : > { %v692_v17 = vunpack.i.h.bf16 %v690_v14  ;;  %v691_v18 = vunpack.i.l.bf16 %v690_v14  ;;  %v701_v22 = vunpack.i.l.bf16 %v700_v15  ;;  %v702_v31 = vunpack.i.h.bf16 %v700_v15 }
  0x9c   : > { %v292_v20 = vsel %vm289_vm11, %v280_v0, %v691_v18  ;;  %v293_v21 = vsel %vm289_vm11, %v691_v18, %v692_v17 }
  0x9d   : > { %v606_v23 = vpack.c.bf16 %v292_v20, %v290_v16  ;;  %v695_v24 = vpop.permute.xlu0 %694  ;;  %v603_v25 = vpack.c.bf16 %v293_v21, %v291_v19  ;;  %v705_v26 = vpop.permute.xlu1 %704 }
  0x9e   : > { %v697_v27 = vunpack.i.h.bf16 %v695_v24  ;;  %v696_v28 = vunpack.i.l.bf16 %v695_v24  ;;  %v707_v34 = vunpack.i.h.bf16 %v705_v26  ;;  %v706_v35 = vunpack.i.l.bf16 %v705_v26 }
  0x9f   : > { %605 = vmatprep.subr.msk.bf16.mxu0 %vm821_vm4, %v603_v25 }
  0xa0   : > { %608 = vmatpush1.bf16.msk.msra.mxu0 %vm826_vm5, %v606_v23  ;;  %v314_v29 = vsel %vm312_vm12, %v696_v28, %v697_v27  ;;  %v316_v30 = vsel %vm312_vm12, %v701_v22, %v697_v27  ;;  %v313_v39 = vsel %vm312_vm12, %v702_v31, %v696_v28  ;;  %v337_v2 = vsel %vm335_vm13, %v706_v35, %v707_v34 }
  0xa1   : > { %v309_v32 = vpop.permute.xlu0 %308  ;;  %610 = vmatprep.subr.bf16.mxu0 %v609_v7  ;;  %v332_v33 = vpop.permute.xlu1 %331  ;;  %v613_v38 = vpack.c.bf16 %v316_v30, %v314_v29 }
  0xa2   : > { %v315_v37 = vsel %vm312_vm12, %v309_v32, %v701_v22 }
  0xa3   : > { %v616_v5 = vpack.c.bf16 %v315_v37, %v313_v39 }
  0xa4   : > { %612 = vmatpush1.bf16.msra.mxu0 %v611_v8 }
  0xa5   : > { %v710_v40 = vpop.permute.xlu0 %709  ;;  %615 = vmatprep.subr.msk.bf16.mxu0 %vm839_vm9, %v613_v38  ;;  %v720_v41 = vpop.permute.xlu1 %719 }
  0xa6   : > { %v712_v7 = vunpack.i.h.bf16 %v710_v40  ;;  %v711_v42 = vunpack.i.l.bf16 %v710_v40  ;;  %v721_v47 = vunpack.i.l.bf16 %v720_v41  ;;  %v722_v48 = vunpack.i.h.bf16 %v720_v41 }
  0xa8   : > { %v336_v44 = vsel %vm335_vm13, %v712_v7, %v706_v35  ;;  %v338_v45 = vsel %vm335_vm13, %v332_v33, %v711_v42  ;;  %v339_v46 = vsel %vm335_vm13, %v711_v42, %v707_v34  ;;  %618 = vmatpush1.bf16.msk.msra.mxu0 %vm845_vm10, %v616_v5 }
  0xa9   : > { %v619_v1 = vpack.c.bf16 %v339_v46, %v337_v2  ;;  %v622_v3 = vpack.c.bf16 %v338_v45, %v336_v44  ;;  %v715_v8 = vpop.permute.xlu0 %714  ;;  %v725_v51 = vpop.permute.xlu1 %724 }
  0xaa   : > { %v717_v49 = vunpack.i.h.bf16 %v715_v8  ;;  %v716_v50 = vunpack.i.l.bf16 %v715_v8  ;;  %v727_v58 = vunpack.i.h.bf16 %v725_v51  ;;  %v726_v59 = vunpack.i.l.bf16 %v725_v51 }
  0xab   : > { %621 = vmatprep.subr.msk.bf16.mxu0 %vm821_vm4, %v619_v1 }
  0xac   : > { %624 = vmatpush1.bf16.msk.msra.mxu0 %vm826_vm5, %v622_v3  ;;  %v402_v52 = vsel %vm400_vm14, %v716_v50, %v717_v49  ;;  %v404_v53 = vsel %vm400_vm14, %v721_v47, %v717_v49  ;;  %v401_v56 = vsel %vm400_vm14, %v722_v48, %v716_v50  ;;  %v360_v4 = vsel %vm358_vm15, %v726_v59, %v727_v58 }
  0xad   : > { %v397_v54 = vpop.permute.xlu0 %396  ;;  %v625_v55 = vpack.c.bf16 %v404_v53, %v402_v52  ;;  %v355_v36 = vpop.permute.xlu1 %354 }
  0xae   : > { %v403_v57 = vsel %vm400_vm14, %v397_v54, %v721_v47 }
  0xaf   : > { %v627_v60 = vpack.c.bf16 %v403_v57, %v401_v56  ;;  %626 = vmatprep.subr.bf16.mxu0 %v625_v55 }
  0xb1   : > { %v730_v62 = vpop.permute.xlu0 %729  ;;  %628 = vmatpush1.bf16.msra.mxu0 %v627_v60 }
  0xb2   : > { %v732_v63 = vunpack.i.h.bf16 %v730_v62  ;;  %v731_v0 = vunpack.i.l.bf16 %v730_v62 }
  0xb4   : > { %v359_v43 = vsel %vm358_vm15, %v732_v63, %v726_v59  ;;  %v361_v6 = vsel %vm358_vm15, %v355_v36, %v731_v0  ;;  %v362_v9 = vsel %vm358_vm15, %v731_v0, %v727_v58 }
  0xb5   : > { %v632_v10 = vpack.c.bf16 %v361_v6, %v359_v43  ;;  %v629_v13 = vpack.c.bf16 %v362_v9, %v360_v4 }
  0xb7   : > { %631 = vmatprep.subr.msk.bf16.mxu0 %vm839_vm9, %v629_v13 }
  0xb8   : > { %634 = vmatpush1.bf16.msk.msra.mxu0 %vm845_vm10, %v632_v10 }
  0xbb   : > { %483 = vmatmul.mubr.f32.vlgmr.msra.gmra.mrb[0].mxu0 %v811_v11 }
  0xc2   : > { %v412_v14 = vpop.permute.xlu0 %411 }
 0x18e   : > { %v484_v15 = vpop.f32.mrb[0].mxu0 }
 0x18f   : > { %v485_v16 = vadd.f32 %v484_v15, %v412_v14  ;;  %v486_v17 = vpop.f32.mrb[1].mxu0 }
 0x190   : > { %v487_v18 = vadd.f32 %v486_v17, %v412_v14 }
 0x192   : > { %v491_v19 = vcombine.low %v485_v16, %v487_v18 }
 0x194   : > { %493 = vst [vmem:[%s170_s6] sm:$0x77] %v491_v19 }
 0x195 PF: > { %s13_s12 = sadd.s32 1, %s741_s12  }
 0x196   : > { %p10_p4 = scmp.ge.s32.totalorder %s13_s12, 4  }
 0x198   :  { %12 = sbr.rel (!%p10_p4) target bundleno = 1 (0x1), region = 62 }

// kernel: post_processing_forward.12
= control target key start
LH: loop header
LB: loop body
LE: loop exit
PB: predicated region body
PF: predicated region fallthrough
CT: control target
= control target key end

     0   :  { %s820_s12 = smov 0   ;;  %s952_s0 = inlined_call_operand.vmem [shape: f32[2,16,256], index: 0, kind: input, shape index: {}]   ;;  %s953_s1 = inlined_call_operand.vmem [shape: f32[16,144], index: 1, kind: input, shape index: {}]   ;;  %s954_s2 = inlined_call_operand.vmem [shape: f32[16,1], index: 2, kind: input, shape index: {}]   ;;  %s955_s3 = inlined_call_operand.vmem [shape: f32[2,16,256], index: 3, kind: output, shape index: {}]  }
   0x1 LB: > { %s577_s13 = sadd.s32 4294967295, %s788_s12   ;;  %p581_p0 = scmp.ge.s32.totalorder %s788_s12, 1  ;;  %s788_s12 = sphi %s820_s12, %s13_s12  }
   0x2   : > { %p137_p1 = scmp.lt.s32.totalorder %s788_s12, 3 }
   0x4   : > { %p138_p2 = pnand %p581_p0, %p137_p1 }
   0x5   : > { %p161_p3 = scmp.lt.s32.totalorder (!%p138_p2), %s577_s13, 1  ;;  %v790_v0 = vmov (!%p138_p2), 0.0   ;;  %s791_s14 = smov (!%p138_p2), 17   ;;  %vm385_vm0 = vcmask (!%p138_p2), 130048   ;;  %v176_v11 = vld [vmem:[%s953_s1 + $0x8] sm:$0xff] (!%p138_p2)  ;;  %v178_v12 = vld [vmem:[%s953_s1 + $0x18] sm:$0xff] (!%p138_p2)  ;;  %v181_v16 = vlaneseq (!%p138_p2) }
   0x6   : > { %141 = sbr.rel (%p138_p2) target bundleno = 406 (0x196), region = 32  ;;  %225 = vrot.lane.b32.xlu1 (!%p138_p2), %v790_v0, %s791_s14  ;;  %s792_s19 = smov (!%p138_p2), 16   ;;  %610 = vmatprep.mubr.msk.f32.mxu0 (!%p138_p2), %vm385_vm0, %v176_v11  ;;  %v799_v13 = vmov (!%p138_p2), 0   ;;  %v180_v14 = vld [vmem:[%s954_s2 + $0x8] sm:$0xff] (!%p138_p2)  ;;  %v179_v15 = vld [vmem:[%s954_s2] sm:$0xff] (!%p138_p2)  ;;  %vm235_vm2 = vcmask (!%p138_p2), 138240  }
   0x7   : > { %s793_s20 = smov (!%p138_p2), 15   ;;  %s794_s21 = smov (!%p138_p2), 1   ;;  %611 = vmatprep.mubr.msk.f32.mxu1 (!%p138_p2), %vm385_vm0, %v178_v12  ;;  %781 = vset.pattern.permute.xlu1 (!%p138_p2), %v799_v13  ;;  %v182_v17 = vand.u32 (!%p138_p2), 127, %v181_v16  ;;  %vm270_vm6 = vcmask (!%p138_p2), 121856   ;;  %vm293_vm11 = vcmask (!%p138_p2), 7168   ;;  %vm316_vm12 = vcmask (!%p138_p2), 1039360  }
   0x8   : > { %s795_s22 = smov (!%p138_p2), 127   ;;  %s796_s23 = smov (!%p138_p2), 113   ;;  %780 = vset.pattern.permute.xlu0 (!%p138_p2), %v799_v13  ;;  %vm339_vm13 = vcmask (!%p138_p2), 924672   ;;  %vm404_vm14 = vcmask (!%p138_p2), 916480   ;;  %vm362_vm15 = vcmask (!%p138_p2), 908288  }
   0x9   : > { %s797_s24 = smov (!%p138_p2), 112   ;;  %s798_s25 = smov (!%p138_p2), 111   ;;  %v183_v18 = vadd.s32 (!%p138_p2), 128, %v182_v17  ;;  %v188_v21 = vand.u32 (!%p138_p2), 15, %v182_v17 }
   0xb   : > { %v195_v20 = vand.u32 (!%p138_p2), 15, %v183_v18  ;;  %v208_v25 = vadd.s32 (!%p138_p2), 4294967295, %v188_v21  ;;  %v248_v51 = vadd.s32 (!%p138_p2), 1, %v188_v21 }
   0xd   : > { %s965_s13 = smov (!%p161_p3, %s577_s13), 1  ;;  %v209_v24 = vadd.s32 4294967295, %v195_v20  ;;  %vm210_vm3 = vcmp.ge.s32.totalorder %v208_v25, 0  ;;  %v249_v34 = vadd.s32 1, %v195_v20  ;;  %vm252_vm8 = vcmp.lt.s32.totalorder %v248_v51, 16 }
   0xe   : > { %s614_s15 = sshll.u32 %s965_s13, 5  ;;  %vm859_vm5 = vmpackc.low %vm210_vm3, %vm210_vm3 }
   0xf   : > { %s165_s18 = scalar_lea.vmem %s952_s0, %s614_s15  ;;  %vm211_vm1 = vcmp.ge.s32.totalorder %v209_v24, 0  ;;  %vm253_vm7 = vcmp.lt.s32.totalorder %v249_v34, 16  ;;  %vm882_vm10 = vmpackc.low %vm252_vm8, %vm252_vm8  ;;  %s170_s16 = scalar_lea.vmem %s955_s3, %s614_s15 }
  0x10   : > { %v171_v1 = vld [vmem:[%s165_s18] sm:$0xff]  ;;  %v172_v2 = vld [vmem:[%s165_s18 + $0x8] sm:$0xff]  ;;  %v173_v3 = vld [vmem:[%s165_s18 + $0x10] sm:$0xff] }
  0x11   : > { %v700_v4 = vpack.i.bf16 %v172_v2, %v171_v1  ;;  %v174_v5 = vld [vmem:[%s165_s18 + $0x18] sm:$0xff]  ;;  %v838_v8 = vpack.c.bf16 %v173_v3, %v171_v1  ;;  %v740_v10 = vpack.i.bf16 %v790_v0, %v172_v2  ;;  %vm854_vm4 = vmpackc.low %vm211_vm1, %vm211_vm1 }
  0x12   : > { %v705_v6 = vpack.i.bf16 %v174_v5, %v173_v3  ;;  %v836_v7 = vpack.c.bf16 %v174_v5, %v172_v2  ;;  %v745_v9 = vpack.i.bf16 %v171_v1, %v174_v5  ;;  %vm876_vm9 = vmpackc.low %vm253_vm7, %vm253_vm7 }
  0x13   : > { %701 = vrot.lane.b32.xlu0 %v700_v4, %s791_s14  ;;  %711 = vrot.lane.b32.xlu1 %v700_v4, %s792_s19 }
  0x17   : > { %706 = vrot.lane.b32.xlu0 %v705_v6, %s791_s14  ;;  %375 = vrot.lane.b32.xlu1 %v790_v0, %s792_s19 }
  0x1b   : > { %716 = vrot.lane.b32.xlu0 %v705_v6, %s792_s19  ;;  %726 = vrot.lane.b32.xlu1 %v705_v6, %s793_s20 }
  0x1f   : > { %721 = vrot.lane.b32.xlu0 %v700_v4, %s793_s20  ;;  %731 = vrot.lane.b32.xlu1 %v700_v4, %s794_s21 }
  0x23   : > { %260 = vrot.lane.b32.xlu0 %v790_v0, %s793_s20  ;;  %283 = vrot.lane.b32.xlu1 %v790_v0, %s794_s21 }
  0x27   : > { %736 = vrot.lane.b32.xlu0 %v705_v6, %s794_s21  ;;  %746 = vrot.lane.b32.xlu1 %v745_v9, %s795_s22 }
  0x2b   : > { %741 = vrot.lane.b32.xlu0 %v740_v10, %s795_s22  ;;  %751 = vrot.lane.b32.xlu1 %v740_v10, %s796_s23 }
  0x2f   : > { %312 = vrot.lane.b32.xlu0 %v173_v3, %s795_s22  ;;  %335 = vrot.lane.b32.xlu1 %v173_v3, %s796_s23 }
  0x33   : > { %756 = vrot.lane.b32.xlu0 %v745_v9, %s796_s23  ;;  %766 = vrot.lane.b32.xlu1 %v745_v9, %s797_s24 }
  0x37   : > { %761 = vrot.lane.b32.xlu0 %v740_v10, %s797_s24  ;;  %771 = vrot.lane.b32.xlu1 %v740_v10, %s798_s25 }
  0x3b   : > { %400 = vrot.lane.b32.xlu0 %v173_v3, %s797_s24  ;;  %358 = vrot.lane.b32.xlu1 %v173_v3, %s798_s25 }
  0x3f   : > { %776 = vrot.lane.b32.xlu0 %v745_v9, %s798_s25  ;;  %420 = vperm.xlu1 %781, %v180_v14  }
  0x43   : > { %415 = vperm.xlu0 %780, %v179_v15  }
  0x78   : > { %v226_v19 = vpop.permute.xlu1 %225 }
  0x85   : > { %v702_v22 = vpop.permute.xlu0 %701  ;;  %v712_v23 = vpop.permute.xlu1 %711 }
  0x86   : > { %v704_v26 = vunpack.i.h.bf16 %v702_v22  ;;  %v703_v27 = vunpack.i.l.bf16 %v702_v22  ;;  %v714_v28 = vunpack.i.h.bf16 %v712_v23  ;;  %v713_v29 = vunpack.i.l.bf16 %v712_v23 }
  0x88   : > { %v237_v35 = vsel %vm235_vm2, %v703_v27, %v704_v26  ;;  %v236_v38 = vsel %vm235_vm2, %v226_v19, %v703_v27  ;;  %v387_v46 = vsel %vm385_vm0, %v713_v29, %v714_v28 }
  0x89   : > { %v707_v30 = vpop.permute.xlu0 %706  ;;  %v376_v31 = vpop.permute.xlu1 %375 }
  0x8a   : > { %v709_v32 = vunpack.i.h.bf16 %v707_v30  ;;  %v708_v33 = vunpack.i.l.bf16 %v707_v30  ;;  %v386_v40 = vsel %vm385_vm0, %v376_v31, %v713_v29 }
  0x8c   : > { %v239_v36 = vsel %vm235_vm2, %v708_v33, %v709_v32  ;;  %v238_v39 = vsel %vm235_vm2, %v226_v19, %v708_v33 }
  0x8d   : > { %v717_v41 = vpop.permute.xlu0 %716  ;;  %v616_v42 = vpack.c.bf16 %v239_v36, %v237_v35  ;;  %v619_v43 = vpack.c.bf16 %v238_v39, %v236_v38  ;;  %v727_v45 = vpop.permute.xlu1 %726 }
  0x8e   : > { %v719_v47 = vunpack.i.h.bf16 %v717_v41  ;;  %v718_v48 = vunpack.i.l.bf16 %v717_v41  ;;  %v729_v49 = vunpack.i.h.bf16 %v727_v45  ;;  %v728_v50 = vunpack.i.l.bf16 %v727_v45 }
  0x8f   : > { %618 = vmatprep.subr.msk.bf16.mxu0 %vm854_vm4, %v616_v42  ;;  %664 = vmatprep.subr.msk.bf16.mxu1 %vm854_vm4, %v616_v42 }
  0x90   : > { %621 = vmatpush1.bf16.msk.msra.mxu0 %vm859_vm5, %v619_v43  ;;  %673 = vmatpush1.bf16.msk.msra.mxu1 %vm859_vm5, %v619_v43  ;;  %v389_v52 = vsel %vm385_vm0, %v718_v48, %v719_v47  ;;  %v388_v53 = vsel %vm385_vm0, %v376_v31, %v718_v48  ;;  %v274_v60 = vsel %vm270_vm6, %v728_v50, %v729_v49 }
  0x91   : > { %v722_v54 = vpop.permute.xlu0 %721  ;;  %v622_v55 = vpack.c.bf16 %v389_v52, %v387_v46  ;;  %v624_v56 = vpack.c.bf16 %v388_v53, %v386_v40  ;;  %v732_v57 = vpop.permute.xlu1 %731 }
  0x92   : > { %v724_v58 = vunpack.i.h.bf16 %v722_v54  ;;  %v723_v59 = vunpack.i.l.bf16 %v722_v54  ;;  %v734_v2 = vunpack.i.h.bf16 %v732_v57  ;;  %v733_v3 = vunpack.i.l.bf16 %v732_v57 }
  0x93   : > { %623 = vmatprep.subr.bf16.mxu0 %v622_v55  ;;  %665 = vmatprep.subr.bf16.mxu1 %v622_v55 }
  0x94   : > { %625 = vmatpush1.bf16.msra.mxu0 %v624_v56  ;;  %674 = vmatpush1.bf16.msra.mxu1 %v624_v56  ;;  %v272_v61 = vsel %vm270_vm6, %v723_v59, %v724_v58  ;;  %v295_v15 = vsel %vm293_vm11, %v733_v3, %v734_v2 }
  0x95   : > { %v261_v63 = vpop.permute.xlu0 %260  ;;  %v626_v0 = vpack.c.bf16 %v274_v60, %v272_v61  ;;  %v284_v1 = vpop.permute.xlu1 %283 }
  0x96   : > { %v271_v4 = vsel %vm270_vm6, %v261_v63, %v723_v59  ;;  %v273_v5 = vsel %vm270_vm6, %v261_v63, %v728_v50  ;;  %v294_v12 = vsel %vm293_vm11, %v284_v1, %v733_v3 }
  0x97   : > { %v629_v9 = vpack.c.bf16 %v273_v5, %v271_v4  ;;  %628 = vmatprep.subr.msk.bf16.mxu0 %vm876_vm9, %v626_v0  ;;  %666 = vmatprep.subr.msk.bf16.mxu1 %vm876_vm9, %v626_v0 }
  0x99   : > { %v737_v10 = vpop.permute.xlu0 %736  ;;  %631 = vmatpush1.bf16.msk.msra.mxu0 %vm882_vm10, %v629_v9  ;;  %675 = vmatpush1.bf16.msk.msra.mxu1 %vm882_vm10, %v629_v9  ;;  %v747_v11 = vpop.permute.xlu1 %746  ;;  %v175_v9 = vld [vmem:[%s953_s1] sm:$0xff] }
  0x9a   : > { %v739_v13 = vunpack.i.h.bf16 %v737_v10  ;;  %v738_v14 = vunpack.i.l.bf16 %v737_v10  ;;  %v748_v19 = vunpack.i.l.bf16 %v747_v11  ;;  %v749_v26 = vunpack.i.h.bf16 %v747_v11  ;;  %v177_v10 = vld [vmem:[%s953_s1 + $0x10] sm:$0xff] }
  0x9c   : > { %v296_v16 = vsel %vm293_vm11, %v284_v1, %v738_v14  ;;  %v297_v17 = vsel %vm293_vm11, %v738_v14, %v739_v13 }
  0x9d   : > { %v635_v18 = vpack.c.bf16 %v296_v16, %v294_v12  ;;  %v742_v20 = vpop.permute.xlu0 %741  ;;  %v632_v21 = vpack.c.bf16 %v297_v17, %v295_v15  ;;  %v752_v22 = vpop.permute.xlu1 %751 }
  0x9e   : > { %v744_v23 = vunpack.i.h.bf16 %v742_v20  ;;  %v743_v24 = vunpack.i.l.bf16 %v742_v20  ;;  %v754_v30 = vunpack.i.h.bf16 %v752_v22  ;;  %v753_v31 = vunpack.i.l.bf16 %v752_v22 }
  0x9f   : > { %634 = vmatprep.subr.msk.bf16.mxu0 %vm854_vm4, %v632_v21  ;;  %667 = vmatprep.subr.msk.bf16.mxu1 %vm854_vm4, %v632_v21 }
  0xa0   : > { %637 = vmatpush1.bf16.msk.msra.mxu0 %vm859_vm5, %v635_v18  ;;  %676 = vmatpush1.bf16.msk.msra.mxu1 %vm859_vm5, %v635_v18  ;;  %v318_v25 = vsel %vm316_vm12, %v743_v24, %v744_v23  ;;  %v320_v29 = vsel %vm316_vm12, %v748_v19, %v744_v23  ;;  %v317_v34 = vsel %vm316_vm12, %v749_v26, %v743_v24 }
  0xa1   : > { %v313_v27 = vpop.permute.xlu0 %312  ;;  %639 = vmatprep.subr.bf16.mxu0 %v836_v7  ;;  %668 = vmatprep.subr.bf16.mxu1 %v836_v7  ;;  %v336_v28 = vpop.permute.xlu1 %335  ;;  %v642_v33 = vpack.c.bf16 %v320_v29, %v318_v25  ;;  %v341_v36 = vsel %vm339_vm13, %v753_v31, %v754_v30 }
  0xa2   : > { %v319_v32 = vsel %vm316_vm12, %v313_v27, %v748_v19 }
  0xa3   : > { %v645_v38 = vpack.c.bf16 %v319_v32, %v317_v34 }
  0xa4   : > { %641 = vmatpush1.bf16.msra.mxu0 %v838_v8  ;;  %677 = vmatpush1.bf16.msra.mxu1 %v838_v8 }
  0xa5   : > { %v757_v35 = vpop.permute.xlu0 %756  ;;  %644 = vmatprep.subr.msk.bf16.mxu0 %vm876_vm9, %v642_v33  ;;  %669 = vmatprep.subr.msk.bf16.mxu1 %vm876_vm9, %v642_v33  ;;  %v767_v7 = vpop.permute.xlu1 %766 }
  0xa6   : > { %v759_v39 = vunpack.i.h.bf16 %v757_v35  ;;  %v758_v40 = vunpack.i.l.bf16 %v757_v35  ;;  %v768_v43 = vunpack.i.l.bf16 %v767_v7  ;;  %v769_v48 = vunpack.i.h.bf16 %v767_v7 }
  0xa8   : > { %v340_v41 = vsel %vm339_vm13, %v759_v39, %v753_v31  ;;  %v342_v42 = vsel %vm339_vm13, %v336_v28, %v758_v40  ;;  %v343_v8 = vsel %vm339_vm13, %v758_v40, %v754_v30  ;;  %647 = vmatpush1.bf16.msk.msra.mxu0 %vm882_vm10, %v645_v38  ;;  %678 = vmatpush1.bf16.msk.msra.mxu1 %vm882_vm10, %v645_v38 }
  0xa9   : > { %v648_v45 = vpack.c.bf16 %v343_v8, %v341_v36  ;;  %v651_v46 = vpack.c.bf16 %v342_v42, %v340_v41  ;;  %v762_v47 = vpop.permute.xlu0 %761  ;;  %v772_v51 = vpop.permute.xlu1 %771 }
  0xaa   : > { %v764_v49 = vunpack.i.h.bf16 %v762_v47  ;;  %v763_v50 = vunpack.i.l.bf16 %v762_v47  ;;  %v774_v58 = vunpack.i.h.bf16 %v772_v51  ;;  %v773_v59 = vunpack.i.l.bf16 %v772_v51 }
  0xab   : > { %650 = vmatprep.subr.msk.bf16.mxu0 %vm854_vm4, %v648_v45  ;;  %670 = vmatprep.subr.msk.bf16.mxu1 %vm854_vm4, %v648_v45 }
  0xac   : > { %653 = vmatpush1.bf16.msk.msra.mxu0 %vm859_vm5, %v651_v46  ;;  %679 = vmatpush1.bf16.msk.msra.mxu1 %vm859_vm5, %v651_v46  ;;  %v406_v52 = vsel %vm404_vm14, %v763_v50, %v764_v49  ;;  %v408_v53 = vsel %vm404_vm14, %v768_v43, %v764_v49  ;;  %v405_v56 = vsel %vm404_vm14, %v769_v48, %v763_v50 }
  0xad   : > { %v401_v54 = vpop.permute.xlu0 %400  ;;  %v654_v55 = vpack.c.bf16 %v408_v53, %v406_v52  ;;  %v359_v61 = vpop.permute.xlu1 %358  ;;  %v364_v44 = vsel %vm362_vm15, %v773_v59, %v774_v58 }
  0xae   : > { %v407_v57 = vsel %vm404_vm14, %v401_v54, %v768_v43 }
  0xaf   : > { %v656_v60 = vpack.c.bf16 %v407_v57, %v405_v56  ;;  %655 = vmatprep.subr.bf16.mxu0 %v654_v55  ;;  %671 = vmatprep.subr.bf16.mxu1 %v654_v55 }
  0xb1   : > { %v777_v37 = vpop.permute.xlu0 %776  ;;  %657 = vmatpush1.bf16.msra.mxu0 %v656_v60  ;;  %680 = vmatpush1.bf16.msra.mxu1 %v656_v60 }
  0xb2   : > { %v779_v63 = vunpack.i.h.bf16 %v777_v37  ;;  %v778_v0 = vunpack.i.l.bf16 %v777_v37 }
  0xb4   : > { %v363_v1 = vsel %vm362_vm15, %v779_v63, %v773_v59  ;;  %v365_v2 = vsel %vm362_vm15, %v359_v61, %v778_v0  ;;  %v366_v3 = vsel %vm362_vm15, %v778_v0, %v774_v58 }
  0xb5   : > { %v661_v4 = vpack.c.bf16 %v365_v2, %v363_v1  ;;  %v658_v5 = vpack.c.bf16 %v366_v3, %v364_v44 }
  0xb7   : > { %660 = vmatprep.subr.msk.bf16.mxu0 %vm876_vm9, %v658_v5  ;;  %672 = vmatprep.subr.msk.bf16.mxu1 %vm876_vm9, %v658_v5 }
  0xb8   : > { %663 = vmatpush1.bf16.msk.msra.mxu0 %vm882_vm10, %v661_v4  ;;  %681 = vmatpush1.bf16.msk.msra.mxu1 %vm882_vm10, %v661_v4 }
  0xbb   : > { %494 = vmatmul.mubr.f32.vlgmr.msra.gmra.mrb[0].mxu0 %v175_v9  ;;  %500 = vmatmul.mubr.f32.vlgmr.msra.gmra.mrb[0].mxu1 %v177_v10 }
  0xbe   : > { %v421_v11 = vpop.permute.xlu1 %420 }
  0xc2   : > { %v416_v62 = vpop.permute.xlu0 %415 }
 0x18e   : > { %v495_v12 = vpop.f32.mrb[0].mxu0  ;;  %v501_v13 = vpop.f32.mrb[0].mxu1 }
 0x18f   : > { %v496_v14 = vadd.f32 %v495_v12, %v416_v62  ;;  %v502_v15 = vadd.f32 %v501_v13, %v421_v11  ;;  %v497_v16 = vpop.f32.mrb[1].mxu0  ;;  %v503_v6 = vpop.f32.mrb[1].mxu1 }
 0x190   : > { %v498_v17 = vadd.f32 %v497_v16, %v416_v62  ;;  %v504_v18 = vadd.f32 %v503_v6, %v421_v11 }
 0x191   : > { %vm506_vm0 = vcmp.ge.f32.partialorder %v496_v14, 0.0  ;;  %v510_v19 = vmul.f32 0.2, %v496_v14  ;;  %vm508_vm1 = vcmp.ge.f32.partialorder %v502_v15, 0.0  ;;  %v512_v20 = vmul.f32 0.2, %v502_v15 }
 0x192   : > { %vm507_vm2 = vcmp.ge.f32.partialorder %v498_v17, 0.0  ;;  %v511_v21 = vmul.f32 0.2, %v498_v17  ;;  %vm509_vm3 = vcmp.ge.f32.partialorder %v504_v18, 0.0  ;;  %v513_v22 = vmul.f32 0.2, %v504_v18 }
 0x193   : > { %v514_v23 = vsel %vm506_vm0, %v496_v14, %v510_v19  ;;  %v516_v24 = vsel %vm508_vm1, %v502_v15, %v512_v20 }
 0x194   : > { %518 = vst [vmem:[%s170_s16] sm:$0xff] %v514_v23  ;;  %520 = vst [vmem:[%s170_s16 + $0x10] sm:$0xff] %v516_v24  ;;  %v515_v25 = vsel %vm507_vm2, %v498_v17, %v511_v21  ;;  %v517_v26 = vsel %vm509_vm3, %v504_v18, %v513_v22 }
 0x195   : > { %519 = vst [vmem:[%s170_s16 + $0x8] sm:$0xff] %v515_v25  ;;  %521 = vst [vmem:[%s170_s16 + $0x18] sm:$0xff] %v517_v26 }
 0x196 PF: > { %s13_s12 = sadd.s32 1, %s788_s12  }
 0x197   : > { %p10_p4 = scmp.ge.s32.totalorder %s13_s12, 4  }
 0x199   :  { %12 = sbr.rel (!%p10_p4) target bundleno = 1 (0x1), region = 62 }

</bundles_post_ra>
